<compile_context>
chip_gen: v6e
topology: v6e:2x2x1
jax: 0.10.0
libtpu: 0.0.40
codegen_flags: <defaults>
</compile_context>

<pallas_src>
import functools

import jax
import jax.numpy as jnp
from jax.experimental import pallas as pl
from jax.experimental.pallas import tpu as pltpu


# ---------------------------------------------------------------------------
# Fused ResidualDenseBlock kernel (one grid step == one batch sample).
# ---------------------------------------------------------------------------
def _rdb_kernel(xh_ref, xr_ref,
                w1_ref, w2_ref, w3_ref, w4_ref, w5t_ref,
                b1_ref, b2_ref, b3_ref, b4_ref, b5_ref,
                o_ref, bank_ref, *, H, W, nf, gc, rb):
    n_row_blocks = H // rb
    P = rb * W                                  # pixels per row-block

    # Zero the bank (this provides the zero "same"-padding ring), then place x
    # into the interior of channels [0, nf).
    bank_ref[...] = jnp.zeros_like(bank_ref)
    bank_ref[pl.ds(1, H), pl.ds(1, W), pl.ds(0, nf)] = xh_ref[0]

    def im2col(r0, cin):
        # (P, 9*cin) bf16 patch slab for output image rows [r0, r0 + rb).
        taps = []
        for ky in range(3):
            for kx in range(3):
                t = bank_ref[pl.ds(r0 + ky, rb), pl.ds(kx, W), pl.ds(0, cin)]
                taps.append(t.reshape(P, cin).astype(jnp.bfloat16))
        return jnp.concatenate(taps, axis=-1)

    # ---- conv1..conv4: grow-channel convs + LeakyReLU, results written back
    # ---- into the feature bank (dense connections, no HBM traffic).
    grow_ws = (w1_ref, w2_ref, w3_ref, w4_ref)
    grow_bs = (b1_ref, b2_ref, b3_ref, b4_ref)
    for i in range(4):
        cin = nf + i * gc
        for blk in range(n_row_blocks):
            r0 = blk * rb
            slab = im2col(r0, cin)                              # (P, 9*cin) bf16
            acc = jnp.dot(slab, grow_ws[i][...],                # (P, gc) f32
                          preferred_element_type=jnp.float32)
            acc = acc + grow_bs[i][...]                         # (1, gc) bias
            acc = jnp.where(acc >= 0, acc, 0.2 * acc)           # LeakyReLU(0.2)
            bank_ref[pl.ds(1 + r0, rb), pl.ds(1, W), pl.ds(cin, gc)] = (
                acc.reshape(rb, W, gc))

    # ---- conv5 (no activation) in transposed orientation: (nf, P) puts the
    # ---- pixel dim on lanes -> lane-dense store, already NCHW.  Residual
    # ---- `x5*0.2 + x` is fused using the exact f32 NCHW input.
    cin5 = nf + 4 * gc
    w5t = w5t_ref[...]                                          # (nf, 9*cin5) bf16
    b5 = b5_ref[...]                                            # (nf, 1) f32
    for blk in range(n_row_blocks):
        r0 = blk * rb
        slab = im2col(r0, cin5)                                 # (P, 9*cin5) bf16
        acc_t = jax.lax.dot_general(                            # (nf, P) f32
            w5t, slab,
            dimension_numbers=(((1,), (1,)), ((), ())),
            preferred_element_type=jnp.float32)
        acc_t = acc_t + b5
        res = xr_ref[0, :, pl.ds(r0 * W, P)]                    # (nf, P) f32 == x
        out_t = acc_t * 0.2 + res
        o_ref[0, :, pl.ds(r0 * W, P)] = out_t.astype(o_ref.dtype)


# ---------------------------------------------------------------------------
# Public wrapper: NCHW in / NCHW out (matches the PyTorch module).
# ---------------------------------------------------------------------------
def residual_dense_block(x_nchw, params, *, row_block=4):
    N, nf, H, W = x_nchw.shape
    gc = params[0][0].shape[-1]                 # num_grow_ch
    assert H % row_block == 0, "H must be divisible by row_block"

    # Input in two layouts: NCHW-flat (residual + output layout, a free
    # reshape) and NHWC (feature-bank layout, one small input relayout).
    x_res = x_nchw.reshape(N, nf, H * W)
    x_nhwc = jnp.transpose(x_nchw, (0, 2, 3, 1))

    # Weights: HWIO (3,3,cin,cout) -> im2col layout (9*cin, cout), bf16.
    # conv5's weight is pre-transposed to (cout, 9*cin) for the transposed dot.
    wr, br = [], []
    for i, (w, b) in enumerate(params):
        cin, cout = w.shape[2], w.shape[3]
        w2 = w.reshape(9 * cin, cout)
        if i == 4:
            w2 = w2.T
            b2 = b.reshape(cout, 1)
        else:
            b2 = b.reshape(1, cout)
        wr.append(w2.astype(jnp.bfloat16))
        br.append(b2.astype(jnp.float32))

    kernel = functools.partial(_rdb_kernel, H=H, W=W, nf=nf, gc=gc,
                               rb=row_block)

    in_specs = (
        [pl.BlockSpec((1, H, W, nf), lambda n: (n, 0, 0, 0)),     # x (NHWC)
         pl.BlockSpec((1, nf, H * W), lambda n: (n, 0, 0))]       # x (NCHW flat)
        + [pl.BlockSpec(w.shape, lambda n: (0, 0)) for w in wr]
        + [pl.BlockSpec(b.shape, lambda n: (0, 0)) for b in br])

    out_flat = pl.pallas_call(
        kernel,
        out_shape=jax.ShapeDtypeStruct((N, nf, H * W), jnp.float32),
        grid_spec=pltpu.PrefetchScalarGridSpec(
            num_scalar_prefetch=0,
            grid=(N,),
            in_specs=in_specs,
            out_specs=pl.BlockSpec((1, nf, H * W), lambda n: (n, 0, 0)),
            scratch_shapes=[
                pltpu.VMEM((H + 2, W + 2, nf + 4 * gc), jnp.float32)]),
        compiler_params=pltpu.CompilerParams(
            dimension_semantics=("parallel",)),
    )(x_nhwc, x_res, *wr, *br)

    return out_flat.reshape(N, nf, H, W)        # already NCHW -> just reshape


# ---------------------------------------------------------------------------
# Parameter init (deterministic; mirrors kaiming_normal_ * 0.1, bias = 0).
# ---------------------------------------------------------------------------
def init_rdb_params(key, num_feat=16, num_grow_ch=8):
    cins = [num_feat + i * num_grow_ch for i in range(5)]
    couts = [num_grow_ch] * 4 + [num_feat]
    params = []
    for cin, cout in zip(cins, couts):
        key, sub = jax.random.split(key)
        fan_in = cin * 3 * 3
        std = (2.0 / fan_in) ** 0.5             # kaiming_normal_ (a=0)
        w = jax.random.normal(sub, (3, 3, cin, cout), jnp.float32) * std * 0.1
        b = jnp.zeros((cout,), jnp.float32)
        params.append((w, b))
    return params


# ---------------------------------------------------------------------------
# Plain-JAX f32 reference (correctness check only).
# ---------------------------------------------------------------------------
def _ref_conv(x_nhwc, w, b, lrelu):
    y = jax.lax.conv_general_dilated(
        x_nhwc, w, window_strides=(1, 1), padding="SAME",
        dimension_numbers=("NHWC", "HWIO", "NHWC")) + b[None, None, None, :]
    return jnp.where(y >= 0, y, 0.2 * y) if lrelu else y


def _ref_forward(x_nchw, params):
    x = jnp.transpose(x_nchw, (0, 2, 3, 1))
    (w1, b1), (w2, b2), (w3, b3), (w4, b4), (w5, b5) = params
    x1 = _ref_conv(x, w1, b1, True)
    x2 = _ref_conv(jnp.concatenate([x, x1], -1), w2, b2, True)
    x3 = _ref_conv(jnp.concatenate([x, x1, x2], -1), w3, b3, True)
    x4 = _ref_conv(jnp.concatenate([x, x1, x2, x3], -1), w4, b4, True)
    x5 = _ref_conv(jnp.concatenate([x, x1, x2, x3, x4], -1), w5, b5, False)
    return jnp.transpose(x5 * 0.2 + x, (0, 3, 1, 2))


if __name__ == "__main__":
    NUM_FEAT, NUM_GROW = 16, 8
    N, H, W = 2, 16, 16

    key = jax.random.PRNGKey(0)
    key, kx = jax.random.split(key)
    x = jax.random.normal(kx, (N, NUM_FEAT, H, W), jnp.float32)   # NCHW input
    params = init_rdb_params(key, NUM_FEAT, NUM_GROW)

    out = jax.block_until_ready(residual_dense_block(x, params))
    ref = jax.block_until_ready(_ref_forward(x, params))

    assert out.shape == x.shape
    # Matmul operands are bf16 (f32 accumulate/epilogue) -> loosened tolerance.
    assert jnp.allclose(out, ref, atol=2e-2, rtol=2e-2), "mismatch vs reference"

    print("KERNEL_OK")
</pallas_src>

<mosaic_0001>
module attributes {stable_mosaic.version = 11 : i64} {
  func.func @_rdb_kernel(%arg0: i32, %arg1: memref<1x16x16x16xf32, #tpu.memory_space<vmem>>, %arg2: memref<1x16x256xf32, #tpu.memory_space<vmem>>, %arg3: memref<144x8xbf16, #tpu.memory_space<vmem>>, %arg4: memref<216x8xbf16, #tpu.memory_space<vmem>>, %arg5: memref<288x8xbf16, #tpu.memory_space<vmem>>, %arg6: memref<360x8xbf16, #tpu.memory_space<vmem>>, %arg7: memref<16x432xbf16, #tpu.memory_space<vmem>>, %arg8: memref<1x8xf32, #tpu.memory_space<vmem>>, %arg9: memref<1x8xf32, #tpu.memory_space<vmem>>, %arg10: memref<1x8xf32, #tpu.memory_space<vmem>>, %arg11: memref<1x8xf32, #tpu.memory_space<vmem>>, %arg12: memref<16x1xf32, #tpu.memory_space<vmem>>, %arg13: memref<1x16x256xf32, #tpu.memory_space<vmem>>, %arg14: memref<18x18x48xf32, #tpu.memory_space<vmem>>) attributes {dimension_semantics = [#tpu.dimension_semantics<parallel>], iteration_bounds = array<i64: 2>, scalar_prefetch = 0 : i64, scratch_operands = 1 : i64, tpu.core_type = #tpu.core_type<tc>, window_params = [{transform_indices = @transform_0, window_bounds = array<i64: 1, 16, 16, 16>}, {transform_indices = @transform_1, window_bounds = array<i64: 1, 16, 256>}, {pipeline_mode = #tpu.pipeline_mode<synchronous>, transform_indices = @transform_2, window_bounds = array<i64: 144, 8>}, {pipeline_mode = #tpu.pipeline_mode<synchronous>, transform_indices = @transform_3, window_bounds = array<i64: 216, 8>}, {pipeline_mode = #tpu.pipeline_mode<synchronous>, transform_indices = @transform_4, window_bounds = array<i64: 288, 8>}, {pipeline_mode = #tpu.pipeline_mode<synchronous>, transform_indices = @transform_5, window_bounds = array<i64: 360, 8>}, {pipeline_mode = #tpu.pipeline_mode<synchronous>, transform_indices = @transform_6, window_bounds = array<i64: 16, 432>}, {pipeline_mode = #tpu.pipeline_mode<synchronous>, transform_indices = @transform_7, window_bounds = array<i64: 1, 8>}, {pipeline_mode = #tpu.pipeline_mode<synchronous>, transform_indices = @transform_8, window_bounds = array<i64: 1, 8>}, {pipeline_mode = #tpu.pipeline_mode<synchronous>, transform_indices = @transform_9, window_bounds = array<i64: 1, 8>}, {pipeline_mode = #tpu.pipeline_mode<synchronous>, transform_indices = @transform_10, window_bounds = array<i64: 1, 8>}, {pipeline_mode = #tpu.pipeline_mode<synchronous>, transform_indices = @transform_11, window_bounds = array<i64: 16, 1>}, {transform_indices = @transform_12, window_bounds = array<i64: 1, 16, 256>}]} {
    %cst = arith.constant 0.000000e+00 : f32
    %0 = vector.broadcast %cst : f32 to vector<18x18x48xf32>
    %c0 = arith.constant 0 : index
    %c0_0 = arith.constant 0 : index
    %c0_1 = arith.constant 0 : index
    %1 = vector.load %arg14[%c0, %c0_0, %c0_1] : memref<18x18x48xf32, #tpu.memory_space<vmem>>, vector<18x18x48xf32>
    tpu.vector_store %arg14[%c0, %c0_0, %c0_1], %0 {strides = array<i32>} : memref<18x18x48xf32, #tpu.memory_space<vmem>>, vector<18x18x48xf32>,
    %c0_2 = arith.constant 0 : index
    %c0_3 = arith.constant 0 : index
    %c0_4 = arith.constant 0 : index
    %c0_5 = arith.constant 0 : index
    %2 = vector.load %arg1[%c0_2, %c0_3, %c0_4, %c0_5] : memref<1x16x16x16xf32, #tpu.memory_space<vmem>>, vector<1x16x16x16xf32>
    %3 = vector.shape_cast %2 : vector<1x16x16x16xf32> to vector<16x16x16xf32>
    %c1 = arith.constant 1 : index
    %c1_6 = arith.constant 1 : index
    %c0_7 = arith.constant 0 : index
    %4 = vector.load %arg14[%c1, %c1_6, %c0_7] : memref<18x18x48xf32, #tpu.memory_space<vmem>>, vector<16x16x16xf32>
    tpu.vector_store %arg14[%c1, %c1_6, %c0_7], %3 {strides = array<i32>} : memref<18x18x48xf32, #tpu.memory_space<vmem>>, vector<16x16x16xf32>,
    %c0_8 = arith.constant 0 : index
    %c0_9 = arith.constant 0 : index
    %c0_10 = arith.constant 0 : index
    %5 = vector.load %arg14[%c0_8, %c0_9, %c0_10] : memref<18x18x48xf32, #tpu.memory_space<vmem>>, vector<4x16x16xf32>
    %6 = vector.shape_cast %5 : vector<4x16x16xf32> to vector<64x16xf32>
    %7 = arith.truncf %6 : vector<64x16xf32> to vector<64x16xbf16>
    %c0_11 = arith.constant 0 : index
    %c1_12 = arith.constant 1 : index
    %c0_13 = arith.constant 0 : index
    %8 = vector.load %arg14[%c0_11, %c1_12, %c0_13] : memref<18x18x48xf32, #tpu.memory_space<vmem>>, vector<4x16x16xf32>
    %9 = vector.shape_cast %8 : vector<4x16x16xf32> to vector<64x16xf32>
    %10 = arith.truncf %9 : vector<64x16xf32> to vector<64x16xbf16>
    %c0_14 = arith.constant 0 : index
    %c2 = arith.constant 2 : index
    %c0_15 = arith.constant 0 : index
    %11 = vector.load %arg14[%c0_14, %c2, %c0_15] : memref<18x18x48xf32, #tpu.memory_space<vmem>>, vector<4x16x16xf32>
    %12 = vector.shape_cast %11 : vector<4x16x16xf32> to vector<64x16xf32>
    %13 = arith.truncf %12 : vector<64x16xf32> to vector<64x16xbf16>
    %c1_16 = arith.constant 1 : index
    %c0_17 = arith.constant 0 : index
    %c0_18 = arith.constant 0 : index
    %14 = vector.load %arg14[%c1_16, %c0_17, %c0_18] : memref<18x18x48xf32, #tpu.memory_space<vmem>>, vector<4x16x16xf32>
    %15 = vector.shape_cast %14 : vector<4x16x16xf32> to vector<64x16xf32>
    %16 = arith.truncf %15 : vector<64x16xf32> to vector<64x16xbf16>
    %c1_19 = arith.constant 1 : index
    %c1_20 = arith.constant 1 : index
    %c0_21 = arith.constant 0 : index
    %17 = vector.load %arg14[%c1_19, %c1_20, %c0_21] : memref<18x18x48xf32, #tpu.memory_space<vmem>>, vector<4x16x16xf32>
    %18 = vector.shape_cast %17 : vector<4x16x16xf32> to vector<64x16xf32>
    %19 = arith.truncf %18 : vector<64x16xf32> to vector<64x16xbf16>
    %c1_22 = arith.constant 1 : index
    %c2_23 = arith.constant 2 : index
    %c0_24 = arith.constant 0 : index
    %20 = vector.load %arg14[%c1_22, %c2_23, %c0_24] : memref<18x18x48xf32, #tpu.memory_space<vmem>>, vector<4x16x16xf32>
    %21 = vector.shape_cast %20 : vector<4x16x16xf32> to vector<64x16xf32>
    %22 = arith.truncf %21 : vector<64x16xf32> to vector<64x16xbf16>
    %c2_25 = arith.constant 2 : index
    %c0_26 = arith.constant 0 : index
    %c0_27 = arith.constant 0 : index
    %23 = vector.load %arg14[%c2_25, %c0_26, %c0_27] : memref<18x18x48xf32, #tpu.memory_space<vmem>>, vector<4x16x16xf32>
    %24 = vector.shape_cast %23 : vector<4x16x16xf32> to vector<64x16xf32>
    %25 = arith.truncf %24 : vector<64x16xf32> to vector<64x16xbf16>
    %c2_28 = arith.constant 2 : index
    %c1_29 = arith.constant 1 : index
    %c0_30 = arith.constant 0 : index
    %26 = vector.load %arg14[%c2_28, %c1_29, %c0_30] : memref<18x18x48xf32, #tpu.memory_space<vmem>>, vector<4x16x16xf32>
    %27 = vector.shape_cast %26 : vector<4x16x16xf32> to vector<64x16xf32>
    %28 = arith.truncf %27 : vector<64x16xf32> to vector<64x16xbf16>
    %c2_31 = arith.constant 2 : index
    %c2_32 = arith.constant 2 : index
    %c0_33 = arith.constant 0 : index
    %29 = vector.load %arg14[%c2_31, %c2_32, %c0_33] : memref<18x18x48xf32, #tpu.memory_space<vmem>>, vector<4x16x16xf32>
    %30 = vector.shape_cast %29 : vector<4x16x16xf32> to vector<64x16xf32>
    %31 = arith.truncf %30 : vector<64x16xf32> to vector<64x16xbf16>
    %32 = tpu.concatenate %7, %10, %13, %16, %19, %22, %25, %28, %31 in 1 : vector<64x16xbf16>, vector<64x16xbf16>, vector<64x16xbf16>, vector<64x16xbf16>, vector<64x16xbf16>, vector<64x16xbf16>, vector<64x16xbf16>, vector<64x16xbf16>, vector<64x16xbf16> -> vector<64x144xbf16>
    %c0_34 = arith.constant 0 : index
    %c0_35 = arith.constant 0 : index
    %33 = vector.load %arg3[%c0_34, %c0_35] : memref<144x8xbf16, #tpu.memory_space<vmem>>, vector<144x8xbf16>
    %cst_36 = arith.constant dense<0.000000e+00> : vector<64x8xf32>
    %34 = tpu.matmul %32, %33, %cst_36 {dimension_numbers = #tpu.dot_dimension_numbers<[1], [0], [0], [1], [0, 0, 1, 1], [], []>} : vector<64x144xbf16>, vector<144x8xbf16>, vector<64x8xf32> -> vector<64x8xf32>
    %c0_37 = arith.constant 0 : index
    %c0_38 = arith.constant 0 : index
    %35 = vector.load %arg8[%c0_37, %c0_38] : memref<1x8xf32, #tpu.memory_space<vmem>>, vector<1x8xf32>
    %36 = vector.broadcast %35 : vector<1x8xf32> to vector<64x8xf32>
    %37 = arith.addf %34, %36 : vector<64x8xf32>
    %cst_39 = arith.constant 0.000000e+00 : f32
    %38 = vector.broadcast %cst_39 : f32 to vector<64x8xf32>
    %39 = arith.cmpf oge, %37, %38 : vector<64x8xf32>
    %cst_40 = arith.constant 2.000000e-01 : f32
    %40 = vector.broadcast %cst_40 : f32 to vector<64x8xf32>
    %41 = arith.mulf %40, %37 : vector<64x8xf32>
    %42 = arith.select %39, %37, %41 : vector<64x8xi1>, vector<64x8xf32>
    %43 = vector.shape_cast %42 : vector<64x8xf32> to vector<4x16x8xf32>
    %c1_41 = arith.constant 1 : index
    %c1_42 = arith.constant 1 : index
    %c16 = arith.constant 16 : index
    %44 = vector.load %arg14[%c1_41, %c1_42, %c16] : memref<18x18x48xf32, #tpu.memory_space<vmem>>, vector<4x16x8xf32>
    tpu.vector_store %arg14[%c1_41, %c1_42, %c16], %43 {strides = array<i32>} : memref<18x18x48xf32, #tpu.memory_space<vmem>>, vector<4x16x8xf32>,
    %c4 = arith.constant 4 : index
    %c0_43 = arith.constant 0 : index
    %c0_44 = arith.constant 0 : index
    %45 = vector.load %arg14[%c4, %c0_43, %c0_44] : memref<18x18x48xf32, #tpu.memory_space<vmem>>, vector<4x16x16xf32>
    %46 = vector.shape_cast %45 : vector<4x16x16xf32> to vector<64x16xf32>
    %47 = arith.truncf %46 : vector<64x16xf32> to vector<64x16xbf16>
    %c4_45 = arith.constant 4 : index
    %c1_46 = arith.constant 1 : index
    %c0_47 = arith.constant 0 : index
    %48 = vector.load %arg14[%c4_45, %c1_46, %c0_47] : memref<18x18x48xf32, #tpu.memory_space<vmem>>, vector<4x16x16xf32>
    %49 = vector.shape_cast %48 : vector<4x16x16xf32> to vector<64x16xf32>
    %50 = arith.truncf %49 : vector<64x16xf32> to vector<64x16xbf16>
    %c4_48 = arith.constant 4 : index
    %c2_49 = arith.constant 2 : index
    %c0_50 = arith.constant 0 : index
    %51 = vector.load %arg14[%c4_48, %c2_49, %c0_50] : memref<18x18x48xf32, #tpu.memory_space<vmem>>, vector<4x16x16xf32>
    %52 = vector.shape_cast %51 : vector<4x16x16xf32> to vector<64x16xf32>
    %53 = arith.truncf %52 : vector<64x16xf32> to vector<64x16xbf16>
    %c5 = arith.constant 5 : index
    %c0_51 = arith.constant 0 : index
    %c0_52 = arith.constant 0 : index
    %54 = vector.load %arg14[%c5, %c0_51, %c0_52] : memref<18x18x48xf32, #tpu.memory_space<vmem>>, vector<4x16x16xf32>
    %55 = vector.shape_cast %54 : vector<4x16x16xf32> to vector<64x16xf32>
    %56 = arith.truncf %55 : vector<64x16xf32> to vector<64x16xbf16>
    %c5_53 = arith.constant 5 : index
    %c1_54 = arith.constant 1 : index
    %c0_55 = arith.constant 0 : index
    %57 = vector.load %arg14[%c5_53, %c1_54, %c0_55] : memref<18x18x48xf32, #tpu.memory_space<vmem>>, vector<4x16x16xf32>
    %58 = vector.shape_cast %57 : vector<4x16x16xf32> to vector<64x16xf32>
    %59 = arith.truncf %58 : vector<64x16xf32> to vector<64x16xbf16>
    %c5_56 = arith.constant 5 : index
    %c2_57 = arith.constant 2 : index
    %c0_58 = arith.constant 0 : index
    %60 = vector.load %arg14[%c5_56, %c2_57, %c0_58] : memref<18x18x48xf32, #tpu.memory_space<vmem>>, vector<4x16x16xf32>
    %61 = vector.shape_cast %60 : vector<4x16x16xf32> to vector<64x16xf32>
    %62 = arith.truncf %61 : vector<64x16xf32> to vector<64x16xbf16>
    %c6 = arith.constant 6 : index
    %c0_59 = arith.constant 0 : index
    %c0_60 = arith.constant 0 : index
    %63 = vector.load %arg14[%c6, %c0_59, %c0_60] : memref<18x18x48xf32, #tpu.memory_space<vmem>>, vector<4x16x16xf32>
    %64 = vector.shape_cast %63 : vector<4x16x16xf32> to vector<64x16xf32>
    %65 = arith.truncf %64 : vector<64x16xf32> to vector<64x16xbf16>
    %c6_61 = arith.constant 6 : index
    %c1_62 = arith.constant 1 : index
    %c0_63 = arith.constant 0 : index
    %66 = vector.load %arg14[%c6_61, %c1_62, %c0_63] : memref<18x18x48xf32, #tpu.memory_space<vmem>>, vector<4x16x16xf32>
    %67 = vector.shape_cast %66 : vector<4x16x16xf32> to vector<64x16xf32>
    %68 = arith.truncf %67 : vector<64x16xf32> to vector<64x16xbf16>
    %c6_64 = arith.constant 6 : index
    %c2_65 = arith.constant 2 : index
    %c0_66 = arith.constant 0 : index
    %69 = vector.load %arg14[%c6_64, %c2_65, %c0_66] : memref<18x18x48xf32, #tpu.memory_space<vmem>>, vector<4x16x16xf32>
    %70 = vector.shape_cast %69 : vector<4x16x16xf32> to vector<64x16xf32>
    %71 = arith.truncf %70 : vector<64x16xf32> to vector<64x16xbf16>
    %72 = tpu.concatenate %47, %50, %53, %56, %59, %62, %65, %68, %71 in 1 : vector<64x16xbf16>, vector<64x16xbf16>, vector<64x16xbf16>, vector<64x16xbf16>, vector<64x16xbf16>, vector<64x16xbf16>, vector<64x16xbf16>, vector<64x16xbf16>, vector<64x16xbf16> -> vector<64x144xbf16>
    %c0_67 = arith.constant 0 : index
    %c0_68 = arith.constant 0 : index
    %73 = vector.load %arg3[%c0_67, %c0_68] : memref<144x8xbf16, #tpu.memory_space<vmem>>, vector<144x8xbf16>
    %cst_69 = arith.constant dense<0.000000e+00> : vector<64x8xf32>
    %74 = tpu.matmul %72, %73, %cst_69 {dimension_numbers = #tpu.dot_dimension_numbers<[1], [0], [0], [1], [0, 0, 1, 1], [], []>} : vector<64x144xbf16>, vector<144x8xbf16>, vector<64x8xf32> -> vector<64x8xf32>
    %c0_70 = arith.constant 0 : index
    %c0_71 = arith.constant 0 : index
    %75 = vector.load %arg8[%c0_70, %c0_71] : memref<1x8xf32, #tpu.memory_space<vmem>>, vector<1x8xf32>
    %76 = vector.broadcast %75 : vector<1x8xf32> to vector<64x8xf32>
    %77 = arith.addf %74, %76 : vector<64x8xf32>
    %cst_72 = arith.constant 0.000000e+00 : f32
    %78 = vector.broadcast %cst_72 : f32 to vector<64x8xf32>
    %79 = arith.cmpf oge, %77, %78 : vector<64x8xf32>
    %cst_73 = arith.constant 2.000000e-01 : f32
    %80 = vector.broadcast %cst_73 : f32 to vector<64x8xf32>
    %81 = arith.mulf %80, %77 : vector<64x8xf32>
    %82 = arith.select %79, %77, %81 : vector<64x8xi1>, vector<64x8xf32>
    %83 = vector.shape_cast %82 : vector<64x8xf32> to vector<4x16x8xf32>
    %c5_74 = arith.constant 5 : index
    %c1_75 = arith.constant 1 : index
    %c16_76 = arith.constant 16 : index
    %84 = vector.load %arg14[%c5_74, %c1_75, %c16_76] : memref<18x18x48xf32, #tpu.memory_space<vmem>>, vector<4x16x8xf32>
    tpu.vector_store %arg14[%c5_74, %c1_75, %c16_76], %83 {strides = array<i32>} : memref<18x18x48xf32, #tpu.memory_space<vmem>>, vector<4x16x8xf32>,
    %c8 = arith.constant 8 : index
    %c0_77 = arith.constant 0 : index
    %c0_78 = arith.constant 0 : index
    %85 = vector.load %arg14[%c8, %c0_77, %c0_78] : memref<18x18x48xf32, #tpu.memory_space<vmem>>, vector<4x16x16xf32>
    %86 = vector.shape_cast %85 : vector<4x16x16xf32> to vector<64x16xf32>
    %87 = arith.truncf %86 : vector<64x16xf32> to vector<64x16xbf16>
    %c8_79 = arith.constant 8 : index
    %c1_80 = arith.constant 1 : index
    %c0_81 = arith.constant 0 : index
    %88 = vector.load %arg14[%c8_79, %c1_80, %c0_81] : memref<18x18x48xf32, #tpu.memory_space<vmem>>, vector<4x16x16xf32>
    %89 = vector.shape_cast %88 : vector<4x16x16xf32> to vector<64x16xf32>
    %90 = arith.truncf %89 : vector<64x16xf32> to vector<64x16xbf16>
    %c8_82 = arith.constant 8 : index
    %c2_83 = arith.constant 2 : index
    %c0_84 = arith.constant 0 : index
    %91 = vector.load %arg14[%c8_82, %c2_83, %c0_84] : memref<18x18x48xf32, #tpu.memory_space<vmem>>, vector<4x16x16xf32>
    %92 = vector.shape_cast %91 : vector<4x16x16xf32> to vector<64x16xf32>
    %93 = arith.truncf %92 : vector<64x16xf32> to vector<64x16xbf16>
    %c9 = arith.constant 9 : index
    %c0_85 = arith.constant 0 : index
    %c0_86 = arith.constant 0 : index
    %94 = vector.load %arg14[%c9, %c0_85, %c0_86] : memref<18x18x48xf32, #tpu.memory_space<vmem>>, vector<4x16x16xf32>
    %95 = vector.shape_cast %94 : vector<4x16x16xf32> to vector<64x16xf32>
    %96 = arith.truncf %95 : vector<64x16xf32> to vector<64x16xbf16>
    %c9_87 = arith.constant 9 : index
    %c1_88 = arith.constant 1 : index
    %c0_89 = arith.constant 0 : index
    %97 = vector.load %arg14[%c9_87, %c1_88, %c0_89] : memref<18x18x48xf32, #tpu.memory_space<vmem>>, vector<4x16x16xf32>
    %98 = vector.shape_cast %97 : vector<4x16x16xf32> to vector<64x16xf32>
    %99 = arith.truncf %98 : vector<64x16xf32> to vector<64x16xbf16>
    %c9_90 = arith.constant 9 : index
    %c2_91 = arith.constant 2 : index
    %c0_92 = arith.constant 0 : index
    %100 = vector.load %arg14[%c9_90, %c2_91, %c0_92] : memref<18x18x48xf32, #tpu.memory_space<vmem>>, vector<4x16x16xf32>
    %101 = vector.shape_cast %100 : vector<4x16x16xf32> to vector<64x16xf32>
    %102 = arith.truncf %101 : vector<64x16xf32> to vector<64x16xbf16>
    %c10 = arith.constant 10 : index
    %c0_93 = arith.constant 0 : index
    %c0_94 = arith.constant 0 : index
    %103 = vector.load %arg14[%c10, %c0_93, %c0_94] : memref<18x18x48xf32, #tpu.memory_space<vmem>>, vector<4x16x16xf32>
    %104 = vector.shape_cast %103 : vector<4x16x16xf32> to vector<64x16xf32>
    %105 = arith.truncf %104 : vector<64x16xf32> to vector<64x16xbf16>
    %c10_95 = arith.constant 10 : index
    %c1_96 = arith.constant 1 : index
    %c0_97 = arith.constant 0 : index
    %106 = vector.load %arg14[%c10_95, %c1_96, %c0_97] : memref<18x18x48xf32, #tpu.memory_space<vmem>>, vector<4x16x16xf32>
    %107 = vector.shape_cast %106 : vector<4x16x16xf32> to vector<64x16xf32>
    %108 = arith.truncf %107 : vector<64x16xf32> to vector<64x16xbf16>
    %c10_98 = arith.constant 10 : index
    %c2_99 = arith.constant 2 : index
    %c0_100 = arith.constant 0 : index
    %109 = vector.load %arg14[%c10_98, %c2_99, %c0_100] : memref<18x18x48xf32, #tpu.memory_space<vmem>>, vector<4x16x16xf32>
    %110 = vector.shape_cast %109 : vector<4x16x16xf32> to vector<64x16xf32>
    %111 = arith.truncf %110 : vector<64x16xf32> to vector<64x16xbf16>
    %112 = tpu.concatenate %87, %90, %93, %96, %99, %102, %105, %108, %111 in 1 : vector<64x16xbf16>, vector<64x16xbf16>, vector<64x16xbf16>, vector<64x16xbf16>, vector<64x16xbf16>, vector<64x16xbf16>, vector<64x16xbf16>, vector<64x16xbf16>, vector<64x16xbf16> -> vector<64x144xbf16>
    %c0_101 = arith.constant 0 : index
    %c0_102 = arith.constant 0 : index
    %113 = vector.load %arg3[%c0_101, %c0_102] : memref<144x8xbf16, #tpu.memory_space<vmem>>, vector<144x8xbf16>
    %cst_103 = arith.constant dense<0.000000e+00> : vector<64x8xf32>
    %114 = tpu.matmul %112, %113, %cst_103 {dimension_numbers = #tpu.dot_dimension_numbers<[1], [0], [0], [1], [0, 0, 1, 1], [], []>} : vector<64x144xbf16>, vector<144x8xbf16>, vector<64x8xf32> -> vector<64x8xf32>
    %c0_104 = arith.constant 0 : index
    %c0_105 = arith.constant 0 : index
    %115 = vector.load %arg8[%c0_104, %c0_105] : memref<1x8xf32, #tpu.memory_space<vmem>>, vector<1x8xf32>
    %116 = vector.broadcast %115 : vector<1x8xf32> to vector<64x8xf32>
    %117 = arith.addf %114, %116 : vector<64x8xf32>
    %cst_106 = arith.constant 0.000000e+00 : f32
    %118 = vector.broadcast %cst_106 : f32 to vector<64x8xf32>
    %119 = arith.cmpf oge, %117, %118 : vector<64x8xf32>
    %cst_107 = arith.constant 2.000000e-01 : f32
    %120 = vector.broadcast %cst_107 : f32 to vector<64x8xf32>
    %121 = arith.mulf %120, %117 : vector<64x8xf32>
    %122 = arith.select %119, %117, %121 : vector<64x8xi1>, vector<64x8xf32>
    %123 = vector.shape_cast %122 : vector<64x8xf32> to vector<4x16x8xf32>
    %c9_108 = arith.constant 9 : index
    %c1_109 = arith.constant 1 : index
    %c16_110 = arith.constant 16 : index
    %124 = vector.load %arg14[%c9_108, %c1_109, %c16_110] : memref<18x18x48xf32, #tpu.memory_space<vmem>>, vector<4x16x8xf32>
    tpu.vector_store %arg14[%c9_108, %c1_109, %c16_110], %123 {strides = array<i32>} : memref<18x18x48xf32, #tpu.memory_space<vmem>>, vector<4x16x8xf32>,
    %c12 = arith.constant 12 : index
    %c0_111 = arith.constant 0 : index
    %c0_112 = arith.constant 0 : index
    %125 = vector.load %arg14[%c12, %c0_111, %c0_112] : memref<18x18x48xf32, #tpu.memory_space<vmem>>, vector<4x16x16xf32>
    %126 = vector.shape_cast %125 : vector<4x16x16xf32> to vector<64x16xf32>
    %127 = arith.truncf %126 : vector<64x16xf32> to vector<64x16xbf16>
    %c12_113 = arith.constant 12 : index
    %c1_114 = arith.constant 1 : index
    %c0_115 = arith.constant 0 : index
    %128 = vector.load %arg14[%c12_113, %c1_114, %c0_115] : memref<18x18x48xf32, #tpu.memory_space<vmem>>, vector<4x16x16xf32>
    %129 = vector.shape_cast %128 : vector<4x16x16xf32> to vector<64x16xf32>
    %130 = arith.truncf %129 : vector<64x16xf32> to vector<64x16xbf16>
    %c12_116 = arith.constant 12 : index
    %c2_117 = arith.constant 2 : index
    %c0_118 = arith.constant 0 : index
    %131 = vector.load %arg14[%c12_116, %c2_117, %c0_118] : memref<18x18x48xf32, #tpu.memory_space<vmem>>, vector<4x16x16xf32>
    %132 = vector.shape_cast %131 : vector<4x16x16xf32> to vector<64x16xf32>
    %133 = arith.truncf %132 : vector<64x16xf32> to vector<64x16xbf16>
    %c13 = arith.constant 13 : index
    %c0_119 = arith.constant 0 : index
    %c0_120 = arith.constant 0 : index
    %134 = vector.load %arg14[%c13, %c0_119, %c0_120] : memref<18x18x48xf32, #tpu.memory_space<vmem>>, vector<4x16x16xf32>
    %135 = vector.shape_cast %134 : vector<4x16x16xf32> to vector<64x16xf32>
    %136 = arith.truncf %135 : vector<64x16xf32> to vector<64x16xbf16>
    %c13_121 = arith.constant 13 : index
    %c1_122 = arith.constant 1 : index
    %c0_123 = arith.constant 0 : index
    %137 = vector.load %arg14[%c13_121, %c1_122, %c0_123] : memref<18x18x48xf32, #tpu.memory_space<vmem>>, vector<4x16x16xf32>
    %138 = vector.shape_cast %137 : vector<4x16x16xf32> to vector<64x16xf32>
    %139 = arith.truncf %138 : vector<64x16xf32> to vector<64x16xbf16>
    %c13_124 = arith.constant 13 : index
    %c2_125 = arith.constant 2 : index
    %c0_126 = arith.constant 0 : index
    %140 = vector.load %arg14[%c13_124, %c2_125, %c0_126] : memref<18x18x48xf32, #tpu.memory_space<vmem>>, vector<4x16x16xf32>
    %141 = vector.shape_cast %140 : vector<4x16x16xf32> to vector<64x16xf32>
    %142 = arith.truncf %141 : vector<64x16xf32> to vector<64x16xbf16>
    %c14 = arith.constant 14 : index
    %c0_127 = arith.constant 0 : index
    %c0_128 = arith.constant 0 : index
    %143 = vector.load %arg14[%c14, %c0_127, %c0_128] : memref<18x18x48xf32, #tpu.memory_space<vmem>>, vector<4x16x16xf32>
    %144 = vector.shape_cast %143 : vector<4x16x16xf32> to vector<64x16xf32>
    %145 = arith.truncf %144 : vector<64x16xf32> to vector<64x16xbf16>
    %c14_129 = arith.constant 14 : index
    %c1_130 = arith.constant 1 : index
    %c0_131 = arith.constant 0 : index
    %146 = vector.load %arg14[%c14_129, %c1_130, %c0_131] : memref<18x18x48xf32, #tpu.memory_space<vmem>>, vector<4x16x16xf32>
    %147 = vector.shape_cast %146 : vector<4x16x16xf32> to vector<64x16xf32>
    %148 = arith.truncf %147 : vector<64x16xf32> to vector<64x16xbf16>
    %c14_132 = arith.constant 14 : index
    %c2_133 = arith.constant 2 : index
    %c0_134 = arith.constant 0 : index
    %149 = vector.load %arg14[%c14_132, %c2_133, %c0_134] : memref<18x18x48xf32, #tpu.memory_space<vmem>>, vector<4x16x16xf32>
    %150 = vector.shape_cast %149 : vector<4x16x16xf32> to vector<64x16xf32>
    %151 = arith.truncf %150 : vector<64x16xf32> to vector<64x16xbf16>
    %152 = tpu.concatenate %127, %130, %133, %136, %139, %142, %145, %148, %151 in 1 : vector<64x16xbf16>, vector<64x16xbf16>, vector<64x16xbf16>, vector<64x16xbf16>, vector<64x16xbf16>, vector<64x16xbf16>, vector<64x16xbf16>, vector<64x16xbf16>, vector<64x16xbf16> -> vector<64x144xbf16>
    %c0_135 = arith.constant 0 : index
    %c0_136 = arith.constant 0 : index
    %153 = vector.load %arg3[%c0_135, %c0_136] : memref<144x8xbf16, #tpu.memory_space<vmem>>, vector<144x8xbf16>
    %cst_137 = arith.constant dense<0.000000e+00> : vector<64x8xf32>
    %154 = tpu.matmul %152, %153, %cst_137 {dimension_numbers = #tpu.dot_dimension_numbers<[1], [0], [0], [1], [0, 0, 1, 1], [], []>} : vector<64x144xbf16>, vector<144x8xbf16>, vector<64x8xf32> -> vector<64x8xf32>
    %c0_138 = arith.constant 0 : index
    %c0_139 = arith.constant 0 : index
    %155 = vector.load %arg8[%c0_138, %c0_139] : memref<1x8xf32, #tpu.memory_space<vmem>>, vector<1x8xf32>
    %156 = vector.broadcast %155 : vector<1x8xf32> to vector<64x8xf32>
    %157 = arith.addf %154, %156 : vector<64x8xf32>
    %cst_140 = arith.constant 0.000000e+00 : f32
    %158 = vector.broadcast %cst_140 : f32 to vector<64x8xf32>
    %159 = arith.cmpf oge, %157, %158 : vector<64x8xf32>
    %cst_141 = arith.constant 2.000000e-01 : f32
    %160 = vector.broadcast %cst_141 : f32 to vector<64x8xf32>
    %161 = arith.mulf %160, %157 : vector<64x8xf32>
    %162 = arith.select %159, %157, %161 : vector<64x8xi1>, vector<64x8xf32>
    %163 = vector.shape_cast %162 : vector<64x8xf32> to vector<4x16x8xf32>
    %c13_142 = arith.constant 13 : index
    %c1_143 = arith.constant 1 : index
    %c16_144 = arith.constant 16 : index
    %164 = vector.load %arg14[%c13_142, %c1_143, %c16_144] : memref<18x18x48xf32, #tpu.memory_space<vmem>>, vector<4x16x8xf32>
    tpu.vector_store %arg14[%c13_142, %c1_143, %c16_144], %163 {strides = array<i32>} : memref<18x18x48xf32, #tpu.memory_space<vmem>>, vector<4x16x8xf32>,
    %c0_145 = arith.constant 0 : index
    %c0_146 = arith.constant 0 : index
    %c0_147 = arith.constant 0 : index
    %165 = vector.load %arg14[%c0_145, %c0_146, %c0_147] : memref<18x18x48xf32, #tpu.memory_space<vmem>>, vector<4x16x24xf32>
    %166 = vector.shape_cast %165 : vector<4x16x24xf32> to vector<64x24xf32>
    %167 = arith.truncf %166 : vector<64x24xf32> to vector<64x24xbf16>
    %c0_148 = arith.constant 0 : index
    %c1_149 = arith.constant 1 : index
    %c0_150 = arith.constant 0 : index
    %168 = vector.load %arg14[%c0_148, %c1_149, %c0_150] : memref<18x18x48xf32, #tpu.memory_space<vmem>>, vector<4x16x24xf32>
    %169 = vector.shape_cast %168 : vector<4x16x24xf32> to vector<64x24xf32>
    %170 = arith.truncf %169 : vector<64x24xf32> to vector<64x24xbf16>
    %c0_151 = arith.constant 0 : index
    %c2_152 = arith.constant 2 : index
    %c0_153 = arith.constant 0 : index
    %171 = vector.load %arg14[%c0_151, %c2_152, %c0_153] : memref<18x18x48xf32, #tpu.memory_space<vmem>>, vector<4x16x24xf32>
    %172 = vector.shape_cast %171 : vector<4x16x24xf32> to vector<64x24xf32>
    %173 = arith.truncf %172 : vector<64x24xf32> to vector<64x24xbf16>
    %c1_154 = arith.constant 1 : index
    %c0_155 = arith.constant 0 : index
    %c0_156 = arith.constant 0 : index
    %174 = vector.load %arg14[%c1_154, %c0_155, %c0_156] : memref<18x18x48xf32, #tpu.memory_space<vmem>>, vector<4x16x24xf32>
    %175 = vector.shape_cast %174 : vector<4x16x24xf32> to vector<64x24xf32>
    %176 = arith.truncf %175 : vector<64x24xf32> to vector<64x24xbf16>
    %c1_157 = arith.constant 1 : index
    %c1_158 = arith.constant 1 : index
    %c0_159 = arith.constant 0 : index
    %177 = vector.load %arg14[%c1_157, %c1_158, %c0_159] : memref<18x18x48xf32, #tpu.memory_space<vmem>>, vector<4x16x24xf32>
    %178 = vector.shape_cast %177 : vector<4x16x24xf32> to vector<64x24xf32>
    %179 = arith.truncf %178 : vector<64x24xf32> to vector<64x24xbf16>
    %c1_160 = arith.constant 1 : index
    %c2_161 = arith.constant 2 : index
    %c0_162 = arith.constant 0 : index
    %180 = vector.load %arg14[%c1_160, %c2_161, %c0_162] : memref<18x18x48xf32, #tpu.memory_space<vmem>>, vector<4x16x24xf32>
    %181 = vector.shape_cast %180 : vector<4x16x24xf32> to vector<64x24xf32>
    %182 = arith.truncf %181 : vector<64x24xf32> to vector<64x24xbf16>
    %c2_163 = arith.constant 2 : index
    %c0_164 = arith.constant 0 : index
    %c0_165 = arith.constant 0 : index
    %183 = vector.load %arg14[%c2_163, %c0_164, %c0_165] : memref<18x18x48xf32, #tpu.memory_space<vmem>>, vector<4x16x24xf32>
    %184 = vector.shape_cast %183 : vector<4x16x24xf32> to vector<64x24xf32>
    %185 = arith.truncf %184 : vector<64x24xf32> to vector<64x24xbf16>
    %c2_166 = arith.constant 2 : index
    %c1_167 = arith.constant 1 : index
    %c0_168 = arith.constant 0 : index
    %186 = vector.load %arg14[%c2_166, %c1_167, %c0_168] : memref<18x18x48xf32, #tpu.memory_space<vmem>>, vector<4x16x24xf32>
    %187 = vector.shape_cast %186 : vector<4x16x24xf32> to vector<64x24xf32>
    %188 = arith.truncf %187 : vector<64x24xf32> to vector<64x24xbf16>
    %c2_169 = arith.constant 2 : index
    %c2_170 = arith.constant 2 : index
    %c0_171 = arith.constant 0 : index
    %189 = vector.load %arg14[%c2_169, %c2_170, %c0_171] : memref<18x18x48xf32, #tpu.memory_space<vmem>>, vector<4x16x24xf32>
    %190 = vector.shape_cast %189 : vector<4x16x24xf32> to vector<64x24xf32>
    %191 = arith.truncf %190 : vector<64x24xf32> to vector<64x24xbf16>
    %192 = tpu.concatenate %167, %170, %173, %176, %179, %182, %185, %188, %191 in 1 : vector<64x24xbf16>, vector<64x24xbf16>, vector<64x24xbf16>, vector<64x24xbf16>, vector<64x24xbf16>, vector<64x24xbf16>, vector<64x24xbf16>, vector<64x24xbf16>, vector<64x24xbf16> -> vector<64x216xbf16>
    %c0_172 = arith.constant 0 : index
    %c0_173 = arith.constant 0 : index
    %193 = vector.load %arg4[%c0_172, %c0_173] : memref<216x8xbf16, #tpu.memory_space<vmem>>, vector<216x8xbf16>
    %cst_174 = arith.constant dense<0.000000e+00> : vector<64x8xf32>
    %194 = tpu.matmul %192, %193, %cst_174 {dimension_numbers = #tpu.dot_dimension_numbers<[1], [0], [0], [1], [0, 0, 1, 1], [], []>} : vector<64x216xbf16>, vector<216x8xbf16>, vector<64x8xf32> -> vector<64x8xf32>
    %c0_175 = arith.constant 0 : index
    %c0_176 = arith.constant 0 : index
    %195 = vector.load %arg9[%c0_175, %c0_176] : memref<1x8xf32, #tpu.memory_space<vmem>>, vector<1x8xf32>
    %196 = vector.broadcast %195 : vector<1x8xf32> to vector<64x8xf32>
    %197 = arith.addf %194, %196 : vector<64x8xf32>
    %cst_177 = arith.constant 0.000000e+00 : f32
    %198 = vector.broadcast %cst_177 : f32 to vector<64x8xf32>
    %199 = arith.cmpf oge, %197, %198 : vector<64x8xf32>
    %cst_178 = arith.constant 2.000000e-01 : f32
    %200 = vector.broadcast %cst_178 : f32 to vector<64x8xf32>
    %201 = arith.mulf %200, %197 : vector<64x8xf32>
    %202 = arith.select %199, %197, %201 : vector<64x8xi1>, vector<64x8xf32>
    %203 = vector.shape_cast %202 : vector<64x8xf32> to vector<4x16x8xf32>
    %c1_179 = arith.constant 1 : index
    %c1_180 = arith.constant 1 : index
    %c24 = arith.constant 24 : index
    %204 = vector.load %arg14[%c1_179, %c1_180, %c24] : memref<18x18x48xf32, #tpu.memory_space<vmem>>, vector<4x16x8xf32>
    tpu.vector_store %arg14[%c1_179, %c1_180, %c24], %203 {strides = array<i32>} : memref<18x18x48xf32, #tpu.memory_space<vmem>>, vector<4x16x8xf32>,
    %c4_181 = arith.constant 4 : index
    %c0_182 = arith.constant 0 : index
    %c0_183 = arith.constant 0 : index
    %205 = vector.load %arg14[%c4_181, %c0_182, %c0_183] : memref<18x18x48xf32, #tpu.memory_space<vmem>>, vector<4x16x24xf32>
    %206 = vector.shape_cast %205 : vector<4x16x24xf32> to vector<64x24xf32>
    %207 = arith.truncf %206 : vector<64x24xf32> to vector<64x24xbf16>
    %c4_184 = arith.constant 4 : index
    %c1_185 = arith.constant 1 : index
    %c0_186 = arith.constant 0 : index
    %208 = vector.load %arg14[%c4_184, %c1_185, %c0_186] : memref<18x18x48xf32, #tpu.memory_space<vmem>>, vector<4x16x24xf32>
    %209 = vector.shape_cast %208 : vector<4x16x24xf32> to vector<64x24xf32>
    %210 = arith.truncf %209 : vector<64x24xf32> to vector<64x24xbf16>
    %c4_187 = arith.constant 4 : index
    %c2_188 = arith.constant 2 : index
    %c0_189 = arith.constant 0 : index
    %211 = vector.load %arg14[%c4_187, %c2_188, %c0_189] : memref<18x18x48xf32, #tpu.memory_space<vmem>>, vector<4x16x24xf32>
    %212 = vector.shape_cast %211 : vector<4x16x24xf32> to vector<64x24xf32>
    %213 = arith.truncf %212 : vector<64x24xf32> to vector<64x24xbf16>
    %c5_190 = arith.constant 5 : index
    %c0_191 = arith.constant 0 : index
    %c0_192 = arith.constant 0 : index
    %214 = vector.load %arg14[%c5_190, %c0_191, %c0_192] : memref<18x18x48xf32, #tpu.memory_space<vmem>>, vector<4x16x24xf32>
    %215 = vector.shape_cast %214 : vector<4x16x24xf32> to vector<64x24xf32>
    %216 = arith.truncf %215 : vector<64x24xf32> to vector<64x24xbf16>
    %c5_193 = arith.constant 5 : index
    %c1_194 = arith.constant 1 : index
    %c0_195 = arith.constant 0 : index
    %217 = vector.load %arg14[%c5_193, %c1_194, %c0_195] : memref<18x18x48xf32, #tpu.memory_space<vmem>>, vector<4x16x24xf32>
    %218 = vector.shape_cast %217 : vector<4x16x24xf32> to vector<64x24xf32>
    %219 = arith.truncf %218 : vector<64x24xf32> to vector<64x24xbf16>
    %c5_196 = arith.constant 5 : index
    %c2_197 = arith.constant 2 : index
    %c0_198 = arith.constant 0 : index
    %220 = vector.load %arg14[%c5_196, %c2_197, %c0_198] : memref<18x18x48xf32, #tpu.memory_space<vmem>>, vector<4x16x24xf32>
    %221 = vector.shape_cast %220 : vector<4x16x24xf32> to vector<64x24xf32>
    %222 = arith.truncf %221 : vector<64x24xf32> to vector<64x24xbf16>
    %c6_199 = arith.constant 6 : index
    %c0_200 = arith.constant 0 : index
    %c0_201 = arith.constant 0 : index
    %223 = vector.load %arg14[%c6_199, %c0_200, %c0_201] : memref<18x18x48xf32, #tpu.memory_space<vmem>>, vector<4x16x24xf32>
    %224 = vector.shape_cast %223 : vector<4x16x24xf32> to vector<64x24xf32>
    %225 = arith.truncf %224 : vector<64x24xf32> to vector<64x24xbf16>
    %c6_202 = arith.constant 6 : index
    %c1_203 = arith.constant 1 : index
    %c0_204 = arith.constant 0 : index
    %226 = vector.load %arg14[%c6_202, %c1_203, %c0_204] : memref<18x18x48xf32, #tpu.memory_space<vmem>>, vector<4x16x24xf32>
    %227 = vector.shape_cast %226 : vector<4x16x24xf32> to vector<64x24xf32>
    %228 = arith.truncf %227 : vector<64x24xf32> to vector<64x24xbf16>
    %c6_205 = arith.constant 6 : index
    %c2_206 = arith.constant 2 : index
    %c0_207 = arith.constant 0 : index
    %229 = vector.load %arg14[%c6_205, %c2_206, %c0_207] : memref<18x18x48xf32, #tpu.memory_space<vmem>>, vector<4x16x24xf32>
    %230 = vector.shape_cast %229 : vector<4x16x24xf32> to vector<64x24xf32>
    %231 = arith.truncf %230 : vector<64x24xf32> to vector<64x24xbf16>
    %232 = tpu.concatenate %207, %210, %213, %216, %219, %222, %225, %228, %231 in 1 : vector<64x24xbf16>, vector<64x24xbf16>, vector<64x24xbf16>, vector<64x24xbf16>, vector<64x24xbf16>, vector<64x24xbf16>, vector<64x24xbf16>, vector<64x24xbf16>, vector<64x24xbf16> -> vector<64x216xbf16>
    %c0_208 = arith.constant 0 : index
    %c0_209 = arith.constant 0 : index
    %233 = vector.load %arg4[%c0_208, %c0_209] : memref<216x8xbf16, #tpu.memory_space<vmem>>, vector<216x8xbf16>
    %cst_210 = arith.constant dense<0.000000e+00> : vector<64x8xf32>
    %234 = tpu.matmul %232, %233, %cst_210 {dimension_numbers = #tpu.dot_dimension_numbers<[1], [0], [0], [1], [0, 0, 1, 1], [], []>} : vector<64x216xbf16>, vector<216x8xbf16>, vector<64x8xf32> -> vector<64x8xf32>
    %c0_211 = arith.constant 0 : index
    %c0_212 = arith.constant 0 : index
    %235 = vector.load %arg9[%c0_211, %c0_212] : memref<1x8xf32, #tpu.memory_space<vmem>>, vector<1x8xf32>
    %236 = vector.broadcast %235 : vector<1x8xf32> to vector<64x8xf32>
    %237 = arith.addf %234, %236 : vector<64x8xf32>
    %cst_213 = arith.constant 0.000000e+00 : f32
    %238 = vector.broadcast %cst_213 : f32 to vector<64x8xf32>
    %239 = arith.cmpf oge, %237, %238 : vector<64x8xf32>
    %cst_214 = arith.constant 2.000000e-01 : f32
    %240 = vector.broadcast %cst_214 : f32 to vector<64x8xf32>
    %241 = arith.mulf %240, %237 : vector<64x8xf32>
    %242 = arith.select %239, %237, %241 : vector<64x8xi1>, vector<64x8xf32>
    %243 = vector.shape_cast %242 : vector<64x8xf32> to vector<4x16x8xf32>
    %c5_215 = arith.constant 5 : index
    %c1_216 = arith.constant 1 : index
    %c24_217 = arith.constant 24 : index
    %244 = vector.load %arg14[%c5_215, %c1_216, %c24_217] : memref<18x18x48xf32, #tpu.memory_space<vmem>>, vector<4x16x8xf32>
    tpu.vector_store %arg14[%c5_215, %c1_216, %c24_217], %243 {strides = array<i32>} : memref<18x18x48xf32, #tpu.memory_space<vmem>>, vector<4x16x8xf32>,
    %c8_218 = arith.constant 8 : index
    %c0_219 = arith.constant 0 : index
    %c0_220 = arith.constant 0 : index
    %245 = vector.load %arg14[%c8_218, %c0_219, %c0_220] : memref<18x18x48xf32, #tpu.memory_space<vmem>>, vector<4x16x24xf32>
    %246 = vector.shape_cast %245 : vector<4x16x24xf32> to vector<64x24xf32>
    %247 = arith.truncf %246 : vector<64x24xf32> to vector<64x24xbf16>
    %c8_221 = arith.constant 8 : index
    %c1_222 = arith.constant 1 : index
    %c0_223 = arith.constant 0 : index
    %248 = vector.load %arg14[%c8_221, %c1_222, %c0_223] : memref<18x18x48xf32, #tpu.memory_space<vmem>>, vector<4x16x24xf32>
    %249 = vector.shape_cast %248 : vector<4x16x24xf32> to vector<64x24xf32>
    %250 = arith.truncf %249 : vector<64x24xf32> to vector<64x24xbf16>
    %c8_224 = arith.constant 8 : index
    %c2_225 = arith.constant 2 : index
    %c0_226 = arith.constant 0 : index
    %251 = vector.load %arg14[%c8_224, %c2_225, %c0_226] : memref<18x18x48xf32, #tpu.memory_space<vmem>>, vector<4x16x24xf32>
    %252 = vector.shape_cast %251 : vector<4x16x24xf32> to vector<64x24xf32>
    %253 = arith.truncf %252 : vector<64x24xf32> to vector<64x24xbf16>
    %c9_227 = arith.constant 9 : index
    %c0_228 = arith.constant 0 : index
    %c0_229 = arith.constant 0 : index
    %254 = vector.load %arg14[%c9_227, %c0_228, %c0_229] : memref<18x18x48xf32, #tpu.memory_space<vmem>>, vector<4x16x24xf32>
    %255 = vector.shape_cast %254 : vector<4x16x24xf32> to vector<64x24xf32>
    %256 = arith.truncf %255 : vector<64x24xf32> to vector<64x24xbf16>
    %c9_230 = arith.constant 9 : index
    %c1_231 = arith.constant 1 : index
    %c0_232 = arith.constant 0 : index
    %257 = vector.load %arg14[%c9_230, %c1_231, %c0_232] : memref<18x18x48xf32, #tpu.memory_space<vmem>>, vector<4x16x24xf32>
    %258 = vector.shape_cast %257 : vector<4x16x24xf32> to vector<64x24xf32>
    %259 = arith.truncf %258 : vector<64x24xf32> to vector<64x24xbf16>
    %c9_233 = arith.constant 9 : index
    %c2_234 = arith.constant 2 : index
    %c0_235 = arith.constant 0 : index
    %260 = vector.load %arg14[%c9_233, %c2_234, %c0_235] : memref<18x18x48xf32, #tpu.memory_space<vmem>>, vector<4x16x24xf32>
    %261 = vector.shape_cast %260 : vector<4x16x24xf32> to vector<64x24xf32>
    %262 = arith.truncf %261 : vector<64x24xf32> to vector<64x24xbf16>
    %c10_236 = arith.constant 10 : index
    %c0_237 = arith.constant 0 : index
    %c0_238 = arith.constant 0 : index
    %263 = vector.load %arg14[%c10_236, %c0_237, %c0_238] : memref<18x18x48xf32, #tpu.memory_space<vmem>>, vector<4x16x24xf32>
    %264 = vector.shape_cast %263 : vector<4x16x24xf32> to vector<64x24xf32>
    %265 = arith.truncf %264 : vector<64x24xf32> to vector<64x24xbf16>
    %c10_239 = arith.constant 10 : index
    %c1_240 = arith.constant 1 : index
    %c0_241 = arith.constant 0 : index
    %266 = vector.load %arg14[%c10_239, %c1_240, %c0_241] : memref<18x18x48xf32, #tpu.memory_space<vmem>>, vector<4x16x24xf32>
    %267 = vector.shape_cast %266 : vector<4x16x24xf32> to vector<64x24xf32>
    %268 = arith.truncf %267 : vector<64x24xf32> to vector<64x24xbf16>
    %c10_242 = arith.constant 10 : index
    %c2_243 = arith.constant 2 : index
    %c0_244 = arith.constant 0 : index
    %269 = vector.load %arg14[%c10_242, %c2_243, %c0_244] : memref<18x18x48xf32, #tpu.memory_space<vmem>>, vector<4x16x24xf32>
    %270 = vector.shape_cast %269 : vector<4x16x24xf32> to vector<64x24xf32>
    %271 = arith.truncf %270 : vector<64x24xf32> to vector<64x24xbf16>
    %272 = tpu.concatenate %247, %250, %253, %256, %259, %262, %265, %268, %271 in 1 : vector<64x24xbf16>, vector<64x24xbf16>, vector<64x24xbf16>, vector<64x24xbf16>, vector<64x24xbf16>, vector<64x24xbf16>, vector<64x24xbf16>, vector<64x24xbf16>, vector<64x24xbf16> -> vector<64x216xbf16>
    %c0_245 = arith.constant 0 : index
    %c0_246 = arith.constant 0 : index
    %273 = vector.load %arg4[%c0_245, %c0_246] : memref<216x8xbf16, #tpu.memory_space<vmem>>, vector<216x8xbf16>
    %cst_247 = arith.constant dense<0.000000e+00> : vector<64x8xf32>
    %274 = tpu.matmul %272, %273, %cst_247 {dimension_numbers = #tpu.dot_dimension_numbers<[1], [0], [0], [1], [0, 0, 1, 1], [], []>} : vector<64x216xbf16>, vector<216x8xbf16>, vector<64x8xf32> -> vector<64x8xf32>
    %c0_248 = arith.constant 0 : index
    %c0_249 = arith.constant 0 : index
    %275 = vector.load %arg9[%c0_248, %c0_249] : memref<1x8xf32, #tpu.memory_space<vmem>>, vector<1x8xf32>
    %276 = vector.broadcast %275 : vector<1x8xf32> to vector<64x8xf32>
    %277 = arith.addf %274, %276 : vector<64x8xf32>
    %cst_250 = arith.constant 0.000000e+00 : f32
    %278 = vector.broadcast %cst_250 : f32 to vector<64x8xf32>
    %279 = arith.cmpf oge, %277, %278 : vector<64x8xf32>
    %cst_251 = arith.constant 2.000000e-01 : f32
    %280 = vector.broadcast %cst_251 : f32 to vector<64x8xf32>
    %281 = arith.mulf %280, %277 : vector<64x8xf32>
    %282 = arith.select %279, %277, %281 : vector<64x8xi1>, vector<64x8xf32>
    %283 = vector.shape_cast %282 : vector<64x8xf32> to vector<4x16x8xf32>
    %c9_252 = arith.constant 9 : index
    %c1_253 = arith.constant 1 : index
    %c24_254 = arith.constant 24 : index
    %284 = vector.load %arg14[%c9_252, %c1_253, %c24_254] : memref<18x18x48xf32, #tpu.memory_space<vmem>>, vector<4x16x8xf32>
    tpu.vector_store %arg14[%c9_252, %c1_253, %c24_254], %283 {strides = array<i32>} : memref<18x18x48xf32, #tpu.memory_space<vmem>>, vector<4x16x8xf32>,
    %c12_255 = arith.constant 12 : index
    %c0_256 = arith.constant 0 : index
    %c0_257 = arith.constant 0 : index
    %285 = vector.load %arg14[%c12_255, %c0_256, %c0_257] : memref<18x18x48xf32, #tpu.memory_space<vmem>>, vector<4x16x24xf32>
    %286 = vector.shape_cast %285 : vector<4x16x24xf32> to vector<64x24xf32>
    %287 = arith.truncf %286 : vector<64x24xf32> to vector<64x24xbf16>
    %c12_258 = arith.constant 12 : index
    %c1_259 = arith.constant 1 : index
    %c0_260 = arith.constant 0 : index
    %288 = vector.load %arg14[%c12_258, %c1_259, %c0_260] : memref<18x18x48xf32, #tpu.memory_space<vmem>>, vector<4x16x24xf32>
    %289 = vector.shape_cast %288 : vector<4x16x24xf32> to vector<64x24xf32>
    %290 = arith.truncf %289 : vector<64x24xf32> to vector<64x24xbf16>
    %c12_261 = arith.constant 12 : index
    %c2_262 = arith.constant 2 : index
    %c0_263 = arith.constant 0 : index
    %291 = vector.load %arg14[%c12_261, %c2_262, %c0_263] : memref<18x18x48xf32, #tpu.memory_space<vmem>>, vector<4x16x24xf32>
    %292 = vector.shape_cast %291 : vector<4x16x24xf32> to vector<64x24xf32>
    %293 = arith.truncf %292 : vector<64x24xf32> to vector<64x24xbf16>
    %c13_264 = arith.constant 13 : index
    %c0_265 = arith.constant 0 : index
    %c0_266 = arith.constant 0 : index
    %294 = vector.load %arg14[%c13_264, %c0_265, %c0_266] : memref<18x18x48xf32, #tpu.memory_space<vmem>>, vector<4x16x24xf32>
    %295 = vector.shape_cast %294 : vector<4x16x24xf32> to vector<64x24xf32>
    %296 = arith.truncf %295 : vector<64x24xf32> to vector<64x24xbf16>
    %c13_267 = arith.constant 13 : index
    %c1_268 = arith.constant 1 : index
    %c0_269 = arith.constant 0 : index
    %297 = vector.load %arg14[%c13_267, %c1_268, %c0_269] : memref<18x18x48xf32, #tpu.memory_space<vmem>>, vector<4x16x24xf32>
    %298 = vector.shape_cast %297 : vector<4x16x24xf32> to vector<64x24xf32>
    %299 = arith.truncf %298 : vector<64x24xf32> to vector<64x24xbf16>
    %c13_270 = arith.constant 13 : index
    %c2_271 = arith.constant 2 : index
    %c0_272 = arith.constant 0 : index
    %300 = vector.load %arg14[%c13_270, %c2_271, %c0_272] : memref<18x18x48xf32, #tpu.memory_space<vmem>>, vector<4x16x24xf32>
    %301 = vector.shape_cast %300 : vector<4x16x24xf32> to vector<64x24xf32>
    %302 = arith.truncf %301 : vector<64x24xf32> to vector<64x24xbf16>
    %c14_273 = arith.constant 14 : index
    %c0_274 = arith.constant 0 : index
    %c0_275 = arith.constant 0 : index
    %303 = vector.load %arg14[%c14_273, %c0_274, %c0_275] : memref<18x18x48xf32, #tpu.memory_space<vmem>>, vector<4x16x24xf32>
    %304 = vector.shape_cast %303 : vector<4x16x24xf32> to vector<64x24xf32>
    %305 = arith.truncf %304 : vector<64x24xf32> to vector<64x24xbf16>
    %c14_276 = arith.constant 14 : index
    %c1_277 = arith.constant 1 : index
    %c0_278 = arith.constant 0 : index
    %306 = vector.load %arg14[%c14_276, %c1_277, %c0_278] : memref<18x18x48xf32, #tpu.memory_space<vmem>>, vector<4x16x24xf32>
    %307 = vector.shape_cast %306 : vector<4x16x24xf32> to vector<64x24xf32>
    %308 = arith.truncf %307 : vector<64x24xf32> to vector<64x24xbf16>
    %c14_279 = arith.constant 14 : index
    %c2_280 = arith.constant 2 : index
    %c0_281 = arith.constant 0 : index
    %309 = vector.load %arg14[%c14_279, %c2_280, %c0_281] : memref<18x18x48xf32, #tpu.memory_space<vmem>>, vector<4x16x24xf32>
    %310 = vector.shape_cast %309 : vector<4x16x24xf32> to vector<64x24xf32>
    %311 = arith.truncf %310 : vector<64x24xf32> to vector<64x24xbf16>
    %312 = tpu.concatenate %287, %290, %293, %296, %299, %302, %305, %308, %311 in 1 : vector<64x24xbf16>, vector<64x24xbf16>, vector<64x24xbf16>, vector<64x24xbf16>, vector<64x24xbf16>, vector<64x24xbf16>, vector<64x24xbf16>, vector<64x24xbf16>, vector<64x24xbf16> -> vector<64x216xbf16>
    %c0_282 = arith.constant 0 : index
    %c0_283 = arith.constant 0 : index
    %313 = vector.load %arg4[%c0_282, %c0_283] : memref<216x8xbf16, #tpu.memory_space<vmem>>, vector<216x8xbf16>
    %cst_284 = arith.constant dense<0.000000e+00> : vector<64x8xf32>
    %314 = tpu.matmul %312, %313, %cst_284 {dimension_numbers = #tpu.dot_dimension_numbers<[1], [0], [0], [1], [0, 0, 1, 1], [], []>} : vector<64x216xbf16>, vector<216x8xbf16>, vector<64x8xf32> -> vector<64x8xf32>
    %c0_285 = arith.constant 0 : index
    %c0_286 = arith.constant 0 : index
    %315 = vector.load %arg9[%c0_285, %c0_286] : memref<1x8xf32, #tpu.memory_space<vmem>>, vector<1x8xf32>
    %316 = vector.broadcast %315 : vector<1x8xf32> to vector<64x8xf32>
    %317 = arith.addf %314, %316 : vector<64x8xf32>
    %cst_287 = arith.constant 0.000000e+00 : f32
    %318 = vector.broadcast %cst_287 : f32 to vector<64x8xf32>
    %319 = arith.cmpf oge, %317, %318 : vector<64x8xf32>
    %cst_288 = arith.constant 2.000000e-01 : f32
    %320 = vector.broadcast %cst_288 : f32 to vector<64x8xf32>
    %321 = arith.mulf %320, %317 : vector<64x8xf32>
    %322 = arith.select %319, %317, %321 : vector<64x8xi1>, vector<64x8xf32>
    %323 = vector.shape_cast %322 : vector<64x8xf32> to vector<4x16x8xf32>
    %c13_289 = arith.constant 13 : index
    %c1_290 = arith.constant 1 : index
    %c24_291 = arith.constant 24 : index
    %324 = vector.load %arg14[%c13_289, %c1_290, %c24_291] : memref<18x18x48xf32, #tpu.memory_space<vmem>>, vector<4x16x8xf32>
    tpu.vector_store %arg14[%c13_289, %c1_290, %c24_291], %323 {strides = array<i32>} : memref<18x18x48xf32, #tpu.memory_space<vmem>>, vector<4x16x8xf32>,
    %c0_292 = arith.constant 0 : index
    %c0_293 = arith.constant 0 : index
    %c0_294 = arith.constant 0 : index
    %325 = vector.load %arg14[%c0_292, %c0_293, %c0_294] : memref<18x18x48xf32, #tpu.memory_space<vmem>>, vector<4x16x32xf32>
    %326 = vector.shape_cast %325 : vector<4x16x32xf32> to vector<64x32xf32>
    %327 = arith.truncf %326 : vector<64x32xf32> to vector<64x32xbf16>
    %c0_295 = arith.constant 0 : index
    %c1_296 = arith.constant 1 : index
    %c0_297 = arith.constant 0 : index
    %328 = vector.load %arg14[%c0_295, %c1_296, %c0_297] : memref<18x18x48xf32, #tpu.memory_space<vmem>>, vector<4x16x32xf32>
    %329 = vector.shape_cast %328 : vector<4x16x32xf32> to vector<64x32xf32>
    %330 = arith.truncf %329 : vector<64x32xf32> to vector<64x32xbf16>
    %c0_298 = arith.constant 0 : index
    %c2_299 = arith.constant 2 : index
    %c0_300 = arith.constant 0 : index
    %331 = vector.load %arg14[%c0_298, %c2_299, %c0_300] : memref<18x18x48xf32, #tpu.memory_space<vmem>>, vector<4x16x32xf32>
    %332 = vector.shape_cast %331 : vector<4x16x32xf32> to vector<64x32xf32>
    %333 = arith.truncf %332 : vector<64x32xf32> to vector<64x32xbf16>
    %c1_301 = arith.constant 1 : index
    %c0_302 = arith.constant 0 : index
    %c0_303 = arith.constant 0 : index
    %334 = vector.load %arg14[%c1_301, %c0_302, %c0_303] : memref<18x18x48xf32, #tpu.memory_space<vmem>>, vector<4x16x32xf32>
    %335 = vector.shape_cast %334 : vector<4x16x32xf32> to vector<64x32xf32>
    %336 = arith.truncf %335 : vector<64x32xf32> to vector<64x32xbf16>
    %c1_304 = arith.constant 1 : index
    %c1_305 = arith.constant 1 : index
    %c0_306 = arith.constant 0 : index
    %337 = vector.load %arg14[%c1_304, %c1_305, %c0_306] : memref<18x18x48xf32, #tpu.memory_space<vmem>>, vector<4x16x32xf32>
    %338 = vector.shape_cast %337 : vector<4x16x32xf32> to vector<64x32xf32>
    %339 = arith.truncf %338 : vector<64x32xf32> to vector<64x32xbf16>
    %c1_307 = arith.constant 1 : index
    %c2_308 = arith.constant 2 : index
    %c0_309 = arith.constant 0 : index
    %340 = vector.load %arg14[%c1_307, %c2_308, %c0_309] : memref<18x18x48xf32, #tpu.memory_space<vmem>>, vector<4x16x32xf32>
    %341 = vector.shape_cast %340 : vector<4x16x32xf32> to vector<64x32xf32>
    %342 = arith.truncf %341 : vector<64x32xf32> to vector<64x32xbf16>
    %c2_310 = arith.constant 2 : index
    %c0_311 = arith.constant 0 : index
    %c0_312 = arith.constant 0 : index
    %343 = vector.load %arg14[%c2_310, %c0_311, %c0_312] : memref<18x18x48xf32, #tpu.memory_space<vmem>>, vector<4x16x32xf32>
    %344 = vector.shape_cast %343 : vector<4x16x32xf32> to vector<64x32xf32>
    %345 = arith.truncf %344 : vector<64x32xf32> to vector<64x32xbf16>
    %c2_313 = arith.constant 2 : index
    %c1_314 = arith.constant 1 : index
    %c0_315 = arith.constant 0 : index
    %346 = vector.load %arg14[%c2_313, %c1_314, %c0_315] : memref<18x18x48xf32, #tpu.memory_space<vmem>>, vector<4x16x32xf32>
    %347 = vector.shape_cast %346 : vector<4x16x32xf32> to vector<64x32xf32>
    %348 = arith.truncf %347 : vector<64x32xf32> to vector<64x32xbf16>
    %c2_316 = arith.constant 2 : index
    %c2_317 = arith.constant 2 : index
    %c0_318 = arith.constant 0 : index
    %349 = vector.load %arg14[%c2_316, %c2_317, %c0_318] : memref<18x18x48xf32, #tpu.memory_space<vmem>>, vector<4x16x32xf32>
    %350 = vector.shape_cast %349 : vector<4x16x32xf32> to vector<64x32xf32>
    %351 = arith.truncf %350 : vector<64x32xf32> to vector<64x32xbf16>
    %352 = tpu.concatenate %327, %330, %333, %336, %339, %342, %345, %348, %351 in 1 : vector<64x32xbf16>, vector<64x32xbf16>, vector<64x32xbf16>, vector<64x32xbf16>, vector<64x32xbf16>, vector<64x32xbf16>, vector<64x32xbf16>, vector<64x32xbf16>, vector<64x32xbf16> -> vector<64x288xbf16>
    %c0_319 = arith.constant 0 : index
    %c0_320 = arith.constant 0 : index
    %353 = vector.load %arg5[%c0_319, %c0_320] : memref<288x8xbf16, #tpu.memory_space<vmem>>, vector<288x8xbf16>
    %cst_321 = arith.constant dense<0.000000e+00> : vector<64x8xf32>
    %354 = tpu.matmul %352, %353, %cst_321 {dimension_numbers = #tpu.dot_dimension_numbers<[1], [0], [0], [1], [0, 0, 1, 1], [], []>} : vector<64x288xbf16>, vector<288x8xbf16>, vector<64x8xf32> -> vector<64x8xf32>
    %c0_322 = arith.constant 0 : index
    %c0_323 = arith.constant 0 : index
    %355 = vector.load %arg10[%c0_322, %c0_323] : memref<1x8xf32, #tpu.memory_space<vmem>>, vector<1x8xf32>
    %356 = vector.broadcast %355 : vector<1x8xf32> to vector<64x8xf32>
    %357 = arith.addf %354, %356 : vector<64x8xf32>
    %cst_324 = arith.constant 0.000000e+00 : f32
    %358 = vector.broadcast %cst_324 : f32 to vector<64x8xf32>
    %359 = arith.cmpf oge, %357, %358 : vector<64x8xf32>
    %cst_325 = arith.constant 2.000000e-01 : f32
    %360 = vector.broadcast %cst_325 : f32 to vector<64x8xf32>
    %361 = arith.mulf %360, %357 : vector<64x8xf32>
    %362 = arith.select %359, %357, %361 : vector<64x8xi1>, vector<64x8xf32>
    %363 = vector.shape_cast %362 : vector<64x8xf32> to vector<4x16x8xf32>
    %c1_326 = arith.constant 1 : index
    %c1_327 = arith.constant 1 : index
    %c32 = arith.constant 32 : index
    %364 = vector.load %arg14[%c1_326, %c1_327, %c32] : memref<18x18x48xf32, #tpu.memory_space<vmem>>, vector<4x16x8xf32>
    tpu.vector_store %arg14[%c1_326, %c1_327, %c32], %363 {strides = array<i32>} : memref<18x18x48xf32, #tpu.memory_space<vmem>>, vector<4x16x8xf32>,
    %c4_328 = arith.constant 4 : index
    %c0_329 = arith.constant 0 : index
    %c0_330 = arith.constant 0 : index
    %365 = vector.load %arg14[%c4_328, %c0_329, %c0_330] : memref<18x18x48xf32, #tpu.memory_space<vmem>>, vector<4x16x32xf32>
    %366 = vector.shape_cast %365 : vector<4x16x32xf32> to vector<64x32xf32>
    %367 = arith.truncf %366 : vector<64x32xf32> to vector<64x32xbf16>
    %c4_331 = arith.constant 4 : index
    %c1_332 = arith.constant 1 : index
    %c0_333 = arith.constant 0 : index
    %368 = vector.load %arg14[%c4_331, %c1_332, %c0_333] : memref<18x18x48xf32, #tpu.memory_space<vmem>>, vector<4x16x32xf32>
    %369 = vector.shape_cast %368 : vector<4x16x32xf32> to vector<64x32xf32>
    %370 = arith.truncf %369 : vector<64x32xf32> to vector<64x32xbf16>
    %c4_334 = arith.constant 4 : index
    %c2_335 = arith.constant 2 : index
    %c0_336 = arith.constant 0 : index
    %371 = vector.load %arg14[%c4_334, %c2_335, %c0_336] : memref<18x18x48xf32, #tpu.memory_space<vmem>>, vector<4x16x32xf32>
    %372 = vector.shape_cast %371 : vector<4x16x32xf32> to vector<64x32xf32>
    %373 = arith.truncf %372 : vector<64x32xf32> to vector<64x32xbf16>
    %c5_337 = arith.constant 5 : index
    %c0_338 = arith.constant 0 : index
    %c0_339 = arith.constant 0 : index
    %374 = vector.load %arg14[%c5_337, %c0_338, %c0_339] : memref<18x18x48xf32, #tpu.memory_space<vmem>>, vector<4x16x32xf32>
    %375 = vector.shape_cast %374 : vector<4x16x32xf32> to vector<64x32xf32>
    %376 = arith.truncf %375 : vector<64x32xf32> to vector<64x32xbf16>
    %c5_340 = arith.constant 5 : index
    %c1_341 = arith.constant 1 : index
    %c0_342 = arith.constant 0 : index
    %377 = vector.load %arg14[%c5_340, %c1_341, %c0_342] : memref<18x18x48xf32, #tpu.memory_space<vmem>>, vector<4x16x32xf32>
    %378 = vector.shape_cast %377 : vector<4x16x32xf32> to vector<64x32xf32>
    %379 = arith.truncf %378 : vector<64x32xf32> to vector<64x32xbf16>
    %c5_343 = arith.constant 5 : index
    %c2_344 = arith.constant 2 : index
    %c0_345 = arith.constant 0 : index
    %380 = vector.load %arg14[%c5_343, %c2_344, %c0_345] : memref<18x18x48xf32, #tpu.memory_space<vmem>>, vector<4x16x32xf32>
    %381 = vector.shape_cast %380 : vector<4x16x32xf32> to vector<64x32xf32>
    %382 = arith.truncf %381 : vector<64x32xf32> to vector<64x32xbf16>
    %c6_346 = arith.constant 6 : index
    %c0_347 = arith.constant 0 : index
    %c0_348 = arith.constant 0 : index
    %383 = vector.load %arg14[%c6_346, %c0_347, %c0_348] : memref<18x18x48xf32, #tpu.memory_space<vmem>>, vector<4x16x32xf32>
    %384 = vector.shape_cast %383 : vector<4x16x32xf32> to vector<64x32xf32>
    %385 = arith.truncf %384 : vector<64x32xf32> to vector<64x32xbf16>
    %c6_349 = arith.constant 6 : index
    %c1_350 = arith.constant 1 : index
    %c0_351 = arith.constant 0 : index
    %386 = vector.load %arg14[%c6_349, %c1_350, %c0_351] : memref<18x18x48xf32, #tpu.memory_space<vmem>>, vector<4x16x32xf32>
    %387 = vector.shape_cast %386 : vector<4x16x32xf32> to vector<64x32xf32>
    %388 = arith.truncf %387 : vector<64x32xf32> to vector<64x32xbf16>
    %c6_352 = arith.constant 6 : index
    %c2_353 = arith.constant 2 : index
    %c0_354 = arith.constant 0 : index
    %389 = vector.load %arg14[%c6_352, %c2_353, %c0_354] : memref<18x18x48xf32, #tpu.memory_space<vmem>>, vector<4x16x32xf32>
    %390 = vector.shape_cast %389 : vector<4x16x32xf32> to vector<64x32xf32>
    %391 = arith.truncf %390 : vector<64x32xf32> to vector<64x32xbf16>
    %392 = tpu.concatenate %367, %370, %373, %376, %379, %382, %385, %388, %391 in 1 : vector<64x32xbf16>, vector<64x32xbf16>, vector<64x32xbf16>, vector<64x32xbf16>, vector<64x32xbf16>, vector<64x32xbf16>, vector<64x32xbf16>, vector<64x32xbf16>, vector<64x32xbf16> -> vector<64x288xbf16>
    %c0_355 = arith.constant 0 : index
    %c0_356 = arith.constant 0 : index
    %393 = vector.load %arg5[%c0_355, %c0_356] : memref<288x8xbf16, #tpu.memory_space<vmem>>, vector<288x8xbf16>
    %cst_357 = arith.constant dense<0.000000e+00> : vector<64x8xf32>
    %394 = tpu.matmul %392, %393, %cst_357 {dimension_numbers = #tpu.dot_dimension_numbers<[1], [0], [0], [1], [0, 0, 1, 1], [], []>} : vector<64x288xbf16>, vector<288x8xbf16>, vector<64x8xf32> -> vector<64x8xf32>
    %c0_358 = arith.constant 0 : index
    %c0_359 = arith.constant 0 : index
    %395 = vector.load %arg10[%c0_358, %c0_359] : memref<1x8xf32, #tpu.memory_space<vmem>>, vector<1x8xf32>
    %396 = vector.broadcast %395 : vector<1x8xf32> to vector<64x8xf32>
    %397 = arith.addf %394, %396 : vector<64x8xf32>
    %cst_360 = arith.constant 0.000000e+00 : f32
    %398 = vector.broadcast %cst_360 : f32 to vector<64x8xf32>
    %399 = arith.cmpf oge, %397, %398 : vector<64x8xf32>
    %cst_361 = arith.constant 2.000000e-01 : f32
    %400 = vector.broadcast %cst_361 : f32 to vector<64x8xf32>
    %401 = arith.mulf %400, %397 : vector<64x8xf32>
    %402 = arith.select %399, %397, %401 : vector<64x8xi1>, vector<64x8xf32>
    %403 = vector.shape_cast %402 : vector<64x8xf32> to vector<4x16x8xf32>
    %c5_362 = arith.constant 5 : index
    %c1_363 = arith.constant 1 : index
    %c32_364 = arith.constant 32 : index
    %404 = vector.load %arg14[%c5_362, %c1_363, %c32_364] : memref<18x18x48xf32, #tpu.memory_space<vmem>>, vector<4x16x8xf32>
    tpu.vector_store %arg14[%c5_362, %c1_363, %c32_364], %403 {strides = array<i32>} : memref<18x18x48xf32, #tpu.memory_space<vmem>>, vector<4x16x8xf32>,
    %c8_365 = arith.constant 8 : index
    %c0_366 = arith.constant 0 : index
    %c0_367 = arith.constant 0 : index
    %405 = vector.load %arg14[%c8_365, %c0_366, %c0_367] : memref<18x18x48xf32, #tpu.memory_space<vmem>>, vector<4x16x32xf32>
    %406 = vector.shape_cast %405 : vector<4x16x32xf32> to vector<64x32xf32>
    %407 = arith.truncf %406 : vector<64x32xf32> to vector<64x32xbf16>
    %c8_368 = arith.constant 8 : index
    %c1_369 = arith.constant 1 : index
    %c0_370 = arith.constant 0 : index
    %408 = vector.load %arg14[%c8_368, %c1_369, %c0_370] : memref<18x18x48xf32, #tpu.memory_space<vmem>>, vector<4x16x32xf32>
    %409 = vector.shape_cast %408 : vector<4x16x32xf32> to vector<64x32xf32>
    %410 = arith.truncf %409 : vector<64x32xf32> to vector<64x32xbf16>
    %c8_371 = arith.constant 8 : index
    %c2_372 = arith.constant 2 : index
    %c0_373 = arith.constant 0 : index
    %411 = vector.load %arg14[%c8_371, %c2_372, %c0_373] : memref<18x18x48xf32, #tpu.memory_space<vmem>>, vector<4x16x32xf32>
    %412 = vector.shape_cast %411 : vector<4x16x32xf32> to vector<64x32xf32>
    %413 = arith.truncf %412 : vector<64x32xf32> to vector<64x32xbf16>
    %c9_374 = arith.constant 9 : index
    %c0_375 = arith.constant 0 : index
    %c0_376 = arith.constant 0 : index
    %414 = vector.load %arg14[%c9_374, %c0_375, %c0_376] : memref<18x18x48xf32, #tpu.memory_space<vmem>>, vector<4x16x32xf32>
    %415 = vector.shape_cast %414 : vector<4x16x32xf32> to vector<64x32xf32>
    %416 = arith.truncf %415 : vector<64x32xf32> to vector<64x32xbf16>
    %c9_377 = arith.constant 9 : index
    %c1_378 = arith.constant 1 : index
    %c0_379 = arith.constant 0 : index
    %417 = vector.load %arg14[%c9_377, %c1_378, %c0_379] : memref<18x18x48xf32, #tpu.memory_space<vmem>>, vector<4x16x32xf32>
    %418 = vector.shape_cast %417 : vector<4x16x32xf32> to vector<64x32xf32>
    %419 = arith.truncf %418 : vector<64x32xf32> to vector<64x32xbf16>
    %c9_380 = arith.constant 9 : index
    %c2_381 = arith.constant 2 : index
    %c0_382 = arith.constant 0 : index
    %420 = vector.load %arg14[%c9_380, %c2_381, %c0_382] : memref<18x18x48xf32, #tpu.memory_space<vmem>>, vector<4x16x32xf32>
    %421 = vector.shape_cast %420 : vector<4x16x32xf32> to vector<64x32xf32>
    %422 = arith.truncf %421 : vector<64x32xf32> to vector<64x32xbf16>
    %c10_383 = arith.constant 10 : index
    %c0_384 = arith.constant 0 : index
    %c0_385 = arith.constant 0 : index
    %423 = vector.load %arg14[%c10_383, %c0_384, %c0_385] : memref<18x18x48xf32, #tpu.memory_space<vmem>>, vector<4x16x32xf32>
    %424 = vector.shape_cast %423 : vector<4x16x32xf32> to vector<64x32xf32>
    %425 = arith.truncf %424 : vector<64x32xf32> to vector<64x32xbf16>
    %c10_386 = arith.constant 10 : index
    %c1_387 = arith.constant 1 : index
    %c0_388 = arith.constant 0 : index
    %426 = vector.load %arg14[%c10_386, %c1_387, %c0_388] : memref<18x18x48xf32, #tpu.memory_space<vmem>>, vector<4x16x32xf32>
    %427 = vector.shape_cast %426 : vector<4x16x32xf32> to vector<64x32xf32>
    %428 = arith.truncf %427 : vector<64x32xf32> to vector<64x32xbf16>
    %c10_389 = arith.constant 10 : index
    %c2_390 = arith.constant 2 : index
    %c0_391 = arith.constant 0 : index
    %429 = vector.load %arg14[%c10_389, %c2_390, %c0_391] : memref<18x18x48xf32, #tpu.memory_space<vmem>>, vector<4x16x32xf32>
    %430 = vector.shape_cast %429 : vector<4x16x32xf32> to vector<64x32xf32>
    %431 = arith.truncf %430 : vector<64x32xf32> to vector<64x32xbf16>
    %432 = tpu.concatenate %407, %410, %413, %416, %419, %422, %425, %428, %431 in 1 : vector<64x32xbf16>, vector<64x32xbf16>, vector<64x32xbf16>, vector<64x32xbf16>, vector<64x32xbf16>, vector<64x32xbf16>, vector<64x32xbf16>, vector<64x32xbf16>, vector<64x32xbf16> -> vector<64x288xbf16>
    %c0_392 = arith.constant 0 : index
    %c0_393 = arith.constant 0 : index
    %433 = vector.load %arg5[%c0_392, %c0_393] : memref<288x8xbf16, #tpu.memory_space<vmem>>, vector<288x8xbf16>
    %cst_394 = arith.constant dense<0.000000e+00> : vector<64x8xf32>
    %434 = tpu.matmul %432, %433, %cst_394 {dimension_numbers = #tpu.dot_dimension_numbers<[1], [0], [0], [1], [0, 0, 1, 1], [], []>} : vector<64x288xbf16>, vector<288x8xbf16>, vector<64x8xf32> -> vector<64x8xf32>
    %c0_395 = arith.constant 0 : index
    %c0_396 = arith.constant 0 : index
    %435 = vector.load %arg10[%c0_395, %c0_396] : memref<1x8xf32, #tpu.memory_space<vmem>>, vector<1x8xf32>
    %436 = vector.broadcast %435 : vector<1x8xf32> to vector<64x8xf32>
    %437 = arith.addf %434, %436 : vector<64x8xf32>
    %cst_397 = arith.constant 0.000000e+00 : f32
    %438 = vector.broadcast %cst_397 : f32 to vector<64x8xf32>
    %439 = arith.cmpf oge, %437, %438 : vector<64x8xf32>
    %cst_398 = arith.constant 2.000000e-01 : f32
    %440 = vector.broadcast %cst_398 : f32 to vector<64x8xf32>
    %441 = arith.mulf %440, %437 : vector<64x8xf32>
    %442 = arith.select %439, %437, %441 : vector<64x8xi1>, vector<64x8xf32>
    %443 = vector.shape_cast %442 : vector<64x8xf32> to vector<4x16x8xf32>
    %c9_399 = arith.constant 9 : index
    %c1_400 = arith.constant 1 : index
    %c32_401 = arith.constant 32 : index
    %444 = vector.load %arg14[%c9_399, %c1_400, %c32_401] : memref<18x18x48xf32, #tpu.memory_space<vmem>>, vector<4x16x8xf32>
    tpu.vector_store %arg14[%c9_399, %c1_400, %c32_401], %443 {strides = array<i32>} : memref<18x18x48xf32, #tpu.memory_space<vmem>>, vector<4x16x8xf32>,
    %c12_402 = arith.constant 12 : index
    %c0_403 = arith.constant 0 : index
    %c0_404 = arith.constant 0 : index
    %445 = vector.load %arg14[%c12_402, %c0_403, %c0_404] : memref<18x18x48xf32, #tpu.memory_space<vmem>>, vector<4x16x32xf32>
    %446 = vector.shape_cast %445 : vector<4x16x32xf32> to vector<64x32xf32>
    %447 = arith.truncf %446 : vector<64x32xf32> to vector<64x32xbf16>
    %c12_405 = arith.constant 12 : index
    %c1_406 = arith.constant 1 : index
    %c0_407 = arith.constant 0 : index
    %448 = vector.load %arg14[%c12_405, %c1_406, %c0_407] : memref<18x18x48xf32, #tpu.memory_space<vmem>>, vector<4x16x32xf32>
    %449 = vector.shape_cast %448 : vector<4x16x32xf32> to vector<64x32xf32>
    %450 = arith.truncf %449 : vector<64x32xf32> to vector<64x32xbf16>
    %c12_408 = arith.constant 12 : index
    %c2_409 = arith.constant 2 : index
    %c0_410 = arith.constant 0 : index
    %451 = vector.load %arg14[%c12_408, %c2_409, %c0_410] : memref<18x18x48xf32, #tpu.memory_space<vmem>>, vector<4x16x32xf32>
    %452 = vector.shape_cast %451 : vector<4x16x32xf32> to vector<64x32xf32>
    %453 = arith.truncf %452 : vector<64x32xf32> to vector<64x32xbf16>
    %c13_411 = arith.constant 13 : index
    %c0_412 = arith.constant 0 : index
    %c0_413 = arith.constant 0 : index
    %454 = vector.load %arg14[%c13_411, %c0_412, %c0_413] : memref<18x18x48xf32, #tpu.memory_space<vmem>>, vector<4x16x32xf32>
    %455 = vector.shape_cast %454 : vector<4x16x32xf32> to vector<64x32xf32>
    %456 = arith.truncf %455 : vector<64x32xf32> to vector<64x32xbf16>
    %c13_414 = arith.constant 13 : index
    %c1_415 = arith.constant 1 : index
    %c0_416 = arith.constant 0 : index
    %457 = vector.load %arg14[%c13_414, %c1_415, %c0_416] : memref<18x18x48xf32, #tpu.memory_space<vmem>>, vector<4x16x32xf32>
    %458 = vector.shape_cast %457 : vector<4x16x32xf32> to vector<64x32xf32>
    %459 = arith.truncf %458 : vector<64x32xf32> to vector<64x32xbf16>
    %c13_417 = arith.constant 13 : index
    %c2_418 = arith.constant 2 : index
    %c0_419 = arith.constant 0 : index
    %460 = vector.load %arg14[%c13_417, %c2_418, %c0_419] : memref<18x18x48xf32, #tpu.memory_space<vmem>>, vector<4x16x32xf32>
    %461 = vector.shape_cast %460 : vector<4x16x32xf32> to vector<64x32xf32>
    %462 = arith.truncf %461 : vector<64x32xf32> to vector<64x32xbf16>
    %c14_420 = arith.constant 14 : index
    %c0_421 = arith.constant 0 : index
    %c0_422 = arith.constant 0 : index
    %463 = vector.load %arg14[%c14_420, %c0_421, %c0_422] : memref<18x18x48xf32, #tpu.memory_space<vmem>>, vector<4x16x32xf32>
    %464 = vector.shape_cast %463 : vector<4x16x32xf32> to vector<64x32xf32>
    %465 = arith.truncf %464 : vector<64x32xf32> to vector<64x32xbf16>
    %c14_423 = arith.constant 14 : index
    %c1_424 = arith.constant 1 : index
    %c0_425 = arith.constant 0 : index
    %466 = vector.load %arg14[%c14_423, %c1_424, %c0_425] : memref<18x18x48xf32, #tpu.memory_space<vmem>>, vector<4x16x32xf32>
    %467 = vector.shape_cast %466 : vector<4x16x32xf32> to vector<64x32xf32>
    %468 = arith.truncf %467 : vector<64x32xf32> to vector<64x32xbf16>
    %c14_426 = arith.constant 14 : index
    %c2_427 = arith.constant 2 : index
    %c0_428 = arith.constant 0 : index
    %469 = vector.load %arg14[%c14_426, %c2_427, %c0_428] : memref<18x18x48xf32, #tpu.memory_space<vmem>>, vector<4x16x32xf32>
    %470 = vector.shape_cast %469 : vector<4x16x32xf32> to vector<64x32xf32>
    %471 = arith.truncf %470 : vector<64x32xf32> to vector<64x32xbf16>
    %472 = tpu.concatenate %447, %450, %453, %456, %459, %462, %465, %468, %471 in 1 : vector<64x32xbf16>, vector<64x32xbf16>, vector<64x32xbf16>, vector<64x32xbf16>, vector<64x32xbf16>, vector<64x32xbf16>, vector<64x32xbf16>, vector<64x32xbf16>, vector<64x32xbf16> -> vector<64x288xbf16>
    %c0_429 = arith.constant 0 : index
    %c0_430 = arith.constant 0 : index
    %473 = vector.load %arg5[%c0_429, %c0_430] : memref<288x8xbf16, #tpu.memory_space<vmem>>, vector<288x8xbf16>
    %cst_431 = arith.constant dense<0.000000e+00> : vector<64x8xf32>
    %474 = tpu.matmul %472, %473, %cst_431 {dimension_numbers = #tpu.dot_dimension_numbers<[1], [0], [0], [1], [0, 0, 1, 1], [], []>} : vector<64x288xbf16>, vector<288x8xbf16>, vector<64x8xf32> -> vector<64x8xf32>
    %c0_432 = arith.constant 0 : index
    %c0_433 = arith.constant 0 : index
    %475 = vector.load %arg10[%c0_432, %c0_433] : memref<1x8xf32, #tpu.memory_space<vmem>>, vector<1x8xf32>
    %476 = vector.broadcast %475 : vector<1x8xf32> to vector<64x8xf32>
    %477 = arith.addf %474, %476 : vector<64x8xf32>
    %cst_434 = arith.constant 0.000000e+00 : f32
    %478 = vector.broadcast %cst_434 : f32 to vector<64x8xf32>
    %479 = arith.cmpf oge, %477, %478 : vector<64x8xf32>
    %cst_435 = arith.constant 2.000000e-01 : f32
    %480 = vector.broadcast %cst_435 : f32 to vector<64x8xf32>
    %481 = arith.mulf %480, %477 : vector<64x8xf32>
    %482 = arith.select %479, %477, %481 : vector<64x8xi1>, vector<64x8xf32>
    %483 = vector.shape_cast %482 : vector<64x8xf32> to vector<4x16x8xf32>
    %c13_436 = arith.constant 13 : index
    %c1_437 = arith.constant 1 : index
    %c32_438 = arith.constant 32 : index
    %484 = vector.load %arg14[%c13_436, %c1_437, %c32_438] : memref<18x18x48xf32, #tpu.memory_space<vmem>>, vector<4x16x8xf32>
    tpu.vector_store %arg14[%c13_436, %c1_437, %c32_438], %483 {strides = array<i32>} : memref<18x18x48xf32, #tpu.memory_space<vmem>>, vector<4x16x8xf32>,
    %c0_439 = arith.constant 0 : index
    %c0_440 = arith.constant 0 : index
    %c0_441 = arith.constant 0 : index
    %485 = vector.load %arg14[%c0_439, %c0_440, %c0_441] : memref<18x18x48xf32, #tpu.memory_space<vmem>>, vector<4x16x40xf32>
    %486 = vector.shape_cast %485 : vector<4x16x40xf32> to vector<64x40xf32>
    %487 = arith.truncf %486 : vector<64x40xf32> to vector<64x40xbf16>
    %c0_442 = arith.constant 0 : index
    %c1_443 = arith.constant 1 : index
    %c0_444 = arith.constant 0 : index
    %488 = vector.load %arg14[%c0_442, %c1_443, %c0_444] : memref<18x18x48xf32, #tpu.memory_space<vmem>>, vector<4x16x40xf32>
    %489 = vector.shape_cast %488 : vector<4x16x40xf32> to vector<64x40xf32>
    %490 = arith.truncf %489 : vector<64x40xf32> to vector<64x40xbf16>
    %c0_445 = arith.constant 0 : index
    %c2_446 = arith.constant 2 : index
    %c0_447 = arith.constant 0 : index
    %491 = vector.load %arg14[%c0_445, %c2_446, %c0_447] : memref<18x18x48xf32, #tpu.memory_space<vmem>>, vector<4x16x40xf32>
    %492 = vector.shape_cast %491 : vector<4x16x40xf32> to vector<64x40xf32>
    %493 = arith.truncf %492 : vector<64x40xf32> to vector<64x40xbf16>
    %c1_448 = arith.constant 1 : index
    %c0_449 = arith.constant 0 : index
    %c0_450 = arith.constant 0 : index
    %494 = vector.load %arg14[%c1_448, %c0_449, %c0_450] : memref<18x18x48xf32, #tpu.memory_space<vmem>>, vector<4x16x40xf32>
    %495 = vector.shape_cast %494 : vector<4x16x40xf32> to vector<64x40xf32>
    %496 = arith.truncf %495 : vector<64x40xf32> to vector<64x40xbf16>
    %c1_451 = arith.constant 1 : index
    %c1_452 = arith.constant 1 : index
    %c0_453 = arith.constant 0 : index
    %497 = vector.load %arg14[%c1_451, %c1_452, %c0_453] : memref<18x18x48xf32, #tpu.memory_space<vmem>>, vector<4x16x40xf32>
    %498 = vector.shape_cast %497 : vector<4x16x40xf32> to vector<64x40xf32>
    %499 = arith.truncf %498 : vector<64x40xf32> to vector<64x40xbf16>
    %c1_454 = arith.constant 1 : index
    %c2_455 = arith.constant 2 : index
    %c0_456 = arith.constant 0 : index
    %500 = vector.load %arg14[%c1_454, %c2_455, %c0_456] : memref<18x18x48xf32, #tpu.memory_space<vmem>>, vector<4x16x40xf32>
    %501 = vector.shape_cast %500 : vector<4x16x40xf32> to vector<64x40xf32>
    %502 = arith.truncf %501 : vector<64x40xf32> to vector<64x40xbf16>
    %c2_457 = arith.constant 2 : index
    %c0_458 = arith.constant 0 : index
    %c0_459 = arith.constant 0 : index
    %503 = vector.load %arg14[%c2_457, %c0_458, %c0_459] : memref<18x18x48xf32, #tpu.memory_space<vmem>>, vector<4x16x40xf32>
    %504 = vector.shape_cast %503 : vector<4x16x40xf32> to vector<64x40xf32>
    %505 = arith.truncf %504 : vector<64x40xf32> to vector<64x40xbf16>
    %c2_460 = arith.constant 2 : index
    %c1_461 = arith.constant 1 : index
    %c0_462 = arith.constant 0 : index
    %506 = vector.load %arg14[%c2_460, %c1_461, %c0_462] : memref<18x18x48xf32, #tpu.memory_space<vmem>>, vector<4x16x40xf32>
    %507 = vector.shape_cast %506 : vector<4x16x40xf32> to vector<64x40xf32>
    %508 = arith.truncf %507 : vector<64x40xf32> to vector<64x40xbf16>
    %c2_463 = arith.constant 2 : index
    %c2_464 = arith.constant 2 : index
    %c0_465 = arith.constant 0 : index
    %509 = vector.load %arg14[%c2_463, %c2_464, %c0_465] : memref<18x18x48xf32, #tpu.memory_space<vmem>>, vector<4x16x40xf32>
    %510 = vector.shape_cast %509 : vector<4x16x40xf32> to vector<64x40xf32>
    %511 = arith.truncf %510 : vector<64x40xf32> to vector<64x40xbf16>
    %512 = tpu.concatenate %487, %490, %493, %496, %499, %502, %505, %508, %511 in 1 : vector<64x40xbf16>, vector<64x40xbf16>, vector<64x40xbf16>, vector<64x40xbf16>, vector<64x40xbf16>, vector<64x40xbf16>, vector<64x40xbf16>, vector<64x40xbf16>, vector<64x40xbf16> -> vector<64x360xbf16>
    %c0_466 = arith.constant 0 : index
    %c0_467 = arith.constant 0 : index
    %513 = vector.load %arg6[%c0_466, %c0_467] : memref<360x8xbf16, #tpu.memory_space<vmem>>, vector<360x8xbf16>
    %cst_468 = arith.constant dense<0.000000e+00> : vector<64x8xf32>
    %514 = tpu.matmul %512, %513, %cst_468 {dimension_numbers = #tpu.dot_dimension_numbers<[1], [0], [0], [1], [0, 0, 1, 1], [], []>} : vector<64x360xbf16>, vector<360x8xbf16>, vector<64x8xf32> -> vector<64x8xf32>
    %c0_469 = arith.constant 0 : index
    %c0_470 = arith.constant 0 : index
    %515 = vector.load %arg11[%c0_469, %c0_470] : memref<1x8xf32, #tpu.memory_space<vmem>>, vector<1x8xf32>
    %516 = vector.broadcast %515 : vector<1x8xf32> to vector<64x8xf32>
    %517 = arith.addf %514, %516 : vector<64x8xf32>
    %cst_471 = arith.constant 0.000000e+00 : f32
    %518 = vector.broadcast %cst_471 : f32 to vector<64x8xf32>
    %519 = arith.cmpf oge, %517, %518 : vector<64x8xf32>
    %cst_472 = arith.constant 2.000000e-01 : f32
    %520 = vector.broadcast %cst_472 : f32 to vector<64x8xf32>
    %521 = arith.mulf %520, %517 : vector<64x8xf32>
    %522 = arith.select %519, %517, %521 : vector<64x8xi1>, vector<64x8xf32>
    %523 = vector.shape_cast %522 : vector<64x8xf32> to vector<4x16x8xf32>
    %c1_473 = arith.constant 1 : index
    %c1_474 = arith.constant 1 : index
    %c40 = arith.constant 40 : index
    %524 = vector.load %arg14[%c1_473, %c1_474, %c40] : memref<18x18x48xf32, #tpu.memory_space<vmem>>, vector<4x16x8xf32>
    tpu.vector_store %arg14[%c1_473, %c1_474, %c40], %523 {strides = array<i32>} : memref<18x18x48xf32, #tpu.memory_space<vmem>>, vector<4x16x8xf32>,
    %c4_475 = arith.constant 4 : index
    %c0_476 = arith.constant 0 : index
    %c0_477 = arith.constant 0 : index
    %525 = vector.load %arg14[%c4_475, %c0_476, %c0_477] : memref<18x18x48xf32, #tpu.memory_space<vmem>>, vector<4x16x40xf32>
    %526 = vector.shape_cast %525 : vector<4x16x40xf32> to vector<64x40xf32>
    %527 = arith.truncf %526 : vector<64x40xf32> to vector<64x40xbf16>
    %c4_478 = arith.constant 4 : index
    %c1_479 = arith.constant 1 : index
    %c0_480 = arith.constant 0 : index
    %528 = vector.load %arg14[%c4_478, %c1_479, %c0_480] : memref<18x18x48xf32, #tpu.memory_space<vmem>>, vector<4x16x40xf32>
    %529 = vector.shape_cast %528 : vector<4x16x40xf32> to vector<64x40xf32>
    %530 = arith.truncf %529 : vector<64x40xf32> to vector<64x40xbf16>
    %c4_481 = arith.constant 4 : index
    %c2_482 = arith.constant 2 : index
    %c0_483 = arith.constant 0 : index
    %531 = vector.load %arg14[%c4_481, %c2_482, %c0_483] : memref<18x18x48xf32, #tpu.memory_space<vmem>>, vector<4x16x40xf32>
    %532 = vector.shape_cast %531 : vector<4x16x40xf32> to vector<64x40xf32>
    %533 = arith.truncf %532 : vector<64x40xf32> to vector<64x40xbf16>
    %c5_484 = arith.constant 5 : index
    %c0_485 = arith.constant 0 : index
    %c0_486 = arith.constant 0 : index
    %534 = vector.load %arg14[%c5_484, %c0_485, %c0_486] : memref<18x18x48xf32, #tpu.memory_space<vmem>>, vector<4x16x40xf32>
    %535 = vector.shape_cast %534 : vector<4x16x40xf32> to vector<64x40xf32>
    %536 = arith.truncf %535 : vector<64x40xf32> to vector<64x40xbf16>
    %c5_487 = arith.constant 5 : index
    %c1_488 = arith.constant 1 : index
    %c0_489 = arith.constant 0 : index
    %537 = vector.load %arg14[%c5_487, %c1_488, %c0_489] : memref<18x18x48xf32, #tpu.memory_space<vmem>>, vector<4x16x40xf32>
    %538 = vector.shape_cast %537 : vector<4x16x40xf32> to vector<64x40xf32>
    %539 = arith.truncf %538 : vector<64x40xf32> to vector<64x40xbf16>
    %c5_490 = arith.constant 5 : index
    %c2_491 = arith.constant 2 : index
    %c0_492 = arith.constant 0 : index
    %540 = vector.load %arg14[%c5_490, %c2_491, %c0_492] : memref<18x18x48xf32, #tpu.memory_space<vmem>>, vector<4x16x40xf32>
    %541 = vector.shape_cast %540 : vector<4x16x40xf32> to vector<64x40xf32>
    %542 = arith.truncf %541 : vector<64x40xf32> to vector<64x40xbf16>
    %c6_493 = arith.constant 6 : index
    %c0_494 = arith.constant 0 : index
    %c0_495 = arith.constant 0 : index
    %543 = vector.load %arg14[%c6_493, %c0_494, %c0_495] : memref<18x18x48xf32, #tpu.memory_space<vmem>>, vector<4x16x40xf32>
    %544 = vector.shape_cast %543 : vector<4x16x40xf32> to vector<64x40xf32>
    %545 = arith.truncf %544 : vector<64x40xf32> to vector<64x40xbf16>
    %c6_496 = arith.constant 6 : index
    %c1_497 = arith.constant 1 : index
    %c0_498 = arith.constant 0 : index
    %546 = vector.load %arg14[%c6_496, %c1_497, %c0_498] : memref<18x18x48xf32, #tpu.memory_space<vmem>>, vector<4x16x40xf32>
    %547 = vector.shape_cast %546 : vector<4x16x40xf32> to vector<64x40xf32>
    %548 = arith.truncf %547 : vector<64x40xf32> to vector<64x40xbf16>
    %c6_499 = arith.constant 6 : index
    %c2_500 = arith.constant 2 : index
    %c0_501 = arith.constant 0 : index
    %549 = vector.load %arg14[%c6_499, %c2_500, %c0_501] : memref<18x18x48xf32, #tpu.memory_space<vmem>>, vector<4x16x40xf32>
    %550 = vector.shape_cast %549 : vector<4x16x40xf32> to vector<64x40xf32>
    %551 = arith.truncf %550 : vector<64x40xf32> to vector<64x40xbf16>
    %552 = tpu.concatenate %527, %530, %533, %536, %539, %542, %545, %548, %551 in 1 : vector<64x40xbf16>, vector<64x40xbf16>, vector<64x40xbf16>, vector<64x40xbf16>, vector<64x40xbf16>, vector<64x40xbf16>, vector<64x40xbf16>, vector<64x40xbf16>, vector<64x40xbf16> -> vector<64x360xbf16>
    %c0_502 = arith.constant 0 : index
    %c0_503 = arith.constant 0 : index
    %553 = vector.load %arg6[%c0_502, %c0_503] : memref<360x8xbf16, #tpu.memory_space<vmem>>, vector<360x8xbf16>
    %cst_504 = arith.constant dense<0.000000e+00> : vector<64x8xf32>
    %554 = tpu.matmul %552, %553, %cst_504 {dimension_numbers = #tpu.dot_dimension_numbers<[1], [0], [0], [1], [0, 0, 1, 1], [], []>} : vector<64x360xbf16>, vector<360x8xbf16>, vector<64x8xf32> -> vector<64x8xf32>
    %c0_505 = arith.constant 0 : index
    %c0_506 = arith.constant 0 : index
    %555 = vector.load %arg11[%c0_505, %c0_506] : memref<1x8xf32, #tpu.memory_space<vmem>>, vector<1x8xf32>
    %556 = vector.broadcast %555 : vector<1x8xf32> to vector<64x8xf32>
    %557 = arith.addf %554, %556 : vector<64x8xf32>
    %cst_507 = arith.constant 0.000000e+00 : f32
    %558 = vector.broadcast %cst_507 : f32 to vector<64x8xf32>
    %559 = arith.cmpf oge, %557, %558 : vector<64x8xf32>
    %cst_508 = arith.constant 2.000000e-01 : f32
    %560 = vector.broadcast %cst_508 : f32 to vector<64x8xf32>
    %561 = arith.mulf %560, %557 : vector<64x8xf32>
    %562 = arith.select %559, %557, %561 : vector<64x8xi1>, vector<64x8xf32>
    %563 = vector.shape_cast %562 : vector<64x8xf32> to vector<4x16x8xf32>
    %c5_509 = arith.constant 5 : index
    %c1_510 = arith.constant 1 : index
    %c40_511 = arith.constant 40 : index
    %564 = vector.load %arg14[%c5_509, %c1_510, %c40_511] : memref<18x18x48xf32, #tpu.memory_space<vmem>>, vector<4x16x8xf32>
    tpu.vector_store %arg14[%c5_509, %c1_510, %c40_511], %563 {strides = array<i32>} : memref<18x18x48xf32, #tpu.memory_space<vmem>>, vector<4x16x8xf32>,
    %c8_512 = arith.constant 8 : index
    %c0_513 = arith.constant 0 : index
    %c0_514 = arith.constant 0 : index
    %565 = vector.load %arg14[%c8_512, %c0_513, %c0_514] : memref<18x18x48xf32, #tpu.memory_space<vmem>>, vector<4x16x40xf32>
    %566 = vector.shape_cast %565 : vector<4x16x40xf32> to vector<64x40xf32>
    %567 = arith.truncf %566 : vector<64x40xf32> to vector<64x40xbf16>
    %c8_515 = arith.constant 8 : index
    %c1_516 = arith.constant 1 : index
    %c0_517 = arith.constant 0 : index
    %568 = vector.load %arg14[%c8_515, %c1_516, %c0_517] : memref<18x18x48xf32, #tpu.memory_space<vmem>>, vector<4x16x40xf32>
    %569 = vector.shape_cast %568 : vector<4x16x40xf32> to vector<64x40xf32>
    %570 = arith.truncf %569 : vector<64x40xf32> to vector<64x40xbf16>
    %c8_518 = arith.constant 8 : index
    %c2_519 = arith.constant 2 : index
    %c0_520 = arith.constant 0 : index
    %571 = vector.load %arg14[%c8_518, %c2_519, %c0_520] : memref<18x18x48xf32, #tpu.memory_space<vmem>>, vector<4x16x40xf32>
    %572 = vector.shape_cast %571 : vector<4x16x40xf32> to vector<64x40xf32>
    %573 = arith.truncf %572 : vector<64x40xf32> to vector<64x40xbf16>
    %c9_521 = arith.constant 9 : index
    %c0_522 = arith.constant 0 : index
    %c0_523 = arith.constant 0 : index
    %574 = vector.load %arg14[%c9_521, %c0_522, %c0_523] : memref<18x18x48xf32, #tpu.memory_space<vmem>>, vector<4x16x40xf32>
    %575 = vector.shape_cast %574 : vector<4x16x40xf32> to vector<64x40xf32>
    %576 = arith.truncf %575 : vector<64x40xf32> to vector<64x40xbf16>
    %c9_524 = arith.constant 9 : index
    %c1_525 = arith.constant 1 : index
    %c0_526 = arith.constant 0 : index
    %577 = vector.load %arg14[%c9_524, %c1_525, %c0_526] : memref<18x18x48xf32, #tpu.memory_space<vmem>>, vector<4x16x40xf32>
    %578 = vector.shape_cast %577 : vector<4x16x40xf32> to vector<64x40xf32>
    %579 = arith.truncf %578 : vector<64x40xf32> to vector<64x40xbf16>
    %c9_527 = arith.constant 9 : index
    %c2_528 = arith.constant 2 : index
    %c0_529 = arith.constant 0 : index
    %580 = vector.load %arg14[%c9_527, %c2_528, %c0_529] : memref<18x18x48xf32, #tpu.memory_space<vmem>>, vector<4x16x40xf32>
    %581 = vector.shape_cast %580 : vector<4x16x40xf32> to vector<64x40xf32>
    %582 = arith.truncf %581 : vector<64x40xf32> to vector<64x40xbf16>
    %c10_530 = arith.constant 10 : index
    %c0_531 = arith.constant 0 : index
    %c0_532 = arith.constant 0 : index
    %583 = vector.load %arg14[%c10_530, %c0_531, %c0_532] : memref<18x18x48xf32, #tpu.memory_space<vmem>>, vector<4x16x40xf32>
    %584 = vector.shape_cast %583 : vector<4x16x40xf32> to vector<64x40xf32>
    %585 = arith.truncf %584 : vector<64x40xf32> to vector<64x40xbf16>
    %c10_533 = arith.constant 10 : index
    %c1_534 = arith.constant 1 : index
    %c0_535 = arith.constant 0 : index
    %586 = vector.load %arg14[%c10_533, %c1_534, %c0_535] : memref<18x18x48xf32, #tpu.memory_space<vmem>>, vector<4x16x40xf32>
    %587 = vector.shape_cast %586 : vector<4x16x40xf32> to vector<64x40xf32>
    %588 = arith.truncf %587 : vector<64x40xf32> to vector<64x40xbf16>
    %c10_536 = arith.constant 10 : index
    %c2_537 = arith.constant 2 : index
    %c0_538 = arith.constant 0 : index
    %589 = vector.load %arg14[%c10_536, %c2_537, %c0_538] : memref<18x18x48xf32, #tpu.memory_space<vmem>>, vector<4x16x40xf32>
    %590 = vector.shape_cast %589 : vector<4x16x40xf32> to vector<64x40xf32>
    %591 = arith.truncf %590 : vector<64x40xf32> to vector<64x40xbf16>
    %592 = tpu.concatenate %567, %570, %573, %576, %579, %582, %585, %588, %591 in 1 : vector<64x40xbf16>, vector<64x40xbf16>, vector<64x40xbf16>, vector<64x40xbf16>, vector<64x40xbf16>, vector<64x40xbf16>, vector<64x40xbf16>, vector<64x40xbf16>, vector<64x40xbf16> -> vector<64x360xbf16>
    %c0_539 = arith.constant 0 : index
    %c0_540 = arith.constant 0 : index
    %593 = vector.load %arg6[%c0_539, %c0_540] : memref<360x8xbf16, #tpu.memory_space<vmem>>, vector<360x8xbf16>
    %cst_541 = arith.constant dense<0.000000e+00> : vector<64x8xf32>
    %594 = tpu.matmul %592, %593, %cst_541 {dimension_numbers = #tpu.dot_dimension_numbers<[1], [0], [0], [1], [0, 0, 1, 1], [], []>} : vector<64x360xbf16>, vector<360x8xbf16>, vector<64x8xf32> -> vector<64x8xf32>
    %c0_542 = arith.constant 0 : index
    %c0_543 = arith.constant 0 : index
    %595 = vector.load %arg11[%c0_542, %c0_543] : memref<1x8xf32, #tpu.memory_space<vmem>>, vector<1x8xf32>
    %596 = vector.broadcast %595 : vector<1x8xf32> to vector<64x8xf32>
    %597 = arith.addf %594, %596 : vector<64x8xf32>
    %cst_544 = arith.constant 0.000000e+00 : f32
    %598 = vector.broadcast %cst_544 : f32 to vector<64x8xf32>
    %599 = arith.cmpf oge, %597, %598 : vector<64x8xf32>
    %cst_545 = arith.constant 2.000000e-01 : f32
    %600 = vector.broadcast %cst_545 : f32 to vector<64x8xf32>
    %601 = arith.mulf %600, %597 : vector<64x8xf32>
    %602 = arith.select %599, %597, %601 : vector<64x8xi1>, vector<64x8xf32>
    %603 = vector.shape_cast %602 : vector<64x8xf32> to vector<4x16x8xf32>
    %c9_546 = arith.constant 9 : index
    %c1_547 = arith.constant 1 : index
    %c40_548 = arith.constant 40 : index
    %604 = vector.load %arg14[%c9_546, %c1_547, %c40_548] : memref<18x18x48xf32, #tpu.memory_space<vmem>>, vector<4x16x8xf32>
    tpu.vector_store %arg14[%c9_546, %c1_547, %c40_548], %603 {strides = array<i32>} : memref<18x18x48xf32, #tpu.memory_space<vmem>>, vector<4x16x8xf32>,
    %c12_549 = arith.constant 12 : index
    %c0_550 = arith.constant 0 : index
    %c0_551 = arith.constant 0 : index
    %605 = vector.load %arg14[%c12_549, %c0_550, %c0_551] : memref<18x18x48xf32, #tpu.memory_space<vmem>>, vector<4x16x40xf32>
    %606 = vector.shape_cast %605 : vector<4x16x40xf32> to vector<64x40xf32>
    %607 = arith.truncf %606 : vector<64x40xf32> to vector<64x40xbf16>
    %c12_552 = arith.constant 12 : index
    %c1_553 = arith.constant 1 : index
    %c0_554 = arith.constant 0 : index
    %608 = vector.load %arg14[%c12_552, %c1_553, %c0_554] : memref<18x18x48xf32, #tpu.memory_space<vmem>>, vector<4x16x40xf32>
    %609 = vector.shape_cast %608 : vector<4x16x40xf32> to vector<64x40xf32>
    %610 = arith.truncf %609 : vector<64x40xf32> to vector<64x40xbf16>
    %c12_555 = arith.constant 12 : index
    %c2_556 = arith.constant 2 : index
    %c0_557 = arith.constant 0 : index
    %611 = vector.load %arg14[%c12_555, %c2_556, %c0_557] : memref<18x18x48xf32, #tpu.memory_space<vmem>>, vector<4x16x40xf32>
    %612 = vector.shape_cast %611 : vector<4x16x40xf32> to vector<64x40xf32>
    %613 = arith.truncf %612 : vector<64x40xf32> to vector<64x40xbf16>
    %c13_558 = arith.constant 13 : index
    %c0_559 = arith.constant 0 : index
    %c0_560 = arith.constant 0 : index
    %614 = vector.load %arg14[%c13_558, %c0_559, %c0_560] : memref<18x18x48xf32, #tpu.memory_space<vmem>>, vector<4x16x40xf32>
    %615 = vector.shape_cast %614 : vector<4x16x40xf32> to vector<64x40xf32>
    %616 = arith.truncf %615 : vector<64x40xf32> to vector<64x40xbf16>
    %c13_561 = arith.constant 13 : index
    %c1_562 = arith.constant 1 : index
    %c0_563 = arith.constant 0 : index
    %617 = vector.load %arg14[%c13_561, %c1_562, %c0_563] : memref<18x18x48xf32, #tpu.memory_space<vmem>>, vector<4x16x40xf32>
    %618 = vector.shape_cast %617 : vector<4x16x40xf32> to vector<64x40xf32>
    %619 = arith.truncf %618 : vector<64x40xf32> to vector<64x40xbf16>
    %c13_564 = arith.constant 13 : index
    %c2_565 = arith.constant 2 : index
    %c0_566 = arith.constant 0 : index
    %620 = vector.load %arg14[%c13_564, %c2_565, %c0_566] : memref<18x18x48xf32, #tpu.memory_space<vmem>>, vector<4x16x40xf32>
    %621 = vector.shape_cast %620 : vector<4x16x40xf32> to vector<64x40xf32>
    %622 = arith.truncf %621 : vector<64x40xf32> to vector<64x40xbf16>
    %c14_567 = arith.constant 14 : index
    %c0_568 = arith.constant 0 : index
    %c0_569 = arith.constant 0 : index
    %623 = vector.load %arg14[%c14_567, %c0_568, %c0_569] : memref<18x18x48xf32, #tpu.memory_space<vmem>>, vector<4x16x40xf32>
    %624 = vector.shape_cast %623 : vector<4x16x40xf32> to vector<64x40xf32>
    %625 = arith.truncf %624 : vector<64x40xf32> to vector<64x40xbf16>
    %c14_570 = arith.constant 14 : index
    %c1_571 = arith.constant 1 : index
    %c0_572 = arith.constant 0 : index
    %626 = vector.load %arg14[%c14_570, %c1_571, %c0_572] : memref<18x18x48xf32, #tpu.memory_space<vmem>>, vector<4x16x40xf32>
    %627 = vector.shape_cast %626 : vector<4x16x40xf32> to vector<64x40xf32>
    %628 = arith.truncf %627 : vector<64x40xf32> to vector<64x40xbf16>
    %c14_573 = arith.constant 14 : index
    %c2_574 = arith.constant 2 : index
    %c0_575 = arith.constant 0 : index
    %629 = vector.load %arg14[%c14_573, %c2_574, %c0_575] : memref<18x18x48xf32, #tpu.memory_space<vmem>>, vector<4x16x40xf32>
    %630 = vector.shape_cast %629 : vector<4x16x40xf32> to vector<64x40xf32>
    %631 = arith.truncf %630 : vector<64x40xf32> to vector<64x40xbf16>
    %632 = tpu.concatenate %607, %610, %613, %616, %619, %622, %625, %628, %631 in 1 : vector<64x40xbf16>, vector<64x40xbf16>, vector<64x40xbf16>, vector<64x40xbf16>, vector<64x40xbf16>, vector<64x40xbf16>, vector<64x40xbf16>, vector<64x40xbf16>, vector<64x40xbf16> -> vector<64x360xbf16>
    %c0_576 = arith.constant 0 : index
    %c0_577 = arith.constant 0 : index
    %633 = vector.load %arg6[%c0_576, %c0_577] : memref<360x8xbf16, #tpu.memory_space<vmem>>, vector<360x8xbf16>
    %cst_578 = arith.constant dense<0.000000e+00> : vector<64x8xf32>
    %634 = tpu.matmul %632, %633, %cst_578 {dimension_numbers = #tpu.dot_dimension_numbers<[1], [0], [0], [1], [0, 0, 1, 1], [], []>} : vector<64x360xbf16>, vector<360x8xbf16>, vector<64x8xf32> -> vector<64x8xf32>
    %c0_579 = arith.constant 0 : index
    %c0_580 = arith.constant 0 : index
    %635 = vector.load %arg11[%c0_579, %c0_580] : memref<1x8xf32, #tpu.memory_space<vmem>>, vector<1x8xf32>
    %636 = vector.broadcast %635 : vector<1x8xf32> to vector<64x8xf32>
    %637 = arith.addf %634, %636 : vector<64x8xf32>
    %cst_581 = arith.constant 0.000000e+00 : f32
    %638 = vector.broadcast %cst_581 : f32 to vector<64x8xf32>
    %639 = arith.cmpf oge, %637, %638 : vector<64x8xf32>
    %cst_582 = arith.constant 2.000000e-01 : f32
    %640 = vector.broadcast %cst_582 : f32 to vector<64x8xf32>
    %641 = arith.mulf %640, %637 : vector<64x8xf32>
    %642 = arith.select %639, %637, %641 : vector<64x8xi1>, vector<64x8xf32>
    %643 = vector.shape_cast %642 : vector<64x8xf32> to vector<4x16x8xf32>
    %c13_583 = arith.constant 13 : index
    %c1_584 = arith.constant 1 : index
    %c40_585 = arith.constant 40 : index
    %644 = vector.load %arg14[%c13_583, %c1_584, %c40_585] : memref<18x18x48xf32, #tpu.memory_space<vmem>>, vector<4x16x8xf32>
    tpu.vector_store %arg14[%c13_583, %c1_584, %c40_585], %643 {strides = array<i32>} : memref<18x18x48xf32, #tpu.memory_space<vmem>>, vector<4x16x8xf32>,
    %c0_586 = arith.constant 0 : index
    %c0_587 = arith.constant 0 : index
    %645 = vector.load %arg7[%c0_586, %c0_587] : memref<16x432xbf16, #tpu.memory_space<vmem>>, vector<16x432xbf16>
    %c0_588 = arith.constant 0 : index
    %c0_589 = arith.constant 0 : index
    %646 = vector.load %arg12[%c0_588, %c0_589] : memref<16x1xf32, #tpu.memory_space<vmem>>, vector<16x1xf32>
    %c0_590 = arith.constant 0 : index
    %c0_591 = arith.constant 0 : index
    %c0_592 = arith.constant 0 : index
    %647 = vector.load %arg14[%c0_590, %c0_591, %c0_592] : memref<18x18x48xf32, #tpu.memory_space<vmem>>, vector<4x16x48xf32>
    %648 = vector.shape_cast %647 : vector<4x16x48xf32> to vector<64x48xf32>
    %649 = arith.truncf %648 : vector<64x48xf32> to vector<64x48xbf16>
    %c0_593 = arith.constant 0 : index
    %c1_594 = arith.constant 1 : index
    %c0_595 = arith.constant 0 : index
    %650 = vector.load %arg14[%c0_593, %c1_594, %c0_595] : memref<18x18x48xf32, #tpu.memory_space<vmem>>, vector<4x16x48xf32>
    %651 = vector.shape_cast %650 : vector<4x16x48xf32> to vector<64x48xf32>
    %652 = arith.truncf %651 : vector<64x48xf32> to vector<64x48xbf16>
    %c0_596 = arith.constant 0 : index
    %c2_597 = arith.constant 2 : index
    %c0_598 = arith.constant 0 : index
    %653 = vector.load %arg14[%c0_596, %c2_597, %c0_598] : memref<18x18x48xf32, #tpu.memory_space<vmem>>, vector<4x16x48xf32>
    %654 = vector.shape_cast %653 : vector<4x16x48xf32> to vector<64x48xf32>
    %655 = arith.truncf %654 : vector<64x48xf32> to vector<64x48xbf16>
    %c1_599 = arith.constant 1 : index
    %c0_600 = arith.constant 0 : index
    %c0_601 = arith.constant 0 : index
    %656 = vector.load %arg14[%c1_599, %c0_600, %c0_601] : memref<18x18x48xf32, #tpu.memory_space<vmem>>, vector<4x16x48xf32>
    %657 = vector.shape_cast %656 : vector<4x16x48xf32> to vector<64x48xf32>
    %658 = arith.truncf %657 : vector<64x48xf32> to vector<64x48xbf16>
    %c1_602 = arith.constant 1 : index
    %c1_603 = arith.constant 1 : index
    %c0_604 = arith.constant 0 : index
    %659 = vector.load %arg14[%c1_602, %c1_603, %c0_604] : memref<18x18x48xf32, #tpu.memory_space<vmem>>, vector<4x16x48xf32>
    %660 = vector.shape_cast %659 : vector<4x16x48xf32> to vector<64x48xf32>
    %661 = arith.truncf %660 : vector<64x48xf32> to vector<64x48xbf16>
    %c1_605 = arith.constant 1 : index
    %c2_606 = arith.constant 2 : index
    %c0_607 = arith.constant 0 : index
    %662 = vector.load %arg14[%c1_605, %c2_606, %c0_607] : memref<18x18x48xf32, #tpu.memory_space<vmem>>, vector<4x16x48xf32>
    %663 = vector.shape_cast %662 : vector<4x16x48xf32> to vector<64x48xf32>
    %664 = arith.truncf %663 : vector<64x48xf32> to vector<64x48xbf16>
    %c2_608 = arith.constant 2 : index
    %c0_609 = arith.constant 0 : index
    %c0_610 = arith.constant 0 : index
    %665 = vector.load %arg14[%c2_608, %c0_609, %c0_610] : memref<18x18x48xf32, #tpu.memory_space<vmem>>, vector<4x16x48xf32>
    %666 = vector.shape_cast %665 : vector<4x16x48xf32> to vector<64x48xf32>
    %667 = arith.truncf %666 : vector<64x48xf32> to vector<64x48xbf16>
    %c2_611 = arith.constant 2 : index
    %c1_612 = arith.constant 1 : index
    %c0_613 = arith.constant 0 : index
    %668 = vector.load %arg14[%c2_611, %c1_612, %c0_613] : memref<18x18x48xf32, #tpu.memory_space<vmem>>, vector<4x16x48xf32>
    %669 = vector.shape_cast %668 : vector<4x16x48xf32> to vector<64x48xf32>
    %670 = arith.truncf %669 : vector<64x48xf32> to vector<64x48xbf16>
    %c2_614 = arith.constant 2 : index
    %c2_615 = arith.constant 2 : index
    %c0_616 = arith.constant 0 : index
    %671 = vector.load %arg14[%c2_614, %c2_615, %c0_616] : memref<18x18x48xf32, #tpu.memory_space<vmem>>, vector<4x16x48xf32>
    %672 = vector.shape_cast %671 : vector<4x16x48xf32> to vector<64x48xf32>
    %673 = arith.truncf %672 : vector<64x48xf32> to vector<64x48xbf16>
    %674 = tpu.concatenate %649, %652, %655, %658, %661, %664, %667, %670, %673 in 1 : vector<64x48xbf16>, vector<64x48xbf16>, vector<64x48xbf16>, vector<64x48xbf16>, vector<64x48xbf16>, vector<64x48xbf16>, vector<64x48xbf16>, vector<64x48xbf16>, vector<64x48xbf16> -> vector<64x432xbf16>
    %cst_617 = arith.constant dense<0.000000e+00> : vector<16x64xf32>
    %675 = tpu.matmul %645, %674, %cst_617 {dimension_numbers = #tpu.dot_dimension_numbers<[1], [1], [0], [0], [0, 0, 1, 0], [], []>} : vector<16x432xbf16>, vector<64x432xbf16>, vector<16x64xf32> -> vector<16x64xf32>
    %676 = vector.broadcast %646 : vector<16x1xf32> to vector<16x64xf32>
    %677 = arith.addf %675, %676 : vector<16x64xf32>
    %c0_618 = arith.constant 0 : index
    %c0_619 = arith.constant 0 : index
    %c0_620 = arith.constant 0 : index
    %678 = vector.load %arg2[%c0_618, %c0_619, %c0_620] : memref<1x16x256xf32, #tpu.memory_space<vmem>>, vector<1x16x64xf32>
    %679 = vector.shape_cast %678 : vector<1x16x64xf32> to vector<16x64xf32>
    %cst_621 = arith.constant 2.000000e-01 : f32
    %680 = vector.broadcast %cst_621 : f32 to vector<16x64xf32>
    %681 = arith.mulf %677, %680 : vector<16x64xf32>
    %682 = arith.addf %681, %679 : vector<16x64xf32>
    %c0_622 = arith.constant 0 : index
    %c0_623 = arith.constant 0 : index
    %c0_624 = arith.constant 0 : index
    %683 = vector.load %arg13[%c0_622, %c0_623, %c0_624] : memref<1x16x256xf32, #tpu.memory_space<vmem>>, vector<1x16x64xf32>
    %684 = vector.shape_cast %683 : vector<1x16x64xf32> to vector<16x64xf32>
    %685 = vector.shape_cast %682 : vector<16x64xf32> to vector<1x16x64xf32>
    tpu.vector_store %arg13[%c0_622, %c0_623, %c0_624], %685 {strides = array<i32>} : memref<1x16x256xf32, #tpu.memory_space<vmem>>, vector<1x16x64xf32>,
    %c4_625 = arith.constant 4 : index
    %c0_626 = arith.constant 0 : index
    %c0_627 = arith.constant 0 : index
    %686 = vector.load %arg14[%c4_625, %c0_626, %c0_627] : memref<18x18x48xf32, #tpu.memory_space<vmem>>, vector<4x16x48xf32>
    %687 = vector.shape_cast %686 : vector<4x16x48xf32> to vector<64x48xf32>
    %688 = arith.truncf %687 : vector<64x48xf32> to vector<64x48xbf16>
    %c4_628 = arith.constant 4 : index
    %c1_629 = arith.constant 1 : index
    %c0_630 = arith.constant 0 : index
    %689 = vector.load %arg14[%c4_628, %c1_629, %c0_630] : memref<18x18x48xf32, #tpu.memory_space<vmem>>, vector<4x16x48xf32>
    %690 = vector.shape_cast %689 : vector<4x16x48xf32> to vector<64x48xf32>
    %691 = arith.truncf %690 : vector<64x48xf32> to vector<64x48xbf16>
    %c4_631 = arith.constant 4 : index
    %c2_632 = arith.constant 2 : index
    %c0_633 = arith.constant 0 : index
    %692 = vector.load %arg14[%c4_631, %c2_632, %c0_633] : memref<18x18x48xf32, #tpu.memory_space<vmem>>, vector<4x16x48xf32>
    %693 = vector.shape_cast %692 : vector<4x16x48xf32> to vector<64x48xf32>
    %694 = arith.truncf %693 : vector<64x48xf32> to vector<64x48xbf16>
    %c5_634 = arith.constant 5 : index
    %c0_635 = arith.constant 0 : index
    %c0_636 = arith.constant 0 : index
    %695 = vector.load %arg14[%c5_634, %c0_635, %c0_636] : memref<18x18x48xf32, #tpu.memory_space<vmem>>, vector<4x16x48xf32>
    %696 = vector.shape_cast %695 : vector<4x16x48xf32> to vector<64x48xf32>
    %697 = arith.truncf %696 : vector<64x48xf32> to vector<64x48xbf16>
    %c5_637 = arith.constant 5 : index
    %c1_638 = arith.constant 1 : index
    %c0_639 = arith.constant 0 : index
    %698 = vector.load %arg14[%c5_637, %c1_638, %c0_639] : memref<18x18x48xf32, #tpu.memory_space<vmem>>, vector<4x16x48xf32>
    %699 = vector.shape_cast %698 : vector<4x16x48xf32> to vector<64x48xf32>
    %700 = arith.truncf %699 : vector<64x48xf32> to vector<64x48xbf16>
    %c5_640 = arith.constant 5 : index
    %c2_641 = arith.constant 2 : index
    %c0_642 = arith.constant 0 : index
    %701 = vector.load %arg14[%c5_640, %c2_641, %c0_642] : memref<18x18x48xf32, #tpu.memory_space<vmem>>, vector<4x16x48xf32>
    %702 = vector.shape_cast %701 : vector<4x16x48xf32> to vector<64x48xf32>
    %703 = arith.truncf %702 : vector<64x48xf32> to vector<64x48xbf16>
    %c6_643 = arith.constant 6 : index
    %c0_644 = arith.constant 0 : index
    %c0_645 = arith.constant 0 : index
    %704 = vector.load %arg14[%c6_643, %c0_644, %c0_645] : memref<18x18x48xf32, #tpu.memory_space<vmem>>, vector<4x16x48xf32>
    %705 = vector.shape_cast %704 : vector<4x16x48xf32> to vector<64x48xf32>
    %706 = arith.truncf %705 : vector<64x48xf32> to vector<64x48xbf16>
    %c6_646 = arith.constant 6 : index
    %c1_647 = arith.constant 1 : index
    %c0_648 = arith.constant 0 : index
    %707 = vector.load %arg14[%c6_646, %c1_647, %c0_648] : memref<18x18x48xf32, #tpu.memory_space<vmem>>, vector<4x16x48xf32>
    %708 = vector.shape_cast %707 : vector<4x16x48xf32> to vector<64x48xf32>
    %709 = arith.truncf %708 : vector<64x48xf32> to vector<64x48xbf16>
    %c6_649 = arith.constant 6 : index
    %c2_650 = arith.constant 2 : index
    %c0_651 = arith.constant 0 : index
    %710 = vector.load %arg14[%c6_649, %c2_650, %c0_651] : memref<18x18x48xf32, #tpu.memory_space<vmem>>, vector<4x16x48xf32>
    %711 = vector.shape_cast %710 : vector<4x16x48xf32> to vector<64x48xf32>
    %712 = arith.truncf %711 : vector<64x48xf32> to vector<64x48xbf16>
    %713 = tpu.concatenate %688, %691, %694, %697, %700, %703, %706, %709, %712 in 1 : vector<64x48xbf16>, vector<64x48xbf16>, vector<64x48xbf16>, vector<64x48xbf16>, vector<64x48xbf16>, vector<64x48xbf16>, vector<64x48xbf16>, vector<64x48xbf16>, vector<64x48xbf16> -> vector<64x432xbf16>
    %cst_652 = arith.constant dense<0.000000e+00> : vector<16x64xf32>
    %714 = tpu.matmul %645, %713, %cst_652 {dimension_numbers = #tpu.dot_dimension_numbers<[1], [1], [0], [0], [0, 0, 1, 0], [], []>} : vector<16x432xbf16>, vector<64x432xbf16>, vector<16x64xf32> -> vector<16x64xf32>
    %715 = vector.broadcast %646 : vector<16x1xf32> to vector<16x64xf32>
    %716 = arith.addf %714, %715 : vector<16x64xf32>
    %c0_653 = arith.constant 0 : index
    %c0_654 = arith.constant 0 : index
    %c64 = arith.constant 64 : index
    %717 = vector.load %arg2[%c0_653, %c0_654, %c64] : memref<1x16x256xf32, #tpu.memory_space<vmem>>, vector<1x16x64xf32>
    %718 = vector.shape_cast %717 : vector<1x16x64xf32> to vector<16x64xf32>
    %cst_655 = arith.constant 2.000000e-01 : f32
    %719 = vector.broadcast %cst_655 : f32 to vector<16x64xf32>
    %720 = arith.mulf %716, %719 : vector<16x64xf32>
    %721 = arith.addf %720, %718 : vector<16x64xf32>
    %c0_656 = arith.constant 0 : index
    %c0_657 = arith.constant 0 : index
    %c64_658 = arith.constant 64 : index
    %722 = vector.load %arg13[%c0_656, %c0_657, %c64_658] : memref<1x16x256xf32, #tpu.memory_space<vmem>>, vector<1x16x64xf32>
    %723 = vector.shape_cast %722 : vector<1x16x64xf32> to vector<16x64xf32>
    %724 = vector.shape_cast %721 : vector<16x64xf32> to vector<1x16x64xf32>
    tpu.vector_store %arg13[%c0_656, %c0_657, %c64_658], %724 {strides = array<i32>} : memref<1x16x256xf32, #tpu.memory_space<vmem>>, vector<1x16x64xf32>,
    %c8_659 = arith.constant 8 : index
    %c0_660 = arith.constant 0 : index
    %c0_661 = arith.constant 0 : index
    %725 = vector.load %arg14[%c8_659, %c0_660, %c0_661] : memref<18x18x48xf32, #tpu.memory_space<vmem>>, vector<4x16x48xf32>
    %726 = vector.shape_cast %725 : vector<4x16x48xf32> to vector<64x48xf32>
    %727 = arith.truncf %726 : vector<64x48xf32> to vector<64x48xbf16>
    %c8_662 = arith.constant 8 : index
    %c1_663 = arith.constant 1 : index
    %c0_664 = arith.constant 0 : index
    %728 = vector.load %arg14[%c8_662, %c1_663, %c0_664] : memref<18x18x48xf32, #tpu.memory_space<vmem>>, vector<4x16x48xf32>
    %729 = vector.shape_cast %728 : vector<4x16x48xf32> to vector<64x48xf32>
    %730 = arith.truncf %729 : vector<64x48xf32> to vector<64x48xbf16>
    %c8_665 = arith.constant 8 : index
    %c2_666 = arith.constant 2 : index
    %c0_667 = arith.constant 0 : index
    %731 = vector.load %arg14[%c8_665, %c2_666, %c0_667] : memref<18x18x48xf32, #tpu.memory_space<vmem>>, vector<4x16x48xf32>
    %732 = vector.shape_cast %731 : vector<4x16x48xf32> to vector<64x48xf32>
    %733 = arith.truncf %732 : vector<64x48xf32> to vector<64x48xbf16>
    %c9_668 = arith.constant 9 : index
    %c0_669 = arith.constant 0 : index
    %c0_670 = arith.constant 0 : index
    %734 = vector.load %arg14[%c9_668, %c0_669, %c0_670] : memref<18x18x48xf32, #tpu.memory_space<vmem>>, vector<4x16x48xf32>
    %735 = vector.shape_cast %734 : vector<4x16x48xf32> to vector<64x48xf32>
    %736 = arith.truncf %735 : vector<64x48xf32> to vector<64x48xbf16>
    %c9_671 = arith.constant 9 : index
    %c1_672 = arith.constant 1 : index
    %c0_673 = arith.constant 0 : index
    %737 = vector.load %arg14[%c9_671, %c1_672, %c0_673] : memref<18x18x48xf32, #tpu.memory_space<vmem>>, vector<4x16x48xf32>
    %738 = vector.shape_cast %737 : vector<4x16x48xf32> to vector<64x48xf32>
    %739 = arith.truncf %738 : vector<64x48xf32> to vector<64x48xbf16>
    %c9_674 = arith.constant 9 : index
    %c2_675 = arith.constant 2 : index
    %c0_676 = arith.constant 0 : index
    %740 = vector.load %arg14[%c9_674, %c2_675, %c0_676] : memref<18x18x48xf32, #tpu.memory_space<vmem>>, vector<4x16x48xf32>
    %741 = vector.shape_cast %740 : vector<4x16x48xf32> to vector<64x48xf32>
    %742 = arith.truncf %741 : vector<64x48xf32> to vector<64x48xbf16>
    %c10_677 = arith.constant 10 : index
    %c0_678 = arith.constant 0 : index
    %c0_679 = arith.constant 0 : index
    %743 = vector.load %arg14[%c10_677, %c0_678, %c0_679] : memref<18x18x48xf32, #tpu.memory_space<vmem>>, vector<4x16x48xf32>
    %744 = vector.shape_cast %743 : vector<4x16x48xf32> to vector<64x48xf32>
    %745 = arith.truncf %744 : vector<64x48xf32> to vector<64x48xbf16>
    %c10_680 = arith.constant 10 : index
    %c1_681 = arith.constant 1 : index
    %c0_682 = arith.constant 0 : index
    %746 = vector.load %arg14[%c10_680, %c1_681, %c0_682] : memref<18x18x48xf32, #tpu.memory_space<vmem>>, vector<4x16x48xf32>
    %747 = vector.shape_cast %746 : vector<4x16x48xf32> to vector<64x48xf32>
    %748 = arith.truncf %747 : vector<64x48xf32> to vector<64x48xbf16>
    %c10_683 = arith.constant 10 : index
    %c2_684 = arith.constant 2 : index
    %c0_685 = arith.constant 0 : index
    %749 = vector.load %arg14[%c10_683, %c2_684, %c0_685] : memref<18x18x48xf32, #tpu.memory_space<vmem>>, vector<4x16x48xf32>
    %750 = vector.shape_cast %749 : vector<4x16x48xf32> to vector<64x48xf32>
    %751 = arith.truncf %750 : vector<64x48xf32> to vector<64x48xbf16>
    %752 = tpu.concatenate %727, %730, %733, %736, %739, %742, %745, %748, %751 in 1 : vector<64x48xbf16>, vector<64x48xbf16>, vector<64x48xbf16>, vector<64x48xbf16>, vector<64x48xbf16>, vector<64x48xbf16>, vector<64x48xbf16>, vector<64x48xbf16>, vector<64x48xbf16> -> vector<64x432xbf16>
    %cst_686 = arith.constant dense<0.000000e+00> : vector<16x64xf32>
    %753 = tpu.matmul %645, %752, %cst_686 {dimension_numbers = #tpu.dot_dimension_numbers<[1], [1], [0], [0], [0, 0, 1, 0], [], []>} : vector<16x432xbf16>, vector<64x432xbf16>, vector<16x64xf32> -> vector<16x64xf32>
    %754 = vector.broadcast %646 : vector<16x1xf32> to vector<16x64xf32>
    %755 = arith.addf %753, %754 : vector<16x64xf32>
    %c0_687 = arith.constant 0 : index
    %c0_688 = arith.constant 0 : index
    %c128 = arith.constant 128 : index
    %756 = vector.load %arg2[%c0_687, %c0_688, %c128] : memref<1x16x256xf32, #tpu.memory_space<vmem>>, vector<1x16x64xf32>
    %757 = vector.shape_cast %756 : vector<1x16x64xf32> to vector<16x64xf32>
    %cst_689 = arith.constant 2.000000e-01 : f32
    %758 = vector.broadcast %cst_689 : f32 to vector<16x64xf32>
    %759 = arith.mulf %755, %758 : vector<16x64xf32>
    %760 = arith.addf %759, %757 : vector<16x64xf32>
    %c0_690 = arith.constant 0 : index
    %c0_691 = arith.constant 0 : index
    %c128_692 = arith.constant 128 : index
    %761 = vector.load %arg13[%c0_690, %c0_691, %c128_692] : memref<1x16x256xf32, #tpu.memory_space<vmem>>, vector<1x16x64xf32>
    %762 = vector.shape_cast %761 : vector<1x16x64xf32> to vector<16x64xf32>
    %763 = vector.shape_cast %760 : vector<16x64xf32> to vector<1x16x64xf32>
    tpu.vector_store %arg13[%c0_690, %c0_691, %c128_692], %763 {strides = array<i32>} : memref<1x16x256xf32, #tpu.memory_space<vmem>>, vector<1x16x64xf32>,
    %c12_693 = arith.constant 12 : index
    %c0_694 = arith.constant 0 : index
    %c0_695 = arith.constant 0 : index
    %764 = vector.load %arg14[%c12_693, %c0_694, %c0_695] : memref<18x18x48xf32, #tpu.memory_space<vmem>>, vector<4x16x48xf32>
    %765 = vector.shape_cast %764 : vector<4x16x48xf32> to vector<64x48xf32>
    %766 = arith.truncf %765 : vector<64x48xf32> to vector<64x48xbf16>
    %c12_696 = arith.constant 12 : index
    %c1_697 = arith.constant 1 : index
    %c0_698 = arith.constant 0 : index
    %767 = vector.load %arg14[%c12_696, %c1_697, %c0_698] : memref<18x18x48xf32, #tpu.memory_space<vmem>>, vector<4x16x48xf32>
    %768 = vector.shape_cast %767 : vector<4x16x48xf32> to vector<64x48xf32>
    %769 = arith.truncf %768 : vector<64x48xf32> to vector<64x48xbf16>
    %c12_699 = arith.constant 12 : index
    %c2_700 = arith.constant 2 : index
    %c0_701 = arith.constant 0 : index
    %770 = vector.load %arg14[%c12_699, %c2_700, %c0_701] : memref<18x18x48xf32, #tpu.memory_space<vmem>>, vector<4x16x48xf32>
    %771 = vector.shape_cast %770 : vector<4x16x48xf32> to vector<64x48xf32>
    %772 = arith.truncf %771 : vector<64x48xf32> to vector<64x48xbf16>
    %c13_702 = arith.constant 13 : index
    %c0_703 = arith.constant 0 : index
    %c0_704 = arith.constant 0 : index
    %773 = vector.load %arg14[%c13_702, %c0_703, %c0_704] : memref<18x18x48xf32, #tpu.memory_space<vmem>>, vector<4x16x48xf32>
    %774 = vector.shape_cast %773 : vector<4x16x48xf32> to vector<64x48xf32>
    %775 = arith.truncf %774 : vector<64x48xf32> to vector<64x48xbf16>
    %c13_705 = arith.constant 13 : index
    %c1_706 = arith.constant 1 : index
    %c0_707 = arith.constant 0 : index
    %776 = vector.load %arg14[%c13_705, %c1_706, %c0_707] : memref<18x18x48xf32, #tpu.memory_space<vmem>>, vector<4x16x48xf32>
    %777 = vector.shape_cast %776 : vector<4x16x48xf32> to vector<64x48xf32>
    %778 = arith.truncf %777 : vector<64x48xf32> to vector<64x48xbf16>
    %c13_708 = arith.constant 13 : index
    %c2_709 = arith.constant 2 : index
    %c0_710 = arith.constant 0 : index
    %779 = vector.load %arg14[%c13_708, %c2_709, %c0_710] : memref<18x18x48xf32, #tpu.memory_space<vmem>>, vector<4x16x48xf32>
    %780 = vector.shape_cast %779 : vector<4x16x48xf32> to vector<64x48xf32>
    %781 = arith.truncf %780 : vector<64x48xf32> to vector<64x48xbf16>
    %c14_711 = arith.constant 14 : index
    %c0_712 = arith.constant 0 : index
    %c0_713 = arith.constant 0 : index
    %782 = vector.load %arg14[%c14_711, %c0_712, %c0_713] : memref<18x18x48xf32, #tpu.memory_space<vmem>>, vector<4x16x48xf32>
    %783 = vector.shape_cast %782 : vector<4x16x48xf32> to vector<64x48xf32>
    %784 = arith.truncf %783 : vector<64x48xf32> to vector<64x48xbf16>
    %c14_714 = arith.constant 14 : index
    %c1_715 = arith.constant 1 : index
    %c0_716 = arith.constant 0 : index
    %785 = vector.load %arg14[%c14_714, %c1_715, %c0_716] : memref<18x18x48xf32, #tpu.memory_space<vmem>>, vector<4x16x48xf32>
    %786 = vector.shape_cast %785 : vector<4x16x48xf32> to vector<64x48xf32>
    %787 = arith.truncf %786 : vector<64x48xf32> to vector<64x48xbf16>
    %c14_717 = arith.constant 14 : index
    %c2_718 = arith.constant 2 : index
    %c0_719 = arith.constant 0 : index
    %788 = vector.load %arg14[%c14_717, %c2_718, %c0_719] : memref<18x18x48xf32, #tpu.memory_space<vmem>>, vector<4x16x48xf32>
    %789 = vector.shape_cast %788 : vector<4x16x48xf32> to vector<64x48xf32>
    %790 = arith.truncf %789 : vector<64x48xf32> to vector<64x48xbf16>
    %791 = tpu.concatenate %766, %769, %772, %775, %778, %781, %784, %787, %790 in 1 : vector<64x48xbf16>, vector<64x48xbf16>, vector<64x48xbf16>, vector<64x48xbf16>, vector<64x48xbf16>, vector<64x48xbf16>, vector<64x48xbf16>, vector<64x48xbf16>, vector<64x48xbf16> -> vector<64x432xbf16>
    %cst_720 = arith.constant dense<0.000000e+00> : vector<16x64xf32>
    %792 = tpu.matmul %645, %791, %cst_720 {dimension_numbers = #tpu.dot_dimension_numbers<[1], [1], [0], [0], [0, 0, 1, 0], [], []>} : vector<16x432xbf16>, vector<64x432xbf16>, vector<16x64xf32> -> vector<16x64xf32>
    %793 = vector.broadcast %646 : vector<16x1xf32> to vector<16x64xf32>
    %794 = arith.addf %792, %793 : vector<16x64xf32>
    %c0_721 = arith.constant 0 : index
    %c0_722 = arith.constant 0 : index
    %c192 = arith.constant 192 : index
    %795 = vector.load %arg2[%c0_721, %c0_722, %c192] : memref<1x16x256xf32, #tpu.memory_space<vmem>>, vector<1x16x64xf32>
    %796 = vector.shape_cast %795 : vector<1x16x64xf32> to vector<16x64xf32>
    %cst_723 = arith.constant 2.000000e-01 : f32
    %797 = vector.broadcast %cst_723 : f32 to vector<16x64xf32>
    %798 = arith.mulf %794, %797 : vector<16x64xf32>
    %799 = arith.addf %798, %796 : vector<16x64xf32>
    %c0_724 = arith.constant 0 : index
    %c0_725 = arith.constant 0 : index
    %c192_726 = arith.constant 192 : index
    %800 = vector.load %arg13[%c0_724, %c0_725, %c192_726] : memref<1x16x256xf32, #tpu.memory_space<vmem>>, vector<1x16x64xf32>
    %801 = vector.shape_cast %800 : vector<1x16x64xf32> to vector<16x64xf32>
    %802 = vector.shape_cast %799 : vector<16x64xf32> to vector<1x16x64xf32>
    tpu.vector_store %arg13[%c0_724, %c0_725, %c192_726], %802 {strides = array<i32>} : memref<1x16x256xf32, #tpu.memory_space<vmem>>, vector<1x16x64xf32>,
    return
  }
  func.func @transform_0(%arg0: i32) -> (i32, i32, i32, i32) {
    %c0_i32 = arith.constant 0 : i32
    %c0_i32_0 = arith.constant 0 : i32
    %c0_i32_1 = arith.constant 0 : i32
    %c0_i32_2 = arith.constant 0 : i32
    return %arg0, %c0_i32, %c0_i32_0, %c0_i32_1 : i32, i32, i32, i32
  }
  func.func @transform_1(%arg0: i32) -> (i32, i32, i32) {
    %c0_i32 = arith.constant 0 : i32
    %c0_i32_0 = arith.constant 0 : i32
    %c0_i32_1 = arith.constant 0 : i32
    return %arg0, %c0_i32, %c0_i32_0 : i32, i32, i32
  }
  func.func @transform_2(%arg0: i32) -> (i32, i32) {
    %c0_i32 = arith.constant 0 : i32
    %c0_i32_0 = arith.constant 0 : i32
    %c0_i32_1 = arith.constant 0 : i32
    return %c0_i32, %c0_i32_0 : i32, i32
  }
  func.func @transform_3(%arg0: i32) -> (i32, i32) {
    %c0_i32 = arith.constant 0 : i32
    %c0_i32_0 = arith.constant 0 : i32
    %c0_i32_1 = arith.constant 0 : i32
    return %c0_i32, %c0_i32_0 : i32, i32
  }
  func.func @transform_4(%arg0: i32) -> (i32, i32) {
    %c0_i32 = arith.constant 0 : i32
    %c0_i32_0 = arith.constant 0 : i32
    %c0_i32_1 = arith.constant 0 : i32
    return %c0_i32, %c0_i32_0 : i32, i32
  }
  func.func @transform_5(%arg0: i32) -> (i32, i32) {
    %c0_i32 = arith.constant 0 : i32
    %c0_i32_0 = arith.constant 0 : i32
    %c0_i32_1 = arith.constant 0 : i32
    return %c0_i32, %c0_i32_0 : i32, i32
  }
  func.func @transform_6(%arg0: i32) -> (i32, i32) {
    %c0_i32 = arith.constant 0 : i32
    %c0_i32_0 = arith.constant 0 : i32
    %c0_i32_1 = arith.constant 0 : i32
    return %c0_i32, %c0_i32_0 : i32, i32
  }
  func.func @transform_7(%arg0: i32) -> (i32, i32) {
    %c0_i32 = arith.constant 0 : i32
    %c0_i32_0 = arith.constant 0 : i32
    %c0_i32_1 = arith.constant 0 : i32
    return %c0_i32, %c0_i32_0 : i32, i32
  }
  func.func @transform_8(%arg0: i32) -> (i32, i32) {
    %c0_i32 = arith.constant 0 : i32
    %c0_i32_0 = arith.constant 0 : i32
    %c0_i32_1 = arith.constant 0 : i32
    return %c0_i32, %c0_i32_0 : i32, i32
  }
  func.func @transform_9(%arg0: i32) -> (i32, i32) {
    %c0_i32 = arith.constant 0 : i32
    %c0_i32_0 = arith.constant 0 : i32
    %c0_i32_1 = arith.constant 0 : i32
    return %c0_i32, %c0_i32_0 : i32, i32
  }
  func.func @transform_10(%arg0: i32) -> (i32, i32) {
    %c0_i32 = arith.constant 0 : i32
    %c0_i32_0 = arith.constant 0 : i32
    %c0_i32_1 = arith.constant 0 : i32
    return %c0_i32, %c0_i32_0 : i32, i32
  }
  func.func @transform_11(%arg0: i32) -> (i32, i32) {
    %c0_i32 = arith.constant 0 : i32
    %c0_i32_0 = arith.constant 0 : i32
    %c0_i32_1 = arith.constant 0 : i32
    return %c0_i32, %c0_i32_0 : i32, i32
  }
  func.func @transform_12(%arg0: i32) -> (i32, i32, i32) {
    %c0_i32 = arith.constant 0 : i32
    %c0_i32_0 = arith.constant 0 : i32
    %c0_i32_1 = arith.constant 0 : i32
    return %arg0, %c0_i32, %c0_i32_0 : i32, i32, i32
  }
}

</mosaic_0001>

<bundles_post_ra>
// kernel: tpu_custom_call.1
= control target key start
LH: loop header
LB: loop body
LE: loop exit
PB: predicated region body
PF: predicated region fallthrough
CT: control target
= control target key end

     0   :  { %s17068_s0 = inlined_call_operand.vmem [shape: f32[2,16,16,16], index: 0, kind: input, shape index: {}]   ;;  %s17069_s1 = inlined_call_operand.hbm [shape: f32[2,16,256], index: 1, kind: input, shape index: {}]   ;;  %s17070_s2 = inlined_call_operand.vmem [shape: bf16[144,8], index: 2, kind: input, shape index: {}]   ;;  %s17071_s3 = inlined_call_operand.vmem [shape: bf16[216,8], index: 3, kind: input, shape index: {}]   ;;  %s17072_s4 = inlined_call_operand.vmem [shape: bf16[288,8], index: 4, kind: input, shape index: {}]   ;;  %s17073_s5 = inlined_call_operand.vmem [shape: bf16[360,8], index: 5, kind: input, shape index: {}]   ;;  %s17074_s6 = inlined_call_operand.vmem [shape: bf16[16,432], index: 6, kind: input, shape index: {}]   ;;  %s17075_s7 = inlined_call_operand.vmem [shape: f32[1,8], index: 7, kind: input, shape index: {}]   ;;  %s17076_s8 = inlined_call_operand.vmem [shape: f32[1,8], index: 8, kind: input, shape index: {}]   ;;  %s17077_s9 = inlined_call_operand.vmem [shape: f32[1,8], index: 9, kind: input, shape index: {}]   ;;  %s17078_s10 = inlined_call_operand.vmem [shape: f32[1,8], index: 10, kind: input, shape index: {}]   ;;  %s17079_s11 = inlined_call_operand.vmem [shape: f32[16,1], index: 11, kind: input, shape index: {}]   ;;  %s17080_s12 = inlined_call_operand.hbm [shape: f32[2,16,256], index: 12, kind: output, shape index: {}]  }
   0x1   :  { %17119 = sst [smem:[#allocation18_spill]] %s17068_s0 }
   0x2   :  { %17120 = sst [smem:[#allocation19_spill]] %s17069_s1 }
   0x3   :  { %17121 = sst [smem:[#allocation20_spill]] %s17070_s2 }
   0x4   :  { %17122 = sst [smem:[#allocation21_spill]] %s17071_s3 }
   0x5   :  { %17123 = sst [smem:[#allocation22_spill]] %s17075_s7 }
   0x6   :  { %17124 = sst [smem:[#allocation23_spill]] %s17076_s8 }
   0x7   :  { %17125 = sst [smem:[#allocation24_spill]] %s17080_s12 }
   0x8   :  { %17 = vsyncpa [#allocation4], 0 }
   0x9   :  { %19 = vsyncpa [#allocation4 + $0x1], 0 }
   0xa   :  { %20 = vsyncpa [#allocation5], 0 }
   0xb   :  { %22 = vsyncpa [#allocation5 + $0x1], 0  ;;  %s12770_s21 = smov 0   ;;  %s12772_s22 = smov 0  }
   0xc   :  { %s12774_s23 = smov 0   ;;  %s12776_s24 = smov 0  }
   0xd LB: > { %17126 = sst [smem:[#allocation9_spill]] %s12673_s21  ;;  %s12791_s25 = sadd.s32 4294967295, %s12685_s24   ;;  %s12685_s24 = sphi %s12776_s24, %s17271_s24   ;;  %s12681_s23 = sphi %s12774_s23, %s17274_s23   ;;  %s12677_s22 = sphi %s12772_s22, %s17273_s22   ;;  %s12673_s21 = sphi %s12770_s21, %s17272_s21  }
   0xe   : > { %17127 = sst [smem:[#allocation10_spill]] %s12677_s22  ;;  %s11355_s26 = sadd.s32 4294967294, %s12685_s24  }
   0xf   : > { %17128 = sst [smem:[#allocation11_spill]] %s12681_s23  ;;  %s12795_s27 = sadd.s32 1, %s12685_s24  }
  0x10   : > { %17129 = sst [smem:[#allocation12_spill]] %s12685_s24  ;;  %s61_s28 = sadd.s32 1, %s12681_s23 }
  0x11   : > { %17130 = sst [smem:[#allocation13_spill]] %s12795_s27  ;;  %s58_s29 = ssub.s32 %s12685_s24, %s12795_s27 }
  0x12   : > { %p68_p0 = scmp.ne.s32.totalorder %s12681_s23, %s12677_s22  ;;  %p59_p1 = scmp.eq.s32.totalorder %s58_s29, 0 }
  0x13   : > { %p69_p2 = scmp.eq.s32.totalorder %s12685_s24, 0  ;;  %p74_p3 = scmp.ne.s32.totalorder %s12677_s22, %s12673_s21 }
  0x14   : > { %p75_p4 = scmp.eq.s32.totalorder %s12791_s25, 0  ;;  %p308_p7 = scmp.eq.s32.totalorder %s12791_s25, 1 }
  0x15   : > { %s12807_s30 = scalar_select %p59_p1, %s12681_s23, %s61_s28  }
  0x16   : > { %p12809_p5 = por %p69_p2, %p68_p0  ;;  %p12813_p6 = por %p75_p4, %p74_p3 }
  0x17   : > { %17131 = sst [smem:[#allocation14_spill]] %s12807_s30  ;;  %p314_p8 = scmp.eq.s32.totalorder %s11355_s26, 1 }
  0x18   : > { %s17133_s14 = scalar_select %p12813_p6, 1, 0 }
  0x19   : > { %p12274_p10 = scmp.lt.s32.totalorder %s12685_s24, 2  ;;  %p12820_p11 = por %p308_p7, %p68_p0 }
  0x1a   : > { %p12824_p12 = por %p314_p8, %p74_p3  ;;  %s372_s17 = sand.u32 1, %s12681_s23  }
  0x1b   : > { %s17134_s15 = scalar_select %p12820_p11, 1, 0 }
  0x1c   : > { %s17135_s16 = scalar_select %p12824_p12, 1, 0 }
  0x1d   : > { %s11731_s18 = sshll.u32 %s12685_s24, 9  ;;  %s11358_s19 = sshll.u32 %s372_s17, 5 }
  0x1e   : > { %17136 = sst [smem:[#allocation15_spill]] %s17135_s16  ;;  %s376_s26 = scalar_lea.vmem [#allocation3], %s11358_s19 }
  0x1f   : > { %s17137_s1 = sld [smem:[#allocation19_spill]]  ;;  %s383_s30 = sshll.u32 %s376_s26, 4  ;;  %s12841_s30 = int_to_ptr.vmem [resolvable:$true] %s383_s30 }
  0x20   : > { %p12837_p13 = pnand %p12274_p10, %p12809_p5  ;;  %s12843_s23 = scalar_lea.sflag [#allocation4], %s372_s17 }
  0x22   : > { %p12595_p1 = pneg %p12837_p13 }
  0x25   : > { %s12833_s29 = scalar_lea.hbm %s17137_s1, %s11731_s18  ;;  %s12598_s19 = scalar_lea.hbm %s17137_s1, 1024 }
  0x26   : > { %s12593_s16 = scalar_lea.hbm %s12833_s29, 512  ;;  %p12599_p4 = scmp.lt.s32.totalorder %s12833_s29, %s17137_s1 }
  0x27   : > { %p12594_p0 = scmp.ne.s32.totalorder %s12833_s29, %s12593_s16  ;;  %p12600_p5 = scmp.lt.s32.totalorder %s12598_s19, %s12593_s16 }
  0x29   : > { %p12596_p2 = pnand %p12595_p1, %p12594_p0  ;;  %p12601_p7 = por %p12600_p5, %p12599_p4 }
  0x2b   : > { %p12597_p3 = pneg %p12596_p2 }
  0x2d   : > { %p12602_p8 = pnand %p12601_p7, %p12597_p3 }
  0x2f   : > { %12605 = shalt.err (!%p12602_p8)
}
  0x30   : > { %s12606_s17 = scalar_lea.vmem %s12841_s30, 512  ;;  %s12687_s26 = smov [#allocation3]  }
  0x31   : > { %p12607_p10 = scmp.ne.s32.totalorder %s12841_s30, %s12606_s17  ;;  %s12611_s21 = sshll.u32 %s12687_s26, 4  ;;  %s12612_s21 = int_to_ptr.vmem [resolvable:$false] %s12611_s21 }
  0x32   : > { %s12613_s18 = scalar_lea.vmem %s12612_s21, 1024  ;;  %p12614_p2 = scmp.lt.s32.totalorder %s12841_s30, %s12612_s21 }
  0x33   : > { %p12609_p9 = pnand %p12607_p10, %p12595_p1  ;;  %p12615_p12 = scmp.lt.s32.totalorder %s12613_s18, %s12606_s17 }
  0x35   : > { %p12610_p0 = pneg %p12609_p9  ;;  %p12616_p11 = por %p12615_p12, %p12614_p2 }
  0x37   : > { %p12617_p6 = pnand %p12616_p11, %p12610_p0 }
  0x39   : > { %12620 = shalt.err (!%p12617_p6)
}
  0x3a   : > { %s12688_s16 = smov 256   ;;  %s12689_s20 = smov 16  }
  0x3b   : > { %12269 = dma.hbm_to_vmem [thread:$0]  (!%p12837_p13), %s12833_s29, 512, %s12841_s30, %s12843_s23, %s12688_s16, %s12688_s16, %s12689_s20  }
  0x3c   : > { %p11361_p9 = scmp.ge.s32.totalorder %s12685_s24, 1  ;;  %p391_p1 = scmp.lt.s32.totalorder %s12685_s24, 3 }
  0x3e   : > { %p392_p3 = pnand %p11361_p9, %p391_p1 }
  0x40   : > { %395 = sbr.rel (%p392_p3) target bundleno = 6559 (0x199f), region = 68 }
  0x45   : > { %s12867_s21 = sand.u32 1, %s12677_s22   ;;  %p17139_p6 = scmp.ne.s32.totalorder %s17133_s14, 0 }
  0x46   : > { %s17088_s19 = sshll.u32 %s12867_s21, 5  ;;  %s398_s13 = scalar_lea.sflag [#allocation4], %s12867_s21 }
  0x47   : > { %s12873_s28 = scalar_lea.vmem [#allocation3], %s17088_s19 }
  0x48   : > { %12664 = dma.done.wait (%p17139_p6), %s398_s13, 512  }
  0x49   : > { %12666 = vsyncadd (%p17139_p6), %s398_s13, 4294966784  ;;  %vm453_vm0 = vcmask 392192   ;;  %vm456_vm1 = vcmask 386048   ;;  %v12690_v0 = vmov 0.0   ;;  %p447_p11 = scmp.lt.s32.totalorder %s12791_s25, 1  ;;  %v12691_v1 = vmov 0  }
  0x4a   : > { %454 = vst.msk [vmem:[#allocation2] sm:$0xff] %vm453_vm0, %v12690_v0  ;;  %455 = vst.msk [vmem:[#allocation2 + $0x8] sm:$0xff] %vm453_vm0, %v12690_v0  ;;  %928 = vmatprep.subr.bf16.mxu0 %v12691_v1  ;;  %1408 = vmatprep.subr.bf16.mxu1 %v12691_v1  ;;  %vm542_vm2 = vcmask 130048   ;;  %s17140_s0 = sld [smem:[#allocation18_spill]]  ;;  %s17099_s17 = smov 16   ;;  %vm780_vm3 = vcmask 261120  }
  0x4b   : > { %457 = vst.msk [vmem:[#allocation2 + $0x10] sm:$0x3] %vm456_vm1, %v12690_v0  ;;  %460 = vst.msk [vmem:[#allocation2 + $0x28] sm:$0x3] %vm456_vm1, %v12690_v0  ;;  %s448_s23 = scalar_select %p447_p11, %s12791_s25, 1  ;;  %12325 = vset.pattern.permute.xlu1 %v12691_v1  ;;  %12324 = vset.pattern.permute.xlu0 %v12691_v1  ;;  %vm797_vm4 = vcmask 523264  }
  0x4c   : > { %458 = vst.msk [vmem:[#allocation2 + $0x18] sm:$0xff] %vm453_vm0, %v12690_v0  ;;  %459 = vst.msk [vmem:[#allocation2 + $0x20] sm:$0xff] %vm453_vm0, %v12690_v0  ;;  %s17141_s2 = sld [smem:[#allocation20_spill]]  ;;  %s17101_s13 = smov 32   ;;  %vm17116_vm5 = vcmask 654336   ;;  %vm815_vm6 = vcmask 785408  }
  0x4d   : > { %461 = vst.msk [vmem:[#allocation2 + $0x30] sm:$0xff] %vm453_vm0, %v12690_v0  ;;  %462 = vst.msk [vmem:[#allocation2 + $0x38] sm:$0xff] %vm453_vm0, %v12690_v0  ;;  %s11732_s27 = sshll.u32 %s448_s23, 8  ;;  %s17091_s30 = smov 48   ;;  %vm824_vm7 = vcmask 916480   ;;  %vm1049_vm10 = vcmask 195712  }
  0x4e   : > { %463 = vst.msk [vmem:[#allocation2 + $0x40] sm:$0x3] %vm456_vm1, %v12690_v0  ;;  %466 = vst.msk [vmem:[#allocation2 + $0x58] sm:$0x3] %vm456_vm1, %v12690_v0  ;;  %s17093_s14 = smov 80   ;;  %s17089_s26 = smov 64  }
  0x4f   : > { %464 = vst.msk [vmem:[#allocation2 + $0x48] sm:$0xff] %vm453_vm0, %v12690_v0  ;;  %465 = vst.msk [vmem:[#allocation2 + $0x50] sm:$0xff] %vm453_vm0, %v12690_v0  ;;  %s17095_s18 = smov 112   ;;  %s17097_s23 = smov 96  }
  0x50   : > { %467 = vst.msk [vmem:[#allocation2 + $0x60] sm:$0xff] %vm453_vm0, %v12690_v0  ;;  %468 = vst.msk [vmem:[#allocation2 + $0x68] sm:$0xff] %vm453_vm0, %v12690_v0  ;;  %s12942_s29 = scalar_lea.vmem %s17140_s0, %s11732_s27  ;;  %s17142_s7 = sld [smem:[#allocation22_spill]] }
  0x51   : > { %469 = vst.msk [vmem:[#allocation2 + $0x70] sm:$0x3] %vm456_vm1, %v12690_v0  ;;  %472 = vst.msk [vmem:[#allocation2 + $0x88] sm:$0x3] %vm456_vm1, %v12690_v0  ;;  %v509_v2 = vld [vmem:[%s12942_s29] sm:$0xff]  ;;  %v510_v3 = vld [vmem:[%s12942_s29 + $0x8] sm:$0xff] }
  0x52   : > { %470 = vst.msk [vmem:[#allocation2 + $0x78] sm:$0xff] %vm453_vm0, %v12690_v0  ;;  %471 = vst.msk [vmem:[#allocation2 + $0x80] sm:$0xff] %vm453_vm0, %v12690_v0  ;;  %v511_v4 = vld [vmem:[%s12942_s29 + $0x10] sm:$0xff]  ;;  %v587_v5 = vld [vmem:[#allocation2 + $0x1] sm:$0xff]  ;;  %s17143_s16 = smov 112   ;;  %s17147_s19 = smov 32  }
  0x53   : > { %473 = vst.msk [vmem:[#allocation2 + $0x90] sm:$0xff] %vm453_vm0, %v12690_v0  ;;  %474 = vst.msk [vmem:[#allocation2 + $0x98] sm:$0xff] %vm453_vm0, %v12690_v0  ;;  %v588_v6 = vld [vmem:[#allocation2 + $0x9] sm:$0xff]  ;;  %v512_v10 = vld [vmem:[%s12942_s29 + $0x18] sm:$0xff]  ;;  %s17148_s0 = smov 16   ;;  %s17105_s27 = smov 72  }
  0x54   : > { %475 = vst.msk [vmem:[#allocation2 + $0xa0] sm:$0x3] %vm456_vm1, %v12690_v0  ;;  %478 = vst.msk [vmem:[#allocation2 + $0xb8] sm:$0x3] %vm456_vm1, %v12690_v0  ;;  %v599_v7 = vld [vmem:[#allocation2 + $0x2] sm:$0xff]  ;;  %v595_v8 = vpack.c.bf16 %v588_v6, %v587_v5  ;;  %v600_v9 = vld [vmem:[#allocation2 + $0xa] sm:$0xff] }
  0x55   : > { %476 = vst.msk [vmem:[#allocation2 + $0xa8] sm:$0xff] %vm453_vm0, %v12690_v0  ;;  %477 = vst.msk [vmem:[#allocation2 + $0xb0] sm:$0xff] %vm453_vm0, %v12690_v0  ;;  %v513_v11 = vld [vmem:[%s12942_s29 + $0x20] sm:$0xff]  ;;  %v514_v12 = vld [vmem:[%s12942_s29 + $0x28] sm:$0xff]  ;;  %v607_v15 = vpack.c.bf16 %v600_v9, %v599_v7  ;;  %s17150_s3 = sld [smem:[#allocation21_spill]]  ;;  %s17152_s20 = smov 24  }
  0x56   : > { %479 = vst.msk [vmem:[#allocation2 + $0xc0] sm:$0xff] %vm453_vm0, %v12690_v0  ;;  %480 = vst.msk [vmem:[#allocation2 + $0xc8] sm:$0xff] %vm453_vm0, %v12690_v0  ;;  %v515_v13 = vld [vmem:[%s12942_s29 + $0x30] sm:$0xff]  ;;  %v516_v14 = vld [vmem:[%s12942_s29 + $0x38] sm:$0xff]  ;;  %688 = vrot.lane.b32.xlu0 %v595_v8, %s17099_s17  ;;  %s17151_s8 = sld [smem:[#allocation23_spill]]  ;;  %s17153_s1 = smov 120  }
  0x57   : > { %481 = vst.msk [vmem:[#allocation2 + $0xd0] sm:$0x3] %vm456_vm1, %v12690_v0  ;;  %484 = vst.msk [vmem:[#allocation2 + $0xe8] sm:$0x3] %vm456_vm1, %v12690_v0  ;;  %v517_v16 = vld [vmem:[%s12942_s29 + $0x40] sm:$0xff]  ;;  %v518_v17 = vld [vmem:[%s12942_s29 + $0x48] sm:$0xff] }
  0x58   : > { %482 = vst.msk [vmem:[#allocation2 + $0xd8] sm:$0xff] %vm453_vm0, %v12690_v0  ;;  %483 = vst.msk [vmem:[#allocation2 + $0xe0] sm:$0xff] %vm453_vm0, %v12690_v0  ;;  %v12326_v18 = vld [vmem:[%s17141_s2 + $0x38] sm:$0xff]   ;;  %v12327_v19 = vld [vmem:[%s17141_s2 + $0x30] sm:$0xff]   ;;  %p17265_p13 = scmp.ne.s32.totalorder %s17134_s15, 0 }
  0x59   : > { %485 = vst.msk [vmem:[#allocation2 + $0xf0] sm:$0xff] %vm453_vm0, %v12690_v0  ;;  %486 = vst.msk [vmem:[#allocation2 + $0xf8] sm:$0xff] %vm453_vm0, %v12690_v0  ;;  %929 = vmatpush1.bf16.msra.mxu0 %v12326_v18  ;;  %v12328_v29 = vld [vmem:[%s17141_s2 + $0x28] sm:$0xff]   ;;  %v12329_v39 = vld [vmem:[%s17141_s2 + $0x20] sm:$0xff]  }
  0x5a   : > { %487 = vst.msk [vmem:[#allocation2 + $0x100] sm:$0x3] %vm456_vm1, %v12690_v0  ;;  %490 = vst.msk [vmem:[#allocation2 + $0x118] sm:$0x3] %vm456_vm1, %v12690_v0  ;;  %700 = vrot.lane.b32.xlu0 %v607_v15, %s17101_s13  ;;  %930 = vmatprep.subr.bf16.mxu0 %v12691_v1  ;;  %v12330_v40 = vld [vmem:[%s17141_s2 + $0x18] sm:$0xff]   ;;  %v12331_v43 = vld [vmem:[%s17141_s2 + $0x10] sm:$0xff]  }
  0x5b   : > { %488 = vst.msk [vmem:[#allocation2 + $0x108] sm:$0xff] %vm453_vm0, %v12690_v0  ;;  %489 = vst.msk [vmem:[#allocation2 + $0x110] sm:$0xff] %vm453_vm0, %v12690_v0  ;;  %v12332_v45 = vld [vmem:[%s17141_s2 + $0x8] sm:$0xff]   ;;  %v12333_v48 = vld [vmem:[%s17141_s2] sm:$0xff]  }
  0x5c   : > { %491 = vst.msk [vmem:[#allocation2 + $0x120] sm:$0xff] %vm453_vm0, %v12690_v0  ;;  %492 = vst.msk [vmem:[#allocation2 + $0x128] sm:$0xff] %vm453_vm0, %v12690_v0  ;;  %v12334_v52 = vld [vmem:[%s17141_s2 + $0x40] sm:$0xff]   ;;  %v576_v6 = vld [vmem:[#allocation2 + $0x8] sm:$0xff] }
  0x5d   : > { %493 = vst.msk [vmem:[#allocation2 + $0x130] sm:$0x3] %vm456_vm1, %v12690_v0  ;;  %496 = vst.msk [vmem:[#allocation2 + $0x148] sm:$0x3] %vm456_vm1, %v12690_v0  ;;  %931 = vmatpush1.bf16.msra.mxu0 %v12327_v19  ;;  %v575_v7 = vld [vmem:[#allocation2] sm:$0xff] }
  0x5e   : > { %494 = vst.msk [vmem:[#allocation2 + $0x138] sm:$0xff] %vm453_vm0, %v12690_v0  ;;  %495 = vst.msk [vmem:[#allocation2 + $0x140] sm:$0xff] %vm453_vm0, %v12690_v0  ;;  %932 = vmatprep.subr.bf16.mxu0 %v12691_v1  ;;  %v583_v9 = vpack.c.bf16 %v576_v6, %v575_v7 }
  0x5f   : > { %497 = vst.msk [vmem:[#allocation2 + $0x150] sm:$0xff] %vm453_vm0, %v12690_v0  ;;  %498 = vst.msk [vmem:[#allocation2 + $0x158] sm:$0xff] %vm453_vm0, %v12690_v0 }
  0x60   : > { %499 = vst.msk [vmem:[#allocation2 + $0x160] sm:$0x3] %vm456_vm1, %v12690_v0  ;;  %502 = vst.msk [vmem:[#allocation2 + $0x178] sm:$0x3] %vm456_vm1, %v12690_v0 }
  0x61   : > { %500 = vst.msk [vmem:[#allocation2 + $0x168] sm:$0xff] %vm453_vm0, %v12690_v0  ;;  %501 = vst.msk [vmem:[#allocation2 + $0x170] sm:$0xff] %vm453_vm0, %v12690_v0  ;;  %933 = vmatpush1.bf16.msra.mxu0 %v12328_v29 }
  0x62   : > { %503 = vst.msk [vmem:[#allocation2 + $0x180] sm:$0xff] %vm453_vm0, %v12690_v0  ;;  %504 = vst.msk [vmem:[#allocation2 + $0x188] sm:$0xff] %vm453_vm0, %v12690_v0  ;;  %934 = vmatprep.subr.bf16.mxu0 %v12691_v1 }
  0x63   : > { %505 = vst.msk [vmem:[#allocation2 + $0x190] sm:$0x3] %vm456_vm1, %v12690_v0  ;;  %508 = vst.msk [vmem:[#allocation2 + $0x1a8] sm:$0x3] %vm456_vm1, %v12690_v0 }
  0x64   : > { %506 = vst.msk [vmem:[#allocation2 + $0x198] sm:$0xff] %vm453_vm0, %v12690_v0  ;;  %507 = vst.msk [vmem:[#allocation2 + $0x1a0] sm:$0xff] %vm453_vm0, %v12690_v0 }
  0x65   : > { %543 = vst.msk [vmem:[#allocation2 + $0x19] sm:$0xff] %vm542_vm2, %v509_v2  ;;  %544 = vst.msk [vmem:[#allocation2 + $0x21] sm:$0xff] %vm542_vm2, %v510_v3  ;;  %935 = vmatpush1.bf16.msra.mxu0 %v12329_v39 }
  0x66   : > { %545 = vst.msk [vmem:[#allocation2 + $0x31] sm:$0xff] %vm542_vm2, %v511_v4  ;;  %546 = vst.msk [vmem:[#allocation2 + $0x39] sm:$0xff] %vm542_vm2, %v512_v10  ;;  %936 = vmatprep.subr.bf16.mxu0 %v12691_v1 }
  0x67   : > { %547 = vst.msk [vmem:[#allocation2 + $0x49] sm:$0xff] %vm542_vm2, %v513_v11  ;;  %548 = vst.msk [vmem:[#allocation2 + $0x51] sm:$0xff] %vm542_vm2, %v514_v12 }
  0x68   : > { %549 = vst.msk [vmem:[#allocation2 + $0x61] sm:$0xff] %vm542_vm2, %v515_v13  ;;  %550 = vst.msk [vmem:[#allocation2 + $0x69] sm:$0xff] %vm542_vm2, %v516_v14 }
  0x69   : > { %551 = vst.msk [vmem:[#allocation2 + $0x79] sm:$0xff] %vm542_vm2, %v517_v16  ;;  %552 = vst.msk [vmem:[#allocation2 + $0x81] sm:$0xff] %vm542_vm2, %v518_v17  ;;  %937 = vmatpush1.bf16.msra.mxu0 %v12330_v40 }
  0x6a   : > { %938 = vmatprep.subr.bf16.mxu0 %v12691_v1 }
  0x6c   : > { %v611_v20 = vld [vmem:[#allocation2 + $0x18] sm:$0xff]  ;;  %v612_v21 = vld [vmem:[#allocation2 + $0x20] sm:$0xff] }
  0x6d   : > { %v623_v22 = vld [vmem:[#allocation2 + $0x19] sm:$0xff]  ;;  %v12973_v23 = vpack.c.bf16 %v612_v21, %v611_v20  ;;  %v624_v24 = vld [vmem:[#allocation2 + $0x21] sm:$0xff]  ;;  %v660_v28 = vld [vmem:[#allocation2 + $0x31] sm:$0xff]  ;;  %939 = vmatpush1.bf16.msra.mxu0 %v12331_v43 }
  0x6e   : > { %v635_v25 = vld [vmem:[#allocation2 + $0x1a] sm:$0xff]  ;;  %v636_v26 = vld [vmem:[#allocation2 + $0x22] sm:$0xff]  ;;  %v631_v30 = vpack.c.bf16 %v624_v24, %v623_v22  ;;  %v637_v32 = vld [vmem:[#allocation2 + $0x32] sm:$0xff]  ;;  %940 = vmatprep.subr.bf16.mxu0 %v12691_v1 }
  0x6f   : > { %v643_v27 = vpack.c.bf16 %v636_v26, %v635_v25  ;;  %712 = vrot.lane.b32.xlu1 %v12973_v23, %s17091_s30  ;;  %v661_v31 = vld [vmem:[#allocation2 + $0x39] sm:$0xff]  ;;  %v648_v34 = vld [vmem:[#allocation2 + $0x30] sm:$0xff]  ;;  %v650_v41 = vld [vmem:[#allocation2 + $0x48] sm:$0xff] }
  0x70   : > { %v638_v33 = vld [vmem:[#allocation2 + $0x3a] sm:$0xff]  ;;  %v668_v36 = vpack.c.bf16 %v661_v31, %v660_v28  ;;  %v651_v42 = vld [vmem:[#allocation2 + $0x50] sm:$0xff]  ;;  %v653_v57 = vld [vmem:[#allocation2 + $0x68] sm:$0xff] }
  0x71   : > { %736 = vrot.lane.b32.xlu0 %v643_v27, %s17093_s14  ;;  %v649_v35 = vld [vmem:[#allocation2 + $0x38] sm:$0xff]  ;;  %v644_v37 = vpack.c.bf16 %v638_v33, %v637_v32  ;;  %v13003_v44 = vpack.c.bf16 %v651_v42, %v650_v41  ;;  %v662_v46 = vld [vmem:[#allocation2 + $0x49] sm:$0xff]  ;;  %941 = vmatpush1.bf16.msra.mxu0 %v12332_v45  ;;  %v664_v53 = vld [vmem:[#allocation2 + $0x61] sm:$0xff] }
  0x72   : > { %v12984_v38 = vpack.c.bf16 %v649_v35, %v648_v34  ;;  %v663_v47 = vld [vmem:[#allocation2 + $0x51] sm:$0xff]  ;;  %942 = vmatprep.subr.bf16.mxu0 %v12691_v1  ;;  %v665_v54 = vld [vmem:[#allocation2 + $0x69] sm:$0xff]  ;;  %v652_v56 = vld [vmem:[#allocation2 + $0x60] sm:$0xff] }
  0x73   : > { %11376 = vmatprep.mubr.msk.bf16.mxu0 %vm542_vm2, %v644_v37  ;;  %724 = vrot.lane.b32.xlu1 %v631_v30, %s17089_s26  ;;  %v669_v49 = vpack.c.bf16 %v663_v47, %v662_v46  ;;  %v639_v50 = vld [vmem:[#allocation2 + $0x4a] sm:$0xff]  ;;  %v640_v51 = vld [vmem:[#allocation2 + $0x52] sm:$0xff]  ;;  %v670_v58 = vpack.c.bf16 %v665_v54, %v664_v53  ;;  %v658_v59 = vpack.c.bf16 %v653_v57, %v652_v56  ;;  %v655_v61 = vld [vmem:[#allocation2 + $0x80] sm:$0xff] }
  0x74   : > { %v645_v55 = vpack.c.bf16 %v640_v51, %v639_v50  ;;  %v654_v60 = vld [vmem:[#allocation2 + $0x78] sm:$0xff]  ;;  %v641_v62 = vld [vmem:[#allocation2 + $0x62] sm:$0xff]  ;;  %v642_v63 = vld [vmem:[#allocation2 + $0x6a] sm:$0xff] }
  0x75   : > { %760 = vrot.lane.b32.xlu0 %v668_v36, %s17095_s18  ;;  %943 = vmatpush1.bf16.msra.mxu0 %v12333_v48  ;;  %v13036_v0 = vpack.c.bf16 %v655_v61, %v654_v60  ;;  %v666_v2 = vld [vmem:[#allocation2 + $0x79] sm:$0xff]  ;;  %v667_v3 = vld [vmem:[#allocation2 + $0x81] sm:$0xff]  ;;  %v646_v4 = vpack.c.bf16 %v642_v63, %v641_v62 }
  0x76   : > { %958 = vmatprep.subr.bf16.mxu0 %v12691_v1  ;;  %v13042_v5 = vpack.c.bf16 %v667_v3, %v666_v2  ;;  %v678_v45 = vld [vmem:[#allocation2 + $0x7a] sm:$0xff]  ;;  %v679_v46 = vld [vmem:[#allocation2 + $0x82] sm:$0xff] }
  0x77   : > { %748 = vrot.lane.b32.xlu1 %v12984_v38, %s17097_s23  ;;  %v13069_v53 = vpack.c.bf16 %v679_v46, %v678_v45 }
  0x79   : > { %702 = vrot.lane.b32.xlu0 %v643_v27, %s17101_s13  ;;  %959 = vmatpush2.bf16.msra.mxu0 %v12334_v52 }
  0x7a   : > { %1887 = vmatprep.subr.bf16.mxu0 %v12691_v1 }
  0x7b   : > { %690 = vrot.lane.b32.xlu1 %v631_v30, %s17099_s17 }
  0x7d   : > { %726 = vrot.lane.b32.xlu0 %v668_v36, %s17089_s26 }
  0x7f   : > { %714 = vrot.lane.b32.xlu1 %v12984_v38, %s17091_s30 }
  0x81   : > { %750 = vrot.lane.b32.xlu0 %v13003_v44, %s17097_s23 }
  0x83   : > { %738 = vrot.lane.b32.xlu1 %v644_v37, %s17093_s14 }
  0x85   : > { %692 = vrot.lane.b32.xlu0 %v668_v36, %s17099_s17 }
  0x87   : > { %762 = vrot.lane.b32.xlu1 %v669_v49, %s17095_s18 }
  0x89   : > { %716 = vrot.lane.b32.xlu0 %v13003_v44, %s17091_s30 }
  0x8b   : > { %704 = vrot.lane.b32.xlu1 %v644_v37, %s17101_s13 }
  0x8d   : > { %740 = vrot.lane.b32.xlu0 %v645_v55, %s17093_s14 }
  0x8f   : > { %728 = vrot.lane.b32.xlu1 %v669_v49, %s17089_s26 }
  0x91   : > { %764 = vrot.lane.b32.xlu0 %v670_v58, %s17095_s18 }
  0x93   : > { %752 = vrot.lane.b32.xlu1 %v658_v59, %s17097_s23 }
  0x95   : > { %706 = vrot.lane.b32.xlu0 %v645_v55, %s17101_s13 }
  0x97   : > { %694 = vrot.lane.b32.xlu1 %v669_v49, %s17099_s17 }
  0x99   : > { %730 = vrot.lane.b32.xlu0 %v670_v58, %s17089_s26 }
  0x9b   : > { %718 = vrot.lane.b32.xlu1 %v658_v59, %s17091_s30 }
  0x9d   : > { %754 = vrot.lane.b32.xlu0 %v13036_v0, %s17097_s23 }
  0x9f   : > { %742 = vrot.lane.b32.xlu1 %v646_v4, %s17093_s14 }
  0xa3   : > { %766 = vrot.lane.b32.xlu1 %v13042_v5, %s17095_s18 }
  0xc8   : > { %v689_v8 = vpop.permute.xlu0 %688 }
  0xc9   : > { %v770_v11 = vsel %vm542_vm2, %v583_v9, %v689_v8  ;;  %v519_v8 = vld [vmem:[%s12942_s29 + $0x50] sm:$0xff] }
  0xca   : > { %553 = vst.msk [vmem:[#allocation2 + $0x91] sm:$0xff] %vm542_vm2, %v519_v8 }
  0xcc   : > { %v701_v10 = vpop.permute.xlu0 %700 }
  0xcd   : > { %v782_v13 = vsel %vm780_vm3, %v770_v11, %v701_v10 }
  0xe1   : > { %v713_v12 = vpop.permute.xlu1 %712 }
  0xe2   : > { %v790_v15 = vsel %vm453_vm0, %v782_v13, %v713_v12 }
  0xe3   : > { %v737_v14 = vpop.permute.xlu0 %736 }
  0xe5   : > { %v725_v16 = vpop.permute.xlu1 %724 }
  0xe6   : > { %v799_v17 = vsel %vm797_vm4, %v790_v15, %v725_v16 }
  0xe7   : > { %v761_v18 = vpop.permute.xlu0 %760  ;;  %v808_v19 = vsel %vm17116_vm5, %v799_v17, %v737_v14 }
  0xe9   : > { %v749_v20 = vpop.permute.xlu1 %748 }
  0xea   : > { %v817_v21 = vsel %vm815_vm6, %v808_v19, %v749_v20 }
  0xeb   : > { %v703_v22 = vpop.permute.xlu0 %702  ;;  %v826_v24 = vsel %vm824_vm7, %v817_v21, %v761_v18 }
  0xec   : > { %961 = vmatmul.mubr.bf16.vlgmr.msra.gmra.mxu0 %v826_v24 }
  0xed   : > { %v691_v25 = vpop.permute.xlu1 %690  ;;  %11377 = vmatprep.mubr.msk.bf16.mxu0 %vm542_vm2, %v645_v55 }
  0xee   : > { %v773_v26 = vsel %vm542_vm2, %v12973_v23, %v691_v25  ;;  %v13104_v25 = vld [vmem:[%s17142_s7] ss:$0 sm:$0xff] }
  0xef   : > { %v727_v27 = vpop.permute.xlu0 %726  ;;  %v784_v28 = vsel %vm780_vm3, %v773_v26, %v703_v22 }
  0xf1   : > { %v715_v29 = vpop.permute.xlu1 %714 }
  0xf2   : > { %v792_v30 = vsel %vm453_vm0, %v784_v28, %v715_v29  ;;  %v522_v28 = vld [vmem:[%s12942_s29 + $0x68] sm:$0xff] }
  0xf3   : > { %v751_v31 = vpop.permute.xlu0 %750  ;;  %v801_v32 = vsel %vm797_vm4, %v792_v30, %v727_v27  ;;  %v521_v27 = vld [vmem:[%s12942_s29 + $0x60] sm:$0xff]  ;;  %556 = vst.msk [vmem:[#allocation2 + $0xb1] sm:$0xff] %vm542_vm2, %v522_v28 }
  0xf4   : > { %555 = vst.msk [vmem:[#allocation2 + $0xa9] sm:$0xff] %vm542_vm2, %v521_v27 }
  0xf5   : > { %v739_v33 = vpop.permute.xlu1 %738 }
  0xf6   : > { %v810_v34 = vsel %vm17116_vm5, %v801_v32, %v739_v33 }
  0xf7   : > { %v693_v35 = vpop.permute.xlu0 %692  ;;  %v819_v36 = vsel %vm815_vm6, %v810_v34, %v751_v31 }
  0xf8   : > { %v776_v23 = vsel %vm542_vm2, %v12984_v38, %v693_v35 }
  0xf9   : > { %v763_v37 = vpop.permute.xlu1 %762 }
  0xfa   : > { %v829_v39 = vsel %vm824_vm7, %v819_v36, %v763_v37 }
  0xfb   : > { %v717_v40 = vpop.permute.xlu0 %716  ;;  %969 = vmatmul.mubr.bf16.gmra.mxu0 %v829_v39  ;;  %v1133_v39 = vld [vmem:[#allocation2 + $0x90] sm:$0xff] }
  0xfc   : > { %11378 = vmatprep.mubr.msk.bf16.mxu0 %vm542_vm2, %v646_v4 }
  0xfd   : > { %v705_v41 = vpop.permute.xlu1 %704 }
  0xfe   : > { %v786_v42 = vsel %vm780_vm3, %v776_v23, %v705_v41  ;;  %v1145_v23 = vld [vmem:[#allocation2 + $0x91] sm:$0xff] }
  0xff   : > { %v741_v43 = vpop.permute.xlu0 %740  ;;  %v794_v47 = vsel %vm453_vm0, %v786_v42, %v717_v40  ;;  %v523_v42 = vld [vmem:[%s12942_s29 + $0x70] sm:$0xff] }
 0x100   : > { %557 = vst.msk [vmem:[#allocation2 + $0xc1] sm:$0xff] %vm542_vm2, %v523_v42 }
 0x101   : > { %v729_v48 = vpop.permute.xlu1 %728 }
 0x102   : > { %v803_v49 = vsel %vm797_vm4, %v794_v47, %v729_v48  ;;  %v525_v47 = vld [vmem:[%s12942_s29 + $0x80] sm:$0xff]  ;;  %v526_v48 = vld [vmem:[%s12942_s29 + $0x88] sm:$0xff] }
 0x103   : > { %v765_v50 = vpop.permute.xlu0 %764  ;;  %v812_v51 = vsel %vm17116_vm5, %v803_v49, %v741_v43  ;;  %v524_v43 = vld [vmem:[%s12942_s29 + $0x78] sm:$0xff]  ;;  %559 = vst.msk [vmem:[#allocation2 + $0xd9] sm:$0xff] %vm542_vm2, %v525_v47  ;;  %560 = vst.msk [vmem:[#allocation2 + $0xe1] sm:$0xff] %vm542_vm2, %v526_v48  ;;  %v12336_v49 = vld [vmem:[%s17141_s2 + $0x30] sm:$0xff]  }
 0x104   : > { %558 = vst.msk [vmem:[#allocation2 + $0xc9] sm:$0xff] %vm542_vm2, %v524_v43 }
 0x105   : > { %v753_v52 = vpop.permute.xlu1 %752 }
 0x106   : > { %v821_v38 = vsel %vm815_vm6, %v812_v51, %v753_v52  ;;  %v12338_v51 = vld [vmem:[%s17141_s2 + $0x20] sm:$0xff]   ;;  %v12339_v52 = vld [vmem:[%s17141_s2 + $0x18] sm:$0xff]  }
 0x107   : > { %v707_v54 = vpop.permute.xlu0 %706  ;;  %v832_v55 = vsel %vm824_vm7, %v821_v38, %v765_v50  ;;  %v12337_v50 = vld [vmem:[%s17141_s2 + $0x28] sm:$0xff]  }
 0x108   : > { %977 = vmatmul.mubr.bf16.gmra.mxu0 %v832_v55  ;;  %v12341_v38 = vld [vmem:[%s17141_s2 + $0x8] sm:$0xff]   ;;  %v12342_v55 = vld [vmem:[%s17141_s2] sm:$0xff]  }
 0x109   : > { %v695_v56 = vpop.permute.xlu1 %694  ;;  %11379 = vmatprep.mubr.msk.bf16.mxu0 %vm542_vm2, %v13069_v53 }
 0x10a   : > { %v779_v57 = vsel %vm542_vm2, %v13003_v44, %v695_v56  ;;  %v520_v44 = vld [vmem:[%s12942_s29 + $0x58] sm:$0xff] }
 0x10b   : > { %v731_v58 = vpop.permute.xlu0 %730  ;;  %v788_v59 = vsel %vm780_vm3, %v779_v57, %v707_v54  ;;  %554 = vst.msk [vmem:[#allocation2 + $0x99] sm:$0xff] %vm542_vm2, %v520_v44  ;;  %v12343_v57 = vld [vmem:[%s17141_s2 + $0x40] sm:$0xff]   ;;  %v1124_v44 = vld [vmem:[#allocation2 + $0xaa] sm:$0xff]  ;;  %v1139_v28 = vld [vmem:[#allocation2 + $0xd8] sm:$0xff] }
 0x10d   : > { %v719_v60 = vpop.permute.xlu1 %718 }
 0x10e   : > { %v796_v61 = vsel %vm453_vm0, %v788_v59, %v719_v60  ;;  %v1136_v59 = vld [vmem:[#allocation2 + $0xb0] sm:$0xff] }
 0x10f   : > { %v805_v62 = vsel %vm797_vm4, %v796_v61, %v731_v58  ;;  %v755_v3 = vpop.permute.xlu0 %754  ;;  %v1135_v58 = vld [vmem:[#allocation2 + $0xa8] sm:$0xff] }
 0x110   : > { %v1147_v61 = vld [vmem:[#allocation2 + $0xa9] sm:$0xff] }
 0x111   : > { %v743_v63 = vpop.permute.xlu1 %742 }
 0x112   : > { %v814_v2 = vsel %vm17116_vm5, %v805_v62, %v743_v63  ;;  %v1122_v21 = vld [vmem:[#allocation2 + $0x92] sm:$0xff]  ;;  %v1123_v22 = vld [vmem:[#allocation2 + $0x9a] sm:$0xff] }
 0x113   : > { %v823_v4 = vsel %vm815_vm6, %v814_v2, %v755_v3  ;;  %v13099_v24 = vpack.c.bf16 %v1123_v22, %v1122_v21  ;;  %v1134_v40 = vld [vmem:[#allocation2 + $0x98] sm:$0xff]  ;;  %v1150_v21 = vld [vmem:[#allocation2 + $0xc9] sm:$0xff] }
 0x114   : > { %v1146_v41 = vld [vmem:[#allocation2 + $0x99] sm:$0xff]  ;;  %v13124_v45 = vpack.c.bf16 %v1134_v40, %v1133_v39  ;;  %v1148_v62 = vld [vmem:[#allocation2 + $0xb1] sm:$0xff] }
 0x115   : > { %v767_v6 = vpop.permute.xlu1 %766  ;;  %11390 = vmatprep.mubr.msk.bf16.mxu1 %vm542_vm2, %v13099_v24  ;;  %v1153_v46 = vpack.c.bf16 %v1146_v41, %v1145_v23  ;;  %v1154_v8 = vpack.c.bf16 %v1148_v62, %v1147_v61 }
 0x116   : > { %v835_v7 = vsel %vm824_vm7, %v823_v4, %v767_v6 }
 0x117   : > { %985 = vmatmul.mubr.bf16.gmra.mxu0 %v835_v7  ;;  %v13184_v7 = vpack.c.bf16 %v1136_v59, %v1135_v58 }
 0x1ac   : > { %v13087_v9 = vpop.f32.mrf.mxu0 }
 0x1ae   : > { %v964_v10 = vpop.f32.mrf.mxu0 }
 0x1af   : > { %v1125_v10 = vld [vmem:[#allocation2 + $0xb2] sm:$0xff] }
 0x1b0   : > { %v13089_v11 = vpop.f32.mrf.mxu0 }
 0x1b2   : > { %v967_v12 = vpop.f32.mrf.mxu0 }
 0x1b3   : > { %v1137_v12 = vld [vmem:[#allocation2 + $0xc0] sm:$0xff] }
 0x1bb   : > { %v13091_v13 = vpop.f32.mrf.mxu0 }
 0x1bd   : > { %v972_v14 = vpop.f32.mrf.mxu0 }
 0x1be   : > { %v1138_v14 = vld [vmem:[#allocation2 + $0xc8] sm:$0xff] }
 0x1bf   : > { %v13093_v15 = vpop.f32.mrf.mxu0 }
 0x1c1   : > { %v975_v16 = vpop.f32.mrf.mxu0 }
 0x1c2   : > { %v1130_v16 = vpack.c.bf16 %v1125_v10, %v1124_v44 }
 0x1c8   : > { %v13095_v17 = vpop.f32.mrf.mxu0 }
 0x1ca   : > { %v980_v18 = vpop.f32.mrf.mxu0 }
 0x1cb   : > { %v1143_v18 = vpack.c.bf16 %v1138_v14, %v1137_v12 }
 0x1cc   : > { %v13097_v19 = vpop.f32.mrf.mxu0 }
 0x1ce   : > { %v983_v20 = vpop.f32.mrf.mxu0 }
 0x1cf   : > { %v1149_v20 = vld [vmem:[#allocation2 + $0xc1] sm:$0xff] }
 0x1d0   : > { %v1155_v22 = vpack.c.bf16 %v1150_v21, %v1149_v20  ;;  %v1164_v20 = vld [vmem:[#allocation2 + $0xe2] sm:$0xff] }
 0x1d7   : > { %v986_v26 = vpop.f32.mrf.mxu0 }
 0x1d8   : > { %v987_v29 = vadd.f32 %v13104_v25, %v986_v26  ;;  %v1127_v26 = vld [vmem:[#allocation2 + $0xca] sm:$0xff] }
 0x1d9   : > { %v988_v30 = vpop.f32.mrf.mxu0 }
 0x1da   : > { %v1007_v31 = vmul.f32 0.2, %v987_v29  ;;  %vm999_vm8 = vcmp.ge.f32.partialorder %v987_v29, 0.0  ;;  %v1151_v30 = vld [vmem:[#allocation2 + $0xd9] sm:$0xff] }
 0x1db   : > { %v989_v32 = vpop.f32.mrf.mxu0 }
 0x1dc   : > { %v990_v33 = vadd.f32 %v13104_v25, %v989_v32  ;;  %v1015_v34 = vsel %vm999_vm8, %v987_v29, %v1007_v31  ;;  %v1140_v29 = vld [vmem:[#allocation2 + $0xe0] sm:$0xff] }
 0x1dd   : > { %v991_v35 = vpop.f32.mrf.mxu0  ;;  %1037 = vrot.lane.b32.xlu0 %v1015_v34, %s17099_s17  ;;  %v1152_v31 = vld [vmem:[#allocation2 + $0xe1] sm:$0xff]  ;;  %v13203_v32 = vpack.c.bf16 %v1140_v29, %v1139_v28 }
 0x1de   : > { %v1008_v36 = vmul.f32 0.2, %v990_v33  ;;  %vm1000_vm9 = vcmp.ge.f32.partialorder %v990_v33, 0.0 }
 0x1e0   : > { %v1016_v37 = vsel %vm1000_vm9, %v990_v33, %v1008_v36  ;;  %v13205_v33 = vpack.c.bf16 %v1152_v31, %v1151_v30 }
 0x1e1   : > { %1039 = vrot.lane.b32.xlu1 %v1016_v37, %s17099_s17  ;;  %1197 = vrot.lane.b32.xlu0 %v13036_v0, %s17091_s30 }
 0x1e5   : > { %1209 = vrot.lane.b32.xlu1 %v13042_v5, %s17089_s26  ;;  %1221 = vrot.lane.b32.xlu0 %v13069_v53, %s17093_s14 }
 0x1e9   : > { %1233 = vrot.lane.b32.xlu1 %v13124_v45, %s17097_s23  ;;  %1245 = vrot.lane.b32.xlu0 %v1153_v46, %s17095_s18  ;;  %s17103_s18 = smov 40  }
 0x1ed   : > { %1175 = vrot.lane.b32.xlu1 %v13042_v5, %s17099_s17  ;;  %1187 = vrot.lane.b32.xlu0 %v13069_v53, %s17101_s13  ;;  %v12335_v5 = vld [vmem:[%s17141_s2 + $0x38] sm:$0xff]   ;;  %v12340_v53 = vld [vmem:[%s17141_s2 + $0x10] sm:$0xff]  }
 0x1ee   : > { %1409 = vmatpush1.bf16.msra.mxu1 %v12335_v5 }
 0x1ef   : > { %1410 = vmatprep.subr.bf16.mxu1 %v12691_v1 }
 0x1f1   : > { %1199 = vrot.lane.b32.xlu1 %v13124_v45, %s17091_s30  ;;  %1211 = vrot.lane.b32.xlu0 %v1153_v46, %s17089_s26  ;;  %s17144_s30 = smov 48   ;;  %s17145_s26 = smov 64  }
 0x1f2   : > { %1411 = vmatpush1.bf16.msra.mxu1 %v12336_v49 }
 0x1f3   : > { %1412 = vmatprep.subr.bf16.mxu1 %v12691_v1 }
 0x1f5   : > { %1223 = vrot.lane.b32.xlu1 %v13099_v24, %s17093_s14  ;;  %s17146_s14 = smov 80  }
 0x1f6   : > { %1413 = vmatpush1.bf16.msra.mxu1 %v12337_v50 }
 0x1f7   : > { %1414 = vmatprep.subr.bf16.mxu1 %v12691_v1 }
 0x1fa   : > { %1415 = vmatpush1.bf16.msra.mxu1 %v12338_v51 }
 0x1fb   : > { %1416 = vmatprep.subr.bf16.mxu1 %v12691_v1 }
 0x1fe   : > { %1417 = vmatpush1.bf16.msra.mxu1 %v12339_v52 }
 0x1ff   : > { %1418 = vmatprep.subr.bf16.mxu1 %v12691_v1 }
 0x202   : > { %1419 = vmatpush1.bf16.msra.mxu1 %v12340_v53 }
 0x203   : > { %1420 = vmatprep.subr.bf16.mxu1 %v12691_v1 }
 0x206   : > { %1421 = vmatpush1.bf16.msra.mxu1 %v12341_v38 }
 0x207   : > { %1422 = vmatprep.subr.bf16.mxu1 %v12691_v1 }
 0x20a   : > { %1423 = vmatpush1.bf16.msra.mxu1 %v12342_v55 }
 0x20b   : > { %1438 = vmatprep.subr.bf16.mxu1 %v12691_v1 }
 0x20e   : > { %1439 = vmatpush2.bf16.msra.mxu1 %v12343_v57 }
 0x20f   : > { %2366 = vmatprep.subr.bf16.mxu1 %v12691_v1 }
 0x24f   : > { %v1038_v54 = vpop.permute.xlu0 %1037 }
 0x250   : > { %1056 = vst.msk [vmem:[#allocation2 + $0x61] sm:$0xff] %vm1049_vm10, %v1038_v54 }
 0x253   : > { %v1040_v56 = vpop.permute.xlu1 %1039  ;;  %v1198_v34 = vpop.permute.xlu0 %1197 }
 0x254   : > { %1057 = vst.msk [vmem:[#allocation2 + $0x69] sm:$0xff] %vm1049_vm10, %v1040_v56 }
 0x257   : > { %v1071_v60 = vld [vmem:[#allocation2 + $0x61] sm:$0xff]  ;;  %v1210_v35 = vpop.permute.xlu1 %1209  ;;  %v1222_v36 = vpop.permute.xlu0 %1221 }
 0x258   : > { %v1059_v47 = vld [vmem:[#allocation2 + $0x60] sm:$0xff] }
 0x25b   : > { %v1083_v63 = vld [vmem:[#allocation2 + $0x62] sm:$0xff]  ;;  %v1084_v2 = vld [vmem:[#allocation2 + $0x6a] sm:$0xff]  ;;  %v1234_v37 = vpop.permute.xlu1 %1233  ;;  %v1246_v39 = vpop.permute.xlu0 %1245 }
 0x25c   : > { %v1072_v3 = vld [vmem:[#allocation2 + $0x69] sm:$0xff]  ;;  %v1091_v4 = vpack.c.bf16 %v1084_v2, %v1083_v63 }
 0x25d   : > { %v1079_v6 = vpack.c.bf16 %v1072_v3, %v1071_v60 }
 0x25e   : > { %1185 = vrot.lane.b32.xlu1 %v1091_v4, %s17101_s13 }
 0x25f   : > { %1173 = vrot.lane.b32.xlu0 %v1079_v6, %s17099_s17  ;;  %v1176_v40 = vpop.permute.xlu1 %1175  ;;  %v1188_v23 = vpop.permute.xlu0 %1187 }
 0x260   : > { %v1258_v48 = vsel %vm542_vm2, %v13036_v0, %v1176_v40 }
 0x261   : > { %v1268_v52 = vsel %vm780_vm3, %v1258_v48, %v1188_v23 }
 0x262   : > { %1247 = vrot.lane.b32.xlu1 %v1154_v8, %s17143_s16 }
 0x263   : > { %1235 = vrot.lane.b32.xlu0 %v13184_v7, %s17097_s23  ;;  %v1200_v41 = vpop.permute.xlu1 %1199  ;;  %v1212_v42 = vpop.permute.xlu0 %1211 }
 0x264   : > { %v1276_v57 = vsel %vm453_vm0, %v1268_v52, %v1200_v41 }
 0x265   : > { %v1284_v60 = vsel %vm797_vm4, %v1276_v57, %v1212_v42  ;;  %v527_v42 = vld [vmem:[%s12942_s29 + $0x90] sm:$0xff] }
 0x266   : > { %1189 = vrot.lane.b32.xlu1 %v13099_v24, %s17101_s13  ;;  %v1126_v24 = vld [vmem:[#allocation2 + $0xc2] sm:$0xff]  ;;  %561 = vst.msk [vmem:[#allocation2 + $0xf1] sm:$0xff] %vm542_vm2, %v527_v42 }
 0x267   : > { %1177 = vrot.lane.b32.xlu0 %v1153_v46, %s17099_s17  ;;  %v1131_v27 = vpack.c.bf16 %v1127_v26, %v1126_v24  ;;  %v1224_v43 = vpop.permute.xlu1 %1223  ;;  %v1060_v46 = vld [vmem:[#allocation2 + $0x68] sm:$0xff] }
 0x268   : > { %v13213_v5 = vpack.c.bf16 %v1060_v46, %v1059_v47  ;;  %v1292_v63 = vsel %vm17116_vm5, %v1284_v60, %v1224_v43  ;;  %v528_v43 = vld [vmem:[%s12942_s29 + $0x98] sm:$0xff]  ;;  %v529_v46 = vld [vmem:[%s12942_s29 + $0xa0] sm:$0xff]  ;;  %v530_v47 = vld [vmem:[%s12942_s29 + $0xa8] sm:$0xff] }
 0x269   : > { %562 = vst.msk [vmem:[#allocation2 + $0xf9] sm:$0xff] %vm542_vm2, %v528_v43  ;;  %563 = vst.msk [vmem:[#allocation2 + $0x109] sm:$0xff] %vm542_vm2, %v529_v46 }
 0x26a   : > { %1213 = vrot.lane.b32.xlu1 %v1154_v8, %s17145_s26  ;;  %564 = vst.msk [vmem:[#allocation2 + $0x111] sm:$0xff] %vm542_vm2, %v530_v47 }
 0x26b   : > { %1201 = vrot.lane.b32.xlu0 %v13184_v7, %s17144_s30 }
 0x26e   : > { %1237 = vrot.lane.b32.xlu1 %v1143_v18, %s17097_s23 }
 0x26f   : > { %1225 = vrot.lane.b32.xlu0 %v1130_v16, %s17146_s14 }
 0x270   : > { %v1601_v48 = vld [vmem:[#allocation2 + $0xf2] sm:$0xff]  ;;  %v1626_v47 = vld [vmem:[#allocation2 + $0x109] sm:$0xff] }
 0x271   : > { %v1615_v42 = vld [vmem:[#allocation2 + $0x110] sm:$0xff] }
 0x272   : > { %1179 = vrot.lane.b32.xlu1 %v1154_v8, %s17099_s17 }
 0x273   : > { %1249 = vrot.lane.b32.xlu0 %v1155_v22, %s17143_s16 }
 0x276   : > { %1203 = vrot.lane.b32.xlu1 %v1143_v18, %s17144_s30  ;;  %v1163_v18 = vld [vmem:[#allocation2 + $0xda] sm:$0xff] }
 0x277   : > { %1191 = vrot.lane.b32.xlu0 %v1130_v16, %s17101_s13  ;;  %v13237_v24 = vpack.c.bf16 %v1164_v20, %v1163_v18 }
 0x27a   : > { %1227 = vrot.lane.b32.xlu1 %v1131_v27, %s17146_s14 }
 0x27b   : > { %1215 = vrot.lane.b32.xlu0 %v1155_v22, %s17145_s26 }
 0x27e   : > { %1251 = vrot.lane.b32.xlu1 %v13205_v33, %s17143_s16 }
 0x27f   : > { %1239 = vrot.lane.b32.xlu0 %v13203_v32, %s17097_s23 }
 0x2d0   : > { %v1186_v49 = vpop.permute.xlu1 %1185 }
 0x2d1   : > { %v1174_v50 = vpop.permute.xlu0 %1173 }
 0x2d2   : > { %v1255_v51 = vsel %vm542_vm2, %v13213_v5, %v1174_v50 }
 0x2d3   : > { %v1266_v53 = vsel %vm780_vm3, %v1255_v51, %v1186_v49  ;;  %v1602_v49 = vld [vmem:[#allocation2 + $0xfa] sm:$0xff] }
 0x2d4   : > { %v1274_v38 = vsel %vm453_vm0, %v1266_v53, %v1198_v34  ;;  %v1248_v55 = vpop.permute.xlu1 %1247  ;;  %v13259_v50 = vpack.c.bf16 %v1602_v49, %v1601_v48  ;;  %v1627_v48 = vld [vmem:[#allocation2 + $0x111] sm:$0xff] }
 0x2d5   : > { %v1236_v54 = vpop.permute.xlu0 %1235  ;;  %v1282_v56 = vsel %vm797_vm4, %v1274_v38, %v1210_v35 }
 0x2d6   : > { %v1290_v0 = vsel %vm17116_vm5, %v1282_v56, %v1222_v36  ;;  %v1300_v3 = vsel %vm815_vm6, %v1292_v63, %v1236_v54  ;;  %11404 = vmatprep.mubr.msk.bf16.mxu0 %vm542_vm2, %v13259_v50 }
 0x2d7   : > { %v1298_v58 = vsel %vm815_vm6, %v1290_v0, %v1234_v37  ;;  %v1309_v10 = vsel %vm824_vm7, %v1300_v3, %v1248_v55 }
 0x2d8   : > { %v1306_v59 = vsel %vm824_vm7, %v1298_v58, %v1246_v39  ;;  %v1190_v62 = vpop.permute.xlu1 %1189 }
 0x2d9   : > { %1441 = vmatmul.mubr.bf16.vlgmr.msra.gmra.mxu1 %v1306_v59  ;;  %v1178_v61 = vpop.permute.xlu0 %1177 }
 0x2da   : > { %11391 = vmatprep.mubr.msk.bf16.mxu1 %vm542_vm2, %v1130_v16  ;;  %v1261_v2 = vsel %vm542_vm2, %v13124_v45, %v1178_v61  ;;  %v963_v61 = vadd.f32 %v13104_v25, %v13087_v9  ;;  %v532_v9 = vld [vmem:[%s12942_s29 + $0xb8] sm:$0xff] }
 0x2db   : > { %v1270_v8 = vsel %vm780_vm3, %v1261_v2, %v1190_v62  ;;  %566 = vst.msk [vmem:[#allocation2 + $0x129] sm:$0xff] %vm542_vm2, %v532_v9 }
 0x2dc   : > { %v1214_v6 = vpop.permute.xlu1 %1213  ;;  %vm993_vm12 = vcmp.ge.f32.partialorder %v963_v61, 0.0 }
 0x2dd   : > { %v1202_v4 = vpop.permute.xlu0 %1201 }
 0x2de   : > { %v1278_v44 = vsel %vm453_vm0, %v1270_v8, %v1202_v4  ;;  %v1001_v4 = vmul.f32 0.2, %v963_v61 }
 0x2df   : > { %v1286_v16 = vsel %vm797_vm4, %v1278_v44, %v1214_v6  ;;  %v966_v6 = vadd.f32 %v13104_v25, %v13089_v11  ;;  %v971_v44 = vadd.f32 %v13104_v25, %v13091_v13  ;;  %v974_v13 = vadd.f32 %v13104_v25, %v13093_v15 }
 0x2e0   : > { %v1238_v14 = vpop.permute.xlu1 %1237  ;;  %v1009_v20 = vsel %vm993_vm12, %v963_v61, %v1001_v4  ;;  %v12351_v61 = vld [vmem:[%s17141_s2] sm:$0xff]  }
 0x2e1   : > { %1449 = vmatmul.mubr.bf16.gmra.mxu1 %v1309_v10  ;;  %v1226_v12 = vpop.permute.xlu0 %1225  ;;  %v1002_v11 = vmul.f32 0.2, %v966_v6  ;;  %vm994_vm14 = vcmp.ge.f32.partialorder %v966_v6, 0.0  ;;  %vm995_vm15 = vcmp.ge.f32.partialorder %v971_v44, 0.0  ;;  %vm996_vm1 = vcmp.ge.f32.partialorder %v974_v13, 0.0 }
 0x2e2   : > { %11392 = vmatprep.mubr.msk.bf16.mxu1 %vm542_vm2, %v1131_v27  ;;  %v1294_v45 = vsel %vm17116_vm5, %v1286_v16, %v1226_v12 }
 0x2e3   : > { %v1302_v26 = vsel %vm815_vm6, %v1294_v45, %v1238_v14  ;;  %v531_v14 = vld [vmem:[%s12942_s29 + $0xb0] sm:$0xff]  ;;  %v1003_v45 = vmul.f32 0.2, %v971_v44 }
 0x2e4   : > { %v1180_v22 = vpop.permute.xlu1 %1179  ;;  %565 = vst.msk [vmem:[#allocation2 + $0x121] sm:$0xff] %vm542_vm2, %v531_v14 }
 0x2e5   : > { %v1250_v21 = vpop.permute.xlu0 %1249  ;;  %v1264_v29 = vsel %vm542_vm2, %v13184_v7, %v1180_v22 }
 0x2e6   : > { %v1312_v28 = vsel %vm824_vm7, %v1302_v26, %v1250_v21  ;;  %v979_v21 = vadd.f32 %v13104_v25, %v13095_v17  ;;  %v1010_v26 = vsel %vm994_vm14, %v966_v6, %v1002_v11  ;;  %vm2758_vm14 = vcmask 326656  }
 0x2e8   : > { %v1204_v30 = vpop.permute.xlu1 %1203  ;;  %vm997_vm8 = vcmp.ge.f32.partialorder %v979_v21, 0.0 }
 0x2e9   : > { %1457 = vmatmul.mubr.bf16.gmra.mxu1 %v1312_v28  ;;  %v1192_v27 = vpop.permute.xlu0 %1191  ;;  %v1004_v28 = vmul.f32 0.2, %v974_v13 }
 0x2ea   : > { %v1272_v31 = vsel %vm780_vm3, %v1264_v29, %v1192_v27  ;;  %11393 = vmatprep.mubr.msk.bf16.mxu1 %vm542_vm2, %v13237_v24  ;;  %v1005_v29 = vmul.f32 0.2, %v979_v21  ;;  %v982_v27 = vadd.f32 %v13104_v25, %v13097_v19  ;;  %v1612_v19 = vld [vmem:[#allocation2 + $0xf0] sm:$0xff] }
 0x2eb   : > { %v1280_v34 = vsel %vm453_vm0, %v1272_v31, %v1204_v30  ;;  %v1011_v30 = vsel %vm995_vm15, %v971_v44, %v1003_v45  ;;  %v1012_v17 = vsel %vm996_vm1, %v974_v13, %v1004_v28  ;;  %v1616_v11 = vld [vmem:[#allocation2 + $0x120] sm:$0xff]  ;;  %v1617_v13 = vld [vmem:[#allocation2 + $0x128] sm:$0xff]  ;;  %vm2890_vm15 = vcmask 719872  }
 0x2ec   : > { %v1228_v36 = vpop.permute.xlu1 %1227  ;;  %v1006_v15 = vmul.f32 0.2, %v982_v27  ;;  %v1013_v31 = vsel %vm997_vm8, %v979_v21, %v1005_v29  ;;  %vm998_vm9 = vcmp.ge.f32.partialorder %v982_v27, 0.0  ;;  %v1603_v21 = vld [vmem:[#allocation2 + $0x10a] sm:$0xff]  ;;  %vm17113_vm1 = vcmask 195584  }
 0x2ed   : > { %v1216_v35 = vpop.permute.xlu0 %1215  ;;  %vm17112_vm8 = vcmask 588800  }
 0x2ee   : > { %v1288_v37 = vsel %vm797_vm4, %v1280_v34, %v1216_v35  ;;  %v1014_v34 = vsel %vm998_vm9, %v982_v27, %v1006_v15  ;;  %v533_v35 = vld [vmem:[%s12942_s29 + $0xc0] sm:$0xff]  ;;  %v1629_v15 = vld [vmem:[#allocation2 + $0x129] sm:$0xff]  ;;  %vm17111_vm9 = vcmask 982016  }
 0x2ef   : > { %v1296_v7 = vsel %vm17116_vm5, %v1288_v37, %v1228_v36  ;;  %v534_v36 = vld [vmem:[%s12942_s29 + $0xc8] sm:$0xff]  ;;  %567 = vst.msk [vmem:[#allocation2 + $0x139] sm:$0xff] %vm542_vm2, %v533_v35  ;;  %v1613_v37 = vld [vmem:[#allocation2 + $0xf8] sm:$0xff] }
 0x2f0   : > { %v1252_v40 = vpop.permute.xlu1 %1251  ;;  %568 = vst.msk [vmem:[#allocation2 + $0x141] sm:$0xff] %vm542_vm2, %v534_v36 }
 0x2f1   : > { %v1240_v39 = vpop.permute.xlu0 %1239 }
 0x2f2   : > { %v1304_v23 = vsel %vm815_vm6, %v1296_v7, %v1240_v39  ;;  %v1624_v7 = vld [vmem:[#allocation2 + $0xf1] sm:$0xff]  ;;  %v1625_v39 = vld [vmem:[#allocation2 + $0xf9] sm:$0xff] }
 0x2f3   : > { %v1315_v41 = vsel %vm824_vm7, %v1304_v23, %v1252_v40  ;;  %v13311_v40 = vpack.c.bf16 %v1613_v37, %v1612_v19  ;;  %v1632_v23 = vpack.c.bf16 %v1625_v39, %v1624_v7  ;;  %v1605_v19 = vld [vmem:[#allocation2 + $0x122] sm:$0xff]  ;;  %v1606_v37 = vld [vmem:[#allocation2 + $0x12a] sm:$0xff] }
 0x2f4   : > { %1465 = vmatmul.mubr.bf16.gmra.mxu1 %v1315_v41  ;;  %v1614_v41 = vld [vmem:[#allocation2 + $0x108] sm:$0xff]  ;;  %v13417_v7 = vpack.c.bf16 %v1606_v37, %v1605_v19 }
 0x2f5   : > { %v13325_v46 = vpack.c.bf16 %v1615_v42, %v1614_v41 }
 0x2f6   : > { %v1630_v39 = vld [vmem:[#allocation2 + $0x139] sm:$0xff] }
 0x2f7   : > { %v1631_v42 = vld [vmem:[#allocation2 + $0x141] sm:$0xff] }
 0x399   : > { %v13263_v51 = vpop.f32.mrf.mxu1 }
 0x39a   : > { %v1443_v43 = vadd.f32 %v13104_v25, %v13263_v51 }
 0x39b   : > { %v1444_v52 = vpop.f32.mrf.mxu1 }
 0x39c   : > { %v1481_v49 = vmul.f32 0.2, %v1443_v43 }
 0x39d   : > { %v13265_v53 = vpop.f32.mrf.mxu1 }
 0x39f   : > { %v1447_v38 = vpop.f32.mrf.mxu1 }
 0x3a1   : > { %v13267_v54 = vpop.f32.mrf.mxu1 }
 0x3a3   : > { %v1452_v55 = vpop.f32.mrf.mxu1 }
 0x3a4   : > { %v12346_v55 = vld [vmem:[%s17141_s2 + $0x28] sm:$0xff]  }
 0x3a5   : > { %v13269_v56 = vpop.f32.mrf.mxu1 }
 0x3a7   : > { %v1455_v57 = vpop.f32.mrf.mxu1 }
 0x3a8   : > { %v12348_v57 = vld [vmem:[%s17141_s2 + $0x18] sm:$0xff]  }
 0x3a9   : > { %v13271_v0 = vpop.f32.mrf.mxu1 }
 0x3ab   : > { %v1460_v58 = vpop.f32.mrf.mxu1 }
 0x3ac   : > { %v12349_v58 = vld [vmem:[%s17141_s2 + $0x10] sm:$0xff]  }
 0x3ad   : > { %v13273_v59 = vpop.f32.mrf.mxu1 }
 0x3af   : > { %v1463_v60 = vpop.f32.mrf.mxu1 }
 0x3b0   : > { %v12350_v60 = vld [vmem:[%s17141_s2 + $0x8] sm:$0xff]  }
 0x3b4   : > { %v1466_v62 = vpop.f32.mrf.mxu1 }
 0x3b5   : > { %v1467_v63 = vadd.f32 %v13104_v25, %v1466_v62 }
 0x3b6   : > { %v1468_v2 = vpop.f32.mrf.mxu1 }
 0x3b7   : > { %v1487_v3 = vmul.f32 0.2, %v1467_v63  ;;  %vm1479_vm11 = vcmp.ge.f32.partialorder %v1467_v63, 0.0 }
 0x3b8   : > { %v1469_v8 = vpop.f32.mrf.mxu1 }
 0x3b9   : > { %v1470_v10 = vadd.f32 %v13104_v25, %v1469_v8  ;;  %v1495_v12 = vsel %vm1479_vm11, %v1467_v63, %v1487_v3  ;;  %vm1473_vm11 = vcmp.ge.f32.partialorder %v1443_v43, 0.0  ;;  %v12352_v3 = vld [vmem:[%s17141_s2 + $0x40] sm:$0xff]  }
 0x3ba   : > { %v1471_v16 = vpop.f32.mrf.mxu1  ;;  %1517 = vrot.lane.b32.xlu0 %v1495_v12, %s17099_s17  ;;  %v1489_v52 = vsel %vm1473_vm11, %v1443_v43, %v1481_v49  ;;  %v1618_v43 = vld [vmem:[#allocation2 + $0x138] sm:$0xff] }
 0x3bb   : > { %v1488_v18 = vmul.f32 0.2, %v1470_v10  ;;  %vm1480_vm13 = vcmp.ge.f32.partialorder %v1470_v10, 0.0 }
 0x3bd   : > { %v1496_v22 = vsel %vm1480_vm13, %v1470_v10, %v1488_v18  ;;  %vm2899_vm13 = vcmask 1043456  }
 0x3be   : > { %1519 = vrot.lane.b32.xlu1 %v1496_v22, %s17099_s17  ;;  %1025 = vrot.lane.b32.xlu0 %v1009_v20, %s17099_s17  ;;  %v1604_v22 = vld [vmem:[#allocation2 + $0x112] sm:$0xff] }
 0x3bf   : > { %v13394_v28 = vpack.c.bf16 %v1604_v22, %v1603_v21 }
 0x3c2   : > { %1027 = vrot.lane.b32.xlu1 %v1010_v26, %s17099_s17  ;;  %1029 = vrot.lane.b32.xlu0 %v1011_v30, %s17099_s17  ;;  %v1622_v26 = vpack.c.bf16 %v1617_v13, %v1616_v11  ;;  %v1628_v30 = vld [vmem:[#allocation2 + $0x121] sm:$0xff] }
 0x3c6   : > { %1031 = vrot.lane.b32.xlu1 %v1012_v17, %s17099_s17  ;;  %1033 = vrot.lane.b32.xlu0 %v1013_v31, %s17099_s17  ;;  %v1634_v17 = vpack.c.bf16 %v1629_v15, %v1628_v30 }
 0x3ca   : > { %1035 = vrot.lane.b32.xlu1 %v1014_v34, %s17099_s17  ;;  %1676 = vrot.lane.b32.xlu0 %v13203_v32, %s17144_s30 }
 0x3ce   : > { %1688 = vrot.lane.b32.xlu1 %v13205_v33, %s17145_s26  ;;  %1700 = vrot.lane.b32.xlu0 %v13237_v24, %s17146_s14 }
 0x3d2   : > { %1712 = vrot.lane.b32.xlu1 %v13311_v40, %s17097_s23  ;;  %1724 = vrot.lane.b32.xlu0 %v1632_v23, %s17143_s16 }
 0x3d6   : > { %1654 = vrot.lane.b32.xlu1 %v13205_v33, %s17099_s17  ;;  %1666 = vrot.lane.b32.xlu0 %v13237_v24, %s17101_s13  ;;  %v1446_v33 = vadd.f32 %v13104_v25, %v13265_v53  ;;  %v13333_v24 = vpack.c.bf16 %v1627_v48, %v1626_v47  ;;  %v12344_v25 = vld [vmem:[%s17141_s2 + $0x38] sm:$0xff]   ;;  %v12345_v53 = vld [vmem:[%s17141_s2 + $0x30] sm:$0xff]   ;;  %v1619_v47 = vld [vmem:[#allocation2 + $0x140] sm:$0xff]  ;;  %v13426_v48 = vpack.c.bf16 %v1631_v42, %v1630_v39 }
 0x3d7   : > { %1888 = vmatpush1.bf16.msra.mxu0 %v12344_v25  ;;  %v13428_v49 = vpack.c.bf16 %v1619_v47, %v1618_v43  ;;  %v2508_v25 = vld [vmem:[#allocation2 + $0x9] sm:$0xff]  ;;  %v2583_v42 = vld [vmem:[#allocation2 + $0x61] sm:$0xff] }
 0x3d8   : > { %v1482_v51 = vmul.f32 0.2, %v1446_v33  ;;  %vm1474_vm12 = vcmp.ge.f32.partialorder %v1446_v33, 0.0  ;;  %1889 = vmatprep.subr.bf16.mxu0 %v12691_v1  ;;  %v2584_v39 = vld [vmem:[#allocation2 + $0x69] sm:$0xff] }
 0x3d9   : > { %v2589_v43 = vpack.c.bf16 %v2584_v39, %v2583_v42  ;;  %v2595_v47 = vld [vmem:[#allocation2 + $0x62] sm:$0xff]  ;;  %v1642_v42 = vld [vmem:[#allocation2 + $0x13a] sm:$0xff] }
 0x3da   : > { %1678 = vrot.lane.b32.xlu1 %v13311_v40, %s17144_s30  ;;  %1690 = vrot.lane.b32.xlu0 %v1632_v23, %s17145_s26  ;;  %v1490_v38 = vsel %vm1474_vm12, %v1446_v33, %v1482_v51  ;;  %v2519_v33 = vld [vmem:[#allocation2 + $0x2] sm:$0xff] }
 0x3db   : > { %1890 = vmatpush1.bf16.msra.mxu0 %v12345_v53 }
 0x3dc   : > { %1891 = vmatprep.subr.bf16.mxu0 %v12691_v1 }
 0x3de   : > { %1702 = vrot.lane.b32.xlu1 %v13259_v50, %s17146_s14  ;;  %1714 = vrot.lane.b32.xlu0 %v13325_v46, %s17097_s23  ;;  %s17149_s23 = smov 96  }
 0x3df   : > { %1892 = vmatpush1.bf16.msra.mxu0 %v12346_v55 }
 0x3e0   : > { %1893 = vmatprep.subr.bf16.mxu0 %v12691_v1 }
 0x3e2   : > { %1726 = vrot.lane.b32.xlu1 %v13333_v24, %s17143_s16  ;;  %1505 = vrot.lane.b32.xlu0 %v1489_v52, %s17099_s17  ;;  %v2520_v52 = vld [vmem:[#allocation2 + $0xa] sm:$0xff] }
 0x3e3   : > { %v2527_v53 = vpack.c.bf16 %v2520_v52, %v2519_v33  ;;  %v2596_v33 = vld [vmem:[#allocation2 + $0x6a] sm:$0xff] }
 0x3e4   : > { %v2601_v52 = vpack.c.bf16 %v2596_v33, %v2595_v47 }
 0x3e6   : > { %1507 = vrot.lane.b32.xlu1 %v1490_v38, %s17099_s17  ;;  %1656 = vrot.lane.b32.xlu0 %v1632_v23, %s17099_s17  ;;  %v2507_v38 = vld [vmem:[#allocation2 + $0x1] sm:$0xff]  ;;  %s17109_s17 = smov 24  }
 0x3e7   : > { %v2515_v55 = vpack.c.bf16 %v2508_v25, %v2507_v38 }
 0x3ea   : > { %1668 = vrot.lane.b32.xlu1 %v13259_v50, %s17101_s13  ;;  %v12347_v50 = vld [vmem:[%s17141_s2 + $0x20] sm:$0xff]   ;;  %s17107_s13 = smov 120  }
 0x3eb   : > { %1894 = vmatpush1.bf16.msra.mxu0 %v12347_v50 }
 0x3ec   : > { %1895 = vmatprep.subr.bf16.mxu0 %v12691_v1 }
 0x3ef   : > { %1896 = vmatpush1.bf16.msra.mxu0 %v12348_v57 }
 0x3f0   : > { %1897 = vmatprep.subr.bf16.mxu0 %v12691_v1 }
 0x3f3   : > { %1898 = vmatpush1.bf16.msra.mxu0 %v12349_v58 }
 0x3f4   : > { %1899 = vmatprep.subr.bf16.mxu0 %v12691_v1 }
 0x3f7   : > { %1900 = vmatpush1.bf16.msra.mxu0 %v12350_v60 }
 0x3f8   : > { %1901 = vmatprep.subr.bf16.mxu0 %v12691_v1 }
 0x3fb   : > { %1902 = vmatpush1.bf16.msra.mxu0 %v12351_v61 }
 0x3fc   : > { %1917 = vmatprep.subr.bf16.mxu0 %v12691_v1 }
 0x3ff   : > { %1918 = vmatpush2.bf16.msra.mxu0 %v12352_v3 }
 0x400   : > { %2903 = vmatprep.subr.bf16.mxu0 %v12691_v1 }
 0x42c   : > { %v1518_v62 = vpop.permute.xlu0 %1517 }
 0x42d   : > { %1535 = vst.msk [vmem:[#allocation2 + $0xc1] sm:$0xff] %vm1049_vm10, %v1518_v62 }
 0x430   : > { %v1520_v63 = vpop.permute.xlu1 %1519  ;;  %v1026_v2 = vpop.permute.xlu0 %1025 }
 0x431   : > { %1536 = vst.msk [vmem:[#allocation2 + $0xc9] sm:$0xff] %vm1049_vm10, %v1520_v63  ;;  %1050 = vst.msk [vmem:[#allocation2 + $0x19] sm:$0xff] %vm1049_vm10, %v1026_v2 }
 0x434   : > { %v1028_v4 = vpop.permute.xlu1 %1027  ;;  %v1030_v6 = vpop.permute.xlu0 %1029  ;;  %v1550_v8 = vld [vmem:[#allocation2 + $0xc1] sm:$0xff] }
 0x435   : > { %1051 = vst.msk [vmem:[#allocation2 + $0x21] sm:$0xff] %vm1049_vm10, %v1028_v4  ;;  %1052 = vst.msk [vmem:[#allocation2 + $0x31] sm:$0xff] %vm1049_vm10, %v1030_v6 }
 0x438   : > { %v1032_v44 = vpop.permute.xlu1 %1031  ;;  %v1034_v10 = vpop.permute.xlu0 %1033  ;;  %v1562_v12 = vld [vmem:[#allocation2 + $0xc2] sm:$0xff]  ;;  %v1563_v14 = vld [vmem:[#allocation2 + $0xca] sm:$0xff] }
 0x439   : > { %v1551_v9 = vld [vmem:[#allocation2 + $0xc9] sm:$0xff]  ;;  %1053 = vst.msk [vmem:[#allocation2 + $0x39] sm:$0xff] %vm1049_vm10, %v1032_v44  ;;  %1054 = vst.msk [vmem:[#allocation2 + $0x49] sm:$0xff] %vm1049_vm10, %v1034_v10  ;;  %v1570_v16 = vpack.c.bf16 %v1563_v14, %v1562_v12 }
 0x43a   : > { %v1558_v18 = vpack.c.bf16 %v1551_v9, %v1550_v8  ;;  %v2531_v8 = vld [vmem:[#allocation2 + $0x18] sm:$0xff] }
 0x43b   : > { %1664 = vrot.lane.b32.xlu1 %v1570_v16, %s17147_s19 }
 0x43c   : > { %1652 = vrot.lane.b32.xlu0 %v1558_v18, %s17148_s0  ;;  %v1036_v20 = vpop.permute.xlu1 %1035  ;;  %v13387_v45 = vpop.permute.xlu0 %1676  ;;  %v2555_v58 = vld [vmem:[#allocation2 + $0x1a] sm:$0xff]  ;;  %v2556_v60 = vld [vmem:[#allocation2 + $0x22] sm:$0xff]  ;;  %v2567_v63 = vld [vmem:[#allocation2 + $0x30] sm:$0xff] }
 0x43d   : > { %1055 = vst.msk [vmem:[#allocation2 + $0x51] sm:$0xff] %vm1049_vm10, %v1036_v20  ;;  %v2563_v2 = vpack.c.bf16 %v2556_v60, %v2555_v58  ;;  %v2532_v4 = vld [vmem:[#allocation2 + $0x20] sm:$0xff]  ;;  %v2579_v44 = vld [vmem:[#allocation2 + $0x31] sm:$0xff] }
 0x43e   : > { %v13449_v10 = vpack.c.bf16 %v2532_v4, %v2531_v8  ;;  %v2544_v14 = vld [vmem:[#allocation2 + $0x21] sm:$0xff]  ;;  %v2543_v18 = vld [vmem:[#allocation2 + $0x19] sm:$0xff] }
 0x43f   : > { %1692 = vrot.lane.b32.xlu1 %v13333_v24, %s17145_s26  ;;  %v2551_v11 = vpack.c.bf16 %v2544_v14, %v2543_v18  ;;  %v1539_v4 = vld [vmem:[#allocation2 + $0xc8] sm:$0xff]  ;;  %v1538_v8 = vld [vmem:[#allocation2 + $0xc0] sm:$0xff] }
 0x440   : > { %1680 = vrot.lane.b32.xlu0 %v13325_v46, %s17144_s30  ;;  %v13396_v29 = vpop.permute.xlu1 %1688  ;;  %v13398_v27 = vpop.permute.xlu0 %1700  ;;  %v2568_v61 = vld [vmem:[#allocation2 + $0x38] sm:$0xff]  ;;  %v2569_v21 = vld [vmem:[#allocation2 + $0x48] sm:$0xff] }
 0x441   : > { %v13444_v3 = vpack.c.bf16 %v2568_v61, %v2567_v63  ;;  %v2580_v6 = vld [vmem:[#allocation2 + $0x39] sm:$0xff]  ;;  %v2581_v30 = vld [vmem:[#allocation2 + $0x49] sm:$0xff] }
 0x442   : > { %v2587_v12 = vpack.c.bf16 %v2580_v6, %v2579_v44  ;;  %v2591_v9 = vld [vmem:[#allocation2 + $0x32] sm:$0xff]  ;;  %v2592_v16 = vld [vmem:[#allocation2 + $0x3a] sm:$0xff]  ;;  %v1546_v44 = vpack.c.bf16 %v1539_v4, %v1538_v8 }
 0x443   : > { %1716 = vrot.lane.b32.xlu1 %v1622_v26, %s17149_s23  ;;  %v2599_v20 = vpack.c.bf16 %v2592_v16, %v2591_v9 }
 0x444   : > { %1704 = vrot.lane.b32.xlu0 %v13394_v28, %s17146_s14  ;;  %v13403_v31 = vpop.permute.xlu1 %1712  ;;  %v13405_v34 = vpop.permute.xlu0 %1724  ;;  %v2570_v13 = vld [vmem:[#allocation2 + $0x50] sm:$0xff] }
 0x445   : > { %v13458_v22 = vpack.c.bf16 %v2570_v13, %v2569_v21  ;;  %v2594_v19 = vld [vmem:[#allocation2 + $0x52] sm:$0xff] }
 0x446   : > { %v12353_v13 = vld [vmem:[%s17150_s3 + $0x38] sm:$0xff]  }
 0x447   : > { %1658 = vrot.lane.b32.xlu1 %v13333_v24, %s17148_s0 }
 0x448   : > { %1728 = vrot.lane.b32.xlu0 %v1634_v17, %s17143_s16  ;;  %v13410_v35 = vpop.permute.xlu1 %1654  ;;  %v13412_v36 = vpop.permute.xlu0 %1666 }
 0x449   : > { %v1737_v6 = vsel %vm542_vm2, %v13203_v32, %v13410_v35 }
 0x44b   : > { %1682 = vrot.lane.b32.xlu1 %v1622_v26, %s17144_s30  ;;  %v2582_v26 = vld [vmem:[#allocation2 + $0x51] sm:$0xff] }
 0x44c   : > { %1670 = vrot.lane.b32.xlu0 %v13394_v28, %s17147_s19  ;;  %v13419_v23 = vpop.permute.xlu1 %1678  ;;  %v13421_v41 = vpop.permute.xlu0 %1690  ;;  %v2588_v15 = vpack.c.bf16 %v2582_v26, %v2581_v30 }
 0x44f   : > { %1706 = vrot.lane.b32.xlu1 %v13417_v7, %s17146_s14 }
 0x450   : > { %1694 = vrot.lane.b32.xlu0 %v1634_v17, %s17145_s26  ;;  %v13430_v24 = vpop.permute.xlu1 %1702  ;;  %v13432_v51 = vpop.permute.xlu0 %1714  ;;  %v2593_v17 = vld [vmem:[#allocation2 + $0x4a] sm:$0xff] }
 0x451   : > { %v2600_v37 = vpack.c.bf16 %v2594_v19, %v2593_v17 }
 0x453   : > { %1730 = vrot.lane.b32.xlu1 %v13426_v48, %s17143_s16 }
 0x454   : > { %1718 = vrot.lane.b32.xlu0 %v13428_v49, %s17149_s23  ;;  %v13438_v50 = vpop.permute.xlu1 %1726  ;;  %v1506_v57 = vpop.permute.xlu0 %1505 }
 0x455   : > { %1529 = vst.msk [vmem:[#allocation2 + $0x79] sm:$0xff] %vm1049_vm10, %v1506_v57 }
 0x457   : > { %2619 = vrot.lane.b32.xlu1 %v2527_v53, %s17144_s30 }
 0x458   : > { %2607 = vrot.lane.b32.xlu0 %v2515_v55, %s17109_s17  ;;  %v1508_v62 = vpop.permute.xlu1 %1507  ;;  %v1657_v63 = vpop.permute.xlu0 %1656 }
 0x459   : > { %1530 = vst.msk [vmem:[#allocation2 + $0x81] sm:$0xff] %vm1049_vm10, %v1508_v62 }
 0x45b   : > { %2667 = vrot.lane.b32.xlu1 %v13444_v3, %s17148_s0 }
 0x45c   : > { %2655 = vrot.lane.b32.xlu0 %v2563_v2, %s17107_s13  ;;  %v2573_v25 = vld [vmem:[#allocation2 + $0x78] sm:$0xff] }
 0x45d   : > { %v2585_v57 = vld [vmem:[#allocation2 + $0x79] sm:$0xff] }
 0x45f   : > { %2679 = vrot.lane.b32.xlu1 %v2587_v12, %s17103_s18 }
 0x460   : > { %2631 = vrot.lane.b32.xlu0 %v13449_v10, %s17105_s27  ;;  %v2574_v38 = vld [vmem:[#allocation2 + $0x80] sm:$0xff] }
 0x461   : > { %v2578_v53 = vpack.c.bf16 %v2574_v38, %v2573_v25  ;;  %v2586_v55 = vld [vmem:[#allocation2 + $0x81] sm:$0xff] }
 0x462   : > { %v2590_v58 = vpack.c.bf16 %v2586_v55, %v2585_v57  ;;  %v2597_v60 = vld [vmem:[#allocation2 + $0x7a] sm:$0xff]  ;;  %v2598_v61 = vld [vmem:[#allocation2 + $0x82] sm:$0xff] }
 0x463   : > { %2691 = vrot.lane.b32.xlu1 %v2599_v20, %s17145_s26  ;;  %v2602_v62 = vpack.c.bf16 %v2598_v61, %v2597_v60  ;;  %v12358_v61 = vld [vmem:[%s17150_s3 + $0x10] sm:$0xff]  }
 0x464   : > { %2643 = vrot.lane.b32.xlu0 %v2551_v11, %s17149_s23 }
 0x467   : > { %2621 = vrot.lane.b32.xlu1 %v2563_v2, %s17144_s30  ;;  %v1669_v2 = vpop.permute.xlu1 %1668 }
 0x468   : > { %2609 = vrot.lane.b32.xlu0 %v2551_v11, %s17109_s17 }
 0x46b   : > { %2669 = vrot.lane.b32.xlu1 %v13458_v22, %s17148_s0 }
 0x46c   : > { %2657 = vrot.lane.b32.xlu0 %v2599_v20, %s17107_s13 }
 0x46f   : > { %2681 = vrot.lane.b32.xlu1 %v2588_v15, %s17103_s18 }
 0x470   : > { %2633 = vrot.lane.b32.xlu0 %v13444_v3, %s17105_s27 }
 0x473   : > { %2693 = vrot.lane.b32.xlu1 %v2600_v37, %s17145_s26 }
 0x474   : > { %2645 = vrot.lane.b32.xlu0 %v2587_v12, %s17149_s23 }
 0x477   : > { %2623 = vrot.lane.b32.xlu1 %v2599_v20, %s17144_s30 }
 0x478   : > { %2611 = vrot.lane.b32.xlu0 %v2587_v12, %s17109_s17  ;;  %v1747_v12 = vsel %vm780_vm3, %v1737_v6, %v13412_v36  ;;  %v12359_v6 = vld [vmem:[%s17150_s3 + $0x8] sm:$0xff]  }
 0x479   : > { %v1755_v18 = vsel %vm453_vm0, %v1747_v12, %v13419_v23 }
 0x47a   : > { %v1763_v21 = vsel %vm797_vm4, %v1755_v18, %v13421_v41 }
 0x47b   : > { %2671 = vrot.lane.b32.xlu1 %v13213_v5, %s17148_s0  ;;  %v1771_v30 = vsel %vm17116_vm5, %v1763_v21, %v13430_v24  ;;  %v12355_v24 = vld [vmem:[%s17150_s3 + $0x28] sm:$0xff]  }
 0x47c   : > { %2659 = vrot.lane.b32.xlu0 %v2600_v37, %s17107_s13 }
 0x47f   : > { %2683 = vrot.lane.b32.xlu1 %v2589_v43, %s17103_s18 }
 0x480   : > { %2635 = vrot.lane.b32.xlu0 %v13458_v22, %s17105_s27 }
 0x483   : > { %2695 = vrot.lane.b32.xlu1 %v2601_v52, %s17145_s26 }
 0x484   : > { %2647 = vrot.lane.b32.xlu0 %v2588_v15, %s17149_s23 }
 0x487   : > { %2625 = vrot.lane.b32.xlu1 %v2600_v37, %s17144_s30 }
 0x488   : > { %2613 = vrot.lane.b32.xlu0 %v2588_v15, %s17109_s17  ;;  %s17154_s17 = smov 72  }
 0x48b   : > { %2673 = vrot.lane.b32.xlu1 %v2578_v53, %s17148_s0 }
 0x48c   : > { %2661 = vrot.lane.b32.xlu0 %v2601_v52, %s17107_s13 }
 0x48f   : > { %2685 = vrot.lane.b32.xlu1 %v2590_v58, %s17103_s18 }
 0x490   : > { %2637 = vrot.lane.b32.xlu0 %v13213_v5, %s17105_s27  ;;  %s11257_s27 = scalar_lea.sflag [#allocation5], %s12867_s21 }
 0x493   : > { %2697 = vrot.lane.b32.xlu1 %v2602_v62, %s17145_s26 }
 0x494   : > { %2649 = vrot.lane.b32.xlu0 %v2589_v43, %s17149_s23  ;;  %v1643_v43 = vld [vmem:[#allocation2 + $0x142] sm:$0xff] }
 0x495   : > { %v13545_v25 = vpack.c.bf16 %v1643_v43, %v1642_v42 }
 0x4ad   : > { %v1665_v5 = vpop.permute.xlu1 %1664 }
 0x4ae   : > { %v1653_v14 = vpop.permute.xlu0 %1652 }
 0x4af   : > { %v1734_v9 = vsel %vm542_vm2, %v1546_v44, %v1653_v14  ;;  %v12361_v14 = vld [vmem:[%s17150_s3 + $0x68] ss:$0 sps:$4 sm:$0xff]  }
 0x4b0   : > { %v1745_v16 = vsel %vm780_vm3, %v1734_v9, %v1665_v5  ;;  %v12360_v5 = vld [vmem:[%s17150_s3] sm:$0xff]   ;;  %v2901_v18 = vsel %vm2899_vm13, %v12361_v14, 0 }
 0x4b1   : > { %v1753_v11 = vsel %vm453_vm0, %v1745_v16, %v13387_v45  ;;  %v1693_v35 = vpop.permute.xlu1 %1692 }
 0x4b2   : > { %v1761_v32 = vsel %vm797_vm4, %v1753_v11, %v13396_v29  ;;  %v1681_v20 = vpop.permute.xlu0 %1680 }
 0x4b3   : > { %v1769_v36 = vsel %vm17116_vm5, %v1761_v32, %v13398_v27  ;;  %v12354_v27 = vld [vmem:[%s17150_s3 + $0x30] sm:$0xff]  }
 0x4b4   : > { %v1777_v23 = vsel %vm815_vm6, %v1769_v36, %v13403_v31  ;;  %v1740_v31 = vsel %vm542_vm2, %v13311_v40, %v1657_v63 }
 0x4b5   : > { %v1785_v45 = vsel %vm824_vm7, %v1777_v23, %v13405_v34  ;;  %v1717_v26 = vpop.permute.xlu1 %1716  ;;  %v1779_v34 = vsel %vm815_vm6, %v1771_v30, %v13432_v51  ;;  %v1749_v17 = vsel %vm780_vm3, %v1740_v31, %v1669_v2  ;;  %v12356_v51 = vld [vmem:[%s17150_s3 + $0x20] sm:$0xff]   ;;  %v12364_v31 = vld [vmem:[%s17150_s3 + $0x50] sm:$0xff]  }
 0x4b6   : > { %1920 = vmatmul.mubr.bf16.vlgmr.msra.gmra.mxu0 %v1785_v45  ;;  %v1705_v29 = vpop.permute.xlu0 %1704  ;;  %v1788_v19 = vsel %vm824_vm7, %v1779_v34, %v13438_v50  ;;  %v12363_v45 = vld [vmem:[%s17150_s3 + $0x58] sm:$0xff]  }
 0x4b7   : > { %2904 = vmatpush1.bf16.msra.mxu0 %v12353_v13  ;;  %11405 = vmatprep.mubr.msk.bf16.mxu0 %vm542_vm2, %v13394_v28  ;;  %v1757_v28 = vsel %vm453_vm0, %v1749_v17, %v1681_v20  ;;  %v12362_v13 = vld [vmem:[%s17150_s3 + $0x60] sm:$0xff]  }
 0x4b8   : > { %2905 = vmatprep.subr.bf16.mxu0 %v12691_v1  ;;  %v1765_v39 = vsel %vm797_vm4, %v1757_v28, %v1693_v35 }
 0x4b9   : > { %v1659_v41 = vpop.permute.xlu1 %1658  ;;  %v1773_v47 = vsel %vm17116_vm5, %v1765_v39, %v1705_v29  ;;  %v2496_v29 = vld [vmem:[#allocation2 + $0x8] sm:$0xff] }
 0x4ba   : > { %v1729_v15 = vpop.permute.xlu0 %1728  ;;  %v1743_v50 = vsel %vm542_vm2, %v13325_v46, %v1659_v41  ;;  %v1781_v53 = vsel %vm815_vm6, %v1773_v47, %v1717_v26  ;;  %v2495_v26 = vld [vmem:[#allocation2] sm:$0xff] }
 0x4bb   : > { %2906 = vmatpush1.bf16.msra.mxu0 %v12354_v27  ;;  %v1791_v57 = vsel %vm824_vm7, %v1781_v53, %v1729_v15  ;;  %v2503_v34 = vpack.c.bf16 %v2496_v29, %v2495_v26  ;;  %v535_v29 = vld [vmem:[%s12942_s29 + $0xd0] sm:$0xff] }
 0x4bc   : > { %2907 = vmatprep.subr.bf16.mxu0 %v12691_v1  ;;  %569 = vst.msk [vmem:[#allocation2 + $0x151] sm:$0xff] %vm542_vm2, %v535_v29 }
 0x4bd   : > { %v1683_v40 = vpop.permute.xlu1 %1682 }
 0x4be   : > { %1928 = vmatmul.mubr.bf16.gmra.mxu0 %v1788_v19  ;;  %v1671_v37 = vpop.permute.xlu0 %1670 }
 0x4bf   : > { %2908 = vmatpush1.bf16.msra.mxu0 %v12355_v24  ;;  %11406 = vmatprep.mubr.msk.bf16.mxu0 %vm542_vm2, %v13417_v7  ;;  %v1751_v33 = vsel %vm780_vm3, %v1743_v50, %v1671_v37  ;;  %v12357_v7 = vld [vmem:[%s17150_s3 + $0x18] sm:$0xff]   ;;  %v12365_v24 = vld [vmem:[%s17150_s3 + $0x48] sm:$0xff]  }
 0x4c0   : > { %2909 = vmatprep.subr.bf16.mxu0 %v12691_v1  ;;  %v1759_v55 = vsel %vm453_vm0, %v1751_v33, %v1683_v40  ;;  %v12366_v40 = vld [vmem:[%s17150_s3 + $0x40] sm:$0xff]  }
 0x4c1   : > { %v1707_v52 = vpop.permute.xlu1 %1706 }
 0x4c2   : > { %v1695_v38 = vpop.permute.xlu0 %1694 }
 0x4c3   : > { %2910 = vmatpush1.bf16.msra.mxu0 %v12356_v51  ;;  %v1767_v46 = vsel %vm797_vm4, %v1759_v55, %v1695_v38 }
 0x4c4   : > { %2911 = vmatprep.subr.bf16.mxu0 %v12691_v1  ;;  %v1775_v62 = vsel %vm17116_vm5, %v1767_v46, %v1707_v52 }
 0x4c5   : > { %v1731_v58 = vpop.permute.xlu1 %1730 }
 0x4c6   : > { %1936 = vmatmul.mubr.bf16.gmra.mxu0 %v1791_v57  ;;  %v1719_v60 = vpop.permute.xlu0 %1718 }
 0x4c7   : > { %2912 = vmatpush1.bf16.msra.mxu0 %v12357_v7  ;;  %11407 = vmatprep.mubr.msk.bf16.mxu0 %vm542_vm2, %v13545_v25  ;;  %v1783_v63 = vsel %vm815_vm6, %v1775_v62, %v1719_v60 }
 0x4c8   : > { %2913 = vmatprep.subr.bf16.mxu0 %v12691_v1  ;;  %v1794_v8 = vsel %vm824_vm7, %v1783_v63, %v1731_v58 }
 0x4c9   : > { %v2620_v2 = vpop.permute.xlu1 %2619 }
 0x4ca   : > { %v2608_v4 = vpop.permute.xlu0 %2607 }
 0x4cb   : > { %2914 = vmatpush1.bf16.msra.mxu0 %v12358_v61  ;;  %v2702_v17 = vsel %vm17113_vm1, %v2503_v34, %v2608_v4 }
 0x4cc   : > { %2915 = vmatprep.subr.bf16.mxu0 %v12691_v1  ;;  %v2713_v37 = vsel %vm453_vm0, %v2702_v17, %v2620_v2 }
 0x4cd   : > { %v2668_v44 = vpop.permute.xlu1 %2667 }
 0x4ce   : > { %1944 = vmatmul.mubr.bf16.gmra.mxu0 %v1794_v8  ;;  %v2656_v12 = vpop.permute.xlu0 %2655 }
 0x4cf   : > { %2916 = vmatpush1.bf16.msra.mxu0 %v12359_v6  ;;  %v2751_v11 = vsel %vm542_vm2, %v2656_v12, %v2668_v44 }
 0x4d0   : > { %2917 = vmatprep.subr.bf16.mxu0 %v12691_v1 }
 0x4d1   : > { %v2680_v9 = vpop.permute.xlu1 %2679 }
 0x4d2   : > { %v2632_v16 = vpop.permute.xlu0 %2631  ;;  %v2760_v32 = vsel %vm2758_vm14, %v2751_v11, %v2680_v9 }
 0x4d3   : > { %2918 = vmatpush1.bf16.msra.mxu0 %v12360_v5  ;;  %v2722_v51 = vsel %vm17112_vm8, %v2713_v37, %v2632_v16 }
 0x4d4   : > { %2923 = vmatprep.subr.bf16.mxu0 %v12691_v1 }
 0x4d5   : > { %v2692_v35 = vpop.permute.xlu1 %2691 }
 0x4d6   : > { %v2644_v20 = vpop.permute.xlu0 %2643  ;;  %v2768_v36 = vsel %vm797_vm4, %v2760_v32, %v2692_v35 }
 0x4d7   : > { %2924 = vmatpush2.bf16.msra.mxu0 %v2901_v18  ;;  %11437 = vmatprep.mubr.msk.bf16.mxu0 %vm2890_vm15, %v2768_v36  ;;  %v2730_v39 = vsel %vm815_vm6, %v2722_v51, %v2644_v20 }
 0x4d8   : > { %2925 = vmatprep.subr.bf16.mxu0 %v12691_v1  ;;  %v2739_v50 = vsel %vm17111_vm9, %v2730_v39, %v2656_v12 }
 0x4d9   : > { %v2622_v21 = vpop.permute.xlu1 %2621 }
 0x4da   : > { %v2610_v23 = vpop.permute.xlu0 %2609 }
 0x4db   : > { %2926 = vmatpush2.bf16.msra.mxu0 %v12362_v13  ;;  %v2705_v33 = vsel %vm17113_vm1, %v13449_v10, %v2610_v23 }
 0x4dc   : > { %2927 = vmatprep.subr.bf16.mxu0 %v12691_v1  ;;  %v2715_v55 = vsel %vm453_vm0, %v2705_v33, %v2622_v21 }
 0x4dd   : > { %v2670_v30 = vpop.permute.xlu1 %2669 }
 0x4de   : > { %v2658_v27 = vpop.permute.xlu0 %2657 }
 0x4df   : > { %2928 = vmatpush2.bf16.msra.mxu0 %v12363_v45  ;;  %v2753_v47 = vsel %vm542_vm2, %v2658_v27, %v2670_v30  ;;  %v536_v30 = vld [vmem:[%s12942_s29 + $0xd8] sm:$0xff] }
 0x4e0   : > { %2929 = vmatprep.subr.bf16.mxu0 %v12691_v1  ;;  %570 = vst.msk [vmem:[#allocation2 + $0x159] sm:$0xff] %vm542_vm2, %v536_v30 }
 0x4e1   : > { %v2682_v41 = vpop.permute.xlu1 %2681 }
 0x4e2   : > { %v2634_v15 = vpop.permute.xlu0 %2633  ;;  %v2762_v52 = vsel %vm2758_vm14, %v2753_v47, %v2682_v41 }
 0x4e3   : > { %2930 = vmatpush2.bf16.msra.mxu0 %v12364_v31  ;;  %v2724_v57 = vsel %vm17112_vm8, %v2715_v55, %v2634_v15  ;;  %v538_v31 = vld [vmem:[%s12942_s29 + $0xe8] sm:$0xff]  ;;  %v12588_v55 = vld [vmem:[%s17142_s7] ss:$0 sm:$0xff] }
 0x4e4   : > { %2931 = vmatprep.subr.bf16.mxu0 %v12691_v1  ;;  %572 = vst.msk [vmem:[#allocation2 + $0x171] sm:$0xff] %vm542_vm2, %v538_v31 }
 0x4e5   : > { %v2694_v28 = vpop.permute.xlu1 %2693 }
 0x4e6   : > { %v2646_v19 = vpop.permute.xlu0 %2645  ;;  %v2770_v38 = vsel %vm797_vm4, %v2762_v52, %v2694_v28 }
 0x4e7   : > { %2932 = vmatpush2.bf16.msra.mxu0 %v12365_v24  ;;  %v2732_v46 = vsel %vm815_vm6, %v2724_v57, %v2646_v19  ;;  %v2080_v34 = vld [vmem:[#allocation2 + $0x152] sm:$0xff]  ;;  %v2081_v41 = vld [vmem:[#allocation2 + $0x15a] sm:$0xff]  ;;  %v1451_v57 = vadd.f32 %v12588_v55, %v13267_v54 }
 0x4e8   : > { %2933 = vmatprep.subr.bf16.mxu0 %v12691_v1  ;;  %v2742_v62 = vsel %vm17111_vm9, %v2732_v46, %v2658_v27  ;;  %v537_v27 = vld [vmem:[%s12942_s29 + $0xe0] sm:$0xff]  ;;  %v13642_v15 = vpack.c.bf16 %v2081_v41, %v2080_v34 }
 0x4e9   : > { %v2624_v42 = vpop.permute.xlu1 %2623  ;;  %571 = vst.msk [vmem:[#allocation2 + $0x169] sm:$0xff] %vm542_vm2, %v537_v27  ;;  %vm1475_vm12 = vcmp.ge.f32.partialorder %v1451_v57, 0.0 }
 0x4ea   : > { %v2612_v43 = vpop.permute.xlu0 %2611  ;;  %11418 = vmatprep.mubr.msk.bf16.mxu1 %vm542_vm2, %v13642_v15 }
 0x4eb   : > { %2934 = vmatpush2.bf16.msra.mxu0 %v12366_v40  ;;  %v2708_v10 = vsel %vm17113_vm1, %v13444_v3, %v2612_v43  ;;  %v11394_v40 = vld [vmem:[%s17142_s7] ss:$0 sm:$0xff] }
 0x4ec   : > { %3966 = vmatprep.subr.bf16.mxu0 %v12691_v1  ;;  %v2717_v8 = vsel %vm453_vm0, %v2708_v10, %v2624_v42  ;;  %v539_v10 = vld [vmem:[%s12942_s29 + $0xf0] sm:$0xff] }
 0x4ed   : > { %v2672_v7 = vpop.permute.xlu1 %2671  ;;  %573 = vst.msk [vmem:[#allocation2 + $0x181] sm:$0xff] %vm542_vm2, %v539_v10 }
 0x4ee   : > { %2936 = vmatmul.mubr.bf16.vlgmr.msra.gmra.mxu0 %v2739_v50  ;;  %v2660_v53 = vpop.permute.xlu0 %2659 }
 0x4ef   : > { %11438 = vmatprep.mubr.msk.bf16.mxu0 %vm2890_vm15, %v2770_v38  ;;  %v2755_v61 = vsel %vm542_vm2, %v2660_v53, %v2672_v7 }
 0x4f1   : > { %v2684_v58 = vpop.permute.xlu1 %2683 }
 0x4f2   : > { %v2636_v60 = vpop.permute.xlu0 %2635  ;;  %v2764_v63 = vsel %vm2758_vm14, %v2755_v61, %v2684_v58  ;;  %v540_v61 = vld [vmem:[%s12942_s29 + $0xf8] sm:$0xff]  ;;  %s17155_s29 = smov 40  }
 0x4f3   : > { %v2726_v44 = vsel %vm17112_vm8, %v2717_v8, %v2636_v60  ;;  %574 = vst.msk [vmem:[#allocation2 + $0x189] sm:$0xff] %vm542_vm2, %v540_v61 }
 0x4f5   : > { %v2696_v2 = vpop.permute.xlu1 %2695 }
 0x4f6   : > { %2944 = vmatmul.mubr.bf16.gmra.mxu0 %v2742_v62  ;;  %v2648_v4 = vpop.permute.xlu0 %2647  ;;  %v2772_v6 = vsel %vm797_vm4, %v2764_v63, %v2696_v2  ;;  %v1483_v63 = vmul.f32 0.2, %v1451_v57 }
 0x4f7   : > { %11439 = vmatprep.mubr.msk.bf16.mxu0 %vm2890_vm15, %v2772_v6  ;;  %v2734_v12 = vsel %vm815_vm6, %v2726_v44, %v2648_v4  ;;  %v1454_v4 = vadd.f32 %v12588_v55, %v13269_v56  ;;  %v1459_v6 = vadd.f32 %v12588_v55, %v13271_v0 }
 0x4f8   : > { %v2745_v14 = vsel %vm17111_vm9, %v2734_v12, %v2660_v53 }
 0x4f9   : > { %v2626_v3 = vpop.permute.xlu1 %2625 }
 0x4fa   : > { %v2614_v5 = vpop.permute.xlu0 %2613 }
 0x4fb   : > { %v2711_v18 = vsel %vm17113_vm1, %v13458_v22, %v2614_v5  ;;  %v1484_v5 = vmul.f32 0.2, %v1454_v4  ;;  %vm1477_vm1 = vcmp.ge.f32.partialorder %v1459_v6, 0.0 }
 0x4fc   : > { %v2719_v20 = vsel %vm453_vm0, %v2711_v18, %v2626_v3  ;;  %v1491_v3 = vsel %vm1475_vm12, %v1451_v57, %v1483_v63 }
 0x4fd   : > { %v2674_v9 = vpop.permute.xlu1 %2673 }
 0x4fe   : > { %2952 = vmatmul.mubr.bf16.gmra.mxu0 %v2745_v14  ;;  %v2662_v16 = vpop.permute.xlu0 %2661  ;;  %v1485_v14 = vmul.f32 0.2, %v1459_v6 }
 0x4ff   : > { %v2757_v35 = vsel %vm542_vm2, %v2662_v16, %v2674_v9  ;;  %v1462_v9 = vadd.f32 %v12588_v55, %v13273_v59  ;;  %v2091_v59 = vld [vmem:[#allocation2 + $0x150] sm:$0xff] }
 0x500   : > { %v1493_v18 = vsel %vm1477_vm1, %v1459_v6, %v1485_v14  ;;  %v12368_v14 = vld [vmem:[%s17141_s2 + $0x30] sm:$0xff]  }
 0x501   : > { %v2686_v11 = vpop.permute.xlu1 %2685  ;;  %v1486_v56 = vmul.f32 0.2, %v1462_v9 }
 0x502   : > { %v2638_v32 = vpop.permute.xlu0 %2637  ;;  %v2766_v36 = vsel %vm2758_vm14, %v2757_v35, %v2686_v11  ;;  %v2103_v35 = vld [vmem:[#allocation2 + $0x151] sm:$0xff] }
 0x503   : > { %v2728_v13 = vsel %vm17112_vm8, %v2719_v20, %v2638_v32  ;;  %vm1476_vm8 = vcmp.ge.f32.partialorder %v1454_v4, 0.0  ;;  %v2092_v32 = vld [vmem:[#allocation2 + $0x158] sm:$0xff] }
 0x504   : > { %v1492_v0 = vsel %vm1476_vm8, %v1454_v4, %v1484_v5  ;;  %v2104_v20 = vld [vmem:[#allocation2 + $0x159] sm:$0xff] }
 0x505   : > { %v2698_v21 = vpop.permute.xlu1 %2697  ;;  %v12367_v5 = vld [vmem:[%s17141_s2 + $0x38] sm:$0xff]  }
 0x506   : > { %v2650_v23 = vpop.permute.xlu0 %2649  ;;  %v2774_v45 = vsel %vm797_vm4, %v2766_v36, %v2698_v21  ;;  %v13680_v21 = vpack.c.bf16 %v2092_v32, %v2091_v59  ;;  %2367 = vmatpush1.bf16.msra.mxu1 %v12367_v5 }
 0x507   : > { %v2736_v26 = vsel %vm815_vm6, %v2728_v13, %v2650_v23  ;;  %11440 = vmatprep.mubr.msk.bf16.mxu0 %vm2890_vm15, %v2774_v45  ;;  %v2111_v23 = vpack.c.bf16 %v2104_v20, %v2103_v35  ;;  %2368 = vmatprep.subr.bf16.mxu1 %v12691_v1  ;;  %v12375_v35 = vld [vmem:[%s17141_s2 + $0x40] sm:$0xff]  }
 0x508   : > { %v2748_v22 = vsel %vm17111_vm9, %v2736_v26, %v2662_v16 }
 0x509   : > { %2960 = vmatmul.mubr.bf16.gmra.mxu0 %v2748_v22  ;;  %v2032_v22 = vld [vmem:[#allocation2 + $0x141] sm:$0xff] }
 0x50a   : > { %2369 = vmatpush1.bf16.msra.mxu1 %v12368_v14  ;;  %v3070_v14 = vld [vmem:[#allocation2 + $0x80] sm:$0xff] }
 0x50b   : > { %2370 = vmatprep.subr.bf16.mxu1 %v12691_v1 }
 0x576   : > { %v1921_v24 = vpop.f32.mrf.mxu0 }
 0x577   : > { %v1922_v36 = vadd.f32 %v11394_v40, %v1921_v24  ;;  %v2093_v24 = vld [vmem:[#allocation2 + $0x168] sm:$0xff] }
 0x578   : > { %v1923_v17 = vpop.f32.mrf.mxu0 }
 0x579   : > { %v1960_v45 = vmul.f32 0.2, %v1922_v36  ;;  %vm1952_vm1 = vcmp.ge.f32.partialorder %v1922_v36, 0.0  ;;  %v2094_v17 = vld [vmem:[#allocation2 + $0x170] sm:$0xff] }
 0x57a   : > { %v1924_v28 = vpop.f32.mrf.mxu0 }
 0x57b   : > { %v1925_v13 = vadd.f32 %v11394_v40, %v1924_v28  ;;  %v1968_v29 = vsel %vm1952_vm1, %v1922_v36, %v1960_v45  ;;  %vm17156_vm1 = vcmask 195584  }
 0x57c   : > { %v1926_v19 = vpop.f32.mrf.mxu0 }
 0x57d   : > { %v1961_v26 = vmul.f32 0.2, %v1925_v13  ;;  %vm1953_vm8 = vcmp.ge.f32.partialorder %v1925_v13, 0.0 }
 0x57e   : > { %v1929_v37 = vpop.f32.mrf.mxu0 }
 0x57f   : > { %v13649_v51 = vadd.f32 %v11394_v40, %v1929_v37  ;;  %v1969_v30 = vsel %vm1953_vm8, %v1925_v13, %v1961_v26  ;;  %v13700_v37 = vpack.c.bf16 %v2094_v17, %v2093_v24  ;;  %v2095_v13 = vld [vmem:[#allocation2 + $0x180] sm:$0xff]  ;;  %v2082_v26 = vld [vmem:[#allocation2 + $0x16a] sm:$0xff]  ;;  %vm17157_vm8 = vcmask 588800  }
 0x580   : > { %v1931_v39 = vpop.f32.mrf.mxu0 }
 0x581   : > { %v2105_v39 = vld [vmem:[#allocation2 + $0x169] sm:$0xff] }
 0x582   : > { %v1932_v42 = vpop.f32.mrf.mxu0 }
 0x583   : > { %v13651_v43 = vadd.f32 %v11394_v40, %v1932_v42  ;;  %v2106_v42 = vld [vmem:[#allocation2 + $0x171] sm:$0xff] }
 0x584   : > { %v1934_v47 = vpop.f32.mrf.mxu0 }
 0x586   : > { %v1937_v50 = vpop.f32.mrf.mxu0 }
 0x587   : > { %v13653_v33 = vadd.f32 %v11394_v40, %v1937_v50 }
 0x588   : > { %v1939_v52 = vpop.f32.mrf.mxu0 }
 0x58a   : > { %v1940_v38 = vpop.f32.mrf.mxu0 }
 0x58b   : > { %v13655_v7 = vadd.f32 %v11394_v40, %v1940_v38 }
 0x58c   : > { %v1942_v53 = vpop.f32.mrf.mxu0 }
 0x58e   : > { %v1945_v46 = vpop.f32.mrf.mxu0 }
 0x58f   : > { %v1946_v58 = vadd.f32 %v11394_v40, %v1945_v46 }
 0x590   : > { %v1947_v60 = vpop.f32.mrf.mxu0 }
 0x591   : > { %vm1958_vm11 = vcmp.ge.f32.partialorder %v1946_v58, 0.0  ;;  %v1966_v62 = vmul.f32 0.2, %v1946_v58 }
 0x592   : > { %v1948_v2 = vpop.f32.mrf.mxu0 }
 0x593   : > { %v1949_v8 = vadd.f32 %v11394_v40, %v1948_v2  ;;  %v1974_v54 = vsel %vm1958_vm11, %v1946_v58, %v1966_v62  ;;  %vm1478_vm11 = vcmp.ge.f32.partialorder %v1462_v9, 0.0 }
 0x594   : > { %v1950_v44 = vpop.f32.mrf.mxu0  ;;  %1996 = vrot.lane.b32.xlu0 %v1974_v54, %s17148_s0  ;;  %v1494_v11 = vsel %vm1478_vm11, %v1462_v9, %v1486_v56  ;;  %v12370_v9 = vld [vmem:[%s17141_s2 + $0x20] sm:$0xff]   ;;  %v12372_v56 = vld [vmem:[%s17141_s2 + $0x10] sm:$0xff]   ;;  %vm3024_vm11 = vcmask 261312  }
 0x595   : > { %vm1959_vm9 = vcmp.ge.f32.partialorder %v1949_v8, 0.0  ;;  %v1967_v12 = vmul.f32 0.2, %v1949_v8 }
 0x597   : > { %v1975_v16 = vsel %vm1959_vm9, %v1949_v8, %v1967_v12 }
 0x598   : > { %1998 = vrot.lane.b32.xlu1 %v1975_v16, %s17148_s0  ;;  %1509 = vrot.lane.b32.xlu0 %v1491_v3, %s17148_s0  ;;  %v12371_v16 = vld [vmem:[%s17141_s2 + $0x18] sm:$0xff]  }
 0x59c   : > { %1511 = vrot.lane.b32.xlu1 %v1492_v0, %s17148_s0  ;;  %1513 = vrot.lane.b32.xlu0 %v1493_v18, %s17148_s0  ;;  %v12373_v0 = vld [vmem:[%s17141_s2 + $0x8] sm:$0xff]  }
 0x5a0   : > { %1515 = vrot.lane.b32.xlu1 %v1494_v11, %s17148_s0  ;;  %2155 = vrot.lane.b32.xlu0 %v13428_v49, %s17144_s30  ;;  %v2031_v49 = vld [vmem:[#allocation2 + $0x139] sm:$0xff] }
 0x5a1   : > { %v2038_v27 = vpack.c.bf16 %v2032_v22, %v2031_v49  ;;  %v12374_v11 = vld [vmem:[%s17141_s2] sm:$0xff]   ;;  %v2083_v49 = vld [vmem:[#allocation2 + $0x172] sm:$0xff] }
 0x5a2   : > { %v13773_v17 = vpack.c.bf16 %v2083_v49, %v2082_v26 }
 0x5a4   : > { %2167 = vrot.lane.b32.xlu1 %v13426_v48, %s17145_s26  ;;  %2179 = vrot.lane.b32.xlu0 %v13545_v25, %s17146_s14  ;;  %v11422_v48 = vld [vmem:[%s17151_s8] ss:$0 sm:$0xff] }
 0x5a8   : > { %2191 = vrot.lane.b32.xlu1 %v13680_v21, %s17149_s23  ;;  %2203 = vrot.lane.b32.xlu0 %v2111_v23, %s17143_s16 }
 0x5ac   : > { %1984 = vrot.lane.b32.xlu1 %v1968_v29, %s17148_s0  ;;  %1986 = vrot.lane.b32.xlu0 %v1969_v30, %s17148_s0 }
 0x5ae   : > { %v2937_v31 = vpop.f32.mrf.mxu0 }
 0x5af   : > { %v13690_v34 = vadd.f32 %v11422_v48, %v2937_v31 }
 0x5b0   : > { %v2939_v41 = vpop.f32.mrf.mxu0  ;;  %2133 = vrot.lane.b32.xlu1 %v2038_v27, %s17148_s0  ;;  %2145 = vrot.lane.b32.xlu0 %v13545_v25, %s17147_s19  ;;  %v13708_v25 = vpack.c.bf16 %v2106_v42, %v2105_v39  ;;  %v2107_v39 = vld [vmem:[#allocation2 + $0x181] sm:$0xff]  ;;  %v2108_v42 = vld [vmem:[#allocation2 + $0x189] sm:$0xff] }
 0x5b2   : > { %v2940_v28 = vpop.f32.mrf.mxu0 }
 0x5b3   : > { %v13695_v19 = vadd.f32 %v11422_v48, %v2940_v28 }
 0x5b4   : > { %v2942_v40 = vpop.f32.mrf.mxu0  ;;  %2157 = vrot.lane.b32.xlu1 %v13680_v21, %s17144_s30  ;;  %2169 = vrot.lane.b32.xlu0 %v2111_v23, %s17145_s26 }
 0x5b6   : > { %v2945_v47 = vpop.f32.mrf.mxu0 }
 0x5b7   : > { %v13702_v50 = vadd.f32 %v11422_v48, %v2945_v47  ;;  %v2113_v47 = vpack.c.bf16 %v2108_v42, %v2107_v39 }
 0x5b8   : > { %v2947_v52 = vpop.f32.mrf.mxu0  ;;  %2181 = vrot.lane.b32.xlu1 %v13642_v15, %s17146_s14  ;;  %2193 = vrot.lane.b32.xlu0 %v13700_v37, %s17149_s23 }
 0x5ba   : > { %v2948_v38 = vpop.f32.mrf.mxu0 }
 0x5bb   : > { %v13710_v53 = vadd.f32 %v11422_v48, %v2948_v38 }
 0x5bc   : > { %v2950_v55 = vpop.f32.mrf.mxu0  ;;  %2205 = vrot.lane.b32.xlu1 %v13708_v25, %s17143_s16 }
 0x5be   : > { %v2953_v57 = vpop.f32.mrf.mxu0 }
 0x5bf   : > { %v13714_v46 = vadd.f32 %v11422_v48, %v2953_v57 }
 0x5c0   : > { %v2955_v58 = vpop.f32.mrf.mxu0 }
 0x5c1   : > { %v2084_v58 = vld [vmem:[#allocation2 + $0x182] sm:$0xff] }
 0x5c2   : > { %v2956_v60 = vpop.f32.mrf.mxu0 }
 0x5c3   : > { %v13716_v10 = vadd.f32 %v11422_v48, %v2956_v60  ;;  %v2085_v60 = vld [vmem:[#allocation2 + $0x18a] sm:$0xff] }
 0x5c4   : > { %v2958_v61 = vpop.f32.mrf.mxu0 }
 0x5c5   : > { %v13794_v61 = vpack.c.bf16 %v2085_v60, %v2084_v58 }
 0x5c9   : > { %v2961_v62 = vpop.f32.mrf.mxu0 }
 0x5ca   : > { %v2962_v63 = vadd.f32 %v11422_v48, %v2961_v62  ;;  %v2109_v62 = vld [vmem:[#allocation2 + $0x199] sm:$0xff] }
 0x5cb   : > { %v2963_v2 = vpop.f32.mrf.mxu0 }
 0x5cc   : > { %vm2974_vm9 = vcmp.ge.f32.partialorder %v2962_v63, 0.0  ;;  %v2982_v4 = vmul.f32 0.2, %v2962_v63  ;;  %v2098_v2 = vld [vmem:[#allocation2 + $0x1a0] sm:$0xff] }
 0x5cd   : > { %v2964_v6 = vpop.f32.mrf.mxu0 }
 0x5ce   : > { %v2965_v8 = vadd.f32 %v11422_v48, %v2964_v6  ;;  %v2990_v54 = vsel %vm2974_vm9, %v2962_v63, %v2982_v4  ;;  %v2110_v63 = vld [vmem:[#allocation2 + $0x1a1] sm:$0xff]  ;;  %vm17158_vm9 = vmmov %vm17156_vm1 }
 0x5cf   : > { %v2966_v44 = vpop.f32.mrf.mxu0  ;;  %3012 = vrot.lane.b32.xlu0 %v2990_v54, %s17152_s20  ;;  %v2114_v4 = vpack.c.bf16 %v2110_v63, %v2109_v62  ;;  %v3094_v54 = vld [vmem:[#allocation2 + $0x82] sm:$0xff] }
 0x5d0   : > { %vm2975_vm12 = vcmp.ge.f32.partialorder %v2965_v8, 0.0  ;;  %v2983_v12 = vmul.f32 0.2, %v2965_v8 }
 0x5d2   : > { %v2991_v3 = vsel %vm2975_vm12, %v2965_v8, %v2983_v12  ;;  %v3093_v8 = vld [vmem:[#allocation2 + $0x7a] sm:$0xff]  ;;  %vm17159_vm12 = vcmask 982016  }
 0x5d3   : > { %3014 = vrot.lane.b32.xlu1 %v2991_v3, %s17152_s20  ;;  %2135 = vrot.lane.b32.xlu0 %v2111_v23, %s17148_s0  ;;  %v2096_v23 = vld [vmem:[#allocation2 + $0x188] sm:$0xff]  ;;  %v3101_v3 = vpack.c.bf16 %v3094_v54, %v3093_v8 }
 0x5d4   : > { %v2101_v24 = vpack.c.bf16 %v2096_v23, %v2095_v13  ;;  %v3122_v54 = vld [vmem:[#allocation2 + $0xc9] sm:$0xff] }
 0x5d7   : > { %2147 = vrot.lane.b32.xlu1 %v13642_v15, %s17147_s19  ;;  %2159 = vrot.lane.b32.xlu0 %v13700_v37, %s17144_s30  ;;  %v12369_v15 = vld [vmem:[%s17141_s2 + $0x28] sm:$0xff]  }
 0x5d8   : > { %2371 = vmatpush1.bf16.msra.mxu1 %v12369_v15 }
 0x5d9   : > { %2372 = vmatprep.subr.bf16.mxu1 %v12691_v1 }
 0x5db   : > { %2171 = vrot.lane.b32.xlu1 %v13708_v25, %s17145_s26 }
 0x5dc   : > { %2373 = vmatpush1.bf16.msra.mxu1 %v12370_v9  ;;  %v3069_v9 = vld [vmem:[#allocation2 + $0x78] sm:$0xff] }
 0x5dd   : > { %2374 = vmatprep.subr.bf16.mxu1 %v12691_v1 }
 0x5e0   : > { %2375 = vmatpush1.bf16.msra.mxu1 %v12371_v16 }
 0x5e1   : > { %2376 = vmatprep.subr.bf16.mxu1 %v12691_v1 }
 0x5e4   : > { %2377 = vmatpush1.bf16.msra.mxu1 %v12372_v56 }
 0x5e5   : > { %2378 = vmatprep.subr.bf16.mxu1 %v12691_v1 }
 0x5e8   : > { %2379 = vmatpush1.bf16.msra.mxu1 %v12373_v0  ;;  %v13808_v0 = vpack.c.bf16 %v3070_v14, %v3069_v9  ;;  %v3134_v14 = vld [vmem:[#allocation2 + $0xca] sm:$0xff] }
 0x5e9   : > { %2380 = vmatprep.subr.bf16.mxu1 %v12691_v1 }
 0x5ec   : > { %2381 = vmatpush1.bf16.msra.mxu1 %v12374_v11  ;;  %v3082_v11 = vld [vmem:[#allocation2 + $0x81] sm:$0xff] }
 0x5ed   : > { %2396 = vmatprep.subr.bf16.mxu1 %v12691_v1 }
 0x5f0   : > { %2397 = vmatpush2.bf16.msra.mxu1 %v12375_v35 }
 0x5f1   : > { %3435 = vmatprep.subr.bf16.mxu1 %v12691_v1 }
 0x606   : > { %v1997_v18 = vpop.permute.xlu0 %1996 }
 0x607   : > { %2014 = vst.msk [vmem:[#allocation2 + $0x121] sm:$0xff] %vm1049_vm10, %v1997_v18 }
 0x60a   : > { %v1999_v59 = vpop.permute.xlu1 %1998  ;;  %v1510_v32 = vpop.permute.xlu0 %1509 }
 0x60b   : > { %2015 = vst.msk [vmem:[#allocation2 + $0x129] sm:$0xff] %vm1049_vm10, %v1999_v59  ;;  %1531 = vst.msk [vmem:[#allocation2 + $0x91] sm:$0xff] %vm1049_vm10, %v1510_v32 }
 0x60e   : > { %v1512_v20 = vpop.permute.xlu1 %1511  ;;  %v1514_v36 = vpop.permute.xlu0 %1513  ;;  %v2029_v45 = vld [vmem:[#allocation2 + $0x121] sm:$0xff] }
 0x60f   : > { %1532 = vst.msk [vmem:[#allocation2 + $0x99] sm:$0xff] %vm1049_vm10, %v1512_v20  ;;  %1533 = vst.msk [vmem:[#allocation2 + $0xa9] sm:$0xff] %vm1049_vm10, %v1514_v36  ;;  %v3081_v20 = vld [vmem:[#allocation2 + $0x79] sm:$0xff] }
 0x610   : > { %v3089_v36 = vpack.c.bf16 %v3082_v11, %v3081_v20 }
 0x612   : > { %v1516_v22 = vpop.permute.xlu1 %1515  ;;  %v13768_v29 = vpop.permute.xlu0 %2155  ;;  %v2041_v30 = vld [vmem:[#allocation2 + $0x122] sm:$0xff]  ;;  %v2042_v48 = vld [vmem:[#allocation2 + $0x12a] sm:$0xff] }
 0x613   : > { %v2030_v27 = vld [vmem:[#allocation2 + $0x129] sm:$0xff]  ;;  %1534 = vst.msk [vmem:[#allocation2 + $0xb1] sm:$0xff] %vm1049_vm10, %v1516_v22  ;;  %v2049_v31 = vpack.c.bf16 %v2042_v48, %v2041_v30  ;;  %v3117_v16 = vld [vmem:[#allocation2 + $0x91] sm:$0xff] }
 0x614   : > { %v2037_v41 = vpack.c.bf16 %v2030_v27, %v2029_v45  ;;  %v3105_v12 = vld [vmem:[#allocation2 + $0x90] sm:$0xff] }
 0x615   : > { %2143 = vrot.lane.b32.xlu1 %v2049_v31, %s17147_s19 }
 0x616   : > { %2131 = vrot.lane.b32.xlu0 %v2037_v41, %s17148_s0  ;;  %v13775_v28 = vpop.permute.xlu1 %2167  ;;  %v13777_v40 = vpop.permute.xlu0 %2179  ;;  %v3106_v44 = vld [vmem:[#allocation2 + $0x98] sm:$0xff]  ;;  %v3107_v49 = vld [vmem:[#allocation2 + $0xa8] sm:$0xff] }
 0x617   : > { %v13801_v5 = vpack.c.bf16 %v3106_v44, %v3105_v12  ;;  %v3118_v15 = vld [vmem:[#allocation2 + $0x99] sm:$0xff]  ;;  %v3119_v31 = vld [vmem:[#allocation2 + $0xa9] sm:$0xff]  ;;  %v3121_v44 = vld [vmem:[#allocation2 + $0xc1] sm:$0xff] }
 0x618   : > { %v3125_v18 = vpack.c.bf16 %v3118_v15, %v3117_v16  ;;  %v3129_v59 = vld [vmem:[#allocation2 + $0x92] sm:$0xff]  ;;  %v3130_v32 = vld [vmem:[#allocation2 + $0x9a] sm:$0xff]  ;;  %v3127_v12 = vpack.c.bf16 %v3122_v54, %v3121_v44 }
 0x619   : > { %2195 = vrot.lane.b32.xlu1 %v2101_v24, %s17149_s23  ;;  %v3137_v13 = vpack.c.bf16 %v3130_v32, %v3129_v59  ;;  %v12376_v44 = vld [vmem:[%s17150_s3 + $0x38] sm:$0xff]  }
 0x61a   : > { %2183 = vrot.lane.b32.xlu0 %v13773_v17, %s17146_s14  ;;  %v13782_v52 = vpop.permute.xlu1 %2191  ;;  %v13784_v38 = vpop.permute.xlu0 %2203  ;;  %v3108_v26 = vld [vmem:[#allocation2 + $0xb0] sm:$0xff] }
 0x61b   : > { %v13825_v30 = vpack.c.bf16 %v3108_v26, %v3107_v49  ;;  %v3120_v48 = vld [vmem:[#allocation2 + $0xb1] sm:$0xff] }
 0x61c   : > { %v3126_v41 = vpack.c.bf16 %v3120_v48, %v3119_v31  ;;  %v3132_v39 = vld [vmem:[#allocation2 + $0xb2] sm:$0xff]  ;;  %v2020_v31 = vld [vmem:[#allocation2 + $0x140] sm:$0xff] }
 0x61d   : > { %2137 = vrot.lane.b32.xlu1 %v13708_v25, %s17148_s0  ;;  %v2097_v25 = vld [vmem:[#allocation2 + $0x198] sm:$0xff] }
 0x61e   : > { %2207 = vrot.lane.b32.xlu0 %v2113_v47, %s17143_s16  ;;  %v1985_v55 = vpop.permute.xlu1 %1984  ;;  %v1987_v57 = vpop.permute.xlu0 %1986  ;;  %v2102_v6 = vpack.c.bf16 %v2098_v2, %v2097_v25  ;;  %v2019_v48 = vld [vmem:[#allocation2 + $0x138] sm:$0xff] }
 0x61f   : > { %2008 = vst.msk [vmem:[#allocation2 + $0xd9] sm:$0xff] %vm1049_vm10, %v1985_v55  ;;  %2009 = vst.msk [vmem:[#allocation2 + $0xe1] sm:$0xff] %vm1049_vm10, %v1987_v57 }
 0x621   : > { %2161 = vrot.lane.b32.xlu1 %v2101_v24, %s17144_s30  ;;  %v3131_v24 = vld [vmem:[#allocation2 + $0xaa] sm:$0xff] }
 0x622   : > { %2149 = vrot.lane.b32.xlu0 %v13773_v17, %s17147_s19  ;;  %v13806_v56 = vpop.permute.xlu1 %2133  ;;  %v13813_v35 = vpop.permute.xlu0 %2145  ;;  %v3138_v55 = vpack.c.bf16 %v3132_v39, %v3131_v24 }
 0x625   : > { %2185 = vrot.lane.b32.xlu1 %v13794_v61, %s17146_s14 }
 0x626   : > { %2173 = vrot.lane.b32.xlu0 %v2113_v47, %s17145_s26  ;;  %v13815_v23 = vpop.permute.xlu1 %2157  ;;  %v13819_v45 = vpop.permute.xlu0 %2169  ;;  %v3111_v9 = vld [vmem:[#allocation2 + $0xd8] sm:$0xff]  ;;  %v3112_v16 = vld [vmem:[#allocation2 + $0xe0] sm:$0xff] }
 0x627   : > { %v3123_v11 = vld [vmem:[#allocation2 + $0xd9] sm:$0xff]  ;;  %v3124_v59 = vld [vmem:[#allocation2 + $0xe1] sm:$0xff] }
 0x628   : > { %v13859_v32 = vpack.c.bf16 %v3124_v59, %v3123_v11  ;;  %v3135_v20 = vld [vmem:[#allocation2 + $0xda] sm:$0xff] }
 0x629   : > { %2209 = vrot.lane.b32.xlu1 %v2114_v4, %s17143_s16  ;;  %v3110_v4 = vld [vmem:[#allocation2 + $0xc8] sm:$0xff]  ;;  %v12379_v59 = vld [vmem:[%s17150_s3 + $0x20] sm:$0xff]  }
 0x62a   : > { %2197 = vrot.lane.b32.xlu0 %v2102_v6, %s17149_s23  ;;  %v13823_v22 = vpop.permute.xlu1 %2181  ;;  %v13827_v27 = vpop.permute.xlu0 %2193  ;;  %v3109_v6 = vld [vmem:[#allocation2 + $0xc0] sm:$0xff] }
 0x62b   : > { %v3115_v8 = vpack.c.bf16 %v3110_v4, %v3109_v6 }
 0x62d   : > { %3205 = vrot.lane.b32.xlu1 %v13801_v5, %s17148_s0 }
 0x62e   : > { %3193 = vrot.lane.b32.xlu0 %v3101_v3, %s17153_s1  ;;  %v13832_v42 = vpop.permute.xlu1 %2205 }
 0x631   : > { %3217 = vrot.lane.b32.xlu1 %v3125_v18, %s17155_s29 }
 0x632   : > { %3169 = vrot.lane.b32.xlu0 %v13808_v0, %s17154_s17 }
 0x635   : > { %3229 = vrot.lane.b32.xlu1 %v3137_v13, %s17145_s26 }
 0x636   : > { %3181 = vrot.lane.b32.xlu0 %v3089_v36, %s17149_s23 }
 0x639   : > { %3159 = vrot.lane.b32.xlu1 %v3101_v3, %s17144_s30  ;;  %v3133_v3 = vld [vmem:[#allocation2 + $0xc2] sm:$0xff] }
 0x63a   : > { %3147 = vrot.lane.b32.xlu0 %v3089_v36, %s17152_s20  ;;  %v3139_v15 = vpack.c.bf16 %v3134_v14, %v3133_v3  ;;  %v3136_v36 = vld [vmem:[#allocation2 + $0xe2] sm:$0xff] }
 0x63d   : > { %3207 = vrot.lane.b32.xlu1 %v13825_v30, %s17148_s0 }
 0x63e   : > { %3195 = vrot.lane.b32.xlu0 %v3137_v13, %s17153_s1 }
 0x641   : > { %3219 = vrot.lane.b32.xlu1 %v3126_v41, %s17155_s29  ;;  %v3013_v47 = vpop.permute.xlu0 %3012 }
 0x642   : > { %3171 = vrot.lane.b32.xlu0 %v13801_v5, %s17154_s17  ;;  %3031 = vst.msk [vmem:[#allocation2 + $0x61] sm:$0xff] %vm3024_vm11, %v3013_v47  ;;  %v2018_v47 = vld [vmem:[#allocation2 + $0x128] sm:$0xff] }
 0x645   : > { %v3015_v57 = vpop.permute.xlu1 %3014  ;;  %3231 = vrot.lane.b32.xlu1 %v3138_v55, %s17145_s26  ;;  %v2136_v49 = vpop.permute.xlu0 %2135 }
 0x646   : > { %3183 = vrot.lane.b32.xlu0 %v3125_v18, %s17149_s23  ;;  %3032 = vst.msk [vmem:[#allocation2 + $0x69] sm:$0xff] %vm3024_vm11, %v3015_v57  ;;  %v2017_v57 = vld [vmem:[#allocation2 + $0x120] sm:$0xff] }
 0x649   : > { %3161 = vrot.lane.b32.xlu1 %v3137_v13, %s17144_s30  ;;  %v3045_v58 = vld [vmem:[#allocation2 + $0x61] sm:$0xff]  ;;  %v13864_v13 = vpack.c.bf16 %v3136_v36, %v3135_v20  ;;  %v2148_v26 = vpop.permute.xlu1 %2147  ;;  %v2160_v39 = vpop.permute.xlu0 %2159 }
 0x64a   : > { %3149 = vrot.lane.b32.xlu0 %v3125_v18, %s17152_s20  ;;  %v13854_v18 = vpack.c.bf16 %v3112_v16, %v3111_v9  ;;  %v2121_v36 = vld [vmem:[#allocation2 + $0x19a] sm:$0xff] }
 0x64d   : > { %v3057_v60 = vld [vmem:[#allocation2 + $0x62] sm:$0xff]  ;;  %v3058_v62 = vld [vmem:[#allocation2 + $0x6a] sm:$0xff]  ;;  %v2172_v24 = vpop.permute.xlu1 %2171 }
 0x64e   : > { %v3046_v63 = vld [vmem:[#allocation2 + $0x69] sm:$0xff]  ;;  %v3065_v25 = vpack.c.bf16 %v3058_v62, %v3057_v60 }
 0x64f   : > { %v3053_v2 = vpack.c.bf16 %v3046_v63, %v3045_v58  ;;  %v13871_v58 = vpack.c.bf16 %v2018_v47, %v2017_v57 }
 0x650   : > { %3157 = vrot.lane.b32.xlu1 %v3065_v25, %s17144_s30 }
 0x651   : > { %3145 = vrot.lane.b32.xlu0 %v3053_v2, %s17152_s20 }
 0x654   : > { %3209 = vrot.lane.b32.xlu1 %v3115_v8, %s17148_s0 }
 0x655   : > { %3197 = vrot.lane.b32.xlu0 %v3138_v55, %s17153_s1 }
 0x658   : > { %3221 = vrot.lane.b32.xlu1 %v3127_v12, %s17155_s29 }
 0x659   : > { %3173 = vrot.lane.b32.xlu0 %v13825_v30, %s17154_s17 }
 0x65c   : > { %3233 = vrot.lane.b32.xlu1 %v3139_v15, %s17145_s26 }
 0x65d   : > { %3185 = vrot.lane.b32.xlu0 %v3126_v41, %s17149_s23 }
 0x660   : > { %3163 = vrot.lane.b32.xlu1 %v3138_v55, %s17144_s30 }
 0x661   : > { %3151 = vrot.lane.b32.xlu0 %v3126_v41, %s17152_s20  ;;  %v2026_v41 = vpack.c.bf16 %v2020_v31, %v2019_v48  ;;  %v12380_v31 = vld [vmem:[%s17150_s3 + $0x18] sm:$0xff]  }
 0x663   : > { %v2216_v55 = vsel %vm542_vm2, %v2026_v41, %v13806_v56 }
 0x664   : > { %3211 = vrot.lane.b32.xlu1 %v13854_v18, %s17148_s0  ;;  %v2226_v60 = vsel %vm780_vm3, %v2216_v55, %v13813_v35 }
 0x665   : > { %3199 = vrot.lane.b32.xlu0 %v3139_v15, %s17153_s1  ;;  %v2234_v4 = vsel %vm453_vm0, %v2226_v60, %v13815_v23  ;;  %v12381_v60 = vld [vmem:[%s17150_s3 + $0x10] sm:$0xff]  }
 0x668   : > { %3223 = vrot.lane.b32.xlu1 %v13859_v32, %s17155_s29 }
 0x669   : > { %3175 = vrot.lane.b32.xlu0 %v3115_v8, %s17154_s17 }
 0x66c   : > { %3235 = vrot.lane.b32.xlu1 %v13864_v13, %s17145_s26 }
 0x66d   : > { %3187 = vrot.lane.b32.xlu0 %v3127_v12, %s17149_s23  ;;  %v2242_v12 = vsel %vm797_vm4, %v2234_v4, %v13819_v45  ;;  %v12377_v45 = vld [vmem:[%s17150_s3 + $0x30] sm:$0xff]   ;;  %v12382_v4 = vld [vmem:[%s17150_s3 + $0x8] sm:$0xff]  }
 0x66e   : > { %v2250_v14 = vsel %vm17116_vm5, %v2242_v12, %v13823_v22  ;;  %v12383_v12 = vld [vmem:[%s17150_s3] sm:$0xff]  }
 0x687   : > { %v2144_v62 = vpop.permute.xlu1 %2143 }
 0x688   : > { %v2132_v63 = vpop.permute.xlu0 %2131 }
 0x689   : > { %v2213_v25 = vsel %vm542_vm2, %v13871_v58, %v2132_v63 }
 0x68a   : > { %v2224_v2 = vsel %vm780_vm3, %v2213_v25, %v2144_v62 }
 0x68b   : > { %v2232_v6 = vsel %vm453_vm0, %v2224_v2, %v13768_v29  ;;  %v2196_v8 = vpop.permute.xlu1 %2195 }
 0x68c   : > { %v2240_v56 = vsel %vm797_vm4, %v2232_v6, %v13775_v28  ;;  %v2184_v54 = vpop.permute.xlu0 %2183 }
 0x68d   : > { %v2248_v35 = vsel %vm17116_vm5, %v2240_v56, %v13777_v40  ;;  %v2219_v40 = vsel %vm542_vm2, %v13680_v21, %v2136_v49  ;;  %v12378_v21 = vld [vmem:[%s17150_s3 + $0x28] sm:$0xff]  }
 0x68e   : > { %v2256_v23 = vsel %vm815_vm6, %v2248_v35, %v13782_v52  ;;  %v2258_v52 = vsel %vm815_vm6, %v2250_v14, %v13827_v27 }
 0x68f   : > { %v2264_v29 = vsel %vm824_vm7, %v2256_v23, %v13784_v38  ;;  %v2138_v3 = vpop.permute.xlu1 %2137  ;;  %v2228_v38 = vsel %vm780_vm3, %v2219_v40, %v2148_v26  ;;  %v12384_v23 = vld [vmem:[%s17150_s3 + $0x68] ss:$0 sps:$4 sm:$0xff]  }
 0x690   : > { %2399 = vmatmul.mubr.bf16.vlgmr.msra.gmra.mxu1 %v2264_v29  ;;  %v2208_v28 = vpop.permute.xlu0 %2207  ;;  %v2236_v9 = vsel %vm453_vm0, %v2228_v38, %v2160_v39  ;;  %v2222_v27 = vsel %vm542_vm2, %v13700_v37, %v2138_v3 }
 0x691   : > { %3436 = vmatpush1.bf16.msra.mxu1 %v12376_v44  ;;  %11419 = vmatprep.mubr.msk.bf16.mxu1 %vm542_vm2, %v13773_v17  ;;  %v2267_v17 = vsel %vm824_vm7, %v2258_v52, %v13832_v42  ;;  %v2244_v20 = vsel %vm797_vm4, %v2236_v9, %v2172_v24  ;;  %v2122_v42 = vld [vmem:[#allocation2 + $0x1a2] sm:$0xff]  ;;  %v12387_v9 = vld [vmem:[%s17150_s3 + $0x50] sm:$0xff]  }
 0x692   : > { %3437 = vmatprep.subr.bf16.mxu1 %v12691_v1  ;;  %v2252_v26 = vsel %vm17116_vm5, %v2244_v20, %v2184_v54  ;;  %v2126_v41 = vpack.c.bf16 %v2122_v42, %v2121_v36  ;;  %v12389_v20 = vld [vmem:[%s17150_s3 + $0x40] sm:$0xff]  }
 0x693   : > { %v2162_v15 = vpop.permute.xlu1 %2161 }
 0x694   : > { %v2150_v22 = vpop.permute.xlu0 %2149 }
 0x695   : > { %3438 = vmatpush1.bf16.msra.mxu1 %v12377_v45  ;;  %v2230_v49 = vsel %vm780_vm3, %v2222_v27, %v2150_v22  ;;  %v12385_v45 = vld [vmem:[%s17150_s3 + $0x60] sm:$0xff]   ;;  %v3034_v27 = vld [vmem:[#allocation2 + $0x68] sm:$0xff] }
 0x696   : > { %3439 = vmatprep.subr.bf16.mxu1 %v12691_v1  ;;  %v2238_v24 = vsel %vm453_vm0, %v2230_v49, %v2162_v15  ;;  %v12386_v15 = vld [vmem:[%s17150_s3 + $0x58] sm:$0xff]  }
 0x697   : > { %v2186_v16 = vpop.permute.xlu1 %2185 }
 0x698   : > { %2407 = vmatmul.mubr.bf16.gmra.mxu1 %v2267_v17  ;;  %v2174_v11 = vpop.permute.xlu0 %2173  ;;  %v12388_v17 = vld [vmem:[%s17150_s3 + $0x48] sm:$0xff]  }
 0x699   : > { %3440 = vmatpush1.bf16.msra.mxu1 %v12378_v21  ;;  %11420 = vmatprep.mubr.msk.bf16.mxu1 %vm542_vm2, %v13794_v61  ;;  %v2260_v61 = vsel %vm815_vm6, %v2252_v26, %v2196_v8  ;;  %v2246_v47 = vsel %vm797_vm4, %v2238_v24, %v2174_v11 }
 0x69a   : > { %3441 = vmatprep.subr.bf16.mxu1 %v12691_v1  ;;  %v2270_v39 = vsel %vm824_vm7, %v2260_v61, %v2208_v28  ;;  %v2254_v62 = vsel %vm17116_vm5, %v2246_v47, %v2186_v16  ;;  %v3433_v28 = vsel %vm2899_vm13, %v12384_v23, 0  ;;  %vm1956_vm5 = vcmp.ge.f32.partialorder %v13653_v33, 0.0 }
 0x69b   : > { %v2210_v48 = vpop.permute.xlu1 %2209 }
 0x69c   : > { %v2198_v37 = vpop.permute.xlu0 %2197 }
 0x69d   : > { %3442 = vmatpush1.bf16.msra.mxu1 %v12379_v59  ;;  %v2262_v63 = vsel %vm815_vm6, %v2254_v62, %v2198_v37  ;;  %v3033_v59 = vld [vmem:[#allocation2 + $0x60] sm:$0xff] }
 0x69e   : > { %3443 = vmatprep.subr.bf16.mxu1 %v12691_v1  ;;  %v2273_v56 = vsel %vm824_vm7, %v2262_v63, %v2210_v48  ;;  %v3041_v36 = vpack.c.bf16 %v3034_v27, %v3033_v59 }
 0x69f   : > { %v3206_v55 = vpop.permute.xlu1 %3205 }
 0x6a0   : > { %2415 = vmatmul.mubr.bf16.gmra.mxu1 %v2270_v39  ;;  %v13934_v57 = vpop.permute.xlu0 %3193 }
 0x6a1   : > { %3444 = vmatpush1.bf16.msra.mxu1 %v12380_v31  ;;  %11421 = vmatprep.mubr.msk.bf16.mxu1 %vm542_vm2, %v2126_v41  ;;  %v3286_v6 = vsel %vm542_vm2, %v13934_v57, %v3206_v55 }
 0x6a2   : > { %3445 = vmatprep.subr.bf16.mxu1 %v12691_v1 }
 0x6a3   : > { %v3218_v25 = vpop.permute.xlu1 %3217 }
 0x6a4   : > { %v3170_v2 = vpop.permute.xlu0 %3169  ;;  %v3294_v8 = vsel %vm2758_vm14, %v3286_v6, %v3218_v25 }
 0x6a5   : > { %3446 = vmatpush1.bf16.msra.mxu1 %v12381_v60 }
 0x6a6   : > { %3447 = vmatprep.subr.bf16.mxu1 %v12691_v1 }
 0x6a7   : > { %v3230_v54 = vpop.permute.xlu1 %3229 }
 0x6a8   : > { %2423 = vmatmul.mubr.bf16.gmra.mxu1 %v2273_v56  ;;  %v3182_v35 = vpop.permute.xlu0 %3181  ;;  %v3302_v44 = vsel %vm797_vm4, %v3294_v8, %v3230_v54 }
 0x6a9   : > { %3448 = vmatpush1.bf16.msra.mxu1 %v12382_v4  ;;  %11456 = vmatprep.mubr.msk.bf16.mxu1 %vm2890_vm15, %v3302_v44 }
 0x6aa   : > { %3449 = vmatprep.subr.bf16.mxu1 %v12691_v1 }
 0x6ab   : > { %v3160_v29 = vpop.permute.xlu1 %3159 }
 0x6ac   : > { %v3148_v3 = vpop.permute.xlu0 %3147 }
 0x6ad   : > { %3450 = vmatpush1.bf16.msra.mxu1 %v12383_v12  ;;  %v3242_v39 = vsel %vm17158_vm9, %v13808_v0, %v3148_v3 }
 0x6ae   : > { %3455 = vmatprep.subr.bf16.mxu1 %v12691_v1  ;;  %v3252_v62 = vsel %vm453_vm0, %v3242_v39, %v3160_v29 }
 0x6af   : > { %v3208_v14 = vpop.permute.xlu1 %3207 }
 0x6b0   : > { %v3196_v40 = vpop.permute.xlu0 %3195 }
 0x6b1   : > { %3456 = vmatpush2.bf16.msra.mxu1 %v3433_v28  ;;  %v3288_v31 = vsel %vm542_vm2, %v3196_v40, %v3208_v14 }
 0x6b2   : > { %3457 = vmatprep.subr.bf16.mxu1 %v12691_v1 }
 0x6b3   : > { %v3220_v52 = vpop.permute.xlu1 %3219 }
 0x6b4   : > { %v3172_v38 = vpop.permute.xlu0 %3171  ;;  %v3296_v47 = vsel %vm2758_vm14, %v3288_v31, %v3220_v52 }
 0x6b5   : > { %3458 = vmatpush2.bf16.msra.mxu1 %v12385_v45 }
 0x6b6   : > { %3459 = vmatprep.subr.bf16.mxu1 %v12691_v1 }
 0x6b7   : > { %v3232_v22 = vpop.permute.xlu1 %3231 }
 0x6b8   : > { %v3184_v21 = vpop.permute.xlu0 %3183  ;;  %v3304_v60 = vsel %vm797_vm4, %v3296_v47, %v3232_v22 }
 0x6b9   : > { %3460 = vmatpush2.bf16.msra.mxu1 %v12386_v15 }
 0x6ba   : > { %3461 = vmatprep.subr.bf16.mxu1 %v12691_v1 }
 0x6bb   : > { %v3162_v16 = vpop.permute.xlu1 %3161 }
 0x6bc   : > { %v3150_v11 = vpop.permute.xlu0 %3149 }
 0x6bd   : > { %3462 = vmatpush2.bf16.msra.mxu1 %v12387_v9 }
 0x6be   : > { %3463 = vmatprep.subr.bf16.mxu1 %v12691_v1 }
 0x6c1   : > { %3464 = vmatpush2.bf16.msra.mxu1 %v12388_v17 }
 0x6c2   : > { %3465 = vmatprep.subr.bf16.mxu1 %v12691_v1  ;;  %v3158_v42 = vpop.permute.xlu1 %3157 }
 0x6c3   : > { %v3146_v26 = vpop.permute.xlu0 %3145 }
 0x6c4   : > { %v3239_v49 = vsel %vm17156_vm1, %v3041_v36, %v3146_v26  ;;  %vm17160_vm1 = vmmov %vm17157_vm8 }
 0x6c5   : > { %v3250_v48 = vsel %vm453_vm0, %v3239_v49, %v3158_v42  ;;  %3466 = vmatpush2.bf16.msra.mxu1 %v12389_v20  ;;  %v11408_v42 = vld [vmem:[%s17142_s7] ss:$0 sm:$0xff] }
 0x6c6   : > { %v3258_v37 = vsel %vm17157_vm8, %v3250_v48, %v3170_v2  ;;  %4497 = vmatprep.subr.bf16.mxu1 %v12691_v1  ;;  %v3210_v41 = vpop.permute.xlu1 %3209  ;;  %v3260_v2 = vsel %vm17160_vm1, %v3252_v62, %v3172_v38  ;;  %vm17161_vm8 = vmmov %vm17158_vm9 }
 0x6c7   : > { %v3198_v61 = vpop.permute.xlu0 %3197  ;;  %v3266_v24 = vsel %vm815_vm6, %v3258_v37, %v3182_v35  ;;  %v3268_v4 = vsel %vm815_vm6, %v3260_v2, %v3184_v21  ;;  %vm17162_vm9 = vmmov %vm17159_vm12 }
 0x6c8   : > { %v3274_v55 = vsel %vm17159_vm12, %v3266_v24, %v13934_v57  ;;  %v3290_v0 = vsel %vm542_vm2, %v3198_v61, %v3210_v41  ;;  %v3245_v57 = vsel %vm17161_vm8, %v13801_v5, %v3150_v11  ;;  %v3277_v35 = vsel %vm17162_vm9, %v3268_v4, %v3196_v40  ;;  %vm17163_vm12 = vmmov %vm17160_vm1 }
 0x6c9   : > { %3468 = vmatmul.mubr.bf16.vlgmr.msra.gmra.mxu1 %v3274_v55  ;;  %v3254_v44 = vsel %vm453_vm0, %v3245_v57, %v3162_v16  ;;  %vm17164_vm1 = vmmov %vm17162_vm9 }
 0x6ca   : > { %11457 = vmatprep.mubr.msk.bf16.mxu1 %vm2890_vm15, %v3304_v60  ;;  %v3222_v63 = vpop.permute.xlu1 %3221  ;;  %vm17165_vm9 = vmmov %vm17163_vm12 }
 0x6cb   : > { %v3174_v25 = vpop.permute.xlu0 %3173  ;;  %v3298_v6 = vsel %vm2758_vm14, %v3290_v0, %v3222_v63 }
 0x6cc   : > { %v3262_v29 = vsel %vm17163_vm12, %v3254_v44, %v3174_v25  ;;  %vm17166_vm12 = vmmov %vm17164_vm1 }
 0x6ce   : > { %v3234_v56 = vpop.permute.xlu1 %3233 }
 0x6cf   : > { %v3186_v8 = vpop.permute.xlu0 %3185  ;;  %v3306_v54 = vsel %vm797_vm4, %v3298_v6, %v3234_v56 }
 0x6d0   : > { %v3270_v3 = vsel %vm815_vm6, %v3262_v29, %v3186_v8 }
 0x6d1   : > { %3476 = vmatmul.mubr.bf16.gmra.mxu1 %v3277_v35  ;;  %v3280_v45 = vsel %vm17164_vm1, %v3270_v3, %v3198_v61 }
 0x6d2   : > { %11458 = vmatprep.mubr.msk.bf16.mxu1 %vm2890_vm15, %v3306_v54  ;;  %v3164_v12 = vpop.permute.xlu1 %3163 }
 0x6d3   : > { %v3152_v23 = vpop.permute.xlu0 %3151 }
 0x6d4   : > { %v3248_v5 = vsel %vm17161_vm8, %v13825_v30, %v3152_v23  ;;  %vm1954_vm8 = vcmp.ge.f32.partialorder %v13649_v51, 0.0 }
 0x6d5   : > { %v3256_v15 = vsel %vm453_vm0, %v3248_v5, %v3164_v12 }
 0x6d6   : > { %v3212_v28 = vpop.permute.xlu1 %3211 }
 0x6d7   : > { %v3200_v14 = vpop.permute.xlu0 %3199 }
 0x6d8   : > { %v3292_v38 = vsel %vm542_vm2, %v3200_v14, %v3212_v28 }
 0x6d9   : > { %3484 = vmatmul.mubr.bf16.gmra.mxu1 %v3280_v45 }
 0x6da   : > { %v3224_v40 = vpop.permute.xlu1 %3223 }
 0x6db   : > { %v3176_v52 = vpop.permute.xlu0 %3175  ;;  %v3300_v22 = vsel %vm2758_vm14, %v3292_v38, %v3224_v40  ;;  %v1962_v38 = vmul.f32 0.2, %v13649_v51 }
 0x6dc   : > { %v3264_v21 = vsel %vm17165_vm9, %v3256_v15, %v3176_v52 }
 0x6de   : > { %v3236_v9 = vpop.permute.xlu1 %3235 }
 0x6df   : > { %v3188_v17 = vpop.permute.xlu0 %3187  ;;  %v3308_v16 = vsel %vm797_vm4, %v3300_v22, %v3236_v9 }
 0x6e0   : > { %v3272_v11 = vsel %vm815_vm6, %v3264_v21, %v3188_v17  ;;  %11459 = vmatprep.mubr.msk.bf16.mxu1 %vm2890_vm15, %v3308_v16  ;;  %v1963_v16 = vmul.f32 0.2, %v13651_v43 }
 0x6e1   : > { %v3283_v30 = vsel %vm17166_vm12, %v3272_v11, %v3200_v14  ;;  %v14049_v14 = vld [vmem:[%s17151_s8] ss:$0 sm:$0xff]  ;;  %v1970_v11 = vsel %vm1954_vm8, %v13649_v51, %v1962_v38  ;;  %vm1955_vm12 = vcmp.ge.f32.partialorder %v13651_v43, 0.0 }
 0x6e2   : > { %3492 = vmatmul.mubr.bf16.gmra.mxu1 %v3283_v30  ;;  %v1964_v30 = vmul.f32 0.2, %v13653_v33 }
 0x6e4   : > { %v1972_v51 = vsel %vm1956_vm5, %v13653_v33, %v1964_v30  ;;  %v12390_v33 = vld [vmem:[%s17150_s3 + $0x38] sm:$0xff]  }
 0x6e5   : > { %3967 = vmatpush1.bf16.msra.mxu0 %v12390_v33 }
 0x6e6   : > { %3968 = vmatprep.subr.bf16.mxu0 %v12691_v1 }
 0x750   : > { %v2400_v27 = vpop.f32.mrf.mxu1 }
 0x752   : > { %v2402_v59 = vpop.f32.mrf.mxu1 }
 0x753   : > { %v2401_v59 = vadd.f32 %v11408_v42, %v2400_v27 }
 0x754   : > { %v2403_v20 = vpop.f32.mrf.mxu1 }
 0x755   : > { %vm2431_vm8 = vcmp.ge.f32.partialorder %v2401_v59, 0.0 }
 0x756   : > { %v2405_v36 = vpop.f32.mrf.mxu1 }
 0x758   : > { %v2408_v26 = vpop.f32.mrf.mxu1 }
 0x759   : > { %v14022_v49 = vadd.f32 %v11408_v42, %v2408_v26  ;;  %v1971_v26 = vsel %vm1955_vm12, %v13651_v43, %v1963_v16  ;;  %v12399_v16 = vld [vmem:[%s17150_s3 + $0x60] sm:$0xff]  }
 0x75a   : > { %v2410_v48 = vpop.f32.mrf.mxu1 }
 0x75b   : > { %v1965_v48 = vmul.f32 0.2, %v13655_v7  ;;  %vm2433_vm5 = vcmp.ge.f32.partialorder %v14022_v49, 0.0 }
 0x75c   : > { %v2411_v37 = vpop.f32.mrf.mxu1 }
 0x75d   : > { %v14024_v31 = vadd.f32 %v11408_v42, %v2411_v37  ;;  %v2439_v37 = vmul.f32 0.2, %v2401_v59 }
 0x75e   : > { %v2413_v41 = vpop.f32.mrf.mxu1 }
 0x75f   : > { %v2404_v41 = vadd.f32 %v11408_v42, %v2403_v20  ;;  %v12392_v20 = vld [vmem:[%s17150_s3 + $0x28] sm:$0xff]  }
 0x760   : > { %v2416_v61 = vpop.f32.mrf.mxu1 }
 0x761   : > { %v14026_v24 = vadd.f32 %v11408_v42, %v2416_v61  ;;  %v2440_v27 = vmul.f32 0.2, %v2404_v41 }
 0x762   : > { %v2418_v39 = vpop.f32.mrf.mxu1 }
 0x763   : > { %v2447_v39 = vsel %vm2431_vm8, %v2401_v59, %v2439_v37  ;;  %vm2435_vm12 = vcmp.ge.f32.partialorder %v14026_v24, 0.0  ;;  %vm2970_vm8 = vcmp.ge.f32.partialorder %v13702_v50, 0.0 }
 0x764   : > { %v2419_v47 = vpop.f32.mrf.mxu1 }
 0x765   : > { %v14028_v55 = vadd.f32 %v11408_v42, %v2419_v47 }
 0x766   : > { %v2421_v60 = vpop.f32.mrf.mxu1 }
 0x768   : > { %v2424_v62 = vpop.f32.mrf.mxu1 }
 0x769   : > { %v14030_v63 = vadd.f32 %v11408_v42, %v2424_v62 }
 0x76a   : > { %v2426_v25 = vpop.f32.mrf.mxu1 }
 0x76b   : > { %v12395_v25 = vld [vmem:[%s17150_s3 + $0x10] sm:$0xff]  }
 0x76c   : > { %v2427_v2 = vpop.f32.mrf.mxu1 }
 0x76d   : > { %v14032_v4 = vadd.f32 %v11408_v42, %v2427_v2  ;;  %v12394_v42 = vld [vmem:[%s17150_s3 + $0x18] sm:$0xff]  }
 0x76e   : > { %v2429_v0 = vpop.f32.mrf.mxu1 }
 0x789   : > { %v14034_v6 = vpop.f32.mrf.mxu1 }
 0x78b   : > { %v3471_v56 = vpop.f32.mrf.mxu1 }
 0x78c   : > { %v12396_v56 = vld [vmem:[%s17150_s3 + $0x8] sm:$0xff]  }
 0x78d   : > { %v14036_v8 = vpop.f32.mrf.mxu1 }
 0x78f   : > { %v3474_v57 = vpop.f32.mrf.mxu1 }
 0x791   : > { %v14038_v54 = vpop.f32.mrf.mxu1 }
 0x793   : > { %v3479_v35 = vpop.f32.mrf.mxu1 }
 0x795   : > { %v14040_v44 = vpop.f32.mrf.mxu1 }
 0x797   : > { %v3482_v12 = vpop.f32.mrf.mxu1 }
 0x798   : > { %v12397_v12 = vld [vmem:[%s17150_s3] sm:$0xff]  }
 0x799   : > { %v14042_v23 = vpop.f32.mrf.mxu1 }
 0x79b   : > { %v3487_v29 = vpop.f32.mrf.mxu1 }
 0x79d   : > { %v14044_v3 = vpop.f32.mrf.mxu1 }
 0x79f   : > { %v3490_v28 = vpop.f32.mrf.mxu1 }
 0x7a2   : > { %v3493_v45 = vpop.f32.mrf.mxu1 }
 0x7a3   : > { %v3494_v5 = vadd.f32 %v14049_v14, %v3493_v45 }
 0x7a4   : > { %v3495_v40 = vpop.f32.mrf.mxu1 }
 0x7a5   : > { %vm3506_vm1 = vcmp.ge.f32.partialorder %v3494_v5, 0.0  ;;  %v3514_v52 = vmul.f32 0.2, %v3494_v5 }
 0x7a6   : > { %v3496_v15 = vpop.f32.mrf.mxu1 }
 0x7a7   : > { %v3497_v22 = vadd.f32 %v14049_v14, %v3496_v15  ;;  %v3522_v21 = vsel %vm3506_vm1, %v3494_v5, %v3514_v52  ;;  %vm1957_vm1 = vcmp.ge.f32.partialorder %v13655_v7, 0.0 }
 0x7a8   : > { %v3498_v9 = vpop.f32.mrf.mxu1  ;;  %3544 = vrot.lane.b32.xlu0 %v3522_v21, %s17152_s20  ;;  %v1973_v61 = vsel %vm1957_vm1, %v13655_v7, %v1965_v48  ;;  %v12391_v7 = vld [vmem:[%s17150_s3 + $0x30] sm:$0xff]   ;;  %vm2968_vm1 = vcmp.ge.f32.partialorder %v13690_v34, 0.0 }
 0x7a9   : > { %vm3507_vm9 = vcmp.ge.f32.partialorder %v3497_v22, 0.0  ;;  %v3515_v17 = vmul.f32 0.2, %v3497_v22  ;;  %3969 = vmatpush1.bf16.msra.mxu0 %v12391_v7  ;;  %v12403_v7 = vld [vmem:[%s17150_s3 + $0x40] sm:$0xff]  }
 0x7aa   : > { %3970 = vmatprep.subr.bf16.mxu0 %v12691_v1 }
 0x7ab   : > { %v3523_v36 = vsel %vm3507_vm9, %v3497_v22, %v3515_v17  ;;  %vm2432_vm9 = vcmp.ge.f32.partialorder %v2404_v41, 0.0  ;;  %v12398_v22 = vld [vmem:[%s17150_s3 + $0x68] ss:$0 sps:$4 sm:$0xff]  }
 0x7ac   : > { %3546 = vrot.lane.b32.xlu1 %v3523_v36, %s17152_s20  ;;  %1988 = vrot.lane.b32.xlu0 %v1970_v11, %s17148_s0  ;;  %v2448_v43 = vsel %vm2432_vm9, %v2404_v41, %v2440_v27  ;;  %v3964_v17 = vsel %vm2899_vm13, %v12398_v22, 0  ;;  %v12400_v11 = vld [vmem:[%s17150_s3 + $0x58] sm:$0xff]   ;;  %v12401_v36 = vld [vmem:[%s17150_s3 + $0x50] sm:$0xff]   ;;  %vm2434_vm9 = vcmp.ge.f32.partialorder %v14024_v31, 0.0 }
 0x7ad   : > { %3971 = vmatpush1.bf16.msra.mxu0 %v12392_v20 }
 0x7ae   : > { %3972 = vmatprep.subr.bf16.mxu0 %v12691_v1 }
 0x7b0   : > { %1990 = vrot.lane.b32.xlu1 %v1971_v26, %s17148_s0  ;;  %1992 = vrot.lane.b32.xlu0 %v1972_v51, %s17148_s0 }
 0x7b4   : > { %1994 = vrot.lane.b32.xlu1 %v1973_v61, %s17148_s0  ;;  %2463 = vrot.lane.b32.xlu0 %v2447_v39, %s17148_s0 }
 0x7b8   : > { %2465 = vrot.lane.b32.xlu1 %v2448_v43, %s17148_s0  ;;  %3724 = vrot.lane.b32.xlu0 %v13864_v13, %s17153_s1 }
 0x7bc   : > { %3700 = vrot.lane.b32.xlu0 %v13854_v18, %s17154_s17 }
 0x7c0   : > { %3712 = vrot.lane.b32.xlu0 %v13859_v32, %s17149_s23 }
 0x7c4   : > { %3678 = vrot.lane.b32.xlu0 %v13859_v32, %s17152_s20  ;;  %v12393_v32 = vld [vmem:[%s17150_s3 + $0x20] sm:$0xff]  }
 0x7c5   : > { %3973 = vmatpush1.bf16.msra.mxu0 %v12393_v32 }
 0x7c6   : > { %3974 = vmatprep.subr.bf16.mxu0 %v12691_v1 }
 0x7c9   : > { %3975 = vmatpush1.bf16.msra.mxu0 %v12394_v42 }
 0x7ca   : > { %3976 = vmatprep.subr.bf16.mxu0 %v12691_v1 }
 0x7cd   : > { %3977 = vmatpush1.bf16.msra.mxu0 %v12395_v25  ;;  %v3653_v25 = vld [vmem:[#allocation2 + $0x129] sm:$0xff] }
 0x7ce   : > { %3978 = vmatprep.subr.bf16.mxu0 %v12691_v1 }
 0x7d1   : > { %3979 = vmatpush1.bf16.msra.mxu0 %v12396_v56  ;;  %v2441_v56 = vmul.f32 0.2, %v14022_v49 }
 0x7d2   : > { %3980 = vmatprep.subr.bf16.mxu0 %v12691_v1 }
 0x7d5   : > { %3981 = vmatpush1.bf16.msra.mxu0 %v12397_v12 }
 0x7d6   : > { %3986 = vmatprep.subr.bf16.mxu0 %v12691_v1 }
 0x7d9   : > { %3987 = vmatpush2.bf16.msra.mxu0 %v3964_v17  ;;  %v2445_v17 = vmul.f32 0.2, %v14030_v63 }
 0x7da   : > { %3988 = vmatprep.subr.bf16.mxu0 %v12691_v1 }
 0x7dd   : > { %3989 = vmatpush2.bf16.msra.mxu0 %v12399_v16 }
 0x7de   : > { %3990 = vmatprep.subr.bf16.mxu0 %v12691_v1 }
 0x7e1   : > { %3991 = vmatpush2.bf16.msra.mxu0 %v12400_v11  ;;  %v2444_v11 = vmul.f32 0.2, %v14028_v55 }
 0x7e2   : > { %3992 = vmatprep.subr.bf16.mxu0 %v12691_v1 }
 0x7e5   : > { %3993 = vmatpush2.bf16.msra.mxu0 %v12401_v36  ;;  %v2977_v36 = vmul.f32 0.2, %v13695_v19 }
 0x7e6   : > { %3994 = vmatprep.subr.bf16.mxu0 %v12691_v1 }
 0x81a   : > { %v3545_v47 = vpop.permute.xlu0 %3544 }
 0x81b   : > { %3562 = vst.msk [vmem:[#allocation2 + $0xc1] sm:$0xff] %vm3024_vm11, %v3545_v47  ;;  %v3630_v47 = vld [vmem:[#allocation2 + $0x122] sm:$0xff] }
 0x81e   : > { %v3547_v60 = vpop.permute.xlu1 %3546  ;;  %v1989_v62 = vpop.permute.xlu0 %1988 }
 0x81f   : > { %3563 = vst.msk [vmem:[#allocation2 + $0xc9] sm:$0xff] %vm3024_vm11, %v3547_v60  ;;  %v3631_v60 = vld [vmem:[#allocation2 + $0x12a] sm:$0xff] }
 0x820   : > { %2010 = vst.msk [vmem:[#allocation2 + $0xf1] sm:$0xff] %vm1049_vm10, %v1989_v62  ;;  %v3635_v62 = vpack.c.bf16 %v3631_v60, %v3630_v47 }
 0x822   : > { %v1991_v2 = vpop.permute.xlu1 %1990  ;;  %v1993_v0 = vpop.permute.xlu0 %1992  ;;  %v3576_v26 = vld [vmem:[#allocation2 + $0xc1] sm:$0xff] }
 0x823   : > { %2011 = vst.msk [vmem:[#allocation2 + $0xf9] sm:$0xff] %vm1049_vm10, %v1991_v2  ;;  %2012 = vst.msk [vmem:[#allocation2 + $0x109] sm:$0xff] %vm1049_vm10, %v1993_v0  ;;  %v3652_v2 = vld [vmem:[#allocation2 + $0x121] sm:$0xff] }
 0x824   : > { %v3658_v0 = vpack.c.bf16 %v3653_v25, %v3652_v2 }
 0x826   : > { %v1995_v57 = vpop.permute.xlu1 %1994  ;;  %v2464_v35 = vpop.permute.xlu0 %2463  ;;  %v3577_v30 = vld [vmem:[#allocation2 + $0xc9] sm:$0xff] }
 0x827   : > { %2013 = vst.msk [vmem:[#allocation2 + $0x111] sm:$0xff] %vm1049_vm10, %v1995_v57  ;;  %2487 = vst.msk [vmem:[#allocation2 + $0x139] sm:$0xff] %vm1049_vm10, %v2464_v35  ;;  %v3636_v29 = vld [vmem:[#allocation2 + $0xf0] sm:$0xff]  ;;  %v3584_v37 = vpack.c.bf16 %v3577_v30, %v3576_v26  ;;  %v3588_v20 = vld [vmem:[#allocation2 + $0xc2] sm:$0xff]  ;;  %v2443_v57 = vmul.f32 0.2, %v14026_v24  ;;  %v2449_v35 = vsel %vm2433_vm5, %v14022_v49, %v2441_v56  ;;  %v3470_v30 = vadd.f32 %v14049_v14, %v14034_v6 }
 0x828   : > { %v3648_v21 = vld [vmem:[#allocation2 + $0xf1] sm:$0xff]  ;;  %vm2437_vm5 = vcmp.ge.f32.partialorder %v14030_v63, 0.0 }
 0x829   : > { %v3589_v32 = vld [vmem:[#allocation2 + $0xca] sm:$0xff]  ;;  %v3508_v26 = vmul.f32 0.2, %v3470_v30 }
 0x82a   : > { %v2466_v28 = vpop.permute.xlu1 %2465  ;;  %v3637_v45 = vld [vmem:[#allocation2 + $0xf8] sm:$0xff]  ;;  %v3638_v48 = vld [vmem:[#allocation2 + $0x108] sm:$0xff]  ;;  %v3596_v42 = vpack.c.bf16 %v3589_v32, %v3588_v20 }
 0x82b   : > { %v3626_v5 = vld [vmem:[#allocation2 + $0xf2] sm:$0xff]  ;;  %v3627_v40 = vld [vmem:[#allocation2 + $0xfa] sm:$0xff]  ;;  %2488 = vst.msk [vmem:[#allocation2 + $0x141] sm:$0xff] %vm1049_vm10, %v2466_v28  ;;  %v14120_v52 = vpack.c.bf16 %v3637_v45, %v3636_v29  ;;  %v3650_v39 = vld [vmem:[#allocation2 + $0x109] sm:$0xff]  ;;  %v2976_v28 = vmul.f32 0.2, %v13690_v34  ;;  %v2451_v45 = vsel %vm2435_vm12, %v14026_v24, %v2443_v57 }
 0x82c   : > { %v3633_v38 = vpack.c.bf16 %v3627_v40, %v3626_v5  ;;  %v3649_v15 = vld [vmem:[#allocation2 + $0xf9] sm:$0xff]  ;;  %vm2972_vm12 = vcmp.ge.f32.partialorder %v13714_v46, 0.0 }
 0x82d   : > { %3736 = vrot.lane.b32.xlu1 %v14120_v52, %s17148_s0  ;;  %v3656_v9 = vpack.c.bf16 %v3649_v15, %v3648_v21  ;;  %v2984_v15 = vsel %vm2968_vm1, %v13690_v34, %v2976_v28  ;;  %v2980_v34 = vmul.f32 0.2, %v13714_v46  ;;  %vm2436_vm1 = vcmp.ge.f32.partialorder %v14028_v55, 0.0  ;;  %v3565_v28 = vld [vmem:[#allocation2 + $0xc8] sm:$0xff] }
 0x82e   : > { %3726 = vrot.lane.b32.xlu0 %v3633_v38, %s17153_s1  ;;  %v3639_v59 = vld [vmem:[#allocation2 + $0x110] sm:$0xff]  ;;  %v3654_v49 = vld [vmem:[#allocation2 + $0x139] sm:$0xff] }
 0x82f   : > { %v14150_v41 = vpack.c.bf16 %v3639_v59, %v3638_v48  ;;  %v3651_v51 = vld [vmem:[#allocation2 + $0x111] sm:$0xff]  ;;  %v2453_v59 = vsel %vm2437_vm5, %v14030_v63, %v2445_v17  ;;  %v2988_v48 = vsel %vm2972_vm12, %v13714_v46, %v2980_v34  ;;  %vm3500_vm5 = vcmp.ge.f32.partialorder %v3470_v30, 0.0 }
 0x830   : > { %v3628_v27 = vld [vmem:[#allocation2 + $0x10a] sm:$0xff]  ;;  %v3629_v61 = vld [vmem:[#allocation2 + $0x112] sm:$0xff]  ;;  %v3657_v43 = vpack.c.bf16 %v3651_v51, %v3650_v39  ;;  %v3516_v63 = vsel %vm3500_vm5, %v3470_v30, %v3508_v26  ;;  %v2446_v46 = vmul.f32 0.2, %v14032_v4  ;;  %vm2438_vm12 = vcmp.ge.f32.partialorder %v14032_v4, 0.0 }
 0x831   : > { %3748 = vrot.lane.b32.xlu1 %v3656_v9, %s17155_s29  ;;  %v3634_v33 = vpack.c.bf16 %v3629_v61, %v3628_v27  ;;  %v2981_v51 = vmul.f32 0.2, %v13716_v10  ;;  %vm17167_vm5 = vcmask 195584  }
 0x832   : > { %3702 = vrot.lane.b32.xlu0 %v14120_v52, %s17154_s17  ;;  %v3643_v12 = vld [vmem:[#allocation2 + $0x140] sm:$0xff]  ;;  %v2454_v27 = vsel %vm2438_vm12, %v14032_v4, %v2446_v46  ;;  %vm17169_vm12 = vcmask 588800  }
 0x833   : > { %v3655_v5 = vld [vmem:[#allocation2 + $0x141] sm:$0xff] }
 0x834   : > { %v14195_v40 = vpack.c.bf16 %v3655_v5, %v3654_v49  ;;  %v3666_v22 = vld [vmem:[#allocation2 + $0x13a] sm:$0xff]  ;;  %v3667_v21 = vld [vmem:[#allocation2 + $0x142] sm:$0xff] }
 0x835   : > { %3760 = vrot.lane.b32.xlu1 %v3633_v38, %s17145_s26  ;;  %v14203_v24 = vpack.c.bf16 %v3667_v21, %v3666_v22  ;;  %v3564_v49 = vld [vmem:[#allocation2 + $0xc0] sm:$0xff] }
 0x836   : > { %3714 = vrot.lane.b32.xlu0 %v3656_v9, %s17149_s23 }
 0x839   : > { %3690 = vrot.lane.b32.xlu1 %v13864_v13, %s17144_s30  ;;  %v12402_v13 = vld [vmem:[%s17150_s3 + $0x48] sm:$0xff]  }
 0x83a   : > { %3680 = vrot.lane.b32.xlu0 %v3656_v9, %s17152_s20  ;;  %3995 = vmatpush2.bf16.msra.mxu0 %v12402_v13  ;;  %v2442_v9 = vmul.f32 0.2, %v14024_v31  ;;  %v3725_v13 = vpop.permute.xlu0 %3724 }
 0x83b   : > { %3996 = vmatprep.subr.bf16.mxu0 %v12691_v1 }
 0x83d   : > { %3738 = vrot.lane.b32.xlu1 %v14150_v41, %s17148_s0 }
 0x83e   : > { %3676 = vrot.lane.b32.xlu0 %v3584_v37, %s17152_s20  ;;  %3997 = vmatpush2.bf16.msra.mxu0 %v12403_v7  ;;  %v2452_v37 = vsel %vm2436_vm1, %v14028_v55, %v2444_v11  ;;  %vm2973_vm1 = vcmp.ge.f32.partialorder %v13716_v10, 0.0 }
 0x841   : > { %3750 = vrot.lane.b32.xlu1 %v3657_v43, %s17155_s29 }
 0x842   : > { %3728 = vrot.lane.b32.xlu0 %v3634_v33, %s17153_s1 }
 0x845   : > { %3762 = vrot.lane.b32.xlu1 %v3634_v33, %s17145_s26 }
 0x846   : > { %3704 = vrot.lane.b32.xlu0 %v14150_v41, %s17154_s17 }
 0x849   : > { %3692 = vrot.lane.b32.xlu1 %v3633_v38, %s17144_s30  ;;  %v2978_v38 = vmul.f32 0.2, %v13702_v50 }
 0x84a   : > { %3716 = vrot.lane.b32.xlu0 %v3657_v43, %s17149_s23 }
 0x84b   : > { %v2986_v16 = vsel %vm2970_vm8, %v13702_v50, %v2978_v38  ;;  %v2450_v50 = vsel %vm2434_vm9, %v14024_v31, %v2442_v9  ;;  %vm2969_vm8 = vcmp.ge.f32.partialorder %v13695_v19, 0.0  ;;  %v2979_v31 = vmul.f32 0.2, %v13710_v53 }
 0x84c   : > { %v2985_v6 = vsel %vm2969_vm8, %v13695_v19, %v2977_v36  ;;  %vm2971_vm9 = vcmp.ge.f32.partialorder %v13710_v53, 0.0  ;;  %v3473_v19 = vadd.f32 %v14049_v14, %v14036_v8  ;;  %v3572_v38 = vpack.c.bf16 %v3565_v28, %v3564_v49 }
 0x84d   : > { %3688 = vrot.lane.b32.xlu1 %v3596_v42, %s17144_s30  ;;  %v2987_v55 = vsel %vm2971_vm9, %v13710_v53, %v2979_v31  ;;  %v2989_v53 = vsel %vm2973_vm1, %v13716_v10, %v2981_v51  ;;  %vm17168_vm9 = vmmov %vm17167_vm5  ;;  %vm17170_vm1 = vcmask 982016  }
 0x84e   : > { %3682 = vrot.lane.b32.xlu0 %v3657_v43, %s17152_s20  ;;  %v3509_v61 = vmul.f32 0.2, %v3473_v19  ;;  %vm3501_vm8 = vcmp.ge.f32.partialorder %v3473_v19, 0.0  ;;  %v3701_v43 = vpop.permute.xlu0 %3700 }
 0x850   : > { %v3517_v39 = vsel %vm3501_vm8, %v3473_v19, %v3509_v61  ;;  %vm17171_vm8 = vmmov %vm17169_vm12 }
 0x851   : > { %3740 = vrot.lane.b32.xlu1 %v13871_v58, %s17148_s0 }
 0x852   : > { %3730 = vrot.lane.b32.xlu0 %v3635_v62, %s17153_s1 }
 0x855   : > { %3752 = vrot.lane.b32.xlu1 %v3658_v0, %s17155_s29 }
 0x856   : > { %3706 = vrot.lane.b32.xlu0 %v13871_v58, %s17154_s17  ;;  %v3642_v58 = vld [vmem:[#allocation2 + $0x138] sm:$0xff] }
 0x857   : > { %v14187_v29 = vpack.c.bf16 %v3643_v12, %v3642_v58 }
 0x859   : > { %3764 = vrot.lane.b32.xlu1 %v3635_v62, %s17145_s26 }
 0x85a   : > { %3718 = vrot.lane.b32.xlu0 %v3658_v0, %s17149_s23 }
 0x85d   : > { %3694 = vrot.lane.b32.xlu1 %v3634_v33, %s17144_s30  ;;  %v3713_v33 = vpop.permute.xlu0 %3712 }
 0x85e   : > { %2467 = vrot.lane.b32.xlu0 %v2449_v35, %s17148_s0 }
 0x861   : > { %3742 = vrot.lane.b32.xlu1 %v14187_v29, %s17148_s0  ;;  %v3679_v7 = vpop.permute.xlu0 %3678 }
 0x862   : > { %2471 = vrot.lane.b32.xlu0 %v2451_v45, %s17148_s0  ;;  %v3773_v17 = vsel %vm17168_vm9, %v13854_v18, %v3679_v7  ;;  %vm17172_vm9 = vmmov %vm17170_vm1 }
 0x865   : > { %3754 = vrot.lane.b32.xlu1 %v14195_v40, %s17155_s29 }
 0x866   : > { %3000 = vrot.lane.b32.xlu0 %v2984_v15, %s17152_s20 }
 0x869   : > { %3766 = vrot.lane.b32.xlu1 %v14203_v24, %s17145_s26 }
 0x86a   : > { %3004 = vrot.lane.b32.xlu0 %v2986_v16, %s17152_s20 }
 0x86d   : > { %2469 = vrot.lane.b32.xlu1 %v2450_v50, %s17148_s0 }
 0x86e   : > { %2475 = vrot.lane.b32.xlu0 %v2453_v59, %s17148_s0 }
 0x871   : > { %2473 = vrot.lane.b32.xlu1 %v2452_v37, %s17148_s0 }
 0x872   : > { %3008 = vrot.lane.b32.xlu0 %v2988_v48, %s17152_s20 }
 0x875   : > { %3002 = vrot.lane.b32.xlu1 %v2985_v6, %s17152_s20 }
 0x876   : > { %3532 = vrot.lane.b32.xlu0 %v3516_v63, %s17152_s20 }
 0x879   : > { %3006 = vrot.lane.b32.xlu1 %v2987_v55, %s17152_s20 }
 0x87a   : > { %4255 = vrot.lane.b32.xlu0 %v14203_v24, %s17153_s1 }
 0x87d   : > { %2477 = vrot.lane.b32.xlu1 %v2454_v27, %s17148_s0 }
 0x881   : > { %3010 = vrot.lane.b32.xlu1 %v2989_v53, %s17152_s20 }
 0x885   : > { %3534 = vrot.lane.b32.xlu1 %v3517_v39, %s17152_s20 }
 0x89f   : > { %v3737_v8 = vpop.permute.xlu1 %3736 }
 0x8a0   : > { %v3727_v20 = vpop.permute.xlu0 %3726  ;;  %v3817_v42 = vsel %vm542_vm2, %v3725_v13, %v3737_v8 }
 0x8a3   : > { %v3749_v4 = vpop.permute.xlu1 %3748 }
 0x8a4   : > { %v3703_v32 = vpop.permute.xlu0 %3702  ;;  %v3825_v47 = vsel %vm2758_vm14, %v3817_v42, %v3749_v4 }
 0x8a7   : > { %v3761_v60 = vpop.permute.xlu1 %3760 }
 0x8a8   : > { %v3715_v10 = vpop.permute.xlu0 %3714  ;;  %v3833_v62 = vsel %vm797_vm4, %v3825_v47, %v3761_v60 }
 0x8a9   : > { %11475 = vmatprep.mubr.msk.bf16.mxu0 %vm2890_vm15, %v3833_v62 }
 0x8ab   : > { %v3691_v25 = vpop.permute.xlu1 %3690 }
 0x8ac   : > { %v3681_v2 = vpop.permute.xlu0 %3680  ;;  %v3783_v34 = vsel %vm453_vm0, %v3773_v17, %v3691_v25 }
 0x8ad   : > { %v3791_v37 = vsel %vm17171_vm8, %v3783_v34, %v3703_v32  ;;  %v3776_v6 = vsel %vm17167_vm5, %v14120_v52, %v3681_v2 }
 0x8ae   : > { %v3799_v63 = vsel %vm815_vm6, %v3791_v37, %v3715_v10 }
 0x8af   : > { %v3739_v0 = vpop.permute.xlu1 %3738  ;;  %v3808_v61 = vsel %vm17172_vm9, %v3799_v63, %v3727_v20  ;;  %v12404_v63 = vld [vmem:[%s17072_s4 + $0x78] sm:$0xff]  }
 0x8b0   : > { %v3677_v56 = vpop.permute.xlu0 %3676  ;;  %v3819_v11 = vsel %vm542_vm2, %v3727_v20, %v3739_v0  ;;  %11734 = vmatprep.subr.bf16.mxu0 %v12404_v63 }
 0x8b1   : > { %v3770_v15 = vsel %vm17167_vm5, %v3572_v38, %v3677_v56 }
 0x8b3   : > { %v3751_v57 = vpop.permute.xlu1 %3750 }
 0x8b4   : > { %v3729_v35 = vpop.permute.xlu0 %3728  ;;  %v3827_v59 = vsel %vm2758_vm14, %v3819_v11, %v3751_v57 }
 0x8b7   : > { %v3763_v12 = vpop.permute.xlu1 %3762 }
 0x8b8   : > { %v3705_v58 = vpop.permute.xlu0 %3704  ;;  %v3835_v48 = vsel %vm797_vm4, %v3827_v59, %v3763_v12 }
 0x8bb   : > { %v3693_v45 = vpop.permute.xlu1 %3692 }
 0x8bc   : > { %v3717_v5 = vpop.permute.xlu0 %3716  ;;  %v3785_v46 = vsel %vm453_vm0, %v3776_v6, %v3693_v45  ;;  %v12405_v6 = vld [vmem:[%s17072_s4 + $0x38] sm:$0xff]  }
 0x8bf   : > { %v3689_v22 = vpop.permute.xlu1 %3688 }
 0x8c0   : > { %v3683_v21 = vpop.permute.xlu0 %3682  ;;  %v3781_v9 = vsel %vm453_vm0, %v3770_v15, %v3689_v22 }
 0x8c1   : > { %v3789_v16 = vsel %vm17169_vm12, %v3781_v9, %v3701_v43  ;;  %vm17173_vm12 = vmmov %vm17171_vm8 }
 0x8c2   : > { %v3797_v30 = vsel %vm815_vm6, %v3789_v16, %v3713_v33  ;;  %v3793_v39 = vsel %vm17173_vm12, %v3785_v46, %v3705_v58  ;;  %vm17175_vm8 = vmmov %vm17172_vm9 }
 0x8c3   : > { %v3741_v50 = vpop.permute.xlu1 %3740  ;;  %v3805_v26 = vsel %vm17170_vm1, %v3797_v30, %v3725_v13  ;;  %v3801_v52 = vsel %vm815_vm6, %v3793_v39, %v3717_v5  ;;  %vm17174_vm1 = vmmov %vm17167_vm5  ;;  %v12407_v39 = vld [vmem:[%s17072_s4 + $0x30] sm:$0xff]  }
 0x8c4   : > { %v3731_v36 = vpop.permute.xlu0 %3730  ;;  %3999 = vmatmul.mubr.bf16.vlgmr.msra.gmra.mxu0 %v3805_v26  ;;  %v3821_v55 = vsel %vm542_vm2, %v3729_v35, %v3741_v50  ;;  %v3779_v33 = vsel %vm17174_vm1, %v14150_v41, %v3683_v21  ;;  %v3811_v20 = vsel %vm17175_vm8, %v3801_v52, %v3729_v35  ;;  %vm17176_vm5 = vmmov %vm17173_vm12 }
 0x8c5   : > { %11476 = vmatprep.mubr.msk.bf16.mxu0 %vm2890_vm15, %v3835_v48  ;;  %vm17177_vm9 = vmmov %vm17175_vm8  ;;  %11735 = vmatpush3.bf16.msra.mxu0 %v12405_v6 }
 0x8c7   : > { %v3753_v18 = vpop.permute.xlu1 %3752 }
 0x8c8   : > { %v3707_v31 = vpop.permute.xlu0 %3706  ;;  %v3829_v51 = vsel %vm2758_vm14, %v3821_v55, %v3753_v18 }
 0x8cb   : > { %v3765_v19 = vpop.permute.xlu1 %3764 }
 0x8cc   : > { %v3719_v27 = vpop.permute.xlu0 %3718  ;;  %v3837_v53 = vsel %vm797_vm4, %v3829_v51, %v3765_v19  ;;  %4007 = vmatmul.mubr.bf16.gmra.mxu0 %v3808_v61 }
 0x8cd   : > { %11477 = vmatprep.mubr.msk.bf16.mxu0 %vm2890_vm15, %v3837_v53  ;;  %v12406_v53 = vld [vmem:[%s17072_s4 + $0x70] sm:$0xff]  }
 0x8ce   : > { %11736 = vmatprep.subr.bf16.mxu0 %v12406_v53 }
 0x8cf   : > { %v3695_v13 = vpop.permute.xlu1 %3694  ;;  %11737 = vmatpush3.bf16.msra.mxu0 %v12407_v39 }
 0x8d0   : > { %v2468_v43 = vpop.permute.xlu0 %2467  ;;  %v3787_v4 = vsel %vm453_vm0, %v3779_v33, %v3695_v13  ;;  %v12409_v33 = vld [vmem:[%s17072_s4 + $0x28] sm:$0xff]  }
 0x8d1   : > { %2489 = vst.msk [vmem:[#allocation2 + $0x151] sm:$0xff] %vm1049_vm10, %v2468_v43  ;;  %v3795_v32 = vsel %vm17176_vm5, %v3787_v4, %v3707_v31  ;;  %vm17178_vm5 = vcmask 195584  }
 0x8d2   : > { %v3803_v10 = vsel %vm815_vm6, %v3795_v32, %v3719_v27  ;;  %v12410_v32 = vld [vmem:[%s17072_s4 + $0x60] sm:$0xff]  }
 0x8d3   : > { %v3743_v7 = vpop.permute.xlu1 %3742  ;;  %v3814_v0 = vsel %vm17177_vm9, %v3803_v10, %v3731_v36  ;;  %v12413_v10 = vld [vmem:[%s17072_s4 + $0x18] sm:$0xff]   ;;  %vm17179_vm9 = vcmask 588800  }
 0x8d4   : > { %v2472_v8 = vpop.permute.xlu0 %2471  ;;  %4015 = vmatmul.mubr.bf16.gmra.mxu0 %v3811_v20  ;;  %v3823_v60 = vsel %vm542_vm2, %v3731_v36, %v3743_v7 }
 0x8d5   : > { %2491 = vst.msk [vmem:[#allocation2 + $0x169] sm:$0xff] %vm1049_vm10, %v2472_v8 }
 0x8d7   : > { %v3755_v42 = vpop.permute.xlu1 %3754 }
 0x8d8   : > { %v3001_v47 = vpop.permute.xlu0 %3000  ;;  %v3831_v41 = vsel %vm2758_vm14, %v3823_v60, %v3755_v42  ;;  %v4167_v45 = vld [vmem:[#allocation2 + $0x150] sm:$0xff]  ;;  %v12411_v42 = vld [vmem:[%s17072_s4 + $0x20] sm:$0xff]   ;;  %v12412_v60 = vld [vmem:[%s17072_s4 + $0x58] sm:$0xff]  }
 0x8d9   : > { %3025 = vst.msk [vmem:[#allocation2 + $0x19] sm:$0xff] %vm3024_vm11, %v3001_v47  ;;  %v4179_v7 = vld [vmem:[#allocation2 + $0x151] sm:$0xff] }
 0x8db   : > { %v3767_v62 = vpop.permute.xlu1 %3766 }
 0x8dc   : > { %v3005_v25 = vpop.permute.xlu0 %3004  ;;  %v3839_v2 = vsel %vm797_vm4, %v3831_v41, %v3767_v62  ;;  %v12414_v62 = vld [vmem:[%s17072_s4 + $0x50] sm:$0xff]  }
 0x8dd   : > { %3027 = vst.msk [vmem:[#allocation2 + $0x31] sm:$0xff] %vm3024_vm11, %v3005_v25  ;;  %11478 = vmatprep.mubr.msk.bf16.mxu0 %vm2890_vm15, %v3839_v2  ;;  %v12415_v25 = vld [vmem:[%s17072_s4 + $0x10] sm:$0xff]   ;;  %v4169_v2 = vld [vmem:[#allocation2 + $0x168] sm:$0xff] }
 0x8de   : > { %4023 = vmatmul.mubr.bf16.gmra.mxu0 %v3814_v0 }
 0x8df   : > { %v2470_v56 = vpop.permute.xlu1 %2469 }
 0x8e0   : > { %v2476_v57 = vpop.permute.xlu0 %2475  ;;  %2490 = vst.msk [vmem:[#allocation2 + $0x159] sm:$0xff] %vm1049_vm10, %v2470_v56  ;;  %v12416_v56 = vld [vmem:[%s17072_s4 + $0x48] sm:$0xff]  }
 0x8e1   : > { %2493 = vst.msk [vmem:[#allocation2 + $0x181] sm:$0xff] %vm1049_vm10, %v2476_v57  ;;  %v12417_v57 = vld [vmem:[%s17072_s4 + $0x8] sm:$0xff]  }
 0x8e3   : > { %v2474_v35 = vpop.permute.xlu1 %2473 }
 0x8e4   : > { %v3009_v12 = vpop.permute.xlu0 %3008  ;;  %2492 = vst.msk [vmem:[#allocation2 + $0x171] sm:$0xff] %vm1049_vm10, %v2474_v35  ;;  %v4710_v6 = vld [vmem:[#allocation2 + $0x31] sm:$0xff] }
 0x8e5   : > { %3029 = vst.msk [vmem:[#allocation2 + $0x49] sm:$0xff] %vm3024_vm11, %v3009_v12 }
 0x8e7   : > { %v3003_v58 = vpop.permute.xlu1 %3002  ;;  %v4168_v5 = vld [vmem:[#allocation2 + $0x158] sm:$0xff] }
 0x8e8   : > { %v3533_v28 = vpop.permute.xlu0 %3532  ;;  %3026 = vst.msk [vmem:[#allocation2 + $0x21] sm:$0xff] %vm3024_vm11, %v3003_v58  ;;  %v14298_v49 = vpack.c.bf16 %v4168_v5, %v4167_v45  ;;  %v4180_v52 = vld [vmem:[#allocation2 + $0x159] sm:$0xff] }
 0x8e9   : > { %3556 = vst.msk [vmem:[#allocation2 + $0x79] sm:$0xff] %vm3024_vm11, %v3533_v28  ;;  %v14342_v8 = vpack.c.bf16 %v4180_v52, %v4179_v7  ;;  %v4191_v20 = vld [vmem:[#allocation2 + $0x152] sm:$0xff]  ;;  %v4192_v4 = vld [vmem:[#allocation2 + $0x15a] sm:$0xff] }
 0x8ea   : > { %4267 = vrot.lane.b32.xlu1 %v14298_v49, %s17148_s0  ;;  %v4199_v47 = vpack.c.bf16 %v4192_v4, %v4191_v20  ;;  %v12418_v5 = vld [vmem:[%s17072_s4 + $0x40] sm:$0xff]  }
 0x8eb   : > { %v3007_v38 = vpop.permute.xlu1 %3006  ;;  %v4170_v41 = vld [vmem:[#allocation2 + $0x170] sm:$0xff] }
 0x8ec   : > { %3028 = vst.msk [vmem:[#allocation2 + $0x39] sm:$0xff] %vm3024_vm11, %v3007_v38  ;;  %v4182_v0 = vld [vmem:[#allocation2 + $0x171] sm:$0xff]  ;;  %v12419_v38 = vld [vmem:[%s17072_s4] sm:$0xff]  }
 0x8ed   : > { %v4193_v12 = vld [vmem:[#allocation2 + $0x16a] sm:$0xff]  ;;  %v4194_v58 = vld [vmem:[#allocation2 + $0x172] sm:$0xff] }
 0x8ef   : > { %v2478_v15 = vpop.permute.xlu1 %2477  ;;  %v4686_v28 = vld [vmem:[#allocation2 + $0x1a] sm:$0xff]  ;;  %v4687_v45 = vld [vmem:[#allocation2 + $0x22] sm:$0xff] }
 0x8f0   : > { %2494 = vst.msk [vmem:[#allocation2 + $0x189] sm:$0xff] %vm1049_vm10, %v2478_v15  ;;  %v4638_v15 = vld [vmem:[#allocation2 + $0x1] sm:$0xff] }
 0x8f1   : > { %v4641_v4 = vld [vmem:[#allocation2 + $0x21] sm:$0xff] }
 0x8f3   : > { %v3011_v22 = vpop.permute.xlu1 %3010  ;;  %v4688_v52 = vld [vmem:[#allocation2 + $0x32] sm:$0xff] }
 0x8f4   : > { %3030 = vst.msk [vmem:[#allocation2 + $0x51] sm:$0xff] %vm3024_vm11, %v3011_v22  ;;  %v4639_v22 = vld [vmem:[#allocation2 + $0x9] sm:$0xff] }
 0x8f7   : > { %v3535_v21 = vpop.permute.xlu1 %3534  ;;  %v4184_v39 = vld [vmem:[#allocation2 + $0x189] sm:$0xff] }
 0x8f8   : > { %3557 = vst.msk [vmem:[#allocation2 + $0x81] sm:$0xff] %vm3024_vm11, %v3535_v21  ;;  %v14396_v21 = vpack.c.bf16 %v4194_v58, %v4193_v12  ;;  %v4196_v7 = vld [vmem:[#allocation2 + $0x18a] sm:$0xff] }
 0x8f9   : > { %v12425_v12 = vld [vmem:[%s17150_s3 + $0x10] sm:$0xff]   ;;  %v12426_v58 = vld [vmem:[%s17150_s3 + $0x8] sm:$0xff]  }
 0x984   : > { %v14306_v9 = vpop.f32.mrf.mxu0 }
 0x986   : > { %v4002_v17 = vpop.f32.mrf.mxu0 }
 0x987   : > { %v4694_v17 = vpack.c.bf16 %v4687_v45, %v4686_v28  ;;  %v12427_v28 = vld [vmem:[%s17150_s3] sm:$0xff]   ;;  %v12428_v45 = vld [vmem:[%s17150_s3 + $0x68] ss:$0 sps:$4 sm:$0xff]  }
 0x988   : > { %v14308_v16 = vpop.f32.mrf.mxu0 }
 0x98a   : > { %v4005_v34 = vpop.f32.mrf.mxu0 }
 0x98b   : > { %v4699_v34 = vld [vmem:[#allocation2 + $0x38] sm:$0xff] }
 0x98c   : > { %v14310_v11 = vpop.f32.mrf.mxu0 }
 0x98e   : > { %v4010_v30 = vpop.f32.mrf.mxu0 }
 0x98f   : > { %v4646_v30 = vpack.c.bf16 %v4639_v22, %v4638_v15  ;;  %v12430_v15 = vld [vmem:[%s17150_s3 + $0x58] sm:$0xff]   ;;  %v12431_v22 = vld [vmem:[%s17150_s3 + $0x50] sm:$0xff]  }
 0x990   : > { %v14312_v59 = vpop.f32.mrf.mxu0 }
 0x992   : > { %v4013_v50 = vpop.f32.mrf.mxu0 }
 0x993   : > { %v4698_v50 = vld [vmem:[#allocation2 + $0x30] sm:$0xff] }
 0x994   : > { %v14314_v36 = vpop.f32.mrf.mxu0 }
 0x996   : > { %v4018_v26 = vpop.f32.mrf.mxu0 }
 0x997   : > { %v4650_v26 = vld [vmem:[#allocation2 + $0x2] sm:$0xff] }
 0x998   : > { %v14316_v48 = vpop.f32.mrf.mxu0 }
 0x99a   : > { %v4021_v37 = vpop.f32.mrf.mxu0 }
 0x99b   : > { %v4651_v37 = vld [vmem:[#allocation2 + $0xa] sm:$0xff] }
 0x99c   : > { %v4658_v63 = vpack.c.bf16 %v4651_v37, %v4650_v26 }
 0x99e   : > { %v4024_v18 = vpop.f32.mrf.mxu0 }
 0x99f   : > { %v4025_v31 = vadd.f32 %v14049_v14, %v4024_v18  ;;  %v14401_v18 = vpack.c.bf16 %v4699_v34, %v4698_v50  ;;  %v14508_v34 = vpop.permute.xlu0 %4255 }
 0x9a0   : > { %v4026_v46 = vpop.f32.mrf.mxu0 }
 0x9a1   : > { %vm4037_vm10 = vcmp.ge.f32.partialorder %v4025_v31, 0.0  ;;  %v4045_v55 = vmul.f32 0.2, %v4025_v31 }
 0x9a2   : > { %v4027_v51 = vpop.f32.mrf.mxu0 }
 0x9a3   : > { %v4028_v19 = vadd.f32 %v14049_v14, %v4027_v51  ;;  %v4053_v27 = vsel %vm4037_vm10, %v4025_v31, %v4045_v55  ;;  %v12408_v14 = vld [vmem:[%s17072_s4 + $0x68] sm:$0xff]   ;;  %v4711_v31 = vld [vmem:[#allocation2 + $0x39] sm:$0xff]  ;;  %vm17180_vm10 = vcmask 982016  }
 0x9a4   : > { %v4029_v61 = vpop.f32.mrf.mxu0  ;;  %4075 = vrot.lane.b32.xlu0 %v4053_v27, %s17152_s20  ;;  %11738 = vmatprep.subr.bf16.mxu0 %v12408_v14  ;;  %v14406_v46 = vpack.c.bf16 %v4711_v31, %v4710_v6  ;;  %v4663_v55 = vld [vmem:[#allocation2 + $0x20] sm:$0xff]  ;;  %v4662_v51 = vld [vmem:[#allocation2 + $0x18] sm:$0xff]  ;;  %v4172_v27 = vld [vmem:[#allocation2 + $0x188] sm:$0xff] }
 0x9a5   : > { %vm4038_vm12 = vcmp.ge.f32.partialorder %v4028_v19, 0.0  ;;  %v4046_v13 = vmul.f32 0.2, %v4028_v19  ;;  %11739 = vmatpush3.bf16.msra.mxu0 %v12409_v33  ;;  %v4171_v61 = vld [vmem:[#allocation2 + $0x180] sm:$0xff] }
 0x9a6   : > { %11740 = vmatprep.subr.bf16.mxu0 %v12410_v32  ;;  %v14420_v53 = vpack.c.bf16 %v4172_v27, %v4171_v61  ;;  %v4689_v14 = vld [vmem:[#allocation2 + $0x3a] sm:$0xff]  ;;  %v4195_v33 = vld [vmem:[#allocation2 + $0x182] sm:$0xff]  ;;  %v4701_v32 = vld [vmem:[#allocation2 + $0x50] sm:$0xff] }
 0x9a7   : > { %v4054_v43 = vsel %vm4038_vm12, %v4028_v19, %v4046_v13  ;;  %v14411_v19 = vpack.c.bf16 %v4663_v55, %v4662_v51  ;;  %v4183_v13 = vld [vmem:[#allocation2 + $0x181] sm:$0xff]  ;;  %v14434_v20 = vpack.c.bf16 %v4196_v7, %v4195_v33  ;;  %vm17181_vm12 = vmmov %vm17178_vm5 }
 0x9a8   : > { %4231 = vrot.lane.b32.xlu0 %v14187_v29, %s17154_s17  ;;  %4077 = vrot.lane.b32.xlu1 %v4054_v43, %s17152_s20  ;;  %v14426_v43 = vpack.c.bf16 %v4184_v39, %v4183_v13  ;;  %v12433_v31 = vld [vmem:[%s17150_s3 + $0x40] sm:$0xff]  }
 0x9a9   : > { %11741 = vmatpush3.bf16.msra.mxu0 %v12411_v42  ;;  %v12420_v42 = vld [vmem:[%s17150_s3 + $0x38] sm:$0xff]  }
 0x9aa   : > { %11742 = vmatprep.subr.bf16.mxu0 %v12412_v60  ;;  %v4700_v60 = vld [vmem:[#allocation2 + $0x48] sm:$0xff]  ;;  %4498 = vmatpush1.bf16.msra.mxu1 %v12420_v42 }
 0x9ab   : > { %4499 = vmatprep.subr.bf16.mxu1 %v12691_v1 }
 0x9ac   : > { %4243 = vrot.lane.b32.xlu0 %v14195_v40, %s17149_s23  ;;  %4279 = vrot.lane.b32.xlu1 %v14342_v8, %s17155_s29 }
 0x9ad   : > { %11743 = vmatpush3.bf16.msra.mxu0 %v12413_v10 }
 0x9ae   : > { %11744 = vmatprep.subr.bf16.mxu0 %v12414_v62  ;;  %v12421_v62 = vld [vmem:[%s17150_s3 + $0x30] sm:$0xff]  }
 0x9af   : > { %4500 = vmatpush1.bf16.msra.mxu1 %v12421_v62 }
 0x9b0   : > { %4209 = vrot.lane.b32.xlu0 %v14195_v40, %s17152_s20  ;;  %4291 = vrot.lane.b32.xlu1 %v4199_v47, %s17145_s26  ;;  %v14372_v40 = vpack.c.bf16 %v4170_v41, %v4169_v2  ;;  %v14445_v41 = vpack.c.bf16 %v4701_v32, %v4700_v60  ;;  %v4712_v2 = vld [vmem:[#allocation2 + $0x49] sm:$0xff]  ;;  %v4174_v60 = vld [vmem:[#allocation2 + $0x1a0] sm:$0xff] }
 0x9b1   : > { %11745 = vmatpush3.bf16.msra.mxu0 %v12415_v25  ;;  %v4713_v25 = vld [vmem:[#allocation2 + $0x51] sm:$0xff]  ;;  %4501 = vmatprep.subr.bf16.mxu1 %v12691_v1 }
 0x9b2   : > { %11746 = vmatprep.subr.bf16.mxu0 %v12416_v56  ;;  %v12422_v56 = vld [vmem:[%s17150_s3 + $0x28] sm:$0xff]  }
 0x9b3   : > { %4502 = vmatpush1.bf16.msra.mxu1 %v12422_v56  ;;  %v4185_v56 = vld [vmem:[#allocation2 + $0x199] sm:$0xff] }
 0x9b4   : > { %4221 = vrot.lane.b32.xlu1 %v14203_v24, %s17144_s30  ;;  %4257 = vrot.lane.b32.xlu0 %v4199_v47, %s17153_s1  ;;  %v4181_v24 = vld [vmem:[#allocation2 + $0x169] sm:$0xff] }
 0x9b5   : > { %v14384_v35 = vpack.c.bf16 %v4182_v0, %v4181_v24  ;;  %11747 = vmatpush3.bf16.msra.mxu0 %v12417_v57  ;;  %v14455_v0 = vpack.c.bf16 %v4713_v25, %v4712_v2  ;;  %v12423_v57 = vld [vmem:[%s17150_s3 + $0x20] sm:$0xff]   ;;  %4503 = vmatprep.subr.bf16.mxu1 %v12691_v1  ;;  %v12424_v24 = vld [vmem:[%s17150_s3 + $0x18] sm:$0xff]  }
 0x9b6   : > { %11748 = vmatprep.subr.bf16.mxu0 %v12418_v5  ;;  %v4495_v5 = vsel %vm2899_vm13, %v12428_v45, 0 }
 0x9b7   : > { %4504 = vmatpush1.bf16.msra.mxu1 %v12423_v57  ;;  %v4186_v57 = vld [vmem:[#allocation2 + $0x1a1] sm:$0xff] }
 0x9b8   : > { %4233 = vrot.lane.b32.xlu0 %v14298_v49, %s17154_s17  ;;  %4269 = vrot.lane.b32.xlu1 %v14372_v40, %s17148_s0 }
 0x9b9   : > { %11749 = vmatpush3.bf16.msra.mxu0 %v12419_v38  ;;  %4505 = vmatprep.subr.bf16.mxu1 %v12691_v1  ;;  %v12429_v38 = vld [vmem:[%s17150_s3 + $0x60] sm:$0xff]  }
 0x9bb   : > { %4506 = vmatpush1.bf16.msra.mxu1 %v12424_v24  ;;  %v4190_v24 = vpack.c.bf16 %v4186_v57, %v4185_v56 }
 0x9bc   : > { %4245 = vrot.lane.b32.xlu0 %v14342_v8, %s17149_s23  ;;  %4281 = vrot.lane.b32.xlu1 %v14384_v35, %s17155_s29 }
 0x9bd   : > { %4507 = vmatprep.subr.bf16.mxu1 %v12691_v1 }
 0x9bf   : > { %4508 = vmatpush1.bf16.msra.mxu1 %v12425_v12 }
 0x9c0   : > { %4293 = vrot.lane.b32.xlu1 %v14396_v21, %s17145_s26  ;;  %4774 = vrot.lane.b32.xlu0 %v4694_v17, %s17147_s19 }
 0x9c1   : > { %4509 = vmatprep.subr.bf16.mxu1 %v12691_v1 }
 0x9c3   : > { %4510 = vmatpush1.bf16.msra.mxu1 %v12426_v58 }
 0x9c4   : > { %4738 = vrot.lane.b32.xlu1 %v4646_v30, %s17147_s19  ;;  %4786 = vrot.lane.b32.xlu0 %v14401_v18, %s17145_s26  ;;  %v4268_v30 = vpop.permute.xlu1 %4267 }
 0x9c5   : > { %4511 = vmatprep.subr.bf16.mxu1 %v12691_v1  ;;  %v4348_v55 = vsel %vm542_vm2, %v14508_v34, %v4268_v30 }
 0x9c7   : > { %4512 = vmatpush1.bf16.msra.mxu1 %v12427_v28  ;;  %v4198_v28 = vld [vmem:[#allocation2 + $0x1a2] sm:$0xff] }
 0x9c8   : > { %4750 = vrot.lane.b32.xlu1 %v4658_v63, %s17145_s26  ;;  %4798 = vrot.lane.b32.xlu0 %v14406_v46, %s17149_s23 }
 0x9c9   : > { %4517 = vmatprep.subr.bf16.mxu1 %v12691_v1 }
 0x9cb   : > { %4518 = vmatpush2.bf16.msra.mxu1 %v4495_v5 }
 0x9cc   : > { %4762 = vrot.lane.b32.xlu1 %v14411_v19, %s17149_s23  ;;  %4211 = vrot.lane.b32.xlu0 %v14342_v8, %s17152_s20  ;;  %v14432_v8 = vpack.c.bf16 %v4689_v14, %v4688_v52 }
 0x9cd   : > { %4519 = vmatprep.subr.bf16.mxu1 %v12691_v1 }
 0x9cf   : > { %4520 = vmatpush2.bf16.msra.mxu1 %v12429_v38  ;;  %v4626_v38 = vld [vmem:[#allocation2] sm:$0xff] }
 0x9d0   : > { %4223 = vrot.lane.b32.xlu1 %v4199_v47, %s17144_s30  ;;  %4259 = vrot.lane.b32.xlu0 %v14396_v21, %s17153_s1  ;;  %v4640_v47 = vld [vmem:[#allocation2 + $0x19] sm:$0xff] }
 0x9d1   : > { %v14443_v10 = vpack.c.bf16 %v4641_v4, %v4640_v47  ;;  %4521 = vmatprep.subr.bf16.mxu1 %v12691_v1  ;;  %v4173_v47 = vld [vmem:[#allocation2 + $0x198] sm:$0xff] }
 0x9d2   : > { %v4178_v62 = vpack.c.bf16 %v4174_v60, %v4173_v47  ;;  %v4692_v60 = vld [vmem:[#allocation2 + $0x62] sm:$0xff] }
 0x9d3   : > { %4522 = vmatpush2.bf16.msra.mxu1 %v12430_v15  ;;  %v4627_v15 = vld [vmem:[#allocation2 + $0x8] sm:$0xff] }
 0x9d4   : > { %4235 = vrot.lane.b32.xlu0 %v14372_v40, %s17154_s17  ;;  %4271 = vrot.lane.b32.xlu1 %v14420_v53, %s17148_s0 }
 0x9d5   : > { %4523 = vmatprep.subr.bf16.mxu1 %v12691_v1 }
 0x9d7   : > { %4524 = vmatpush2.bf16.msra.mxu1 %v12431_v22  ;;  %v4690_v22 = vld [vmem:[#allocation2 + $0x4a] sm:$0xff] }
 0x9d8   : > { %4247 = vrot.lane.b32.xlu0 %v14384_v35, %s17149_s23  ;;  %4283 = vrot.lane.b32.xlu1 %v14426_v43, %s17155_s29 }
 0x9d9   : > { %4525 = vmatprep.subr.bf16.mxu1 %v12691_v1 }
 0x9dc   : > { %4776 = vrot.lane.b32.xlu0 %v14432_v8, %s17147_s19  ;;  %4295 = vrot.lane.b32.xlu1 %v14434_v20, %s17145_s26 }
 0x9e0   : > { %4740 = vrot.lane.b32.xlu1 %v14443_v10, %s17147_s19  ;;  %4788 = vrot.lane.b32.xlu0 %v14445_v41, %s17145_s26 }
 0x9e4   : > { %4752 = vrot.lane.b32.xlu1 %v4694_v17, %s17145_s26  ;;  %4800 = vrot.lane.b32.xlu0 %v14455_v0, %s17149_s23  ;;  %v12432_v17 = vld [vmem:[%s17150_s3 + $0x48] sm:$0xff]   ;;  %s11733_s3 = sshll.u32 %s12791_s25, 9  ;;  %s12703_s25 = smov [#allocation6]  }
 0x9e5   : > { %4526 = vmatpush2.bf16.msra.mxu1 %v12432_v17  ;;  %v4634_v17 = vpack.c.bf16 %v4627_v15, %v4626_v38  ;;  %v14604_v15 = vld [vmem:[%s17151_s8] ss:$0 sm:$0xff]  ;;  %s12625_s22 = sshll.u32 %s12703_s25, 4  ;;  %s12626_s22 = int_to_ptr.vmem [resolvable:$false] %s12625_s22 }
 0x9e6   : > { %4527 = vmatprep.subr.bf16.mxu1 %v12691_v1  ;;  %v14522_v1 = vld [vmem:[%s17072_s4 + $0x88] sm:$0xff]   ;;  %s12627_s24 = scalar_lea.vmem %s12626_s22, 1024 }
 0x9e8   : > { %4764 = vrot.lane.b32.xlu1 %v14401_v18, %s17149_s23 }
 0x9e9   : > { %4528 = vmatpush2.bf16.msra.mxu1 %v12433_v31  ;;  %v4703_v31 = vld [vmem:[#allocation2 + $0x68] sm:$0xff] }
 0x9ea   : > { %12122 = vmatprep.subr.bf16.mxu1 %v14522_v1 }
 0xa16   : > { %v4076_v50 = vpop.permute.xlu0 %4075 }
 0xa17   : > { %4093 = vst.msk [vmem:[#allocation2 + $0x121] sm:$0xff] %vm3024_vm11, %v4076_v50 }
 0xa1a   : > { %v4078_v26 = vpop.permute.xlu1 %4077  ;;  %v14511_v37 = vpop.permute.xlu0 %4231 }
 0xa1b   : > { %4094 = vst.msk [vmem:[#allocation2 + $0x129] sm:$0xff] %vm3024_vm11, %v4078_v26 }
 0xa1e   : > { %v4280_v63 = vpop.permute.xlu1 %4279  ;;  %v14517_v6 = vpop.permute.xlu0 %4243  ;;  %v4107_v51 = vld [vmem:[#allocation2 + $0x121] sm:$0xff] }
 0xa1f   : > { %v4356_v27 = vsel %vm2758_vm14, %v4348_v55, %v4280_v63 }
 0xa22   : > { %v4292_v61 = vpop.permute.xlu1 %4291  ;;  %v14528_v39 = vpop.permute.xlu0 %4209  ;;  %v4119_v13 = vld [vmem:[#allocation2 + $0x122] sm:$0xff]  ;;  %v4120_v52 = vld [vmem:[#allocation2 + $0x12a] sm:$0xff] }
 0xa23   : > { %v4108_v14 = vld [vmem:[#allocation2 + $0x129] sm:$0xff]  ;;  %v4364_v33 = vsel %vm797_vm4, %v4356_v27, %v4292_v61  ;;  %v4127_v7 = vpack.c.bf16 %v4120_v52, %v4119_v13  ;;  %v4702_v27 = vld [vmem:[#allocation2 + $0x60] sm:$0xff] }
 0xa24   : > { %v4115_v4 = vpack.c.bf16 %v4108_v14, %v4107_v51  ;;  %11494 = vmatprep.mubr.msk.bf16.mxu1 %vm2890_vm15, %v4364_v33  ;;  %v4708_v13 = vpack.c.bf16 %v4703_v31, %v4702_v27  ;;  %v4716_v31 = vld [vmem:[#allocation2 + $0x79] sm:$0xff] }
 0xa25   : > { %4219 = vrot.lane.b32.xlu1 %v4127_v7, %s17144_s30  ;;  %v4714_v7 = vld [vmem:[#allocation2 + $0x61] sm:$0xff] }
 0xa26   : > { %4207 = vrot.lane.b32.xlu0 %v4115_v4, %s17152_s20  ;;  %v14534_v32 = vpop.permute.xlu1 %4221  ;;  %v14536_v42 = vpop.permute.xlu0 %4257 }
 0xa29   : > { %4225 = vrot.lane.b32.xlu1 %v14396_v21, %s17144_s30  ;;  %v4197_v21 = vld [vmem:[#allocation2 + $0x19a] sm:$0xff] }
 0xa2a   : > { %4213 = vrot.lane.b32.xlu0 %v14384_v35, %s17152_s20  ;;  %v14542_v25 = vpop.permute.xlu1 %4269  ;;  %v14544_v2 = vpop.permute.xlu0 %4233  ;;  %v4202_v35 = vpack.c.bf16 %v4198_v28, %v4197_v21  ;;  %v4705_v21 = vld [vmem:[#allocation2 + $0x80] sm:$0xff] }
 0xa2d   : > { %4273 = vrot.lane.b32.xlu1 %v4178_v62, %s17148_s0  ;;  %v4693_v62 = vld [vmem:[#allocation2 + $0x6a] sm:$0xff] }
 0xa2e   : > { %4261 = vrot.lane.b32.xlu0 %v14434_v20, %s17153_s1  ;;  %v14549_v12 = vpop.permute.xlu1 %4281  ;;  %v14551_v58 = vpop.permute.xlu0 %4245  ;;  %v4691_v20 = vld [vmem:[#allocation2 + $0x52] sm:$0xff] }
 0xa2f   : > { %v14561_v26 = vpack.c.bf16 %v4691_v20, %v4690_v22  ;;  %v3478_v22 = vadd.f32 %v14604_v15, %v14038_v54  ;;  %v3481_v20 = vadd.f32 %v14604_v15, %v14040_v44 }
 0xa31   : > { %4285 = vrot.lane.b32.xlu1 %v4190_v24, %s17155_s29  ;;  %v14589_v24 = vpack.c.bf16 %v4693_v62, %v4692_v60  ;;  %vm3502_vm1 = vcmp.ge.f32.partialorder %v3478_v22, 0.0  ;;  %vm3503_vm8 = vcmp.ge.f32.partialorder %v3481_v20, 0.0 }
 0xa32   : > { %4237 = vrot.lane.b32.xlu0 %v14420_v53, %s17154_s17  ;;  %v14556_v45 = vpop.permute.xlu1 %4293  ;;  %v4775_v5 = vpop.permute.xlu0 %4774 }
 0xa33   : > { %v4840_v53 = vsel %vm780_vm3, %v14443_v10, %v4775_v5  ;;  %v4715_v10 = vld [vmem:[#allocation2 + $0x69] sm:$0xff]  ;;  %v4704_v5 = vld [vmem:[#allocation2 + $0x78] sm:$0xff] }
 0xa34   : > { %v14579_v47 = vpack.c.bf16 %v4715_v10, %v4714_v7  ;;  %v14599_v38 = vpack.c.bf16 %v4705_v21, %v4704_v5  ;;  %v4096_v5 = vld [vmem:[#allocation2 + $0x128] sm:$0xff] }
 0xa35   : > { %4297 = vrot.lane.b32.xlu1 %v4202_v35, %s17145_s26 }
 0xa36   : > { %4249 = vrot.lane.b32.xlu0 %v14426_v43, %s17149_s23  ;;  %v4739_v30 = vpop.permute.xlu1 %4738  ;;  %v4787_v50 = vpop.permute.xlu0 %4786 }
 0xa37   : > { %v4808_v63 = vsel %vm780_vm3, %v4634_v17, %v4739_v30  ;;  %v4851_v55 = vsel %vm797_vm4, %v4840_v53, %v4787_v50  ;;  %v4717_v17 = vld [vmem:[#allocation2 + $0x81] sm:$0xff] }
 0xa38   : > { %v14616_v53 = vpack.c.bf16 %v4717_v17, %v4716_v31 }
 0xa39   : > { %4742 = vrot.lane.b32.xlu1 %v14406_v46, %s17147_s19 }
 0xa3a   : > { %4778 = vrot.lane.b32.xlu0 %v14561_v26, %s17147_s19  ;;  %v4751_v43 = vpop.permute.xlu1 %4750  ;;  %v4799_v51 = vpop.permute.xlu0 %4798 }
 0xa3b   : > { %v4859_v61 = vsel %vm815_vm6, %v4851_v55, %v4799_v51  ;;  %v4819_v52 = vsel %vm797_vm4, %v4808_v63, %v4751_v43  ;;  %v3510_v63 = vmul.f32 0.2, %v3478_v22  ;;  %v3511_v55 = vmul.f32 0.2, %v3481_v20 }
 0xa3c   : > { %5065 = vmatprep.mubr.bf16.mxu0 %v4859_v61 }
 0xa3d   : > { %4754 = vrot.lane.b32.xlu1 %v14432_v8, %s17145_s26  ;;  %v3519_v43 = vsel %vm3503_vm8, %v3481_v20, %v3511_v55  ;;  %v3518_v51 = vsel %vm3502_vm1, %v3478_v22, %v3510_v63  ;;  %v4095_v22 = vld [vmem:[#allocation2 + $0x120] sm:$0xff]  ;;  %vm17182_vm1 = vmmov %vm17179_vm9 }
 0xa3e   : > { %4790 = vrot.lane.b32.xlu0 %v4708_v13, %s17145_s26  ;;  %v4763_v14 = vpop.permute.xlu1 %4762  ;;  %v14576_v33 = vpop.permute.xlu0 %4211  ;;  %v4103_v20 = vpack.c.bf16 %v4096_v5, %v4095_v22  ;;  %vm17183_vm8 = vmmov %vm17180_vm10 }
 0xa3f   : > { %v4827_v4 = vsel %vm815_vm6, %v4819_v52, %v4763_v14 }
 0xa40   : > { %5066 = vmatmul.mubr.bf16.vlgmr.msra.gmra.mxu0 %v4827_v4 }
 0xa41   : > { %4766 = vrot.lane.b32.xlu1 %v14445_v41, %s17149_s23 }
 0xa42   : > { %4802 = vrot.lane.b32.xlu0 %v14579_v47, %s17149_s23  ;;  %v14585_v56 = vpop.permute.xlu1 %4223  ;;  %v14587_v57 = vpop.permute.xlu0 %4259 }
 0xa45   : > { %4744 = vrot.lane.b32.xlu1 %v14455_v0, %s17147_s19 }
 0xa46   : > { %4780 = vrot.lane.b32.xlu0 %v14589_v24, %s17147_s19  ;;  %v14595_v28 = vpop.permute.xlu1 %4271  ;;  %v14597_v35 = vpop.permute.xlu0 %4235 }
 0xa49   : > { %4756 = vrot.lane.b32.xlu1 %v14561_v26, %s17145_s26 }
 0xa4a   : > { %4792 = vrot.lane.b32.xlu0 %v14599_v38, %s17145_s26  ;;  %v4284_v30 = vpop.permute.xlu1 %4283  ;;  %v14614_v50 = vpop.permute.xlu0 %4247 }
 0xa4d   : > { %4768 = vrot.lane.b32.xlu1 %v4708_v13, %s17149_s23 }
 0xa4e   : > { %4804 = vrot.lane.b32.xlu0 %v14616_v53, %s17149_s23  ;;  %v4296_v54 = vpop.permute.xlu1 %4295  ;;  %v4777_v44 = vpop.permute.xlu0 %4776 }
 0xa4f   : > { %v4843_v52 = vsel %vm780_vm3, %v14406_v46, %v4777_v44 }
 0xa51   : > { %3538 = vrot.lane.b32.xlu1 %v3519_v43, %s17152_s20 }
 0xa52   : > { %3536 = vrot.lane.b32.xlu0 %v3518_v51, %s17152_s20  ;;  %v4741_v27 = vpop.permute.xlu1 %4740  ;;  %v4789_v61 = vpop.permute.xlu0 %4788 }
 0xa53   : > { %v4853_v10 = vsel %vm797_vm4, %v4843_v52, %v4789_v61  ;;  %v4811_v4 = vsel %vm780_vm3, %v14411_v19, %v4741_v27  ;;  %v4350_v19 = vsel %vm542_vm2, %v14536_v42, %v14542_v25  ;;  %v12435_v27 = vld [vmem:[%s17072_s4 + $0x80] sm:$0xff]   ;;  %v4304_v25 = vsel %vm17181_vm12, %v14187_v29, %v14528_v39  ;;  %vm17186_vm12 = vmmov %vm17183_vm8 }
 0xa54   : > { %v4358_v61 = vsel %vm2758_vm14, %v4350_v19, %v14549_v12  ;;  %v4352_v29 = vsel %vm542_vm2, %v14587_v57, %v14595_v28 }
 0xa56   : > { %v4753_v14 = vpop.permute.xlu1 %4752  ;;  %v4801_v13 = vpop.permute.xlu0 %4800 }
 0xa57   : > { %v4862_v7 = vsel %vm815_vm6, %v4853_v10, %v4801_v13  ;;  %v4821_v60 = vsel %vm797_vm4, %v4811_v4, %v4753_v14 }
 0xa58   : > { %5073 = vmatprep.mubr.bf16.mxu0 %v4862_v7 }
 0xa5a   : > { %v4765_v62 = vpop.permute.xlu1 %4764 }
 0xa5b   : > { %v4830_v21 = vsel %vm815_vm6, %v4821_v60, %v4765_v62 }
 0xa5c   : > { %5074 = vmatmul.mubr.bf16.gmra.mxu0 %v4830_v21 }
 0xa97   : > { %v4220_v46 = vpop.permute.xlu1 %4219 }
 0xa98   : > { %v4208_v17 = vpop.permute.xlu0 %4207 }
 0xa99   : > { %v4301_v31 = vsel %vm17178_vm5, %v4103_v20, %v4208_v17 }
 0xa9a   : > { %v4312_v63 = vsel %vm453_vm0, %v4301_v31, %v4220_v46 }
 0xa9b   : > { %v4320_v55 = vsel %vm17179_vm9, %v4312_v63, %v14511_v37  ;;  %v4226_v44 = vpop.permute.xlu1 %4225  ;;  %v4366_v37 = vsel %vm797_vm4, %v4358_v61, %v14556_v45  ;;  %vm17184_vm9 = vmmov %vm17182_vm1 }
 0xa9c   : > { %v4214_v43 = vpop.permute.xlu0 %4213  ;;  %v4328_v51 = vsel %vm815_vm6, %v4320_v55, %v14517_v6  ;;  %v4314_v6 = vsel %vm453_vm0, %v4304_v25, %v14534_v32 }
 0xa9d   : > { %v4336_v52 = vsel %vm17180_vm10, %v4328_v51, %v14508_v34  ;;  %v4322_v34 = vsel %vm17182_vm1, %v4314_v6, %v14544_v2  ;;  %v4307_v2 = vsel %vm17178_vm5, %v14298_v49, %v14576_v33  ;;  %vm17185_vm10 = vmmov %vm17178_vm5 }
 0xa9e   : > { %4530 = vmatmul.mubr.bf16.vlgmr.msra.gmra.mxu1 %v4336_v52  ;;  %v4330_v45 = vsel %vm815_vm6, %v4322_v34, %v14551_v58  ;;  %v4316_v58 = vsel %vm453_vm0, %v4307_v2, %v14585_v56  ;;  %v4310_v49 = vsel %vm17185_vm10, %v14372_v40, %v4214_v43 }
 0xa9f   : > { %11495 = vmatprep.mubr.msk.bf16.mxu1 %vm2890_vm15, %v4366_v37  ;;  %12123 = vmatpush3.bf16.msra.mxu1 %v14522_v1  ;;  %v4274_v10 = vpop.permute.xlu1 %4273  ;;  %v4360_v1 = vsel %vm2758_vm14, %v4352_v29, %v4284_v30  ;;  %v4339_v32 = vsel %vm17183_vm8, %v4330_v45, %v14536_v42  ;;  %v4324_v30 = vsel %vm17184_vm9, %v4316_v58, %v14597_v35 }
 0xaa0   : > { %v4262_v12 = vpop.permute.xlu0 %4261  ;;  %12124 = vmatprep.subr.bf16.mxu1 %v12435_v27  ;;  %v4368_v13 = vsel %vm797_vm4, %v4360_v1, %v4296_v54  ;;  %v4332_v42 = vsel %vm815_vm6, %v4324_v30, %v14614_v50  ;;  %v4318_v35 = vsel %vm453_vm0, %v4310_v49, %v4226_v44 }
 0xaa1   : > { %v4354_v54 = vsel %vm542_vm2, %v4262_v12, %v4274_v10  ;;  %v4342_v56 = vsel %vm17186_vm12, %v4332_v42, %v14587_v57  ;;  %v4729_v10 = vld [vmem:[#allocation2 + $0x82] sm:$0xff] }
 0xaa3   : > { %12125 = vmatpush3.bf16.msra.mxu1 %v12435_v27  ;;  %v4286_v39 = vpop.permute.xlu1 %4285 }
 0xaa4   : > { %v4238_v14 = vpop.permute.xlu0 %4237  ;;  %v4362_v33 = vsel %vm2758_vm14, %v4354_v54, %v4286_v39 }
 0xaa5   : > { %v4326_v5 = vsel %vm17182_vm1, %v4318_v35, %v4238_v14 }
 0xaa6   : > { %4538 = vmatmul.mubr.bf16.gmra.mxu1 %v4339_v32 }
 0xaa7   : > { %11496 = vmatprep.mubr.msk.bf16.mxu1 %vm2890_vm15, %v4368_v13  ;;  %v4298_v28 = vpop.permute.xlu1 %4297 }
 0xaa8   : > { %v4250_v7 = vpop.permute.xlu0 %4249  ;;  %v4370_v62 = vsel %vm797_vm4, %v4362_v33, %v4298_v28 }
 0xaa9   : > { %v4334_v22 = vsel %vm815_vm6, %v4326_v5, %v4250_v7 }
 0xaab   : > { %v4743_v4 = vpop.permute.xlu1 %4742 }
 0xaac   : > { %v4779_v60 = vpop.permute.xlu0 %4778  ;;  %v4814_v40 = vsel %vm780_vm3, %v14401_v18, %v4743_v4  ;;  %v14728_v4 = vld [vmem:[%s17151_s8] ss:$0 sm:$0xff] }
 0xaad   : > { %v4846_v20 = vsel %vm780_vm3, %v14455_v0, %v4779_v60 }
 0xaae   : > { %4546 = vmatmul.mubr.bf16.gmra.mxu1 %v4342_v56 }
 0xaaf   : > { %11497 = vmatprep.mubr.msk.bf16.mxu1 %vm2890_vm15, %v4370_v62  ;;  %v4755_v50 = vpop.permute.xlu1 %4754  ;;  %vm17187_vm15 = vmmov %vm17183_vm8 }
 0xab0   : > { %v4791_v21 = vpop.permute.xlu0 %4790  ;;  %v4823_v57 = vsel %vm797_vm4, %v4814_v40, %v4755_v50  ;;  %v4345_v63 = vsel %vm17187_vm15, %v4334_v22, %v4262_v12  ;;  %vm5219_vm15 = vcmask 326912  }
 0xab1   : > { %v4855_v46 = vsel %vm797_vm4, %v4846_v20, %v4791_v21 }
 0xab3   : > { %v4767_v17 = vpop.permute.xlu1 %4766 }
 0xab4   : > { %v4803_v31 = vpop.permute.xlu0 %4802  ;;  %v4833_v19 = vsel %vm815_vm6, %v4823_v57, %v4767_v17 }
 0xab5   : > { %v4865_v55 = vsel %vm815_vm6, %v4855_v46, %v4803_v31 }
 0xab6   : > { %4554 = vmatmul.mubr.bf16.gmra.mxu1 %v4345_v63  ;;  %5081 = vmatprep.mubr.bf16.mxu0 %v4865_v55 }
 0xab7   : > { %5082 = vmatmul.mubr.bf16.gmra.mxu0 %v4833_v19  ;;  %12126 = vmatprep.mubr.msk.bf16.mxu1 %vm780_vm3, %v14432_v8  ;;  %v4745_v18 = vpop.permute.xlu1 %4744 }
 0xab8   : > { %v4781_v0 = vpop.permute.xlu0 %4780  ;;  %v4817_v51 = vsel %vm780_vm3, %v14445_v41, %v4745_v18 }
 0xab9   : > { %v4849_v27 = vsel %vm780_vm3, %v14579_v47, %v4781_v0 }
 0xabb   : > { %v4757_v44 = vpop.permute.xlu1 %4756 }
 0xabc   : > { %v4793_v43 = vpop.permute.xlu0 %4792  ;;  %v4825_v61 = vsel %vm797_vm4, %v4817_v51, %v4757_v44 }
 0xabd   : > { %v4857_v8 = vsel %vm797_vm4, %v4849_v27, %v4793_v43  ;;  %v14751_v27 = vld [vmem:[%s17077_s9] ss:$0 sm:$0xff] }
 0xabe   : > { %12127 = vmatmul.mubr.msk.bf16.vlgmr.msra.gmra.mxu1 %vm780_vm3, %v14561_v26  ;;  %v4728_v26 = vld [vmem:[#allocation2 + $0x7a] sm:$0xff] }
 0xabf   : > { %12130 = vmatprep.mubr.msk.bf16.mxu1 %vm780_vm3, %v14589_v24  ;;  %v4769_v52 = vpop.permute.xlu1 %4768  ;;  %v14711_v47 = vpack.c.bf16 %v4729_v10, %v4728_v26 }
 0xac0   : > { %v4805_v37 = vpop.permute.xlu0 %4804  ;;  %v4836_v6 = vsel %vm815_vm6, %v4825_v61, %v4769_v52 }
 0xac1   : > { %v4868_v25 = vsel %vm815_vm6, %v4857_v8, %v4805_v37 }
 0xac2   : > { %5089 = vmatprep.mubr.bf16.mxu0 %v4868_v25 }
 0xac3   : > { %5090 = vmatmul.mubr.bf16.gmra.mxu0 %v4836_v6  ;;  %v3539_v41 = vpop.permute.xlu1 %3538 }
 0xac4   : > { %v3537_v12 = vpop.permute.xlu0 %3536  ;;  %3559 = vst.msk [vmem:[#allocation2 + $0x99] sm:$0xff] %vm3024_vm11, %v3539_v41 }
 0xac5   : > { %3558 = vst.msk [vmem:[#allocation2 + $0x91] sm:$0xff] %vm3024_vm11, %v3537_v12 }
 0xac6   : > { %12131 = vmatmul.mubr.msk.bf16.gmra.mxu1 %vm780_vm3, %v14711_v47 }
 0xacb   : > { %v5325_v34 = vld [vmem:[#allocation2 + $0x9a] sm:$0xff] }
 0xacc   : > { %v5324_v24 = vld [vmem:[#allocation2 + $0x92] sm:$0xff] }
 0xacd   : > { %v14717_v45 = vpack.c.bf16 %v5325_v34, %v5324_v24 }
 0xacf   : > { %12138 = vmatprep.mubr.msk.bf16.mxu1 %vm780_vm3, %v14717_v45 }
 0xb00   : > { %v11750_v29 = vpop.f32.mrf.mxu0 }
 0xb02   : > { %v11751_v39 = vpop.f32.mrf.mxu0 }
 0xb03   : > { %v11752_v14 = vadd.f32 %v11751_v39, %v11750_v29 }
 0xb04   : > { %v11753_v1 = vpop.f32.mrf.mxu0 }
 0xb05   : > { %v5068_v26 = vadd.f32 %v11752_v14, %v14751_v27 }
 0xb06   : > { %v11754_v32 = vpop.f32.mrf.mxu0 }
 0xb07   : > { %v11755_v13 = vadd.f32 %v11754_v32, %v11753_v1 }
 0xb09   : > { %v5071_v39 = vadd.f32 %v11755_v13, %v14751_v27 }
 0xb1c   : > { %v11756_v2 = vpop.f32.mrf.mxu0 }
 0xb1e   : > { %v11757_v58 = vpop.f32.mrf.mxu0 }
 0xb1f   : > { %v11758_v28 = vadd.f32 %v11757_v58, %v11756_v2 }
 0xb20   : > { %v11759_v22 = vpop.f32.mrf.mxu0 }
 0xb21   : > { %v5076_v52 = vadd.f32 %v11758_v28, %v14751_v27 }
 0xb22   : > { %v11760_v46 = vpop.f32.mrf.mxu0 }
 0xb23   : > { %v11761_v61 = vadd.f32 %v11760_v46, %v11759_v22 }
 0xb25   : > { %v5079_v12 = vadd.f32 %v11761_v61, %v14751_v27 }
 0xb5e   : > { %v14721_v7 = vpop.f32.mrf.mxu1 }
 0xb60   : > { %v4533_v30 = vpop.f32.mrf.mxu1 }
 0xb62   : > { %v14723_v42 = vpop.f32.mrf.mxu1 }
 0xb64   : > { %v4536_v54 = vpop.f32.mrf.mxu1 }
 0xb66   : > { %v4539_v60 = vpop.f32.mrf.mxu1 }
 0xb67   : > { %v14731_v49 = vadd.f32 %v14728_v4, %v4539_v60 }
 0xb68   : > { %v4541_v33 = vpop.f32.mrf.mxu1 }
 0xb69   : > { %v3486_v33 = vadd.f32 %v14604_v15, %v14042_v23  ;;  %v3489_v23 = vadd.f32 %v14604_v15, %v14044_v3  ;;  %v4004_v3 = vadd.f32 %v14604_v15, %v14308_v16 }
 0xb6a   : > { %v4542_v56 = vpop.f32.mrf.mxu1 }
 0xb6b   : > { %v14734_v62 = vadd.f32 %v14728_v4, %v4542_v56  ;;  %vm3504_vm5 = vcmp.ge.f32.partialorder %v3486_v33, 0.0  ;;  %vm3505_vm10 = vcmp.ge.f32.partialorder %v3489_v23, 0.0  ;;  %vm4032_vm1 = vcmp.ge.f32.partialorder %v4004_v3, 0.0 }
 0xb6c   : > { %v4544_v35 = vpop.f32.mrf.mxu1 }
 0xb6e   : > { %v4547_v50 = vpop.f32.mrf.mxu1 }
 0xb6f   : > { %v14737_v21 = vadd.f32 %v14728_v4, %v4547_v50 }
 0xb70   : > { %v4549_v5 = vpop.f32.mrf.mxu1 }
 0xb71   : > { %v12436_v5 = vld [vmem:[%s17072_s4 + $0x88] sm:$0xff]  }
 0xb72   : > { %v4550_v40 = vpop.f32.mrf.mxu1  ;;  %12134 = vmatprep.subr.bf16.mxu1 %v12436_v5 }
 0xb73   : > { %v14740_v20 = vadd.f32 %v14728_v4, %v4550_v40  ;;  %12135 = vmatpush3.bf16.msra.mxu1 %v12436_v5 }
 0xb74   : > { %v4552_v57 = vpop.f32.mrf.mxu1 }
 0xb75   : > { %v3512_v57 = vmul.f32 0.2, %v3486_v33 }
 0xb76   : > { %v4555_v17 = vpop.f32.mrf.mxu1 }
 0xb77   : > { %v14743_v31 = vadd.f32 %v14728_v4, %v4555_v17  ;;  %v11762_v63 = vpop.f32.mrf.mxu0  ;;  %v4001_v17 = vadd.f32 %v14604_v15, %v14306_v9  ;;  %v4040_v9 = vmul.f32 0.2, %v4004_v3 }
 0xb78   : > { %v4557_v55 = vpop.f32.mrf.mxu1 }
 0xb79   : > { %v11763_v19 = vpop.f32.mrf.mxu0  ;;  %vm4031_vm12 = vcmp.ge.f32.partialorder %v4001_v17, 0.0 }
 0xb7a   : > { %v11764_v18 = vadd.f32 %v11763_v19, %v11762_v63  ;;  %v4558_v0 = vpop.f32.mrf.mxu1  ;;  %v12437_v19 = vld [vmem:[%s17072_s4 + $0x80] sm:$0xff]  }
 0xb7b   : > { %v14746_v44 = vadd.f32 %v14728_v4, %v4558_v0  ;;  %v11765_v43 = vpop.f32.mrf.mxu0  ;;  %12136 = vmatprep.subr.bf16.mxu1 %v12437_v19  ;;  %v3520_v0 = vsel %vm3504_vm5, %v3486_v33, %v3512_v57  ;;  %v12448_v33 = vld [vmem:[%s17072_s4 + $0x50] sm:$0xff]  }
 0xb7c   : > { %v4560_v51 = vpop.f32.mrf.mxu1  ;;  %v5084_v14 = vadd.f32 %v11764_v18, %v14751_v27  ;;  %12137 = vmatpush3.bf16.msra.mxu1 %v12437_v19 }
 0xb7d   : > { %v11766_v8 = vpop.f32.mrf.mxu0  ;;  %v4039_v51 = vmul.f32 0.2, %v4001_v17 }
 0xb7e   : > { %v14754_v37 = vadd.f32 %v11766_v8, %v11765_v43  ;;  %v12128_v25 = vpop.f32.mrf.mxu1  ;;  %v3513_v43 = vmul.f32 0.2, %v3489_v23 }
 0xb7f   : > { %v14756_v6 = vadd.f32 %v12128_v25, %v5076_v52  ;;  %v4047_v52 = vsel %vm4031_vm12, %v4001_v17, %v4039_v51  ;;  %v4048_v25 = vsel %vm4032_vm1, %v4004_v3, %v4040_v9  ;;  %v5329_v9 = vld [vmem:[#allocation2 + $0xca] sm:$0xff] }
 0xb80   : > { %v5132_v10 = vpop.f32.mrf.mxu1  ;;  %v3521_v8 = vsel %vm3505_vm10, %v3489_v23, %v3513_v43 }
 0xb81   : > { %v14759_v41 = vadd.f32 %v5132_v10, %v5068_v26  ;;  %v5300_v26 = vld [vmem:[#allocation2 + $0x90] sm:$0xff]  ;;  %v5301_v10 = vld [vmem:[#allocation2 + $0x98] sm:$0xff] }
 0xb82   : > { %v12129_v24 = vpop.f32.mrf.mxu1  ;;  %v14794_v16 = vpack.c.bf16 %v5301_v10, %v5300_v26 }
 0xb83   : > { %v14762_v34 = vadd.f32 %v12129_v24, %v5079_v12  ;;  %v11768_v29 = vpop.f32.mrf.mxu0  ;;  %v5312_v12 = vld [vmem:[#allocation2 + $0x91] sm:$0xff]  ;;  %v5313_v24 = vld [vmem:[#allocation2 + $0x99] sm:$0xff] }
 0xb84   : > { %v5135_v1 = vpop.f32.mrf.mxu1 }
 0xb85   : > { %v14765_v32 = vadd.f32 %v5135_v1, %v5071_v39  ;;  %v11769_v2 = vpop.f32.mrf.mxu0  ;;  %v12438_v39 = vld [vmem:[%s17072_s4 + $0x78] sm:$0xff]  }
 0xb86   : > { %v11770_v58 = vadd.f32 %v11769_v2, %v11768_v29  ;;  %v12132_v28 = vpop.f32.mrf.mxu1  ;;  %v14800_v29 = vpack.c.bf16 %v5313_v24, %v5312_v12  ;;  %v12439_v1 = vld [vmem:[%s17072_s4 + $0x38] sm:$0xff]   ;;  %v12440_v2 = vld [vmem:[%s17072_s4 + $0x70] sm:$0xff]   ;;  %11780 = vmatprep.subr.bf16.mxu0 %v12438_v39 }
 0xb87   : > { %v11771_v30 = vpop.f32.mrf.mxu0  ;;  %11781 = vmatpush3.bf16.msra.mxu0 %v12439_v1 }
 0xb88   : > { %v5092_v54 = vadd.f32 %v11770_v58, %v14751_v27  ;;  %v5148_v60 = vpop.f32.mrf.mxu1  ;;  %11782 = vmatprep.subr.bf16.mxu0 %v12440_v2  ;;  %v12442_v58 = vld [vmem:[%s17072_s4 + $0x68] sm:$0xff]  }
 0xb89   : > { %v14771_v56 = vadd.f32 %v5148_v60, %v5084_v14  ;;  %v11772_v35 = vpop.f32.mrf.mxu0  ;;  %v12445_v14 = vld [vmem:[%s17072_s4 + $0x20] sm:$0xff]   ;;  %v12447_v60 = vld [vmem:[%s17072_s4 + $0x18] sm:$0xff]  }
 0xb8a   : > { %v5157_v50 = vadd.f32 %v12132_v28, %v5092_v54  ;;  %v11773_v13 = vadd.f32 %v11772_v35, %v11771_v30  ;;  %v12133_v46 = vpop.f32.mrf.mxu1  ;;  %v12443_v28 = vld [vmem:[%s17072_s4 + $0x28] sm:$0xff]   ;;  %v12444_v30 = vld [vmem:[%s17072_s4 + $0x60] sm:$0xff]   ;;  %v12446_v54 = vld [vmem:[%s17072_s4 + $0x58] sm:$0xff]  }
 0xb8b   : > { %v12449_v35 = vld [vmem:[%s17072_s4 + $0x10] sm:$0xff]  }
 0xb8c   : > { %vm5169_vm8 = vcmp.ge.f32.partialorder %v5157_v50, 0.0  ;;  %v5177_v22 = vmul.f32 0.2, %v5157_v50  ;;  %v5095_v40 = vadd.f32 %v11773_v13, %v14751_v27  ;;  %v12451_v13 = vld [vmem:[%s17072_s4 + $0x8] sm:$0xff]  }
 0xb8e   : > { %v5160_v63 = vadd.f32 %v12133_v46, %v5095_v40  ;;  %v5185_v55 = vsel %vm5169_vm8, %v5157_v50, %v5177_v22  ;;  %v12450_v50 = vld [vmem:[%s17072_s4 + $0x48] sm:$0xff]   ;;  %v12452_v22 = vld [vmem:[%s17072_s4 + $0x40] sm:$0xff]  }
 0xb8f   : > { %5207 = vrot.lane.b32.xlu0 %v5185_v55, %s17147_s19  ;;  %v12453_v40 = vld [vmem:[%s17072_s4] sm:$0xff]  }
 0xb90   : > { %vm5170_vm9 = vcmp.ge.f32.partialorder %v5160_v63, 0.0  ;;  %v5178_v18 = vmul.f32 0.2, %v5160_v63 }
 0xb92   : > { %v5186_v61 = vsel %vm5170_vm9, %v5160_v63, %v5178_v18 }
 0xb93   : > { %5209 = vrot.lane.b32.xlu1 %v5186_v61, %s17147_s19  ;;  %3540 = vrot.lane.b32.xlu0 %v3520_v0, %s17152_s20  ;;  %v5328_v61 = vld [vmem:[#allocation2 + $0xc2] sm:$0xff] }
 0xb94   : > { %v5334_v39 = vpack.c.bf16 %v5329_v9, %v5328_v61 }
 0xb97   : > { %3542 = vrot.lane.b32.xlu1 %v3521_v8, %s17152_s20  ;;  %4063 = vrot.lane.b32.xlu0 %v4047_v52, %s17152_s20 }
 0xb9b   : > { %4065 = vrot.lane.b32.xlu1 %v4048_v25, %s17152_s20  ;;  %5376 = vrot.lane.b32.xlu0 %v14711_v47, %s17147_s19 }
 0xb9f   : > { %5364 = vrot.lane.b32.xlu1 %v14599_v38, %s17149_s23  ;;  %5388 = vrot.lane.b32.xlu0 %v14794_v16, %s17145_s26 }
 0xba3   : > { %5342 = vrot.lane.b32.xlu1 %v14616_v53, %s17147_s19  ;;  %5400 = vrot.lane.b32.xlu0 %v14800_v29, %s17149_s23 }
 0xba7   : > { %5354 = vrot.lane.b32.xlu1 %v14711_v47, %s17145_s26  ;;  %5378 = vrot.lane.b32.xlu0 %v14717_v45, %s17147_s19  ;;  %v12441_v47 = vld [vmem:[%s17072_s4 + $0x30] sm:$0xff]  }
 0xba8   : > { %11783 = vmatpush3.bf16.msra.mxu0 %v12441_v47 }
 0xba9   : > { %11784 = vmatprep.subr.bf16.mxu0 %v12442_v58 }
 0xbac   : > { %11785 = vmatpush3.bf16.msra.mxu0 %v12443_v28 }
 0xbad   : > { %11786 = vmatprep.subr.bf16.mxu0 %v12444_v30 }
 0xbb0   : > { %11787 = vmatpush3.bf16.msra.mxu0 %v12445_v14 }
 0xbb1   : > { %11788 = vmatprep.subr.bf16.mxu0 %v12446_v54 }
 0xbb4   : > { %11789 = vmatpush3.bf16.msra.mxu0 %v12447_v60 }
 0xbb5   : > { %11790 = vmatprep.subr.bf16.mxu0 %v12448_v33  ;;  %v5305_v33 = vld [vmem:[#allocation2 + $0xc8] sm:$0xff] }
 0xbb8   : > { %11791 = vmatpush3.bf16.msra.mxu0 %v12449_v35  ;;  %v5304_v35 = vld [vmem:[#allocation2 + $0xc0] sm:$0xff] }
 0xbb9   : > { %11792 = vmatprep.subr.bf16.mxu0 %v12450_v50  ;;  %v5310_v50 = vpack.c.bf16 %v5305_v33, %v5304_v35 }
 0xbbc   : > { %11793 = vmatpush3.bf16.msra.mxu0 %v12451_v13  ;;  %v5317_v13 = vld [vmem:[#allocation2 + $0xc9] sm:$0xff] }
 0xbbd   : > { %11794 = vmatprep.subr.bf16.mxu0 %v12452_v22 }
 0xbc0   : > { %11795 = vmatpush3.bf16.msra.mxu0 %v12453_v40 }
 0xc01   : > { %v5208_v5 = vpop.permute.xlu0 %5207 }
 0xc02   : > { %5226 = vst.msk [vmem:[#allocation2 + $0x61] sm:$0xff] %vm5219_vm15, %v5208_v5  ;;  %v5316_v5 = vld [vmem:[#allocation2 + $0xc1] sm:$0xff] }
 0xc03   : > { %v14892_v22 = vpack.c.bf16 %v5317_v13, %v5316_v5 }
 0xc05   : > { %v5210_v57 = vpop.permute.xlu1 %5209  ;;  %v3541_v46 = vpop.permute.xlu0 %3540 }
 0xc06   : > { %3560 = vst.msk [vmem:[#allocation2 + $0xa9] sm:$0xff] %vm3024_vm11, %v3541_v46 }
 0xc07   : > { %5227 = vst.msk [vmem:[#allocation2 + $0x69] sm:$0xff] %vm5219_vm15, %v5210_v57 }
 0xc09   : > { %v3543_v23 = vpop.permute.xlu1 %3542  ;;  %v4064_v17 = vpop.permute.xlu0 %4063  ;;  %v5240_v19 = vld [vmem:[#allocation2 + $0x61] sm:$0xff] }
 0xc0a   : > { %3561 = vst.msk [vmem:[#allocation2 + $0xb1] sm:$0xff] %vm3024_vm11, %v3543_v23  ;;  %4087 = vst.msk [vmem:[#allocation2 + $0xd9] sm:$0xff] %vm3024_vm11, %v4064_v17  ;;  %v4009_v23 = vadd.f32 %v14604_v15, %v14310_v11 }
 0xc0c   : > { %vm4033_vm5 = vcmp.ge.f32.partialorder %v4009_v23, 0.0 }
 0xc0d   : > { %v4066_v63 = vpop.permute.xlu1 %4065  ;;  %v5377_v55 = vpop.permute.xlu0 %5376  ;;  %v5302_v3 = vld [vmem:[#allocation2 + $0xa8] sm:$0xff] }
 0xc0e   : > { %v5241_v18 = vld [vmem:[#allocation2 + $0x69] sm:$0xff]  ;;  %4088 = vst.msk [vmem:[#allocation2 + $0xe1] sm:$0xff] %vm3024_vm11, %v4066_v63  ;;  %v5442_v1 = vsel %vm780_vm3, %v14616_v53, %v5377_v55 }
 0xc0f   : > { %v5248_v0 = vpack.c.bf16 %v5241_v18, %v5240_v19  ;;  %v5252_v43 = vld [vmem:[#allocation2 + $0x62] sm:$0xff]  ;;  %v5253_v51 = vld [vmem:[#allocation2 + $0x6a] sm:$0xff]  ;;  %v4041_v18 = vmul.f32 0.2, %v4009_v23 }
 0xc10   : > { %v5260_v10 = vpack.c.bf16 %v5253_v51, %v5252_v43  ;;  %v5314_v30 = vld [vmem:[#allocation2 + $0xa9] sm:$0xff] }
 0xc11   : > { %5340 = vrot.lane.b32.xlu1 %v5248_v0, %s17147_s19  ;;  %v5389_v8 = vpop.permute.xlu0 %5388  ;;  %v5326_v52 = vld [vmem:[#allocation2 + $0xaa] sm:$0xff]  ;;  %v5327_v25 = vld [vmem:[#allocation2 + $0xb2] sm:$0xff]  ;;  %v4049_v11 = vsel %vm4033_vm5, %v4009_v23, %v4041_v18  ;;  %v5365_v0 = vpop.permute.xlu1 %5364 }
 0xc12   : > { %v5303_v26 = vld [vmem:[#allocation2 + $0xb0] sm:$0xff]  ;;  %v5333_v12 = vpack.c.bf16 %v5327_v25, %v5326_v52  ;;  %v5453_v47 = vsel %vm797_vm4, %v5442_v1, %v5389_v8  ;;  %v5306_v57 = vld [vmem:[#allocation2 + $0xd8] sm:$0xff]  ;;  %v5228_v8 = vld [vmem:[#allocation2 + $0x60] sm:$0xff] }
 0xc13   : > { %v14865_v24 = vpack.c.bf16 %v5303_v26, %v5302_v3  ;;  %v5315_v2 = vld [vmem:[#allocation2 + $0xb1] sm:$0xff]  ;;  %v5318_v63 = vld [vmem:[#allocation2 + $0xd9] sm:$0xff]  ;;  %v5229_v3 = vld [vmem:[#allocation2 + $0x68] sm:$0xff] }
 0xc14   : > { %12139 = vmatmul.mubr.msk.bf16.vlgmr.msra.gmra.mxu1 %vm780_vm3, %v5333_v12  ;;  %v14876_v14 = vpack.c.bf16 %v5315_v2, %v5314_v30  ;;  %v5236_v52 = vpack.c.bf16 %v5229_v3, %v5228_v8 }
 0xc15   : > { %5352 = vrot.lane.b32.xlu1 %v5260_v10, %s17145_s26  ;;  %5390 = vrot.lane.b32.xlu0 %v14865_v24, %s17145_s26  ;;  %v5401_v58 = vpop.permute.xlu0 %5400  ;;  %v5330_v53 = vld [vmem:[#allocation2 + $0xda] sm:$0xff]  ;;  %v5331_v54 = vld [vmem:[#allocation2 + $0xe2] sm:$0xff]  ;;  %v5343_v43 = vpop.permute.xlu1 %5342 }
 0xc16   : > { %12142 = vmatprep.mubr.msk.bf16.mxu1 %vm780_vm3, %v5334_v39  ;;  %v5461_v28 = vsel %vm815_vm6, %v5453_v47, %v5401_v58  ;;  %v14882_v60 = vpack.c.bf16 %v5331_v54, %v5330_v53  ;;  %v5307_v40 = vld [vmem:[#allocation2 + $0xe0] sm:$0xff]  ;;  %v5413_v30 = vsel %vm780_vm3, %v14599_v38, %v5343_v43 }
 0xc17   : > { %5667 = vmatprep.mubr.bf16.mxu0 %v5461_v28  ;;  %v14903_v46 = vpack.c.bf16 %v5307_v40, %v5306_v57  ;;  %v5319_v17 = vld [vmem:[#allocation2 + $0xe1] sm:$0xff] }
 0xc18   : > { %v14910_v19 = vpack.c.bf16 %v5319_v17, %v5318_v63 }
 0xc19   : > { %5366 = vrot.lane.b32.xlu1 %v14794_v16, %s17149_s23  ;;  %5402 = vrot.lane.b32.xlu0 %v14876_v14, %s17149_s23  ;;  %v5355_v51 = vpop.permute.xlu1 %5354  ;;  %v5379_v9 = vpop.permute.xlu0 %5378 }
 0xc1a   : > { %v5445_v1 = vsel %vm780_vm3, %v14800_v29, %v5379_v9  ;;  %v5423_v54 = vsel %vm797_vm4, %v5413_v30, %v5355_v51  ;;  %v14956_v30 = vpop.f32.mrf.mxu1 }
 0xc1c   : > { %12143 = vmatmul.mubr.msk.bf16.gmra.mxu1 %vm780_vm3, %v14882_v60 }
 0xc1d   : > { %5344 = vrot.lane.b32.xlu1 %v14800_v29, %s17147_s19  ;;  %5380 = vrot.lane.b32.xlu0 %v5333_v12, %s17147_s19 }
 0xc21   : > { %5356 = vrot.lane.b32.xlu1 %v14717_v45, %s17145_s26  ;;  %5392 = vrot.lane.b32.xlu0 %v5310_v50, %s17145_s26  ;;  %v4012_v45 = vadd.f32 %v14604_v15, %v14312_v59 }
 0xc23   : > { %v4042_v55 = vmul.f32 0.2, %v4012_v45  ;;  %vm4034_vm8 = vcmp.ge.f32.partialorder %v4012_v45, 0.0 }
 0xc25   : > { %5368 = vrot.lane.b32.xlu1 %v14865_v24, %s17149_s23  ;;  %5404 = vrot.lane.b32.xlu0 %v14892_v22, %s17149_s23  ;;  %v4050_v59 = vsel %vm4034_vm8, %v4012_v45, %v4042_v55 }
 0xc29   : > { %5346 = vrot.lane.b32.xlu1 %v14876_v14, %s17147_s19  ;;  %5382 = vrot.lane.b32.xlu0 %v5334_v39, %s17147_s19 }
 0xc2d   : > { %5358 = vrot.lane.b32.xlu1 %v5333_v12, %s17145_s26  ;;  %5394 = vrot.lane.b32.xlu0 %v14903_v46, %s17145_s26 }
 0xc31   : > { %5370 = vrot.lane.b32.xlu1 %v5310_v50, %s17149_s23  ;;  %5406 = vrot.lane.b32.xlu0 %v14910_v19, %s17149_s23 }
 0xc35   : > { %4069 = vrot.lane.b32.xlu1 %v4050_v59, %s17152_s20  ;;  %4067 = vrot.lane.b32.xlu0 %v4049_v11, %s17152_s20 }
 0xc83   : > { %v5341_v61 = vpop.permute.xlu1 %5340 }
 0xc84   : > { %v5410_v25 = vsel %vm780_vm3, %v5236_v52, %v5341_v61 }
 0xc87   : > { %v5353_v26 = vpop.permute.xlu1 %5352  ;;  %v5391_v12 = vpop.permute.xlu0 %5390 }
 0xc88   : > { %v5421_v10 = vsel %vm797_vm4, %v5410_v25, %v5353_v26  ;;  %v5455_v47 = vsel %vm797_vm4, %v5445_v1, %v5391_v12 }
 0xc89   : > { %v5429_v39 = vsel %vm815_vm6, %v5421_v10, %v5365_v0 }
 0xc8a   : > { %5668 = vmatmul.mubr.bf16.vlgmr.msra.gmra.mxu0 %v5429_v39 }
 0xc8b   : > { %v5367_v2 = vpop.permute.xlu1 %5366  ;;  %v5403_v58 = vpop.permute.xlu0 %5402 }
 0xc8c   : > { %v5464_v28 = vsel %vm815_vm6, %v5455_v47, %v5403_v58  ;;  %v5432_v35 = vsel %vm815_vm6, %v5423_v54, %v5367_v2 }
 0xc8d   : > { %5675 = vmatprep.mubr.bf16.mxu0 %v5464_v28 }
 0xc8f   : > { %v5345_v53 = vpop.permute.xlu1 %5344  ;;  %v5381_v33 = vpop.permute.xlu0 %5380 }
 0xc90   : > { %v5416_v29 = vsel %vm780_vm3, %v14794_v16, %v5345_v53  ;;  %v5448_v5 = vsel %vm780_vm3, %v14876_v14, %v5381_v33 }
 0xc92   : > { %5676 = vmatmul.mubr.bf16.gmra.mxu0 %v5432_v35 }
 0xc93   : > { %v5357_v50 = vpop.permute.xlu1 %5356  ;;  %v5393_v13 = vpop.permute.xlu0 %5392 }
 0xc94   : > { %v5425_v40 = vsel %vm797_vm4, %v5416_v29, %v5357_v50  ;;  %v5457_v38 = vsel %vm797_vm4, %v5448_v5, %v5393_v13 }
 0xc97   : > { %v5369_v57 = vpop.permute.xlu1 %5368  ;;  %v5405_v45 = vpop.permute.xlu0 %5404 }
 0xc98   : > { %v5435_v23 = vsel %vm815_vm6, %v5425_v40, %v5369_v57  ;;  %v5467_v17 = vsel %vm815_vm6, %v5457_v38, %v5405_v45 }
 0xc99   : > { %5683 = vmatprep.mubr.bf16.mxu0 %v5467_v17 }
 0xc9a   : > { %5684 = vmatmul.mubr.bf16.gmra.mxu0 %v5435_v23 }
 0xc9b   : > { %v5347_v63 = vpop.permute.xlu1 %5346  ;;  %v5383_v55 = vpop.permute.xlu0 %5382 }
 0xc9c   : > { %v5419_v16 = vsel %vm780_vm3, %v14865_v24, %v5347_v63  ;;  %v5451_v14 = vsel %vm780_vm3, %v14892_v22, %v5383_v55 }
 0xc9f   : > { %v5359_v18 = vpop.permute.xlu1 %5358  ;;  %v5395_v59 = vpop.permute.xlu0 %5394 }
 0xca0   : > { %v5427_v11 = vsel %vm797_vm4, %v5419_v16, %v5359_v18  ;;  %v5459_v43 = vsel %vm797_vm4, %v5451_v14, %v5395_v59  ;;  %v4017_v16 = vadd.f32 %v14604_v15, %v14314_v36  ;;  %v4020_v36 = vadd.f32 %v14604_v15, %v14316_v48 }
 0xca1   : > { %v4535_v48 = vadd.f32 %v14728_v4, %v14723_v42 }
 0xca2   : > { %vm4035_vm10 = vcmp.ge.f32.partialorder %v4017_v16, 0.0  ;;  %vm4036_vm1 = vcmp.ge.f32.partialorder %v4020_v36, 0.0 }
 0xca3   : > { %v5371_v0 = vpop.permute.xlu1 %5370  ;;  %v5407_v51 = vpop.permute.xlu0 %5406  ;;  %vm4563_vm5 = vcmp.ge.f32.partialorder %v4535_v48, 0.0 }
 0xca4   : > { %v5438_v3 = vsel %vm815_vm6, %v5427_v11, %v5371_v0  ;;  %v5470_v61 = vsel %vm815_vm6, %v5459_v43, %v5407_v51  ;;  %v12454_v51 = vld [vmem:[%s17072_s4 + $0x88] sm:$0xff]  }
 0xca5   : > { %5691 = vmatprep.mubr.bf16.mxu0 %v5470_v61  ;;  %12146 = vmatprep.subr.bf16.mxu0 %v12454_v51 }
 0xca6   : > { %5692 = vmatmul.mubr.bf16.gmra.mxu0 %v5438_v3 }
 0xca7   : > { %v4070_v9 = vpop.permute.xlu1 %4069  ;;  %v4068_v8 = vpop.permute.xlu0 %4067  ;;  %12147 = vmatpush3.bf16.msra.mxu0 %v12454_v51  ;;  %v12466_v51 = vld [vmem:[%s17072_s4 + $0x50] sm:$0xff]  }
 0xca8   : > { %4090 = vst.msk [vmem:[#allocation2 + $0xf9] sm:$0xff] %vm3024_vm11, %v4070_v9  ;;  %4089 = vst.msk [vmem:[#allocation2 + $0xf1] sm:$0xff] %vm3024_vm11, %v4068_v8  ;;  %v4043_v9 = vmul.f32 0.2, %v4017_v16 }
 0xcaf   : > { %v5926_v24 = vld [vmem:[#allocation2 + $0xfa] sm:$0xff]  ;;  %v5925_v22 = vld [vmem:[#allocation2 + $0xf2] sm:$0xff] }
 0xcb0   : > { %v14946_v52 = vpack.c.bf16 %v5926_v24, %v5925_v22  ;;  %v4532_v24 = vadd.f32 %v14728_v4, %v14721_v7  ;;  %v4571_v7 = vmul.f32 0.2, %v4535_v48  ;;  %v5913_v4 = vld [vmem:[#allocation2 + $0xf1] sm:$0xff] }
 0xcb2   : > { %12150 = vmatprep.mubr.msk.bf16.mxu0 %vm780_vm3, %v14946_v52  ;;  %vm4562_vm8 = vcmp.ge.f32.partialorder %v4532_v24, 0.0 }
 0xcd4   : > { %v14958_v54 = vpop.f32.mrf.mxu1 }
 0xcd6   : > { %v14962_v50 = vpop.f32.mrf.mxu1 }
 0xcd8   : > { %v14966_v40 = vpop.f32.mrf.mxu1 }
 0xcda   : > { %v14970_v45 = vpop.f32.mrf.mxu1 }
 0xcdc   : > { %v12144_v17 = vpop.f32.mrf.mxu1 }
 0xcde   : > { %v14975_v14 = vpop.f32.mrf.mxu1 }
 0xce0   : > { %v12145_v8 = vpop.f32.mrf.mxu1 }
 0xd4a   : > { %v11796_v25 = vpop.f32.mrf.mxu0 }
 0xd4c   : > { %v11797_v26 = vpop.f32.mrf.mxu0 }
 0xd4d   : > { %v14950_v10 = vadd.f32 %v11797_v26, %v11796_v25  ;;  %v12455_v26 = vld [vmem:[%s17072_s4 + $0x80] sm:$0xff]  }
 0xd4e   : > { %v11799_v12 = vpop.f32.mrf.mxu0  ;;  %12148 = vmatprep.subr.bf16.mxu0 %v12455_v26 }
 0xd4f   : > { %12149 = vmatpush3.bf16.msra.mxu0 %v12455_v26 }
 0xd50   : > { %v11800_v39 = vpop.f32.mrf.mxu0 }
 0xd51   : > { %v14952_v1 = vadd.f32 %v11800_v39, %v11799_v12  ;;  %v4051_v39 = vsel %vm4035_vm10, %v4017_v16, %v4043_v9  ;;  %v12462_v16 = vld [vmem:[%s17072_s4 + $0x60] sm:$0xff]   ;;  %v12469_v9 = vld [vmem:[%s17072_s4 + $0x8] sm:$0xff]   ;;  %vm4564_vm10 = vcmp.ge.f32.partialorder %v14731_v49, 0.0 }
 0xd52   : > { %v11802_v2 = vpop.f32.mrf.mxu0 }
 0xd54   : > { %v11803_v47 = vpop.f32.mrf.mxu0 }
 0xd55   : > { %v14954_v58 = vadd.f32 %v11803_v47, %v11802_v2  ;;  %v4044_v2 = vmul.f32 0.2, %v4020_v36  ;;  %v4570_v47 = vmul.f32 0.2, %v4532_v24 }
 0xd56   : > { %v11805_v28 = vpop.f32.mrf.mxu0 }
 0xd58   : > { %v11806_v53 = vpop.f32.mrf.mxu0 }
 0xd59   : > { %v14960_v33 = vadd.f32 %v11806_v53, %v11805_v28  ;;  %v4052_v28 = vsel %vm4036_vm1, %v4020_v36, %v4044_v2  ;;  %v4578_v53 = vsel %vm4562_vm8, %v4532_v24, %v4570_v47  ;;  %v12470_v36 = vld [vmem:[%s17072_s4 + $0x40] sm:$0xff]   ;;  %vm4566_vm1 = vcmp.ge.f32.partialorder %v14737_v21, 0.0 }
 0xd5a   : > { %v11808_v35 = vpop.f32.mrf.mxu0  ;;  %v12471_v24 = vld [vmem:[%s17072_s4] sm:$0xff]   ;;  %vm5164_vm8 = vcmp.ge.f32.partialorder %v14765_v32, 0.0 }
 0xd5c   : > { %v11809_v13 = vpop.f32.mrf.mxu0 }
 0xd5d   : > { %v14964_v29 = vadd.f32 %v11809_v13, %v11808_v35  ;;  %v4579_v35 = vsel %vm4563_vm5, %v4535_v48, %v4571_v7  ;;  %v5901_v13 = vld [vmem:[#allocation2 + $0xf0] sm:$0xff]  ;;  %vm5163_vm5 = vcmp.ge.f32.partialorder %v14759_v41, 0.0 }
 0xd5e   : > { %v11811_v5 = vpop.f32.mrf.mxu0 }
 0xd60   : > { %v11812_v57 = vpop.f32.mrf.mxu0 }
 0xd61   : > { %v14968_v38 = vadd.f32 %v11812_v57, %v11811_v5  ;;  %v5902_v5 = vld [vmem:[#allocation2 + $0xf8] sm:$0xff] }
 0xd62   : > { %v14998_v42 = vpack.c.bf16 %v5902_v5, %v5901_v13  ;;  %v5914_v57 = vld [vmem:[#allocation2 + $0xf9] sm:$0xff]  ;;  %v5930_v13 = vld [vmem:[#allocation2 + $0x12a] sm:$0xff] }
 0xd66   : > { %v11814_v23 = vpop.f32.mrf.mxu0 }
 0xd68   : > { %v11815_v63 = vpop.f32.mrf.mxu0 }
 0xd69   : > { %v11816_v55 = vadd.f32 %v11815_v63, %v11814_v23  ;;  %v15004_v23 = vpack.c.bf16 %v5914_v57, %v5913_v4  ;;  %v12457_v63 = vld [vmem:[%s17072_s4 + $0x38] sm:$0xff]  }
 0xd6a   : > { %v11817_v18 = vpop.f32.mrf.mxu0 }
 0xd6b   : > { %v5694_v59 = vadd.f32 %v11816_v55, %v14751_v27  ;;  %v12458_v55 = vld [vmem:[%s17072_s4 + $0x70] sm:$0xff]  }
 0xd6c   : > { %v11818_v11 = vpop.f32.mrf.mxu0 }
 0xd6d   : > { %v5759_v0 = vadd.f32 %v12144_v17, %v5694_v59  ;;  %v11819_v43 = vadd.f32 %v11818_v11, %v11817_v18  ;;  %v12456_v17 = vld [vmem:[%s17072_s4 + $0x78] sm:$0xff]   ;;  %v12460_v18 = vld [vmem:[%s17072_s4 + $0x68] sm:$0xff]   ;;  %v12463_v11 = vld [vmem:[%s17072_s4 + $0x20] sm:$0xff]  }
 0xd6e   : > { %11826 = vmatprep.subr.bf16.mxu1 %v12456_v17  ;;  %v12461_v59 = vld [vmem:[%s17072_s4 + $0x28] sm:$0xff]  }
 0xd6f   : > { %v5697_v3 = vadd.f32 %v11819_v43, %v14751_v27  ;;  %vm5771_vm9 = vcmp.ge.f32.partialorder %v5759_v0, 0.0  ;;  %v5779_v61 = vmul.f32 0.2, %v5759_v0  ;;  %11827 = vmatpush3.bf16.msra.mxu1 %v12457_v63  ;;  %v12465_v43 = vld [vmem:[%s17072_s4 + $0x18] sm:$0xff]  }
 0xd70   : > { %11828 = vmatprep.subr.bf16.mxu1 %v12458_v55 }
 0xd71   : > { %v5762_v22 = vadd.f32 %v12145_v8, %v5697_v3  ;;  %v5787_v25 = vsel %vm5771_vm9, %v5759_v0, %v5779_v61  ;;  %v12464_v0 = vld [vmem:[%s17072_s4 + $0x58] sm:$0xff]   ;;  %v12467_v3 = vld [vmem:[%s17072_s4 + $0x10] sm:$0xff]   ;;  %v12468_v61 = vld [vmem:[%s17072_s4 + $0x48] sm:$0xff]   ;;  %vm4565_vm9 = vcmp.ge.f32.partialorder %v14734_v62, 0.0 }
 0xd72   : > { %5809 = vrot.lane.b32.xlu0 %v5787_v25, %s17147_s19 }
 0xd73   : > { %vm5772_vm12 = vcmp.ge.f32.partialorder %v5762_v22, 0.0  ;;  %v5780_v12 = vmul.f32 0.2, %v5762_v22 }
 0xd75   : > { %v5788_v15 = vsel %vm5772_vm12, %v5762_v22, %v5780_v12  ;;  %vm4567_vm12 = vcmp.ge.f32.partialorder %v14740_v20, 0.0 }
 0xd76   : > { %5811 = vrot.lane.b32.xlu1 %v5788_v15, %s17147_s19  ;;  %4071 = vrot.lane.b32.xlu0 %v4051_v39, %s17152_s20 }
 0xd7a   : > { %4073 = vrot.lane.b32.xlu1 %v4052_v28, %s17152_s20  ;;  %4594 = vrot.lane.b32.xlu0 %v4578_v53, %s17152_s20 }
 0xd7e   : > { %4596 = vrot.lane.b32.xlu1 %v4579_v35, %s17152_s20  ;;  %5977 = vrot.lane.b32.xlu0 %v14882_v60, %s17147_s19  ;;  %v5929_v35 = vld [vmem:[#allocation2 + $0x122] sm:$0xff] }
 0xd82   : > { %5965 = vrot.lane.b32.xlu1 %v14903_v46, %s17149_s23  ;;  %5989 = vrot.lane.b32.xlu0 %v14998_v42, %s17145_s26 }
 0xd86   : > { %5943 = vrot.lane.b32.xlu1 %v14910_v19, %s17147_s19  ;;  %6001 = vrot.lane.b32.xlu0 %v15004_v23, %s17149_s23 }
 0xd8a   : > { %5955 = vrot.lane.b32.xlu1 %v14882_v60, %s17145_s26  ;;  %5979 = vrot.lane.b32.xlu0 %v14946_v52, %s17147_s19  ;;  %v12459_v60 = vld [vmem:[%s17072_s4 + $0x30] sm:$0xff]  }
 0xd8b   : > { %11829 = vmatpush3.bf16.msra.mxu1 %v12459_v60 }
 0xd8c   : > { %11830 = vmatprep.subr.bf16.mxu1 %v12460_v18  ;;  %v5935_v18 = vpack.c.bf16 %v5930_v13, %v5929_v35  ;;  %v4575_v35 = vmul.f32 0.2, %v14740_v20 }
 0xd8f   : > { %11831 = vmatpush3.bf16.msra.mxu1 %v12461_v59 }
 0xd90   : > { %11832 = vmatprep.subr.bf16.mxu1 %v12462_v16 }
 0xd93   : > { %11833 = vmatpush3.bf16.msra.mxu1 %v12463_v11 }
 0xd94   : > { %11834 = vmatprep.subr.bf16.mxu1 %v12464_v0 }
 0xd97   : > { %11835 = vmatpush3.bf16.msra.mxu1 %v12465_v43 }
 0xd98   : > { %11836 = vmatprep.subr.bf16.mxu1 %v12466_v51 }
 0xd9b   : > { %11837 = vmatpush3.bf16.msra.mxu1 %v12467_v3 }
 0xd9c   : > { %11838 = vmatprep.subr.bf16.mxu1 %v12468_v61 }
 0xd9f   : > { %11839 = vmatpush3.bf16.msra.mxu1 %v12469_v9 }
 0xda0   : > { %11840 = vmatprep.subr.bf16.mxu1 %v12470_v36  ;;  %v5905_v36 = vld [vmem:[#allocation2 + $0x120] sm:$0xff] }
 0xda3   : > { %11841 = vmatpush3.bf16.msra.mxu1 %v12471_v24 }
 0xde4   : > { %v5810_v8 = vpop.permute.xlu0 %5809 }
 0xde5   : > { %5827 = vst.msk [vmem:[#allocation2 + $0xc1] sm:$0xff] %vm5219_vm15, %v5810_v8  ;;  %v5906_v8 = vld [vmem:[#allocation2 + $0x128] sm:$0xff] }
 0xde6   : > { %v5911_v24 = vpack.c.bf16 %v5906_v8, %v5905_v36 }
 0xde8   : > { %v5812_v22 = vpop.permute.xlu1 %5811  ;;  %v4072_v25 = vpop.permute.xlu0 %4071 }
 0xde9   : > { %5828 = vst.msk [vmem:[#allocation2 + $0xc9] sm:$0xff] %vm5219_vm15, %v5812_v22  ;;  %v5918_v22 = vld [vmem:[#allocation2 + $0x129] sm:$0xff] }
 0xdea   : > { %4091 = vst.msk [vmem:[#allocation2 + $0x109] sm:$0xff] %vm3024_vm11, %v4072_v25  ;;  %v5917_v25 = vld [vmem:[#allocation2 + $0x121] sm:$0xff] }
 0xdec   : > { %v4074_v26 = vpop.permute.xlu1 %4073  ;;  %v4595_v12 = vpop.permute.xlu0 %4594  ;;  %v5841_v47 = vld [vmem:[#allocation2 + $0xc1] sm:$0xff] }
 0xded   : > { %4092 = vst.msk [vmem:[#allocation2 + $0x111] sm:$0xff] %vm3024_vm11, %v4074_v26  ;;  %4618 = vst.msk [vmem:[#allocation2 + $0x139] sm:$0xff] %vm3024_vm11, %v4595_v12  ;;  %v15096_v26 = vpack.c.bf16 %v5918_v22, %v5917_v25  ;;  %v5829_v25 = vld [vmem:[#allocation2 + $0xc0] sm:$0xff] }
 0xdf0   : > { %v4597_v39 = vpop.permute.xlu1 %4596  ;;  %v5978_v2 = vpop.permute.xlu0 %5977  ;;  %v5842_v48 = vld [vmem:[#allocation2 + $0xc9] sm:$0xff] }
 0xdf1   : > { %4619 = vst.msk [vmem:[#allocation2 + $0x141] sm:$0xff] %vm3024_vm11, %v4597_v39  ;;  %v5849_v15 = vpack.c.bf16 %v5842_v48, %v5841_v47  ;;  %v5853_v7 = vld [vmem:[#allocation2 + $0xc2] sm:$0xff]  ;;  %v5854_v28 = vld [vmem:[#allocation2 + $0xca] sm:$0xff]  ;;  %v6043_v59 = vsel %vm780_vm3, %v14910_v19, %v5978_v2 }
 0xdf2   : > { %v5903_v53 = vld [vmem:[#allocation2 + $0x108] sm:$0xff]  ;;  %v5861_v63 = vpack.c.bf16 %v5854_v28, %v5853_v7  ;;  %v4572_v28 = vmul.f32 0.2, %v14731_v49 }
 0xdf3   : > { %5941 = vrot.lane.b32.xlu1 %v5849_v15, %s17147_s19  ;;  %v5915_v51 = vld [vmem:[#allocation2 + $0x109] sm:$0xff]  ;;  %v4573_v15 = vmul.f32 0.2, %v14734_v62 }
 0xdf4   : > { %v5990_v5 = vpop.permute.xlu0 %5989  ;;  %v5927_v4 = vld [vmem:[#allocation2 + $0x10a] sm:$0xff]  ;;  %v5928_v57 = vld [vmem:[#allocation2 + $0x112] sm:$0xff] }
 0xdf5   : > { %v5904_v17 = vld [vmem:[#allocation2 + $0x110] sm:$0xff]  ;;  %v5934_v55 = vpack.c.bf16 %v5928_v57, %v5927_v4  ;;  %v6054_v11 = vsel %vm797_vm4, %v6043_v59, %v5990_v5  ;;  %v5907_v39 = vld [vmem:[#allocation2 + $0x138] sm:$0xff]  ;;  %v12472_v47 = vld [vmem:[%s17072_s4 + $0x88] sm:$0xff]   ;;  %v4581_v13 = vsel %vm4565_vm9, %v14734_v62, %v4573_v15  ;;  %v4574_v5 = vmul.f32 0.2, %v14737_v21 }
 0xdf6   : > { %v15069_v60 = vpack.c.bf16 %v5904_v17, %v5903_v53  ;;  %v5916_v16 = vld [vmem:[#allocation2 + $0x111] sm:$0xff]  ;;  %v5919_v48 = vld [vmem:[#allocation2 + $0x139] sm:$0xff]  ;;  %12158 = vmatprep.subr.bf16.mxu0 %v12472_v47  ;;  %v4580_v4 = vsel %vm4564_vm10, %v14731_v49, %v4572_v28  ;;  %v5172_v57 = vmul.f32 0.2, %v14765_v32  ;;  %v4583_v17 = vsel %vm4567_vm12, %v14740_v20, %v4575_v35  ;;  %v5830_v36 = vld [vmem:[#allocation2 + $0xc8] sm:$0xff] }
 0xdf7   : > { %5953 = vrot.lane.b32.xlu1 %v5861_v63, %s17145_s26  ;;  %12151 = vmatmul.mubr.msk.bf16.vlgmr.msra.gmra.mxu0 %vm780_vm3, %v5934_v55  ;;  %v15080_v3 = vpack.c.bf16 %v5916_v16, %v5915_v51  ;;  %v12473_v53 = vld [vmem:[%s17072_s4 + $0x80] sm:$0xff]   ;;  %v5171_v63 = vmul.f32 0.2, %v14759_v41  ;;  %v4582_v62 = vsel %vm4566_vm1, %v14737_v21, %v4574_v5  ;;  %v5174_v49 = vmul.f32 0.2, %v14762_v34 }
 0xdf8   : > { %5991 = vrot.lane.b32.xlu0 %v15069_v60, %s17145_s26  ;;  %12154 = vmatprep.mubr.msk.bf16.mxu0 %vm780_vm3, %v5935_v18  ;;  %v6002_v0 = vpop.permute.xlu0 %6001  ;;  %v5931_v19 = vld [vmem:[#allocation2 + $0x13a] sm:$0xff]  ;;  %v5932_v61 = vld [vmem:[#allocation2 + $0x142] sm:$0xff]  ;;  %vm5166_vm9 = vcmp.ge.f32.partialorder %v14762_v34, 0.0  ;;  %vm5165_vm10 = vcmp.ge.f32.partialorder %v14756_v6, 0.0  ;;  %v5087_v21 = vadd.f32 %v14754_v37, %v14751_v27  ;;  %v4577_v59 = vmul.f32 0.2, %v14746_v44 }
 0xdf9   : > { %v6062_v43 = vsel %vm815_vm6, %v6054_v11, %v6002_v0  ;;  %v15086_v9 = vpack.c.bf16 %v5932_v61, %v5931_v19  ;;  %v5908_v12 = vld [vmem:[#allocation2 + $0x140] sm:$0xff]  ;;  %12159 = vmatpush3.bf16.msra.mxu0 %v12472_v47  ;;  %v5179_v20 = vsel %vm5163_vm5, %v14759_v41, %v5171_v63  ;;  %v5182_v11 = vsel %vm5166_vm9, %v14762_v34, %v5174_v49 }
 0xdfa   : > { %6268 = vmatprep.mubr.bf16.mxu1 %v6062_v43  ;;  %v5920_v2 = vld [vmem:[#allocation2 + $0x141] sm:$0xff]  ;;  %12160 = vmatprep.subr.bf16.mxu0 %v12473_v53  ;;  %v5152_v16 = vadd.f32 %v14956_v30, %v5087_v21  ;;  %v4576_v0 = vmul.f32 0.2, %v14743_v31  ;;  %vm4569_vm12 = vcmp.ge.f32.partialorder %v14746_v44, 0.0  ;;  %v5670_v41 = vadd.f32 %v14950_v10, %v14751_v27 }
 0xdfb   : > { %5967 = vrot.lane.b32.xlu1 %v14998_v42, %s17149_s23  ;;  %v15114_v7 = vpack.c.bf16 %v5920_v2, %v5919_v48  ;;  %vm4568_vm1 = vcmp.ge.f32.partialorder %v14743_v31, 0.0  ;;  %v4585_v34 = vsel %vm4569_vm12, %v14746_v44, %v4577_v59  ;;  %v5175_v43 = vmul.f32 0.2, %v14771_v56 }
 0xdfc   : > { %6003 = vrot.lane.b32.xlu0 %v15080_v3, %s17149_s23  ;;  %v5176_v30 = vmul.f32 0.2, %v5152_v16  ;;  %v5735_v51 = vadd.f32 %v14962_v50, %v5670_v41  ;;  %vm5167_vm5 = vcmp.ge.f32.partialorder %v14771_v56, 0.0  ;;  %v5980_v22 = vpop.permute.xlu0 %5979 }
 0xdfd   : > { %12161 = vmatpush3.bf16.msra.mxu0 %v12473_v53  ;;  %v6046_v15 = vsel %vm780_vm3, %v15004_v23, %v5980_v22 }
 0xdfe   : > { %v5773_v44 = vmul.f32 0.2, %v5735_v51 }
 0xdff   : > { %5945 = vrot.lane.b32.xlu1 %v15004_v23, %s17147_s19  ;;  %12155 = vmatmul.mubr.msk.bf16.gmra.mxu0 %vm780_vm3, %v15086_v9 }
 0xe00   : > { %5981 = vrot.lane.b32.xlu0 %v5934_v55, %s17147_s19 }
 0xe03   : > { %5957 = vrot.lane.b32.xlu1 %v14946_v52, %s17145_s26  ;;  %v15105_v52 = vpack.c.bf16 %v5908_v12, %v5907_v39  ;;  %v5837_v12 = vpack.c.bf16 %v5830_v36, %v5829_v25 }
 0xe04   : > { %5993 = vrot.lane.b32.xlu0 %v5911_v24, %s17145_s26 }
 0xe07   : > { %5969 = vrot.lane.b32.xlu1 %v15069_v60, %s17149_s23 }
 0xe08   : > { %6005 = vrot.lane.b32.xlu0 %v15096_v26, %s17149_s23 }
 0xe0b   : > { %5947 = vrot.lane.b32.xlu1 %v15080_v3, %s17147_s19 }
 0xe0c   : > { %5983 = vrot.lane.b32.xlu0 %v5935_v18, %s17147_s19  ;;  %v5173_v18 = vmul.f32 0.2, %v14756_v6 }
 0xe0e   : > { %v5181_v37 = vsel %vm5165_vm10, %v14756_v6, %v5173_v18  ;;  %vm5765_vm10 = vcmp.ge.f32.partialorder %v5735_v51, 0.0 }
 0xe0f   : > { %5959 = vrot.lane.b32.xlu1 %v5934_v55, %s17145_s26  ;;  %v5180_v55 = vsel %vm5164_vm8, %v14765_v32, %v5172_v57  ;;  %v5673_v32 = vadd.f32 %v14952_v1, %v14751_v27  ;;  %vm5168_vm8 = vcmp.ge.f32.partialorder %v5152_v16, 0.0  ;;  %v4584_v27 = vsel %vm4568_vm1, %v14743_v31, %v4576_v0  ;;  %v5966_v31 = vpop.permute.xlu1 %5965 }
 0xe10   : > { %5995 = vrot.lane.b32.xlu0 %v15105_v52, %s17145_s26  ;;  %v5184_v6 = vsel %vm5168_vm8, %v5152_v16, %v5176_v30  ;;  %v5781_v19 = vsel %vm5765_vm10, %v5735_v51, %v5773_v44  ;;  %vm17190_vm1 = vcmask 588800   ;;  %vm17191_vm8 = vcmask 654336  }
 0xe11   : > { %v5738_v1 = vadd.f32 %v14970_v45, %v5673_v32  ;;  %v5183_v45 = vsel %vm5167_vm5, %v14771_v56, %v5175_v43  ;;  %vm17192_vm5 = vcmask 982016   ;;  %vm17194_vm10 = vmmov %vm17191_vm8 }
 0xe13   : > { %5971 = vrot.lane.b32.xlu1 %v5911_v24, %s17149_s23  ;;  %v5774_v10 = vmul.f32 0.2, %v5738_v1  ;;  %vm5766_vm9 = vcmp.ge.f32.partialorder %v5738_v1, 0.0  ;;  %v5944_v61 = vpop.permute.xlu1 %5943 }
 0xe14   : > { %6007 = vrot.lane.b32.xlu0 %v15114_v7, %s17149_s23  ;;  %v6014_v5 = vsel %vm780_vm3, %v14903_v46, %v5944_v61 }
 0xe15   : > { %v5782_v50 = vsel %vm5766_vm9, %v5738_v1, %v5774_v10  ;;  %vm17193_vm9 = vmmov %vm17190_vm1 }
 0xe17   : > { %4600 = vrot.lane.b32.xlu1 %v4581_v13, %s17152_s20  ;;  %v5956_v8 = vpop.permute.xlu1 %5955 }
 0xe18   : > { %4598 = vrot.lane.b32.xlu0 %v4580_v4, %s17152_s20  ;;  %v6024_v57 = vsel %vm797_vm4, %v6014_v5, %v5956_v8 }
 0xe1b   : > { %4604 = vrot.lane.b32.xlu1 %v4583_v17, %s17152_s20 }
 0xe1c   : > { %4602 = vrot.lane.b32.xlu0 %v4582_v62, %s17152_s20 }
 0xe1f   : > { %5197 = vrot.lane.b32.xlu1 %v5180_v55, %s17147_s19 }
 0xe20   : > { %5195 = vrot.lane.b32.xlu0 %v5179_v20, %s17147_s19 }
 0xe23   : > { %5201 = vrot.lane.b32.xlu1 %v5182_v11, %s17147_s19 }
 0xe24   : > { %5199 = vrot.lane.b32.xlu0 %v5181_v37, %s17147_s19 }
 0xe27   : > { %4608 = vrot.lane.b32.xlu1 %v4585_v34, %s17152_s20 }
 0xe28   : > { %4606 = vrot.lane.b32.xlu0 %v4584_v27, %s17152_s20 }
 0xe2b   : > { %5205 = vrot.lane.b32.xlu1 %v5184_v6, %s17147_s19 }
 0xe2c   : > { %5203 = vrot.lane.b32.xlu0 %v5183_v45, %s17147_s19 }
 0xe2f   : > { %5799 = vrot.lane.b32.xlu1 %v5782_v50, %s17147_s19 }
 0xe30   : > { %5797 = vrot.lane.b32.xlu0 %v5781_v19, %s17147_s19 }
 0xe65   : > { %v5942_v24 = vpop.permute.xlu1 %5941 }
 0xe66   : > { %v6011_v56 = vsel %vm780_vm3, %v5837_v12, %v5942_v24 }
 0xe69   : > { %v5954_v39 = vpop.permute.xlu1 %5953 }
 0xe6a   : > { %v6022_v2 = vsel %vm797_vm4, %v6011_v56, %v5954_v39  ;;  %v5992_v47 = vpop.permute.xlu0 %5991 }
 0xe6b   : > { %v6030_v48 = vsel %vm815_vm6, %v6022_v2, %v5966_v31  ;;  %v6056_v53 = vsel %vm797_vm4, %v6046_v15, %v5992_v47 }
 0xe6c   : > { %6269 = vmatmul.mubr.bf16.vlgmr.msra.gmra.mxu1 %v6030_v48 }
 0xe6d   : > { %v5968_v28 = vpop.permute.xlu1 %5967 }
 0xe6e   : > { %v6004_v35 = vpop.permute.xlu0 %6003  ;;  %v6033_v63 = vsel %vm815_vm6, %v6024_v57, %v5968_v28  ;;  %v15230_v28 = vpop.f32.mrf.mxu1 }
 0xe6f   : > { %v6065_v13 = vsel %vm815_vm6, %v6056_v53, %v6004_v35 }
 0xe70   : > { %6276 = vmatprep.mubr.bf16.mxu1 %v6065_v13  ;;  %v11544_v13 = vld [vmem:[%s17077_s9] ss:$0 sm:$0xff] }
 0xe71   : > { %v5946_v4 = vpop.permute.xlu1 %5945 }
 0xe72   : > { %v5982_v17 = vpop.permute.xlu0 %5981  ;;  %v6017_v23 = vsel %vm780_vm3, %v14998_v42, %v5946_v4 }
 0xe73   : > { %v6049_v55 = vsel %vm780_vm3, %v15080_v3, %v5982_v17 }
 0xe74   : > { %6277 = vmatmul.mubr.bf16.gmra.mxu1 %v6033_v63 }
 0xe75   : > { %v5958_v62 = vpop.permute.xlu1 %5957 }
 0xe76   : > { %v5994_v49 = vpop.permute.xlu0 %5993  ;;  %v6026_v18 = vsel %vm797_vm4, %v6017_v23, %v5958_v62 }
 0xe77   : > { %v6058_v46 = vsel %vm797_vm4, %v6049_v55, %v5994_v49 }
 0xe79   : > { %v5970_v20 = vpop.permute.xlu1 %5969 }
 0xe7a   : > { %v6006_v21 = vpop.permute.xlu0 %6005  ;;  %v6036_v59 = vsel %vm815_vm6, %v6026_v18, %v5970_v20 }
 0xe7b   : > { %v6068_v16 = vsel %vm815_vm6, %v6058_v46, %v6006_v21 }
 0xe7c   : > { %6284 = vmatprep.mubr.bf16.mxu1 %v6068_v16 }
 0xe7d   : > { %6285 = vmatmul.mubr.bf16.gmra.mxu1 %v6036_v59  ;;  %v5948_v32 = vpop.permute.xlu1 %5947 }
 0xe7e   : > { %v5984_v11 = vpop.permute.xlu0 %5983  ;;  %v6020_v42 = vsel %vm780_vm3, %v15069_v60, %v5948_v32 }
 0xe7f   : > { %v6052_v3 = vsel %vm780_vm3, %v15096_v26, %v5984_v11 }
 0xe81   : > { %v5960_v0 = vpop.permute.xlu1 %5959 }
 0xe82   : > { %v5996_v41 = vpop.permute.xlu0 %5995  ;;  %v6028_v37 = vsel %vm797_vm4, %v6020_v42, %v5960_v0 }
 0xe83   : > { %v6060_v1 = vsel %vm797_vm4, %v6052_v3, %v5996_v41 }
 0xe85   : > { %v5972_v30 = vpop.permute.xlu1 %5971 }
 0xe86   : > { %v6008_v34 = vpop.permute.xlu0 %6007  ;;  %v6039_v43 = vsel %vm815_vm6, %v6028_v37, %v5972_v30 }
 0xe87   : > { %v6071_v51 = vsel %vm815_vm6, %v6060_v1, %v6008_v34 }
 0xe88   : > { %6292 = vmatprep.mubr.bf16.mxu1 %v6071_v51 }
 0xe89   : > { %6293 = vmatmul.mubr.bf16.gmra.mxu1 %v6039_v43  ;;  %v4601_v27 = vpop.permute.xlu1 %4600 }
 0xe8a   : > { %4621 = vst.msk [vmem:[#allocation2 + $0x159] sm:$0xff] %vm3024_vm11, %v4601_v27  ;;  %v4599_v6 = vpop.permute.xlu0 %4598 }
 0xe8b   : > { %4620 = vst.msk [vmem:[#allocation2 + $0x151] sm:$0xff] %vm3024_vm11, %v4599_v6 }
 0xe8d   : > { %v4605_v60 = vpop.permute.xlu1 %4604 }
 0xe8e   : > { %4623 = vst.msk [vmem:[#allocation2 + $0x171] sm:$0xff] %vm3024_vm11, %v4605_v60  ;;  %v4603_v26 = vpop.permute.xlu0 %4602 }
 0xe8f   : > { %4622 = vst.msk [vmem:[#allocation2 + $0x169] sm:$0xff] %vm3024_vm11, %v4603_v26 }
 0xe91   : > { %v5198_v10 = vpop.permute.xlu1 %5197  ;;  %v6527_v45 = vld [vmem:[#allocation2 + $0x15a] sm:$0xff] }
 0xe92   : > { %5221 = vst.msk [vmem:[#allocation2 + $0x21] sm:$0xff] %vm5219_vm15, %v5198_v10  ;;  %v5196_v44 = vpop.permute.xlu0 %5195  ;;  %v6526_v50 = vld [vmem:[#allocation2 + $0x152] sm:$0xff] }
 0xe93   : > { %5220 = vst.msk [vmem:[#allocation2 + $0x19] sm:$0xff] %vm5219_vm15, %v5196_v44  ;;  %v15210_v19 = vpack.c.bf16 %v6527_v45, %v6526_v50  ;;  %v12474_v50 = vld [vmem:[%s17073_s5 + $0x78] sm:$0xff]  }
 0xe94   : > { %11918 = vmatprep.subr.bf16.mxu0 %v12474_v50 }
 0xe95   : > { %12162 = vmatprep.mubr.msk.bf16.mxu0 %vm780_vm3, %v15210_v19  ;;  %v5202_v31 = vpop.permute.xlu1 %5201  ;;  %v6529_v61 = vld [vmem:[#allocation2 + $0x172] sm:$0xff] }
 0xe96   : > { %5223 = vst.msk [vmem:[#allocation2 + $0x39] sm:$0xff] %vm5219_vm15, %v5202_v31  ;;  %v5200_v8 = vpop.permute.xlu0 %5199  ;;  %v6528_v36 = vld [vmem:[#allocation2 + $0x16a] sm:$0xff] }
 0xe97   : > { %5222 = vst.msk [vmem:[#allocation2 + $0x31] sm:$0xff] %vm5219_vm15, %v5200_v8  ;;  %v15216_v24 = vpack.c.bf16 %v6529_v61, %v6528_v36  ;;  %v12475_v8 = vld [vmem:[%s17073_s5 + $0x38] sm:$0xff]  }
 0xe99   : > { %12163 = vmatmul.mubr.msk.bf16.vlgmr.msra.gmra.mxu0 %vm780_vm3, %v15216_v24  ;;  %v4609_v22 = vpop.permute.xlu1 %4608 }
 0xe9a   : > { %4625 = vst.msk [vmem:[#allocation2 + $0x189] sm:$0xff] %vm3024_vm11, %v4609_v22  ;;  %v4607_v25 = vpop.permute.xlu0 %4606  ;;  %11919 = vmatpush3.bf16.msra.mxu0 %v12475_v8  ;;  %v12489_v8 = vld [vmem:[%s17073_s5] sm:$0xff]  }
 0xe9b   : > { %4624 = vst.msk [vmem:[#allocation2 + $0x181] sm:$0xff] %vm3024_vm11, %v4607_v25 }
 0xe9d   : > { %v5206_v12 = vpop.permute.xlu1 %5205 }
 0xe9e   : > { %5225 = vst.msk [vmem:[#allocation2 + $0x51] sm:$0xff] %vm5219_vm15, %v5206_v12  ;;  %v5204_v56 = vpop.permute.xlu0 %5203  ;;  %v12476_v12 = vld [vmem:[%s17073_s5 + $0x70] sm:$0xff]  }
 0xe9f   : > { %5224 = vst.msk [vmem:[#allocation2 + $0x49] sm:$0xff] %vm5219_vm15, %v5204_v56  ;;  %11920 = vmatprep.subr.bf16.mxu0 %v12476_v12  ;;  %v7091_v12 = vld [vmem:[#allocation2 + $0x1a] sm:$0xff] }
 0xea1   : > { %v5800_v39 = vpop.permute.xlu1 %5799  ;;  %v6531_v2 = vld [vmem:[#allocation2 + $0x18a] sm:$0xff] }
 0xea2   : > { %5822 = vst.msk [vmem:[#allocation2 + $0x81] sm:$0xff] %vm5219_vm15, %v5800_v39  ;;  %v5798_v47 = vpop.permute.xlu0 %5797  ;;  %v6530_v48 = vld [vmem:[#allocation2 + $0x182] sm:$0xff] }
 0xea3   : > { %5821 = vst.msk [vmem:[#allocation2 + $0x79] sm:$0xff] %vm5219_vm15, %v5798_v47  ;;  %v15226_v15 = vpack.c.bf16 %v6531_v2, %v6530_v48  ;;  %v12477_v2 = vld [vmem:[%s17073_s5 + $0x30] sm:$0xff]  }
 0xea4   : > { %11921 = vmatpush3.bf16.msra.mxu0 %v12477_v2  ;;  %v7044_v2 = vld [vmem:[#allocation2 + $0x9] sm:$0xff] }
 0xea5   : > { %12166 = vmatprep.mubr.msk.bf16.mxu0 %vm780_vm3, %v15226_v15 }
 0xeb7   : > { %v15232_v53 = vpop.f32.mrf.mxu0 }
 0xeb9   : > { %v15237_v4 = vpop.f32.mrf.mxu0 }
 0xebb   : > { %v15241_v49 = vpop.f32.mrf.mxu0 }
 0xebd   : > { %v15245_v46 = vpop.f32.mrf.mxu0 }
 0xebf   : > { %v12156_v11 = vpop.f32.mrf.mxu0 }
 0xec1   : > { %v15251_v3 = vpop.f32.mrf.mxu0 }
 0xec2   : > { %17188 = vst [vmem:[#allocation16_spill] sm:$0xff] %v15251_v3 }
 0xec3   : > { %v12157_v43 = vpop.f32.mrf.mxu0 }
 0xec5   : > { %v6354_v60 = vpop.f32.mrf.mxu0 }
 0xf2c   : > { %v11842_v35 = vpop.f32.mrf.mxu1 }
 0xf2e   : > { %v11843_v5 = vpop.f32.mrf.mxu1 }
 0xf2f   : > { %v11844_v57 = vadd.f32 %v11843_v5, %v11842_v35  ;;  %v12478_v35 = vld [vmem:[%s17073_s5 + $0x68] sm:$0xff]  }
 0xf30   : > { %v11845_v17 = vpop.f32.mrf.mxu1  ;;  %11922 = vmatprep.subr.bf16.mxu0 %v12478_v35  ;;  %v7103_v35 = vld [vmem:[#allocation2 + $0x30] sm:$0xff] }
 0xf31   : > { %v15239_v63 = vadd.f32 %v11844_v57, %v11544_v13 }
 0xf32   : > { %v11846_v62 = vpop.f32.mrf.mxu1 }
 0xf33   : > { %v11847_v23 = vadd.f32 %v11846_v62, %v11845_v17  ;;  %v6502_v17 = vld [vmem:[#allocation2 + $0x150] sm:$0xff]  ;;  %v6503_v62 = vld [vmem:[#allocation2 + $0x158] sm:$0xff] }
 0xf34   : > { %v11848_v55 = vpop.f32.mrf.mxu1 }
 0xf35   : > { %v15243_v18 = vadd.f32 %v11847_v23, %v11544_v13  ;;  %v12480_v23 = vld [vmem:[%s17073_s5 + $0x60] sm:$0xff]  }
 0xf36   : > { %v11849_v20 = vpop.f32.mrf.mxu1 }
 0xf37   : > { %v11850_v21 = vadd.f32 %v11849_v20, %v11848_v55  ;;  %v12481_v55 = vld [vmem:[%s17073_s5 + $0x20] sm:$0xff]   ;;  %v15285_v20 = vpack.c.bf16 %v6503_v62, %v6502_v17  ;;  %v7056_v17 = vld [vmem:[#allocation2 + $0xa] sm:$0xff] }
 0xf38   : > { %v11851_v59 = vpop.f32.mrf.mxu1 }
 0xf39   : > { %v15247_v16 = vadd.f32 %v11850_v21, %v11544_v13  ;;  %v6514_v21 = vld [vmem:[#allocation2 + $0x151] sm:$0xff] }
 0xf3a   : > { %v11852_v32 = vpop.f32.mrf.mxu1 }
 0xf3b   : > { %v11853_v0 = vadd.f32 %v11852_v32, %v11851_v59  ;;  %v6515_v59 = vld [vmem:[#allocation2 + $0x159] sm:$0xff] }
 0xf3c   : > { %v12482_v32 = vld [vmem:[%s17073_s5 + $0x58] sm:$0xff]  }
 0xf3d   : > { %v15249_v41 = vadd.f32 %v11853_v0, %v11544_v13  ;;  %v11854_v42 = vpop.f32.mrf.mxu1  ;;  %v15297_v0 = vpack.c.bf16 %v6515_v59, %v6514_v21  ;;  %v6507_v21 = vld [vmem:[#allocation2 + $0x188] sm:$0xff] }
 0xf3f   : > { %v11855_v37 = vpop.f32.mrf.mxu1 }
 0xf40   : > { %v11856_v30 = vadd.f32 %v11855_v37, %v11854_v42  ;;  %v12484_v42 = vld [vmem:[%s17073_s5 + $0x50] sm:$0xff]   ;;  %v6504_v37 = vld [vmem:[#allocation2 + $0x168] sm:$0xff] }
 0xf41   : > { %v11857_v1 = vpop.f32.mrf.mxu1 }
 0xf42   : > { %v15253_v34 = vadd.f32 %v11856_v30, %v11544_v13  ;;  %v12485_v30 = vld [vmem:[%s17073_s5 + $0x10] sm:$0xff]  }
 0xf43   : > { %v11858_v51 = vpop.f32.mrf.mxu1 }
 0xf44   : > { %v11859_v27 = vadd.f32 %v11858_v51, %v11857_v1  ;;  %v6505_v1 = vld [vmem:[#allocation2 + $0x170] sm:$0xff]  ;;  %v7068_v51 = vld [vmem:[#allocation2 + $0x20] sm:$0xff] }
 0xf46   : > { %v6290_v6 = vadd.f32 %v11859_v27, %v11544_v13  ;;  %v6532_v27 = vld [vmem:[#allocation2 + $0x19a] sm:$0xff] }
 0xf48   : > { %v15255_v26 = vadd.f32 %v6354_v60, %v6290_v6  ;;  %v6533_v6 = vld [vmem:[#allocation2 + $0x1a2] sm:$0xff] }
 0xf49   : > { %v11860_v10 = vpop.f32.mrf.mxu1  ;;  %v12486_v60 = vld [vmem:[%s17073_s5 + $0x48] sm:$0xff]  }
 0xf4a   : > { %17189 = vst [vmem:[#allocation17_spill] sm:$0xff] %v15255_v26  ;;  %v12507_v26 = vld [vmem:[%s17073_s5 + $0xa8] sm:$0xff]  }
 0xf4b   : > { %v11861_v45 = vpop.f32.mrf.mxu1 }
 0xf4c   : > { %v11862_v44 = vadd.f32 %v11861_v45, %v11860_v10  ;;  %v6537_v10 = vpack.c.bf16 %v6533_v6, %v6532_v27  ;;  %v12487_v45 = vld [vmem:[%s17073_s5 + $0x8] sm:$0xff]   ;;  %v7106_v6 = vld [vmem:[#allocation2 + $0x50] sm:$0xff] }
 0xf4d   : > { %v11863_v31 = vpop.f32.mrf.mxu1  ;;  %v7105_v27 = vld [vmem:[#allocation2 + $0x48] sm:$0xff] }
 0xf4e   : > { %v6295_v61 = vadd.f32 %v11862_v44, %v11544_v13  ;;  %v15319_v44 = vpack.c.bf16 %v6505_v1, %v6504_v37  ;;  %12167 = vmatmul.mubr.msk.bf16.gmra.mxu0 %vm780_vm3, %v6537_v10  ;;  %v7094_v37 = vld [vmem:[#allocation2 + $0x3a] sm:$0xff]  ;;  %v7081_v1 = vld [vmem:[#allocation2 + $0x31] sm:$0xff] }
 0xf4f   : > { %v11864_v36 = vpop.f32.mrf.mxu1  ;;  %v6508_v10 = vld [vmem:[#allocation2 + $0x198] sm:$0xff] }
 0xf50   : > { %v6360_v22 = vadd.f32 %v12156_v11, %v6295_v61  ;;  %v11865_v25 = vadd.f32 %v11864_v36, %v11863_v31  ;;  %v12483_v11 = vld [vmem:[%s17073_s5 + $0x18] sm:$0xff]   ;;  %v6516_v31 = vld [vmem:[#allocation2 + $0x169] sm:$0xff] }
 0xf51   : > { %v6517_v61 = vld [vmem:[#allocation2 + $0x171] sm:$0xff] }
 0xf52   : > { %v6298_v56 = vadd.f32 %v11865_v25, %v11544_v13  ;;  %vm6372_vm11 = vcmp.ge.f32.partialorder %v6360_v22, 0.0  ;;  %v6380_v39 = vmul.f32 0.2, %v6360_v22  ;;  %v12479_v13 = vld [vmem:[%s17073_s5 + $0x28] sm:$0xff]   ;;  %v15334_v36 = vpack.c.bf16 %v6517_v61, %v6516_v31  ;;  %v7079_v25 = vld [vmem:[#allocation2 + $0x19] sm:$0xff] }
 0xf53   : > { %11923 = vmatpush3.bf16.msra.mxu0 %v12479_v13  ;;  %v6520_v61 = vld [vmem:[#allocation2 + $0x199] sm:$0xff] }
 0xf54   : > { %v6363_v47 = vadd.f32 %v12157_v43, %v6298_v56  ;;  %v6388_v48 = vsel %vm6372_vm11, %v6360_v22, %v6380_v39  ;;  %11924 = vmatprep.subr.bf16.mxu0 %v12480_v23  ;;  %v7067_v43 = vld [vmem:[#allocation2 + $0x18] sm:$0xff]  ;;  %v7080_v22 = vld [vmem:[#allocation2 + $0x21] sm:$0xff]  ;;  %vm17195_vm11 = vmmov %vm17192_vm5 }
 0xf55   : > { %6410 = vrot.lane.b32.xlu0 %v6388_v48, %s17147_s19  ;;  %v15321_v50 = vpack.c.bf16 %v7068_v51, %v7067_v43  ;;  %v7092_v56 = vld [vmem:[#allocation2 + $0x22] sm:$0xff]  ;;  %v7082_v43 = vld [vmem:[#allocation2 + $0x39] sm:$0xff] }
 0xf56   : > { %vm6373_vm12 = vcmp.ge.f32.partialorder %v6363_v47, 0.0  ;;  %v6381_v5 = vmul.f32 0.2, %v6363_v47  ;;  %v7043_v39 = vld [vmem:[#allocation2 + $0x1] sm:$0xff]  ;;  %v7099_v48 = vpack.c.bf16 %v7092_v56, %v7091_v12  ;;  %v7088_v51 = vpack.c.bf16 %v7082_v43, %v7081_v1  ;;  %v12500_v1 = vld [vmem:[%s17072_s4 + $0x50] sm:$0xff]  }
 0xf57   : > { %11925 = vmatpush3.bf16.msra.mxu0 %v12481_v55  ;;  %v7051_v13 = vpack.c.bf16 %v7044_v2, %v7043_v39  ;;  %v6506_v55 = vld [vmem:[#allocation2 + $0x180] sm:$0xff]  ;;  %v12491_v2 = vld [vmem:[%s17072_s4 + $0x38] sm:$0xff]   ;;  %v12501_v43 = vld [vmem:[%s17072_s4 + $0x10] sm:$0xff]  }
 0xf58   : > { %v6389_v57 = vsel %vm6373_vm12, %v6363_v47, %v6381_v5  ;;  %11926 = vmatprep.subr.bf16.mxu0 %v12482_v32  ;;  %v7087_v47 = vpack.c.bf16 %v7080_v22, %v7079_v25  ;;  %v7104_v5 = vld [vmem:[#allocation2 + $0x38] sm:$0xff]  ;;  %v15354_v59 = vpack.c.bf16 %v6507_v21, %v6506_v55  ;;  %v6518_v32 = vld [vmem:[#allocation2 + $0x181] sm:$0xff]  ;;  %v7083_v22 = vld [vmem:[#allocation2 + $0x49] sm:$0xff] }
 0xf59   : > { %6412 = vrot.lane.b32.xlu1 %v6389_v57, %s17147_s19  ;;  %6578 = vrot.lane.b32.xlu0 %v15086_v9, %s17147_s19  ;;  %v7055_v57 = vld [vmem:[#allocation2 + $0x2] sm:$0xff]  ;;  %v15342_v62 = vpack.c.bf16 %v7104_v5, %v7103_v35  ;;  %v7084_v25 = vld [vmem:[#allocation2 + $0x51] sm:$0xff]  ;;  %vm17196_vm12 = vmmov %vm17190_vm1 }
 0xf5a   : > { %v7063_v23 = vpack.c.bf16 %v7056_v17, %v7055_v57  ;;  %v15382_v12 = vpack.c.bf16 %v7084_v25, %v7083_v22  ;;  %v7085_v56 = vld [vmem:[#allocation2 + $0x61] sm:$0xff]  ;;  %v7061_v55 = vld [vmem:[#allocation2 + $0x4a] sm:$0xff]  ;;  %v7062_v21 = vld [vmem:[#allocation2 + $0x52] sm:$0xff] }
 0xf5b   : > { %11927 = vmatpush3.bf16.msra.mxu0 %v12483_v11  ;;  %v6519_v11 = vld [vmem:[#allocation2 + $0x189] sm:$0xff] }
 0xf5c   : > { %11928 = vmatprep.subr.bf16.mxu0 %v12484_v42  ;;  %v15360_v42 = vpack.c.bf16 %v6519_v11, %v6518_v32  ;;  %v12494_v35 = vld [vmem:[%s17072_s4 + $0x68] sm:$0xff]   ;;  %v12497_v32 = vld [vmem:[%s17072_s4 + $0x20] sm:$0xff]   ;;  %v12498_v11 = vld [vmem:[%s17072_s4 + $0x58] sm:$0xff]  }
 0xf5d   : > { %6566 = vrot.lane.b32.xlu1 %v15105_v52, %s17149_s23  ;;  %6590 = vrot.lane.b32.xlu0 %v15285_v20, %s17145_s26  ;;  %v7097_v5 = vld [vmem:[#allocation2 + $0x62] sm:$0xff] }
 0xf5e   : > { %v12495_v17 = vld [vmem:[%s17072_s4 + $0x28] sm:$0xff]  }
 0xf5f   : > { %11929 = vmatpush3.bf16.msra.mxu0 %v12485_v30  ;;  %v7093_v30 = vld [vmem:[#allocation2 + $0x32] sm:$0xff] }
 0xf60   : > { %11930 = vmatprep.subr.bf16.mxu0 %v12486_v60  ;;  %v15368_v60 = vpack.c.bf16 %v7106_v6, %v7105_v27  ;;  %v12504_v6 = vld [vmem:[%s17072_s4 + $0x40] sm:$0xff]  }
 0xf61   : > { %6544 = vrot.lane.b32.xlu1 %v15114_v7, %s17147_s19  ;;  %6602 = vrot.lane.b32.xlu0 %v15297_v0, %s17149_s23 }
 0xf63   : > { %11931 = vmatpush3.bf16.msra.mxu0 %v12487_v45  ;;  %v6509_v45 = vld [vmem:[#allocation2 + $0x1a0] sm:$0xff] }
 0xf64   : > { %v6513_v31 = vpack.c.bf16 %v6509_v45, %v6508_v10  ;;  %v12505_v10 = vld [vmem:[%s17072_s4] sm:$0xff]  }
 0xf65   : > { %6556 = vrot.lane.b32.xlu1 %v15086_v9, %s17145_s26  ;;  %6580 = vrot.lane.b32.xlu0 %v15210_v19, %s17147_s19  ;;  %v12488_v9 = vld [vmem:[%s17073_s5 + $0x40] sm:$0xff]  }
 0xf66   : > { %11932 = vmatprep.subr.bf16.mxu0 %v12488_v9  ;;  %v6521_v9 = vld [vmem:[#allocation2 + $0x1a1] sm:$0xff] }
 0xf67   : > { %11933 = vmatpush3.bf16.msra.mxu0 %v12489_v8  ;;  %v6525_v8 = vpack.c.bf16 %v6521_v9, %v6520_v61 }
 0xf69   : > { %6592 = vrot.lane.b32.xlu0 %v15319_v44, %s17145_s26  ;;  %7167 = vrot.lane.b32.xlu1 %v15321_v50, %s17153_s1 }
 0xf6d   : > { %6604 = vrot.lane.b32.xlu0 %v15334_v36, %s17149_s23  ;;  %6568 = vrot.lane.b32.xlu1 %v15285_v20, %s17149_s23 }
 0xf71   : > { %7179 = vrot.lane.b32.xlu0 %v7087_v47, %s17147_s19  ;;  %7191 = vrot.lane.b32.xlu1 %v7099_v48, %s17154_s17 }
 0xf75   : > { %7143 = vrot.lane.b32.xlu0 %v7051_v13, %s17155_s29  ;;  %7203 = vrot.lane.b32.xlu1 %v15342_v62, %s17143_s16  ;;  %v7098_v13 = vld [vmem:[#allocation2 + $0x6a] sm:$0xff] }
 0xf76   : > { %v7102_v57 = vpack.c.bf16 %v7098_v13, %v7097_v5 }
 0xf79   : > { %7155 = vrot.lane.b32.xlu0 %v7063_v23, %s17146_s14  ;;  %6546 = vrot.lane.b32.xlu1 %v15297_v0, %s17147_s19  ;;  %v12496_v23 = vld [vmem:[%s17072_s4 + $0x60] sm:$0xff]  }
 0xf7d   : > { %6582 = vrot.lane.b32.xlu0 %v15216_v24, %s17147_s19  ;;  %6558 = vrot.lane.b32.xlu1 %v15210_v19, %s17145_s26  ;;  %v7100_v19 = vpack.c.bf16 %v7094_v37, %v7093_v30  ;;  %v15419_v37 = vpack.c.bf16 %v7062_v21, %v7061_v55  ;;  %v12499_v30 = vld [vmem:[%s17072_s4 + $0x18] sm:$0xff]   ;;  %v7031_v21 = vld [vmem:[#allocation2] sm:$0xff] }
 0xf81   : > { %7169 = vrot.lane.b32.xlu1 %v15342_v62, %s17153_s1  ;;  %6594 = vrot.lane.b32.xlu0 %v15354_v59, %s17145_s26 }
 0xf85   : > { %6570 = vrot.lane.b32.xlu1 %v15319_v44, %s17149_s23  ;;  %6606 = vrot.lane.b32.xlu0 %v15360_v42, %s17149_s23 }
 0xf89   : > { %7193 = vrot.lane.b32.xlu1 %v7100_v19, %s17154_s17  ;;  %7181 = vrot.lane.b32.xlu0 %v7088_v51, %s17147_s19 }
 0xf8d   : > { %7145 = vrot.lane.b32.xlu0 %v7087_v47, %s17155_s29  ;;  %7205 = vrot.lane.b32.xlu1 %v15368_v60, %s17143_s16  ;;  %v12492_v47 = vld [vmem:[%s17072_s4 + $0x70] sm:$0xff]  }
 0xf91   : > { %7157 = vrot.lane.b32.xlu0 %v7099_v48, %s17146_s14  ;;  %6548 = vrot.lane.b32.xlu1 %v15334_v36, %s17147_s19  ;;  %v12493_v48 = vld [vmem:[%s17072_s4 + $0x30] sm:$0xff]  }
 0xf95   : > { %6584 = vrot.lane.b32.xlu0 %v15226_v15, %s17147_s19  ;;  %6560 = vrot.lane.b32.xlu1 %v15216_v24, %s17145_s26  ;;  %v12490_v24 = vld [vmem:[%s17072_s4 + $0x78] sm:$0xff]   ;;  %v7086_v15 = vld [vmem:[#allocation2 + $0x69] sm:$0xff] }
 0xf96   : > { %11872 = vmatprep.subr.bf16.mxu1 %v12490_v24  ;;  %v7090_v39 = vpack.c.bf16 %v7086_v15, %v7085_v56 }
 0xf97   : > { %11873 = vmatpush3.bf16.msra.mxu1 %v12491_v2 }
 0xf98   : > { %11874 = vmatprep.subr.bf16.mxu1 %v12492_v47 }
 0xf99   : > { %6596 = vrot.lane.b32.xlu0 %v6513_v31, %s17145_s26 }
 0xf9b   : > { %11875 = vmatpush3.bf16.msra.mxu1 %v12493_v48 }
 0xf9c   : > { %11876 = vmatprep.subr.bf16.mxu1 %v12494_v35 }
 0xf9d   : > { %6608 = vrot.lane.b32.xlu0 %v6525_v8, %s17149_s23  ;;  %v15453_v8 = vld [vmem:[%s17073_s5 + $0xb0] ss:$0 sps:$4 sm:$0xff]  }
 0xf9f   : > { %11877 = vmatpush3.bf16.msra.mxu1 %v12495_v17 }
 0xfa0   : > { %11878 = vmatprep.subr.bf16.mxu1 %v12496_v23 }
 0xfa1   : > { %7183 = vrot.lane.b32.xlu0 %v15382_v12, %s17147_s19 }
 0xfa3   : > { %11879 = vmatpush3.bf16.msra.mxu1 %v12497_v32  ;;  %v7032_v32 = vld [vmem:[#allocation2 + $0x8] sm:$0xff] }
 0xfa4   : > { %11880 = vmatprep.subr.bf16.mxu1 %v12498_v11 }
 0xfa5   : > { %7147 = vrot.lane.b32.xlu0 %v7088_v51, %s17155_s29 }
 0xfa7   : > { %11881 = vmatpush3.bf16.msra.mxu1 %v12499_v30 }
 0xfa8   : > { %11882 = vmatprep.subr.bf16.mxu1 %v12500_v1 }
 0xfa9   : > { %7159 = vrot.lane.b32.xlu0 %v7100_v19, %s17146_s14 }
 0xfab   : > { %11883 = vmatpush3.bf16.msra.mxu1 %v12501_v43  ;;  %v7039_v43 = vpack.c.bf16 %v7032_v32, %v7031_v21 }
 0xfad   : > { %7215 = vrot.lane.b32.xlu0 %v7088_v51, %s17152_s20  ;;  %v12503_v51 = vld [vmem:[%s17072_s4 + $0x8] sm:$0xff]  }
 0xfb1   : > { %7185 = vrot.lane.b32.xlu0 %v7090_v39, %s17147_s19 }
 0xfb5   : > { %7227 = vrot.lane.b32.xlu0 %v7100_v19, %s17145_s26  ;;  %v12502_v19 = vld [vmem:[%s17072_s4 + $0x48] sm:$0xff]  }
 0xfb6   : > { %11884 = vmatprep.subr.bf16.mxu1 %v12502_v19  ;;  %v7108_v19 = vld [vmem:[#allocation2 + $0x68] sm:$0xff] }
 0xfb7   : > { %11885 = vmatpush3.bf16.msra.mxu1 %v12503_v51 }
 0xfb8   : > { %11886 = vmatprep.subr.bf16.mxu1 %v12504_v6 }
 0xfb9   : > { %7197 = vrot.lane.b32.xlu0 %v7102_v57, %s17154_s17 }
 0xfbb   : > { %11887 = vmatpush3.bf16.msra.mxu1 %v12505_v10  ;;  %v7107_v10 = vld [vmem:[#allocation2 + $0x60] sm:$0xff] }
 0xfbc   : > { %12258 = vmatprep.subr.msk.bf16.mxu1 %vm2899_vm13, %v15453_v8 }
 0xfbd   : > { %7161 = vrot.lane.b32.xlu0 %v15419_v37, %s17146_s14 }
 0xfc1   : > { %7219 = vrot.lane.b32.xlu0 %v7090_v39, %s17152_s20 }
 0xfc5   : > { %7231 = vrot.lane.b32.xlu0 %v7102_v57, %s17145_s26 }
 0xfc7   : > { %v6411_v27 = vpop.permute.xlu0 %6410 }
 0xfc8   : > { %6428 = vst.msk [vmem:[#allocation2 + $0x121] sm:$0xff] %vm5219_vm15, %v6411_v27 }
 0xfcb   : > { %v6413_v45 = vpop.permute.xlu1 %6412  ;;  %v6579_v31 = vpop.permute.xlu0 %6578 }
 0xfcc   : > { %6429 = vst.msk [vmem:[#allocation2 + $0x129] sm:$0xff] %vm5219_vm15, %v6413_v45  ;;  %v6644_v22 = vsel %vm780_vm3, %v15114_v7, %v6579_v31  ;;  %v7113_v45 = vpack.c.bf16 %v7108_v19, %v7107_v10  ;;  %v7133_v10 = vld [vmem:[#allocation2 + $0x7a] sm:$0xff] }
 0xfcf   : > { %v15448_v61 = vpop.permute.xlu1 %6566  ;;  %v6591_v9 = vpop.permute.xlu0 %6590  ;;  %v6442_v56 = vld [vmem:[#allocation2 + $0x121] sm:$0xff] }
 0xfd0   : > { %v6655_v25 = vsel %vm797_vm4, %v6644_v22, %v6591_v9 }
 0xfd3   : > { %v15458_v24 = vpop.permute.xlu1 %6544  ;;  %v6603_v15 = vpop.permute.xlu0 %6602  ;;  %v6443_v39 = vld [vmem:[#allocation2 + $0x129] sm:$0xff] }
 0xfd4   : > { %v6663_v2 = vsel %vm815_vm6, %v6655_v25, %v6603_v15  ;;  %v6450_v47 = vpack.c.bf16 %v6443_v39, %v6442_v56  ;;  %v6454_v48 = vld [vmem:[#allocation2 + $0x122] sm:$0xff]  ;;  %v6455_v35 = vld [vmem:[#allocation2 + $0x12a] sm:$0xff] }
 0xfd5   : > { %6869 = vmatprep.mubr.bf16.mxu1 %v6663_v2  ;;  %v6462_v13 = vpack.c.bf16 %v6455_v35, %v6454_v48 }
 0xfd6   : > { %6542 = vrot.lane.b32.xlu1 %v6450_v47, %s17147_s19 }
 0xfd7   : > { %v15464_v5 = vpop.permute.xlu1 %6556  ;;  %v15466_v7 = vpop.permute.xlu0 %6580 }
 0xfda   : > { %6554 = vrot.lane.b32.xlu1 %v6462_v13, %s17145_s26  ;;  %v7109_v13 = vld [vmem:[#allocation2 + $0x78] sm:$0xff] }
 0xfdb   : > { %v7168_v57 = vpop.permute.xlu1 %7167  ;;  %v15469_v17 = vpop.permute.xlu0 %6592 }
 0xfde   : > { %7171 = vrot.lane.b32.xlu1 %v15368_v60, %s17153_s1 }
 0xfdf   : > { %v15473_v23 = vpop.permute.xlu1 %6568  ;;  %v15475_v55 = vpop.permute.xlu0 %6604 }
 0xfe2   : > { %6572 = vrot.lane.b32.xlu1 %v15354_v59, %s17149_s23 }
 0xfe3   : > { %v7192_v11 = vpop.permute.xlu1 %7191  ;;  %v7180_v30 = vpop.permute.xlu0 %7179 }
 0xfe4   : > { %v7268_v1 = vsel %vm780_vm3, %v7168_v57, %v7180_v30 }
 0xfe5   : > { %v7276_v6 = vsel %vm17190_vm1, %v7268_v1, %v7192_v11  ;;  %v7121_v1 = vld [vmem:[#allocation2 + $0x79] sm:$0xff]  ;;  %vm17197_vm1 = vmmov %vm17191_vm8 }
 0xfe6   : > { %7195 = vrot.lane.b32.xlu1 %v15419_v37, %s17154_s17 }
 0xfe7   : > { %v15482_v51 = vpop.permute.xlu1 %7203  ;;  %v7144_v27 = vpop.permute.xlu0 %7143 }
 0xfe8   : > { %v7284_v59 = vsel %vm824_vm7, %v7276_v6, %v15482_v51  ;;  %v7237_v31 = vsel %vm2758_vm14, %v7039_v43, %v7144_v27  ;;  %v7122_v43 = vld [vmem:[#allocation2 + $0x81] sm:$0xff] }
 0xfe9   : > { %7542 = vmatprep.mubr.bf16.mxu0 %v7284_v59  ;;  %v7134_v59 = vld [vmem:[#allocation2 + $0x82] sm:$0xff] }
 0xfea   : > { %7207 = vrot.lane.b32.xlu1 %v7113_v45, %s17143_s16 }
 0xfeb   : > { %v15489_v9 = vpop.permute.xlu1 %6546  ;;  %v7156_v22 = vpop.permute.xlu0 %7155 }
 0xfec   : > { %v7248_v25 = vsel %vm17191_vm8, %v7237_v31, %v7156_v22  ;;  %vm17198_vm8 = vmmov %vm17192_vm5 }
 0xfed   : > { %v7256_v15 = vsel %vm17192_vm5, %v7248_v25, %v7168_v57  ;;  %v7110_v57 = vld [vmem:[#allocation2 + $0x80] sm:$0xff]  ;;  %v15527_v25 = vpack.c.bf16 %v7134_v59, %v7133_v10  ;;  %vm7498_vm5 = vcmask 850944  }
 0xfee   : > { %7173 = vrot.lane.b32.xlu1 %v7113_v45, %s17153_s1  ;;  %7543 = vmatmul.mubr.bf16.vlgmr.msra.gmra.mxu0 %v7256_v15  ;;  %v15511_v30 = vpack.c.bf16 %v7110_v57, %v7109_v13 }
 0xfef   : > { %v15494_v56 = vpop.permute.xlu1 %6558  ;;  %v15496_v39 = vpop.permute.xlu0 %6582 }
 0xff2   : > { %7217 = vrot.lane.b32.xlu1 %v15382_v12, %s17152_s20 }
 0xff3   : > { %v7170_v2 = vpop.permute.xlu1 %7169  ;;  %v15500_v47 = vpop.permute.xlu0 %6594 }
 0xff6   : > { %7149 = vrot.lane.b32.xlu1 %v15382_v12, %s17155_s29 }
 0xff7   : > { %v15504_v48 = vpop.permute.xlu1 %6570  ;;  %v15506_v35 = vpop.permute.xlu0 %6606 }
 0xffa   : > { %7229 = vrot.lane.b32.xlu1 %v15419_v37, %s17145_s26  ;;  %v15520_v37 = vpack.c.bf16 %v7122_v43, %v7121_v1 }
 0xffb   : > { %v7194_v21 = vpop.permute.xlu1 %7193  ;;  %v7182_v32 = vpop.permute.xlu0 %7181 }
 0xffc   : > { %v7270_v11 = vsel %vm780_vm3, %v7170_v2, %v7182_v32 }
 0xffd   : > { %v7278_v27 = vsel %vm17193_vm9, %v7270_v11, %v7194_v21  ;;  %vm17199_vm9 = vcmask 195584  }
 0xffe   : > { %7209 = vrot.lane.b32.xlu1 %v15511_v30, %s17143_s16 }
 0xfff   : > { %v15515_v12 = vpop.permute.xlu1 %7205  ;;  %v7146_v19 = vpop.permute.xlu0 %7145 }
0x1000   : > { %v7287_v6 = vsel %vm824_vm7, %v7278_v27, %v15515_v12  ;;  %v7240_v45 = vsel %vm2758_vm14, %v15321_v50, %v7146_v19  ;;  %v6431_v19 = vld [vmem:[#allocation2 + $0x128] sm:$0xff] }
0x1001   : > { %7550 = vmatprep.mubr.bf16.mxu0 %v7287_v6  ;;  %v6430_v6 = vld [vmem:[#allocation2 + $0x120] sm:$0xff] }
0x1002   : > { %7221 = vrot.lane.b32.xlu1 %v15520_v37, %s17152_s20 }
0x1003   : > { %v7158_v31 = vpop.permute.xlu0 %7157  ;;  %v15534_v11 = vpop.permute.xlu1 %6548 }
0x1004   : > { %v7250_v22 = vsel %vm17194_vm10, %v7240_v45, %v7158_v31  ;;  %v6647_v31 = vsel %vm780_vm3, %v15297_v0, %v15466_v7  ;;  %vm17200_vm10 = vmmov %vm17199_vm9 }
0x1005   : > { %v7259_v15 = vsel %vm17195_vm11, %v7250_v22, %v7170_v2  ;;  %v6438_v2 = vpack.c.bf16 %v6431_v19, %v6430_v6  ;;  %v6657_v3 = vsel %vm797_vm4, %v6647_v31, %v15469_v17  ;;  %v6615_v17 = vsel %vm780_vm3, %v15105_v52, %v15458_v24  ;;  %vm17201_vm11 = vmmov %vm17199_vm9 }
0x1006   : > { %7233 = vrot.lane.b32.xlu1 %v15527_v25, %s17145_s26  ;;  %7551 = vmatmul.mubr.bf16.gmra.mxu0 %v7259_v15  ;;  %v7508_v15 = vsel %vm2899_vm13, %v15453_v8, 0  ;;  %v12508_v8 = vld [vmem:[%s17073_s5 + $0xa0] sm:$0xff]  }
0x1007   : > { %v6585_v13 = vpop.permute.xlu0 %6584  ;;  %v15536_v50 = vpop.permute.xlu1 %6560 }
0x100b   : > { %v6597_v57 = vpop.permute.xlu0 %6596 }
0x100f   : > { %v15532_v21 = vpop.permute.xlu0 %6608 }
0x1013   : > { %v7184_v32 = vpop.permute.xlu0 %7183 }
0x1017   : > { %v7148_v1 = vpop.permute.xlu0 %7147 }
0x101b   : > { %v7160_v43 = vpop.permute.xlu0 %7159 }
0x101f   : > { %v15538_v10 = vpop.permute.xlu0 %7215 }
0x1023   : > { %v15556_v0 = vpop.permute.xlu0 %7185 }
0x1048   : > { %v6543_v27 = vpop.permute.xlu1 %6542 }
0x1049   : > { %v6612_v59 = vsel %vm780_vm3, %v6438_v2, %v6543_v27  ;;  %v6666_v27 = vsel %vm815_vm6, %v6657_v3, %v15475_v55  ;;  %v6650_v3 = vsel %vm780_vm3, %v15334_v36, %v15496_v39  ;;  %v12509_v55 = vld [vmem:[%s17073_s5 + $0x98] sm:$0xff]   ;;  %v12510_v36 = vld [vmem:[%s17073_s5 + $0x90] sm:$0xff]   ;;  %v6618_v39 = vsel %vm780_vm3, %v15285_v20, %v15489_v9  ;;  %v12511_v20 = vld [vmem:[%s17073_s5 + $0x88] sm:$0xff]  }
0x104a   : > { %v6659_v2 = vsel %vm797_vm4, %v6650_v3, %v15500_v47  ;;  %v6627_v31 = vsel %vm797_vm4, %v6618_v39, %v15494_v56 }
0x104b   : > { %v6637_v9 = vsel %vm815_vm6, %v6627_v31, %v15504_v48  ;;  %v6621_v48 = vsel %vm780_vm3, %v15319_v44, %v15534_v11 }
0x104c   : > { %v6555_v45 = vpop.permute.xlu1 %6554 }
0x104d   : > { %v6623_v22 = vsel %vm797_vm4, %v6612_v59, %v6555_v45  ;;  %v7228_v59 = vpop.permute.xlu0 %7227 }
0x104e   : > { %v6631_v19 = vsel %vm815_vm6, %v6623_v22, %v15448_v61  ;;  %v6625_v61 = vsel %vm797_vm4, %v6615_v17, %v15464_v5  ;;  %v6653_v22 = vsel %vm780_vm3, %v15360_v42, %v6585_v13 }
0x104f   : > { %6870 = vmatmul.mubr.bf16.vlgmr.msra.gmra.mxu1 %v6631_v19  ;;  %v6634_v52 = vsel %vm815_vm6, %v6625_v61, %v15473_v23  ;;  %v7243_v23 = vsel %vm2758_vm14, %v15342_v62, %v7148_v1  ;;  %v6661_v62 = vsel %vm797_vm4, %v6653_v22, %v6597_v57  ;;  %v12512_v1 = vld [vmem:[%s17073_s5 + $0x80] sm:$0xff]   ;;  %v6629_v19 = vsel %vm797_vm4, %v6621_v48, %v15536_v50 }
0x1050   : > { %v7172_v7 = vpop.permute.xlu1 %7171  ;;  %6877 = vmatprep.mubr.bf16.mxu1 %v6666_v27  ;;  %12171 = vmatpush3.bf16.msra.mxu1 %v7508_v15  ;;  %v6672_v42 = vsel %vm815_vm6, %v6661_v62, %v15532_v21  ;;  %v7296_v21 = vsel %vm17199_vm9, %v15482_v51, %v15538_v10 }
0x1051   : > { %12172 = vmatprep.subr.bf16.mxu1 %v12507_v26  ;;  %v7272_v5 = vsel %vm780_vm3, %v7172_v7, %v7184_v32  ;;  %v7198_v47 = vpop.permute.xlu0 %7197  ;;  %v7252_v32 = vsel %vm17197_vm1, %v7243_v23, %v7160_v43 }
0x1052   : > { %v7262_v56 = vsel %vm17198_vm8, %v7252_v32, %v7172_v7  ;;  %v7304_v7 = vsel %vm797_vm4, %v7296_v21, %v7228_v59 }
0x1054   : > { %v6573_v6 = vpop.permute.xlu1 %6572  ;;  %12173 = vmatpush3.bf16.msra.mxu1 %v12507_v26  ;;  %v6669_v26 = vsel %vm815_vm6, %v6659_v2, %v15506_v35 }
0x1055   : > { %12174 = vmatprep.subr.bf16.mxu1 %v12508_v8  ;;  %v7162_v57 = vpop.permute.xlu0 %7161  ;;  %v6640_v27 = vsel %vm815_vm6, %v6629_v19, %v6573_v6 }
0x1057   : > { %6878 = vmatmul.mubr.bf16.gmra.mxu1 %v6634_v52 }
0x1058   : > { %v7196_v24 = vpop.permute.xlu1 %7195  ;;  %6885 = vmatprep.mubr.bf16.mxu1 %v6669_v26  ;;  %12175 = vmatpush3.bf16.msra.mxu1 %v12508_v8 }
0x1059   : > { %12176 = vmatprep.subr.bf16.mxu1 %v12509_v55  ;;  %v7280_v35 = vsel %vm17196_vm12, %v7272_v5, %v7196_v24  ;;  %v7220_v8 = vpop.permute.xlu0 %7219  ;;  %vm17202_vm12 = vmmov %vm17197_vm1  ;;  %vm17203_vm1 = vcmask 588800  }
0x105c   : > { %v7208_v45 = vpop.permute.xlu1 %7207  ;;  %12177 = vmatpush3.bf16.msra.mxu1 %v12509_v55 }
0x105d   : > { %v7290_v15 = vsel %vm824_vm7, %v7280_v35, %v7208_v45  ;;  %12178 = vmatprep.subr.bf16.mxu1 %v12510_v36  ;;  %v7300_v44 = vsel %vm17200_vm10, %v7208_v45, %v7220_v8  ;;  %v7232_v6 = vpop.permute.xlu0 %7231 }
0x105e   : > { %7558 = vmatprep.mubr.bf16.mxu0 %v7290_v15  ;;  %v7308_v55 = vsel %vm797_vm4, %v7300_v44, %v7232_v6  ;;  %v15658_v44 = vld [vmem:[%s17077_s9] ss:$0 sm:$0xff] }
0x105f   : > { %6886 = vmatmul.mubr.bf16.gmra.mxu1 %v6637_v9  ;;  %7559 = vmatmul.mubr.bf16.gmra.mxu0 %v7262_v56 }
0x1060   : > { %v7174_v13 = vpop.permute.xlu1 %7173  ;;  %6893 = vmatprep.mubr.bf16.mxu1 %v6672_v42  ;;  %12179 = vmatpush3.bf16.msra.mxu1 %v12510_v36  ;;  %v15635_v36 = vpop.f32.mrf.mxu0 }
0x1061   : > { %12180 = vmatprep.subr.bf16.mxu1 %v12511_v20  ;;  %v7274_v51 = vsel %vm780_vm3, %v7174_v13, %v15556_v0 }
0x1062   : > { %v15637_v5 = vpop.f32.mrf.mxu0 }
0x1064   : > { %v7218_v43 = vpop.permute.xlu1 %7217  ;;  %12181 = vmatpush3.bf16.msra.mxu1 %v12511_v20  ;;  %v15639_v39 = vpop.f32.mrf.mxu0 }
0x1065   : > { %12182 = vmatprep.subr.bf16.mxu1 %v12512_v1  ;;  %v7298_v11 = vsel %vm17201_vm11, %v15515_v12, %v7218_v43  ;;  %v7282_v12 = vsel %vm17203_vm1, %v7274_v51, %v7198_v47 }
0x1066   : > { %v15641_v23 = vpop.f32.mrf.mxu0 }
0x1067   : > { %6894 = vmatmul.mubr.bf16.gmra.mxu1 %v6640_v27 }
0x1068   : > { %v7150_v17 = vpop.permute.xlu1 %7149  ;;  %12184 = vmatprep.mubr.msk.bf16.mxu1 %vm7498_vm5, %v7304_v7  ;;  %12183 = vmatpush3.bf16.msra.mxu1 %v12512_v1  ;;  %v15643_v47 = vpop.f32.mrf.mxu0 }
0x1069   : > { %v7246_v50 = vsel %vm2758_vm14, %v15368_v60, %v7150_v17 }
0x106a   : > { %v7254_v3 = vsel %vm17202_vm12, %v7246_v50, %v7162_v57  ;;  %v15645_v35 = vpop.f32.mrf.mxu0 }
0x106b   : > { %v7265_v59 = vsel %vm17198_vm8, %v7254_v3, %v7174_v13 }
0x106c   : > { %v7230_v61 = vpop.permute.xlu1 %7229  ;;  %v15647_v45 = vpop.f32.mrf.mxu0 }
0x106d   : > { %v7306_v10 = vsel %vm797_vm4, %v7298_v11, %v7230_v61 }
0x106e   : > { %v15649_v31 = vpop.f32.mrf.mxu0 }
0x106f   : > { %12185 = vmatmul.mubr.msk.bf16.vlgmr.msra.gmra.mxu1 %vm7498_vm5, %v7306_v10 }
0x1070   : > { %v7210_v2 = vpop.permute.xlu1 %7209  ;;  %12188 = vmatprep.mubr.msk.bf16.mxu1 %vm7498_vm5, %v7308_v55 }
0x1071   : > { %v7293_v60 = vsel %vm824_vm7, %v7282_v12, %v7210_v2 }
0x1072   : > { %7566 = vmatprep.mubr.bf16.mxu0 %v7293_v60 }
0x1073   : > { %7567 = vmatmul.mubr.bf16.gmra.mxu0 %v7265_v59 }
0x1074   : > { %v7222_v0 = vpop.permute.xlu1 %7221 }
0x1075   : > { %v7302_v52 = vsel %vm17199_vm9, %v7210_v2, %v7222_v0 }
0x1078   : > { %v7234_v26 = vpop.permute.xlu1 %7233 }
0x1079   : > { %v7310_v24 = vsel %vm797_vm4, %v7302_v52, %v7234_v26 }
0x107a   : > { %12189 = vmatmul.mubr.msk.bf16.gmra.mxu1 %vm7498_vm5, %v7310_v24 }
0x10ae   : > { %v11934_v22 = vpop.f32.mrf.mxu0 }
0x10b0   : > { %v11935_v32 = vpop.f32.mrf.mxu0 }
0x10b1   : > { %v11936_v15 = vadd.f32 %v11935_v32, %v11934_v22 }
0x10b2   : > { %v11937_v20 = vpop.f32.mrf.mxu0 }
0x10b4   : > { %v11938_v62 = vpop.f32.mrf.mxu0 }
0x10b5   : > { %v11939_v9 = vadd.f32 %v11938_v62, %v11937_v20 }
0x10c6   : > { %v11940_v56 = vpop.f32.mrf.mxu0 }
0x10c8   : > { %v11941_v42 = vpop.f32.mrf.mxu0 }
0x10c9   : > { %v11942_v13 = vadd.f32 %v11941_v42, %v11940_v56 }
0x10ca   : > { %v11943_v7 = vpop.f32.mrf.mxu0 }
0x10cc   : > { %v11944_v61 = vpop.f32.mrf.mxu0 }
0x110f   : > { %v11888_v1 = vpop.f32.mrf.mxu1 }
0x1111   : > { %v11889_v57 = vpop.f32.mrf.mxu1 }
0x1112   : > { %v15651_v48 = vadd.f32 %v11889_v57, %v11888_v1 }
0x1113   : > { %v11891_v43 = vpop.f32.mrf.mxu1 }
0x1115   : > { %v11892_v19 = vpop.f32.mrf.mxu1 }
0x1116   : > { %v15653_v21 = vadd.f32 %v11892_v19, %v11891_v43 }
0x1117   : > { %v11894_v27 = vpop.f32.mrf.mxu1 }
0x1119   : > { %v11895_v8 = vpop.f32.mrf.mxu1 }
0x111a   : > { %v11896_v17 = vadd.f32 %v11895_v8, %v11894_v27  ;;  %v15680_v27 = vld [vmem:[%s17078_s10] ss:$0 sm:$0xff]  ;;  %v11945_v8 = vadd.f32 %v11944_v61, %v11943_v7 }
0x111b   : > { %v11897_v11 = vpop.f32.mrf.mxu1  ;;  %v7548_v7 = vadd.f32 %v11939_v9, %v15680_v27 }
0x111c   : > { %v15661_v50 = vadd.f32 %v11896_v17, %v15658_v44 }
0x111d   : > { %v11898_v51 = vpop.f32.mrf.mxu1 }
0x111e   : > { %v11899_v10 = vadd.f32 %v11898_v51, %v11897_v11  ;;  %v7553_v11 = vadd.f32 %v11942_v13, %v15680_v27 }
0x111f   : > { %v11900_v6 = vpop.f32.mrf.mxu1  ;;  %v11946_v3 = vpop.f32.mrf.mxu0 }
0x1120   : > { %v15664_v55 = vadd.f32 %v11899_v10, %v15658_v44 }
0x1121   : > { %v11901_v2 = vpop.f32.mrf.mxu1  ;;  %v11947_v12 = vpop.f32.mrf.mxu0 }
0x1122   : > { %v11902_v60 = vadd.f32 %v11901_v2, %v11900_v6  ;;  %v11948_v59 = vadd.f32 %v11947_v12, %v11946_v3  ;;  %v7545_v3 = vadd.f32 %v11936_v15, %v15680_v27 }
0x1123   : > { %v11903_v0 = vpop.f32.mrf.mxu1  ;;  %v11949_v52 = vpop.f32.mrf.mxu0 }
0x1124   : > { %v15667_v26 = vadd.f32 %v11902_v60, %v15658_v44  ;;  %v7556_v60 = vadd.f32 %v11945_v8, %v15680_v27 }
0x1125   : > { %v11904_v24 = vpop.f32.mrf.mxu1  ;;  %v11950_v22 = vpop.f32.mrf.mxu0 }
0x1126   : > { %v11905_v32 = vadd.f32 %v11904_v24, %v11903_v0  ;;  %v15669_v20 = vadd.f32 %v11950_v22, %v11949_v52  ;;  %v12590_v22 = vld [vmem:[%s17077_s9] ss:$0 sm:$0xff] }
0x1127   : > { %v11906_v62 = vpop.f32.mrf.mxu1  ;;  %v5681_v8 = vadd.f32 %v12590_v22, %v14960_v33 }
0x1128   : > { %v15672_v56 = vadd.f32 %v11905_v32, %v15658_v44  ;;  %v5678_v32 = vadd.f32 %v12590_v22, %v14954_v58 }
0x1129   : > { %v11907_v42 = vpop.f32.mrf.mxu1 }
0x112a   : > { %v11908_v1 = vadd.f32 %v11907_v42, %v11906_v62 }
0x112b   : > { %v11909_v57 = vpop.f32.mrf.mxu1 }
0x112c   : > { %v15675_v43 = vadd.f32 %v11908_v1, %v15658_v44 }
0x112d   : > { %v11910_v19 = vpop.f32.mrf.mxu1 }
0x112e   : > { %v11911_v17 = vadd.f32 %v11910_v19, %v11909_v57  ;;  %v5743_v19 = vadd.f32 %v14958_v54, %v5678_v32 }
0x112f   : > { %v12186_v51 = vpop.f32.mrf.mxu1 }
0x1130   : > { %v15684_v10 = vadd.f32 %v11911_v17, %v15658_v44  ;;  %v15686_v6 = vadd.f32 %v12186_v51, %v7553_v11  ;;  %v5686_v11 = vadd.f32 %v12590_v22, %v14964_v29  ;;  %vm5767_vm11 = vcmp.ge.f32.partialorder %v5743_v19, 0.0 }
0x1131   : > { %v7609_v2 = vpop.f32.mrf.mxu1  ;;  %v5775_v54 = vmul.f32 0.2, %v5743_v19 }
0x1132   : > { %v15689_v12 = vadd.f32 %v7609_v2, %v7545_v3  ;;  %v7561_v3 = vadd.f32 %v11948_v59, %v15680_v27  ;;  %v5751_v33 = vadd.f32 %v14975_v14, %v5686_v11  ;;  %v6339_v14 = vadd.f32 %v15245_v46, %v15243_v18  ;;  %v12513_v18 = vld [vmem:[%s17073_s5 + $0x78] sm:$0xff]  }
0x1133   : > { %v11952_v0 = vpop.f32.mrf.mxu0  ;;  %v12187_v52 = vpop.f32.mrf.mxu1  ;;  %v5783_v32 = vsel %vm5767_vm11, %v5743_v19, %v5775_v54  ;;  %v12514_v46 = vld [vmem:[%s17073_s5 + $0x38] sm:$0xff]   ;;  %11969 = vmatprep.subr.bf16.mxu0 %v12513_v18  ;;  %v12520_v54 = vld [vmem:[%s17073_s5 + $0x20] sm:$0xff]  }
0x1134   : > { %v15692_v24 = vadd.f32 %v12187_v52, %v7556_v60  ;;  %v5746_v52 = vadd.f32 %v14966_v40, %v5681_v8  ;;  %v6336_v40 = vadd.f32 %v15237_v4, %v15239_v63  ;;  %vm5769_vm8 = vcmp.ge.f32.partialorder %v5751_v33, 0.0  ;;  %11970 = vmatpush3.bf16.msra.mxu0 %v12514_v46 }
0x1135   : > { %v11953_v13 = vpop.f32.mrf.mxu0  ;;  %v7612_v61 = vpop.f32.mrf.mxu1  ;;  %v6375_v63 = vmul.f32 0.2, %v6339_v14  ;;  %vm6367_vm11 = vcmp.ge.f32.partialorder %v6339_v14, 0.0 }
0x1136   : > { %v11954_v15 = vadd.f32 %v11953_v13, %v11952_v0  ;;  %v15699_v62 = vadd.f32 %v7612_v61, %v7548_v7  ;;  %v5689_v13 = vadd.f32 %v12590_v22, %v14968_v38  ;;  %vm5768_vm1 = vcmp.ge.f32.partialorder %v5746_v52, 0.0 }
0x1137   : > { %v11955_v42 = vpop.f32.mrf.mxu0  ;;  %v6374_v19 = vmul.f32 0.2, %v6336_v40  ;;  %vm6366_vm9 = vcmp.ge.f32.partialorder %v6336_v40, 0.0 }
0x1138   : > { %v7569_v1 = vadd.f32 %v11954_v15, %v15680_v27  ;;  %v5776_v15 = vmul.f32 0.2, %v5746_v52 }
0x1139   : > { %v11956_v57 = vpop.f32.mrf.mxu0 }
0x113a   : > { %v11957_v9 = vadd.f32 %v11956_v57, %v11955_v42  ;;  %v12190_v17 = vpop.f32.mrf.mxu1  ;;  %v5754_v42 = vadd.f32 %v15230_v28, %v5689_v13  ;;  %v5777_v57 = vmul.f32 0.2, %v5751_v33  ;;  %v5784_v38 = vsel %vm5768_vm1, %v5746_v52, %v5776_v15 }
0x113b   : > { %v7634_v51 = vadd.f32 %v12190_v17, %v7569_v1  ;;  %v6382_v28 = vsel %vm6366_vm9, %v6336_v40, %v6374_v19  ;;  %v12516_v17 = vld [vmem:[%s17073_s5 + $0x30] sm:$0xff]   ;;  %vm17204_vm1 = vcmask 588800  }
0x113c   : > { %v7625_v2 = vpop.f32.mrf.mxu1  ;;  %v7572_v58 = vadd.f32 %v11957_v9, %v15680_v27  ;;  %v5785_v22 = vsel %vm5769_vm8, %v5751_v33, %v5777_v57  ;;  %v5778_v8 = vmul.f32 0.2, %v5754_v42  ;;  %v6383_v9 = vsel %vm6367_vm11, %v6339_v14, %v6375_v63  ;;  %v12524_v57 = vld [vmem:[%s17073_s5 + $0xb0] ss:$0 sps:$4 sm:$0xff]   ;;  %v12527_v63 = vld [vmem:[%s17073_s5 + $0xa8] sm:$0xff]   ;;  %vm17206_vm9 = vmmov %vm17204_vm1 }
0x113d   : > { %vm7646_vm10 = vcmp.ge.f32.partialorder %v7634_v51, 0.0  ;;  %v7654_v60 = vmul.f32 0.2, %v7634_v51  ;;  %v15707_v0 = vadd.f32 %v7625_v2, %v7561_v3  ;;  %v12517_v2 = vld [vmem:[%s17073_s5 + $0x68] sm:$0xff]   ;;  %12259 = vmatprep.subr.msk.bf16.mxu1 %vm2899_vm13, %v12524_v57  ;;  %vm17205_vm8 = vcmask 654336  }
0x113e   : > { %v12191_v7 = vpop.f32.mrf.mxu1  ;;  %vm17208_vm11 = vmmov %vm17205_vm8 }
0x113f   : > { %v7637_v29 = vadd.f32 %v12191_v7, %v7572_v58  ;;  %v7662_v61 = vsel %vm7646_vm10, %v7634_v51, %v7654_v60  ;;  %vm5770_vm10 = vcmp.ge.f32.partialorder %v5754_v42, 0.0  ;;  %v12518_v58 = vld [vmem:[%s17073_s5 + $0x28] sm:$0xff]   ;;  %v12519_v7 = vld [vmem:[%s17073_s5 + $0x60] sm:$0xff]  }
0x1140   : > { %7684 = vrot.lane.b32.xlu0 %v7662_v61, %s17155_s29  ;;  %v5786_v4 = vsel %vm5770_vm10, %v5754_v42, %v5778_v8  ;;  %v12522_v61 = vld [vmem:[%s17073_s5 + $0x18] sm:$0xff]   ;;  %vm17207_vm10 = vcmask 982016  }
0x1141   : > { %vm7647_vm12 = vcmp.ge.f32.partialorder %v7637_v29, 0.0  ;;  %v7655_v59 = vmul.f32 0.2, %v7637_v29 }
0x1143   : > { %v7663_v1 = vsel %vm7647_vm12, %v7637_v29, %v7655_v59  ;;  %vm7696_vm12 = vcmask 392512   ;;  %v12521_v29 = vld [vmem:[%s17073_s5 + $0x58] sm:$0xff]  }
0x1144   : > { %5801 = vrot.lane.b32.xlu0 %v5783_v32, %s17147_s19  ;;  %7686 = vrot.lane.b32.xlu1 %v7663_v1, %s17155_s29  ;;  %v12523_v1 = vld [vmem:[%s17073_s5 + $0x50] sm:$0xff]  }
0x1148   : > { %5805 = vrot.lane.b32.xlu0 %v5785_v22, %s17147_s19  ;;  %5803 = vrot.lane.b32.xlu1 %v5784_v38, %s17147_s19  ;;  %v12525_v38 = vld [vmem:[%s17073_s5 + $0x10] sm:$0xff]   ;;  %v8181_v22 = vsel %vm2899_vm13, %v12524_v57, 0 }
0x1149   : > { %12193 = vmatpush3.bf16.msra.mxu1 %v8181_v22  ;;  %v7759_v22 = vld [vmem:[#allocation2 + $0xc1] sm:$0xff] }
0x114a   : > { %12194 = vmatprep.subr.bf16.mxu1 %v12527_v63 }
0x114c   : > { %6398 = vrot.lane.b32.xlu0 %v6382_v28, %s17147_s19  ;;  %5807 = vrot.lane.b32.xlu1 %v5786_v4, %s17147_s19  ;;  %v12526_v4 = vld [vmem:[%s17073_s5 + $0x48] sm:$0xff]  }
0x114d   : > { %12195 = vmatpush3.bf16.msra.mxu1 %v12527_v63 }
0x1150   : > { %7841 = vrot.lane.b32.xlu0 %v15511_v30, %s17153_s1  ;;  %6400 = vrot.lane.b32.xlu1 %v6383_v9, %s17147_s19  ;;  %v12515_v30 = vld [vmem:[%s17073_s5 + $0x70] sm:$0xff]   ;;  %v12528_v9 = vld [vmem:[%s17073_s5 + $0x8] sm:$0xff]  }
0x1151   : > { %11971 = vmatprep.subr.bf16.mxu0 %v12515_v30  ;;  %v12529_v30 = vld [vmem:[%s17073_s5 + $0x40] sm:$0xff]  }
0x1152   : > { %11972 = vmatpush3.bf16.msra.mxu0 %v12516_v17  ;;  %v12530_v17 = vld [vmem:[%s17073_s5 + $0xa0] sm:$0xff]  }
0x1153   : > { %11973 = vmatprep.subr.bf16.mxu0 %v12517_v2  ;;  %12196 = vmatprep.subr.bf16.mxu1 %v12530_v17 }
0x1154   : > { %7853 = vrot.lane.b32.xlu1 %v15520_v37, %s17147_s19  ;;  %12197 = vmatpush3.bf16.msra.mxu1 %v12530_v17 }
0x1156   : > { %11974 = vmatpush3.bf16.msra.mxu0 %v12518_v58  ;;  %v12532_v58 = vld [vmem:[%s17073_s5 + $0x98] sm:$0xff]  }
0x1157   : > { %11975 = vmatprep.subr.bf16.mxu0 %v12519_v7  ;;  %12198 = vmatprep.subr.bf16.mxu1 %v12532_v58 }
0x1158   : > { %7865 = vrot.lane.b32.xlu1 %v15527_v25, %s17154_s17  ;;  %12199 = vmatpush3.bf16.msra.mxu1 %v12532_v58 }
0x115a   : > { %11976 = vmatpush3.bf16.msra.mxu0 %v12520_v54  ;;  %v12533_v54 = vld [vmem:[%s17073_s5 + $0x90] sm:$0xff]  }
0x115b   : > { %11977 = vmatprep.subr.bf16.mxu0 %v12521_v29  ;;  %12200 = vmatprep.subr.bf16.mxu1 %v12533_v54 }
0x115c   : > { %12201 = vmatpush3.bf16.msra.mxu1 %v12533_v54 }
0x115e   : > { %11978 = vmatpush3.bf16.msra.mxu0 %v12522_v61  ;;  %v7782_v61 = vld [vmem:[#allocation2 + $0xc8] sm:$0xff] }
0x115f   : > { %11979 = vmatprep.subr.bf16.mxu0 %v12523_v1 }
0x1162   : > { %11980 = vmatpush3.bf16.msra.mxu0 %v12525_v38  ;;  %v12535_v38 = vld [vmem:[%s17073_s5 + $0x80] sm:$0xff]  }
0x1163   : > { %11981 = vmatprep.subr.bf16.mxu0 %v12526_v4  ;;  %v7772_v4 = vld [vmem:[#allocation2 + $0xca] sm:$0xff] }
0x1166   : > { %11982 = vmatpush3.bf16.msra.mxu0 %v12528_v9 }
0x1167   : > { %11983 = vmatprep.subr.bf16.mxu0 %v12529_v30 }
0x11b2   : > { %v7685_v11 = vpop.permute.xlu0 %7684 }
0x11b3   : > { %7703 = vst.msk [vmem:[#allocation2 + $0x61] sm:$0xff] %vm7696_vm12, %v7685_v11  ;;  %v12531_v11 = vld [vmem:[%s17073_s5] sm:$0xff]  }
0x11b4   : > { %11984 = vmatpush3.bf16.msra.mxu0 %v12531_v11 }
0x11b6   : > { %v5802_v51 = vpop.permute.xlu0 %5801  ;;  %v7687_v3 = vpop.permute.xlu1 %7686 }
0x11b7   : > { %5823 = vst.msk [vmem:[#allocation2 + $0x91] sm:$0xff] %vm5219_vm15, %v5802_v51 }
0x11b8   : > { %7704 = vst.msk [vmem:[#allocation2 + $0x69] sm:$0xff] %vm7696_vm12, %v7687_v3 }
0x11ba   : > { %v5806_v60 = vpop.permute.xlu0 %5805  ;;  %v5804_v52 = vpop.permute.xlu1 %5803 }
0x11bb   : > { %5825 = vst.msk [vmem:[#allocation2 + $0xa9] sm:$0xff] %vm5219_vm15, %v5806_v60  ;;  %5824 = vst.msk [vmem:[#allocation2 + $0x99] sm:$0xff] %vm5219_vm15, %v5804_v52 }
0x11be   : > { %v6399_v33 = vpop.permute.xlu0 %6398  ;;  %v5808_v13 = vpop.permute.xlu1 %5807  ;;  %v7777_v32 = vld [vmem:[#allocation2 + $0x90] sm:$0xff] }
0x11bf   : > { %6422 = vst.msk [vmem:[#allocation2 + $0xd9] sm:$0xff] %vm5219_vm15, %v6399_v33  ;;  %5826 = vst.msk [vmem:[#allocation2 + $0xb1] sm:$0xff] %vm5219_vm15, %v5808_v13  ;;  %v7755_v14 = vld [vmem:[#allocation2 + $0x91] sm:$0xff]  ;;  %v7718_v60 = vld [vmem:[#allocation2 + $0x69] sm:$0xff] }
0x11c0   : > { %v7717_v33 = vld [vmem:[#allocation2 + $0x61] sm:$0xff] }
0x11c1   : > { %v7725_v29 = vpack.c.bf16 %v7718_v60, %v7717_v33 }
0x11c2   : > { %v6401_v59 = vpop.permute.xlu1 %6400  ;;  %v7778_v15 = vld [vmem:[#allocation2 + $0x98] sm:$0xff]  ;;  %v7757_v2 = vld [vmem:[#allocation2 + $0xa9] sm:$0xff]  ;;  %v7842_v58 = vpop.permute.xlu0 %7841 }
0x11c3   : > { %6423 = vst.msk [vmem:[#allocation2 + $0xe1] sm:$0xff] %vm5219_vm15, %v6401_v59  ;;  %v15769_v42 = vpack.c.bf16 %v7778_v15, %v7777_v32  ;;  %v7756_v40 = vld [vmem:[#allocation2 + $0x99] sm:$0xff]  ;;  %v7729_v59 = vld [vmem:[#allocation2 + $0x62] sm:$0xff]  ;;  %v7730_v32 = vld [vmem:[#allocation2 + $0x6a] sm:$0xff] }
0x11c4   : > { %v15786_v19 = vpack.c.bf16 %v7756_v40, %v7755_v14  ;;  %v7767_v8 = vld [vmem:[#allocation2 + $0x92] sm:$0xff]  ;;  %v7768_v28 = vld [vmem:[#allocation2 + $0x9a] sm:$0xff]  ;;  %v12534_v40 = vld [vmem:[%s17073_s5 + $0x88] sm:$0xff]   ;;  %v7737_v57 = vpack.c.bf16 %v7730_v32, %v7729_v59 }
0x11c5   : > { %7877 = vrot.lane.b32.xlu1 %v15769_v42, %s17143_s16  ;;  %7843 = vrot.lane.b32.xlu0 %v15769_v42, %s17153_s1  ;;  %v7774_v18 = vpack.c.bf16 %v7768_v28, %v7767_v8  ;;  %v7781_v15 = vld [vmem:[#allocation2 + $0xc0] sm:$0xff]  ;;  %v7760_v14 = vld [vmem:[#allocation2 + $0xc9] sm:$0xff] }
0x11c6   : > { %v7780_v46 = vld [vmem:[#allocation2 + $0xb0] sm:$0xff]  ;;  %v7787_v1 = vpack.c.bf16 %v7782_v61, %v7781_v15  ;;  %12202 = vmatprep.subr.bf16.mxu1 %v12534_v40  ;;  %v7764_v8 = vpack.c.bf16 %v7760_v14, %v7759_v22  ;;  %v7771_v28 = vld [vmem:[#allocation2 + $0xc2] sm:$0xff]  ;;  %v7783_v9 = vld [vmem:[#allocation2 + $0xd8] sm:$0xff] }
0x11c7   : > { %v7758_v3 = vld [vmem:[#allocation2 + $0xb1] sm:$0xff]  ;;  %12203 = vmatpush3.bf16.msra.mxu1 %v12534_v40  ;;  %v7705_v22 = vld [vmem:[#allocation2 + $0x60] sm:$0xff] }
0x11c8   : > { %v7769_v52 = vld [vmem:[#allocation2 + $0xaa] sm:$0xff]  ;;  %v7770_v7 = vld [vmem:[#allocation2 + $0xb2] sm:$0xff]  ;;  %12204 = vmatprep.subr.bf16.mxu1 %v12535_v38 }
0x11c9   : > { %7855 = vrot.lane.b32.xlu1 %v15786_v19, %s17147_s19  ;;  %7819 = vrot.lane.b32.xlu0 %v15520_v37, %s17155_s29  ;;  %v7779_v37 = vld [vmem:[#allocation2 + $0xa8] sm:$0xff]  ;;  %v7775_v13 = vpack.c.bf16 %v7770_v7, %v7769_v52 }
0x11ca   : > { %v15813_v51 = vpack.c.bf16 %v7780_v46, %v7779_v37  ;;  %v7784_v63 = vld [vmem:[#allocation2 + $0xe0] sm:$0xff]  ;;  %v7776_v46 = vpack.c.bf16 %v7772_v4, %v7771_v28 }
0x11cb   : > { %12205 = vmatpush3.bf16.msra.mxu1 %v12535_v38  ;;  %v15847_v30 = vpack.c.bf16 %v7784_v63, %v7783_v9  ;;  %v7796_v17 = vld [vmem:[#allocation2 + $0xe1] sm:$0xff]  ;;  %v7707_v9 = vld [vmem:[#allocation2 + $0x78] sm:$0xff] }
0x11cc   : > { %v7807_v37 = vld [vmem:[#allocation2 + $0xda] sm:$0xff] }
0x11cd   : > { %7867 = vrot.lane.b32.xlu1 %v7774_v18, %s17154_s17  ;;  %7831 = vrot.lane.b32.xlu0 %v15527_v25, %s17146_s14  ;;  %v7763_v25 = vpack.c.bf16 %v7758_v3, %v7757_v2  ;;  %v7808_v3 = vld [vmem:[#allocation2 + $0xe2] sm:$0xff]  ;;  %v7854_v2 = vpop.permute.xlu1 %7853 }
0x11ce   : > { %v7942_v60 = vsel %vm780_vm3, %v7842_v58, %v7854_v2 }
0x11d1   : > { %7879 = vrot.lane.b32.xlu1 %v15813_v51, %s17143_s16  ;;  %7845 = vrot.lane.b32.xlu0 %v15813_v51, %s17153_s1 }
0x11d5   : > { %7857 = vrot.lane.b32.xlu1 %v7763_v25, %s17147_s19  ;;  %7821 = vrot.lane.b32.xlu0 %v15786_v19, %s17155_s29 }
0x11d9   : > { %7869 = vrot.lane.b32.xlu1 %v7775_v13, %s17154_s17  ;;  %7817 = vrot.lane.b32.xlu0 %v7725_v29, %s17155_s29 }
0x11dd   : > { %7881 = vrot.lane.b32.xlu1 %v7787_v1, %s17143_s16  ;;  %7829 = vrot.lane.b32.xlu0 %v7737_v57, %s17146_s14  ;;  %v7706_v57 = vld [vmem:[#allocation2 + $0x68] sm:$0xff] }
0x11e1   : > { %7847 = vrot.lane.b32.xlu1 %v7787_v1, %s17153_s1  ;;  %7833 = vrot.lane.b32.xlu0 %v7774_v18, %s17146_s14 }
0x11e5   : > { %7891 = vrot.lane.b32.xlu1 %v7763_v25, %s17152_s20  ;;  %7889 = vrot.lane.b32.xlu0 %v15786_v19, %s17152_s20  ;;  %v7795_v19 = vld [vmem:[#allocation2 + $0xd9] sm:$0xff] }
0x11e6   : > { %v15852_v11 = vpack.c.bf16 %v7796_v17, %v7795_v19 }
0x11e9   : > { %7859 = vrot.lane.b32.xlu0 %v7764_v8, %s17147_s19  ;;  %7823 = vrot.lane.b32.xlu1 %v7763_v25, %s17155_s29  ;;  %v7866_v25 = vpop.permute.xlu1 %7865 }
0x11ea   : > { %v7950_v52 = vsel %vm17204_vm1, %v7942_v60, %v7866_v25 }
0x11ed   : > { %7901 = vrot.lane.b32.xlu0 %v7774_v18, %s17145_s26  ;;  %7903 = vrot.lane.b32.xlu1 %v7775_v13, %s17145_s26  ;;  %v15857_v18 = vpack.c.bf16 %v7808_v3, %v7807_v37 }
0x11f1   : > { %7871 = vrot.lane.b32.xlu0 %v7776_v46, %s17154_s17  ;;  %7883 = vrot.lane.b32.xlu1 %v15847_v30, %s17143_s16 }
0x11f5   : > { %7835 = vrot.lane.b32.xlu0 %v7775_v13, %s17146_s14  ;;  %7895 = vrot.lane.b32.xlu1 %v15852_v11, %s17152_s20 }
0x11f9   : > { %7893 = vrot.lane.b32.xlu0 %v7764_v8, %s17152_s20  ;;  %7907 = vrot.lane.b32.xlu1 %v15857_v18, %s17145_s26  ;;  %v7713_v8 = vpack.c.bf16 %v7706_v57, %v7705_v22 }
0x11fd   : > { %7905 = vrot.lane.b32.xlu0 %v7776_v46, %s17145_s26  ;;  %v7708_v46 = vld [vmem:[#allocation2 + $0x80] sm:$0xff] }
0x11fe   : > { %v7714_v25 = vpack.c.bf16 %v7708_v46, %v7707_v9 }
0x1237   : > { %v7844_v7 = vpop.permute.xlu0 %7843  ;;  %v7878_v54 = vpop.permute.xlu1 %7877 }
0x1238   : > { %v7958_v33 = vsel %vm824_vm7, %v7950_v52, %v7878_v54 }
0x1239   : > { %8215 = vmatprep.mubr.bf16.mxu0 %v7958_v33 }
0x123b   : > { %v7820_v13 = vpop.permute.xlu0 %7819  ;;  %v7856_v29 = vpop.permute.xlu1 %7855 }
0x123c   : > { %v7944_v17 = vsel %vm780_vm3, %v7844_v7, %v7856_v29  ;;  %v7914_v33 = vsel %vm2758_vm14, %v7714_v25, %v7820_v13 }
0x123f   : > { %v7832_v61 = vpop.permute.xlu0 %7831  ;;  %v7868_v59 = vpop.permute.xlu1 %7867 }
0x1240   : > { %v7952_v37 = vsel %vm17206_vm9, %v7944_v17, %v7868_v59  ;;  %v7924_v57 = vsel %vm17208_vm11, %v7914_v33, %v7832_v61  ;;  %vm17210_vm9 = vmmov %vm17208_vm11 }
0x1243   : > { %v7846_v32 = vpop.permute.xlu0 %7845  ;;  %v7880_v15 = vpop.permute.xlu1 %7879 }
0x1244   : > { %v7961_v2 = vsel %vm824_vm7, %v7952_v37, %v7880_v15 }
0x1247   : > { %v7822_v40 = vpop.permute.xlu0 %7821  ;;  %v7858_v1 = vpop.permute.xlu1 %7857 }
0x1248   : > { %v7946_v29 = vsel %vm780_vm3, %v7846_v32, %v7858_v1  ;;  %v7917_v9 = vsel %vm2758_vm14, %v15769_v42, %v7822_v40 }
0x124b   : > { %v7818_v38 = vpop.permute.xlu0 %7817  ;;  %v7870_v14 = vpop.permute.xlu1 %7869 }
0x124c   : > { %v7911_v28 = vsel %vm2758_vm14, %v7713_v8, %v7818_v38  ;;  %v7954_v8 = vsel %vm17204_vm1, %v7946_v29, %v7870_v14 }
0x124f   : > { %v7830_v4 = vpop.permute.xlu0 %7829  ;;  %v7882_v63 = vpop.permute.xlu1 %7881 }
0x1250   : > { %v7922_v19 = vsel %vm17205_vm8, %v7911_v28, %v7830_v4  ;;  %vm17209_vm8 = vmmov %vm17207_vm10 }
0x1251   : > { %v7930_v3 = vsel %vm17207_vm10, %v7922_v19, %v7842_v58  ;;  %v7933_v59 = vsel %vm17209_vm8, %v7924_v57, %v7844_v7  ;;  %v7964_v58 = vsel %vm824_vm7, %v7954_v8, %v7882_v63  ;;  %vm17211_vm10 = vcmask 195584   ;;  %vm17213_vm1 = vmmov %vm17209_vm8 }
0x1252   : > { %8216 = vmatmul.mubr.bf16.vlgmr.msra.gmra.mxu0 %v7930_v3  ;;  %vm17212_vm11 = vmmov %vm17211_vm10  ;;  %vm17214_vm8 = vcmask 588800  }
0x1253   : > { %v7834_v60 = vpop.permute.xlu0 %7833  ;;  %8223 = vmatprep.mubr.bf16.mxu0 %v7961_v2  ;;  %v7848_v52 = vpop.permute.xlu1 %7847 }
0x1254   : > { %v7926_v13 = vsel %vm17210_vm9, %v7917_v9, %v7834_v60 }
0x1255   : > { %v7936_v19 = vsel %vm17213_vm1, %v7926_v13, %v7846_v32 }
0x1257   : > { %v7890_v38 = vpop.permute.xlu0 %7889  ;;  %v7892_v22 = vpop.permute.xlu1 %7891 }
0x1258   : > { %v7970_v61 = vsel %vm17211_vm10, %v7878_v54, %v7890_v38  ;;  %v7972_v46 = vsel %vm17212_vm11, %v7880_v15, %v7892_v22  ;;  %vm17215_vm10 = vmmov %vm17213_vm1 }
0x1259   : > { %vm17216_vm1 = vmmov %vm17212_vm11 }
0x125a   : > { %8224 = vmatmul.mubr.bf16.gmra.mxu0 %v7933_v59 }
0x125b   : > { %v7860_v28 = vpop.permute.xlu0 %7859  ;;  %8231 = vmatprep.mubr.bf16.mxu0 %v7964_v58  ;;  %v7824_v4 = vpop.permute.xlu1 %7823 }
0x125c   : > { %v7948_v42 = vsel %vm780_vm3, %v7848_v52, %v7860_v28  ;;  %v7920_v3 = vsel %vm2758_vm14, %v15813_v51, %v7824_v4 }
0x125f   : > { %v7902_v1 = vpop.permute.xlu0 %7901  ;;  %v7904_v17 = vpop.permute.xlu1 %7903 }
0x1260   : > { %v7978_v14 = vsel %vm797_vm4, %v7970_v61, %v7902_v1  ;;  %v7980_v7 = vsel %vm797_vm4, %v7972_v46, %v7904_v17  ;;  %v15901_v1 = vpop.f32.mrf.mxu1 }
0x1261   : > { %12206 = vmatprep.mubr.msk.bf16.mxu1 %vm7498_vm5, %v7978_v14 }
0x1262   : > { %8232 = vmatmul.mubr.bf16.gmra.mxu0 %v7936_v19  ;;  %12207 = vmatmul.mubr.msk.bf16.vlgmr.msra.gmra.mxu1 %vm7498_vm5, %v7980_v7 }
0x1263   : > { %v7872_v40 = vpop.permute.xlu0 %7871  ;;  %v7884_v37 = vpop.permute.xlu1 %7883 }
0x1264   : > { %v7956_v54 = vsel %vm17214_vm8, %v7948_v42, %v7872_v40 }
0x1265   : > { %v7967_v15 = vsel %vm824_vm7, %v7956_v54, %v7884_v37 }
0x1266   : > { %8239 = vmatprep.mubr.bf16.mxu0 %v7967_v15 }
0x1267   : > { %v7836_v2 = vpop.permute.xlu0 %7835  ;;  %v7896_v60 = vpop.permute.xlu1 %7895 }
0x1268   : > { %v7928_v25 = vsel %vm17210_vm9, %v7920_v3, %v7836_v2  ;;  %v7976_v29 = vsel %vm17216_vm1, %v7884_v37, %v7896_v60 }
0x1269   : > { %v7939_v32 = vsel %vm17215_vm10, %v7928_v25, %v7848_v52 }
0x126a   : > { %8240 = vmatmul.mubr.bf16.gmra.mxu0 %v7939_v32 }
0x126b   : > { %v7894_v33 = vpop.permute.xlu0 %7893  ;;  %v7908_v57 = vpop.permute.xlu1 %7907 }
0x126c   : > { %v7974_v38 = vsel %vm17212_vm11, %v7882_v63, %v7894_v33  ;;  %v7984_v59 = vsel %vm797_vm4, %v7976_v29, %v7908_v57 }
0x126f   : > { %v7906_v22 = vpop.permute.xlu0 %7905 }
0x1270   : > { %v7982_v8 = vsel %vm797_vm4, %v7974_v38, %v7906_v22 }
0x1271   : > { %12210 = vmatprep.mubr.msk.bf16.mxu1 %vm7498_vm5, %v7982_v8 }
0x1272   : > { %12211 = vmatmul.mubr.msk.bf16.gmra.mxu1 %vm7498_vm5, %v7984_v59 }
0x1312   : > { %v11985_v51 = vpop.f32.mrf.mxu0 }
0x1314   : > { %v11986_v58 = vpop.f32.mrf.mxu0 }
0x1315   : > { %v11987_v28 = vadd.f32 %v11986_v58, %v11985_v51 }
0x1316   : > { %v11988_v52 = vpop.f32.mrf.mxu0 }
0x1317   : > { %v8218_v37 = vadd.f32 %v11987_v28, %v15680_v27 }
0x1318   : > { %v11989_v4 = vpop.f32.mrf.mxu0 }
0x1319   : > { %v11990_v9 = vadd.f32 %v11989_v4, %v11988_v52 }
0x131a   : > { %v11991_v13 = vpop.f32.mrf.mxu0 }
0x131b   : > { %v8221_v57 = vadd.f32 %v11990_v9, %v15680_v27 }
0x131c   : > { %v11992_v61 = vpop.f32.mrf.mxu0 }
0x131d   : > { %v11993_v63 = vadd.f32 %v11992_v61, %v11991_v13  ;;  %v6344_v61 = vadd.f32 %v15232_v53, %v15247_v16  ;;  %v6872_v16 = vadd.f32 %v15651_v48, %v15658_v44 }
0x131e   : > { %v11994_v46 = vpop.f32.mrf.mxu0 }
0x131f   : > { %v8226_v7 = vadd.f32 %v11993_v63, %v15680_v27  ;;  %vm6368_vm9 = vcmp.ge.f32.partialorder %v6344_v61, 0.0 }
0x1320   : > { %v11995_v17 = vpop.f32.mrf.mxu0 }
0x1321   : > { %v11996_v14 = vadd.f32 %v11995_v17, %v11994_v46 }
0x1322   : > { %v11997_v19 = vpop.f32.mrf.mxu0  ;;  %v12208_v42 = vpop.f32.mrf.mxu1 }
0x1323   : > { %v15904_v40 = vadd.f32 %v12208_v42, %v8226_v7  ;;  %v8229_v25 = vadd.f32 %v11996_v14, %v15680_v27  ;;  %v6347_v42 = vadd.f32 %v15241_v49, %v15249_v41  ;;  %v6937_v49 = vadd.f32 %v15637_v5, %v6872_v16  ;;  %v12545_v16 = vld [vmem:[%s17073_s5 + $0x18] sm:$0xff]  }
0x1324   : > { %v11998_v54 = vpop.f32.mrf.mxu0  ;;  %v8282_v15 = vpop.f32.mrf.mxu1  ;;  %v6875_v41 = vadd.f32 %v15653_v21, %v15658_v44 }
0x1325   : > { %v11999_v3 = vadd.f32 %v11998_v54, %v11997_v19  ;;  %v15907_v2 = vadd.f32 %v8282_v15, %v8218_v37  ;;  %v6376_v54 = vmul.f32 0.2, %v6344_v61  ;;  %v17217_v15 = vld [vmem:[#allocation16_spill] sm:$0xff]  ;;  %vm6369_vm11 = vcmp.ge.f32.partialorder %v6347_v42, 0.0 }
0x1326   : > { %v12000_v60 = vpop.f32.mrf.mxu0  ;;  %v12209_v32 = vpop.f32.mrf.mxu1  ;;  %v6352_v53 = vadd.f32 %v17217_v15, %v15253_v34  ;;  %v6940_v48 = vadd.f32 %v15641_v23, %v6875_v41  ;;  %v12547_v41 = vld [vmem:[%s17073_s5 + $0xb0] ss:$0 sps:$4 sm:$0xff]  }
0x1327   : > { %v15910_v33 = vadd.f32 %v12209_v32, %v8229_v25  ;;  %v8234_v9 = vadd.f32 %v11999_v3, %v15680_v27  ;;  %v6384_v32 = vsel %vm6368_vm9, %v6344_v61, %v6376_v54  ;;  %12260 = vmatprep.subr.msk.bf16.mxu0 %vm2899_vm13, %v12547_v41 }
0x1328   : > { %v12001_v38 = vpop.f32.mrf.mxu0  ;;  %v8285_v22 = vpop.f32.mrf.mxu1  ;;  %vm6370_vm1 = vcmp.ge.f32.partialorder %v6352_v53, 0.0  ;;  %v6976_v44 = vmul.f32 0.2, %v6940_v48 }
0x1329   : > { %v15913_v29 = vadd.f32 %v12001_v38, %v12000_v60  ;;  %v15915_v8 = vadd.f32 %v8285_v22, %v8221_v57  ;;  %v6378_v38 = vmul.f32 0.2, %v6352_v53 }
0x132a   : > { %v12003_v59 = vpop.f32.mrf.mxu0 }
0x132b   : > { %v6386_v22 = vsel %vm6370_vm1, %v6352_v53, %v6378_v38  ;;  %v12544_v53 = vld [vmem:[%s17073_s5 + $0x58] sm:$0xff]   ;;  %vm17220_vm1 = vcmask 654336  }
0x132c   : > { %v12004_v51 = vpop.f32.mrf.mxu0 }
0x132d   : > { %v12005_v58 = vadd.f32 %v12004_v51, %v12003_v59  ;;  %v6975_v59 = vmul.f32 0.2, %v6937_v49  ;;  %v17218_v51 = vld [vmem:[#allocation17_spill] sm:$0xff] }
0x132e   : > { %v12006_v28 = vpop.f32.mrf.mxu0  ;;  %vm6371_vm9 = vcmp.ge.f32.partialorder %v17218_v51, 0.0 }
0x132f   : > { %v8242_v13 = vadd.f32 %v12005_v58, %v15680_v27  ;;  %v6379_v58 = vmul.f32 0.2, %v17218_v51 }
0x1330   : > { %v12007_v52 = vpop.f32.mrf.mxu0 }
0x1331   : > { %v12008_v4 = vadd.f32 %v12007_v52, %v12006_v28  ;;  %v6387_v21 = vsel %vm6371_vm9, %v17218_v51, %v6379_v58  ;;  %v12536_v28 = vld [vmem:[%s17073_s5 + $0x78] sm:$0xff]   ;;  %v12549_v51 = vld [vmem:[%s17073_s5 + $0x48] sm:$0xff]   ;;  %vm17222_vm9 = vcmask 982016  }
0x1332   : > { %v12212_v63 = vpop.f32.mrf.mxu1  ;;  %v12537_v52 = vld [vmem:[%s17073_s5 + $0x38] sm:$0xff]   ;;  %12020 = vmatprep.subr.bf16.mxu1 %v12536_v28  ;;  %v12550_v58 = vld [vmem:[%s17073_s5 + $0xa8] sm:$0xff]   ;;  %v12553_v28 = vld [vmem:[%s17073_s5 + $0xa0] sm:$0xff]  }
0x1333   : > { %v8307_v46 = vadd.f32 %v12212_v63, %v8242_v13  ;;  %v8245_v19 = vadd.f32 %v12008_v4, %v15680_v27  ;;  %v6377_v27 = vmul.f32 0.2, %v6347_v42  ;;  %v12538_v4 = vld [vmem:[%s17073_s5 + $0x70] sm:$0xff]   ;;  %12021 = vmatpush3.bf16.msra.mxu1 %v12537_v52  ;;  %v12554_v52 = vld [vmem:[%s17073_s5] sm:$0xff]  }
0x1334   : > { %v8298_v17 = vpop.f32.mrf.mxu1  ;;  %v12539_v13 = vld [vmem:[%s17073_s5 + $0x30] sm:$0xff]   ;;  %12022 = vmatprep.subr.bf16.mxu1 %v12538_v4 }
0x1335   : > { %vm8319_vm8 = vcmp.ge.f32.partialorder %v8307_v46, 0.0  ;;  %v8327_v14 = vmul.f32 0.2, %v8307_v46  ;;  %v15921_v7 = vadd.f32 %v8298_v17, %v8234_v9  ;;  %v6385_v34 = vsel %vm6369_vm11, %v6347_v42, %v6377_v27  ;;  %v12540_v9 = vld [vmem:[%s17073_s5 + $0x68] sm:$0xff]   ;;  %v12542_v42 = vld [vmem:[%s17073_s5 + $0x60] sm:$0xff]  }
0x1336   : > { %v12213_v37 = vpop.f32.mrf.mxu1  ;;  %v12541_v17 = vld [vmem:[%s17073_s5 + $0x28] sm:$0xff]   ;;  %vm17219_vm11 = vcmask 588800  }
0x1337   : > { %v8310_v3 = vadd.f32 %v12213_v37, %v8245_v19  ;;  %v8335_v25 = vsel %vm8319_vm8, %v8307_v46, %v8327_v14  ;;  %vm6967_vm8 = vcmp.ge.f32.partialorder %v6937_v49, 0.0  ;;  %12023 = vmatpush3.bf16.msra.mxu1 %v12539_v13  ;;  %v12543_v37 = vld [vmem:[%s17073_s5 + $0x20] sm:$0xff]  }
0x1338   : > { %8357 = vrot.lane.b32.xlu0 %v8335_v25, %s17155_s29  ;;  %v6983_v5 = vsel %vm6967_vm8, %v6937_v49, %v6975_v59  ;;  %12024 = vmatprep.subr.bf16.mxu1 %v12540_v9  ;;  %v12546_v49 = vld [vmem:[%s17073_s5 + $0x50] sm:$0xff]   ;;  %vm17221_vm8 = vmmov %vm17219_vm11 }
0x1339   : > { %vm8320_vm10 = vcmp.ge.f32.partialorder %v8310_v3, 0.0  ;;  %v8328_v60 = vmul.f32 0.2, %v8310_v3 }
0x133b   : > { %v8336_v57 = vsel %vm8320_vm10, %v8310_v3, %v8328_v60  ;;  %vm6968_vm10 = vcmp.ge.f32.partialorder %v6940_v48, 0.0  ;;  %12025 = vmatpush3.bf16.msra.mxu1 %v12541_v17 }
0x133c   : > { %6402 = vrot.lane.b32.xlu0 %v6384_v32, %s17147_s19  ;;  %8359 = vrot.lane.b32.xlu1 %v8336_v57, %s17155_s29  ;;  %v6984_v23 = vsel %vm6968_vm10, %v6940_v48, %v6976_v44  ;;  %v12548_v57 = vld [vmem:[%s17073_s5 + $0x10] sm:$0xff]   ;;  %vm17223_vm10 = vmmov %vm17220_vm1 }
0x133d   : > { %12026 = vmatprep.subr.bf16.mxu1 %v12542_v42 }
0x133f   : > { %12027 = vmatpush3.bf16.msra.mxu1 %v12543_v37 }
0x1340   : > { %6406 = vrot.lane.b32.xlu0 %v6386_v22, %s17147_s19  ;;  %6404 = vrot.lane.b32.xlu1 %v6385_v34, %s17147_s19  ;;  %v8853_v34 = vsel %vm2899_vm13, %v12547_v41, 0  ;;  %v8431_v41 = vld [vmem:[#allocation2 + $0x121] sm:$0xff] }
0x1341   : > { %12028 = vmatprep.subr.bf16.mxu1 %v12544_v53  ;;  %12215 = vmatpush3.bf16.msra.mxu0 %v8853_v34  ;;  %v8444_v34 = vld [vmem:[#allocation2 + $0x12a] sm:$0xff] }
0x1342   : > { %12216 = vmatprep.subr.bf16.mxu0 %v12550_v58 }
0x1343   : > { %12029 = vmatpush3.bf16.msra.mxu1 %v12545_v16  ;;  %v8453_v16 = vld [vmem:[#allocation2 + $0x120] sm:$0xff] }
0x1344   : > { %6999 = vrot.lane.b32.xlu0 %v6983_v5, %s17147_s19  ;;  %6408 = vrot.lane.b32.xlu1 %v6387_v21, %s17147_s19  ;;  %v12551_v5 = vld [vmem:[%s17073_s5 + $0x8] sm:$0xff]  }
0x1345   : > { %12030 = vmatprep.subr.bf16.mxu1 %v12546_v49  ;;  %12217 = vmatpush3.bf16.msra.mxu0 %v12550_v58  ;;  %v8432_v49 = vld [vmem:[#allocation2 + $0x129] sm:$0xff] }
0x1346   : > { %12218 = vmatprep.subr.bf16.mxu0 %v12553_v28 }
0x1347   : > { %12031 = vmatpush3.bf16.msra.mxu1 %v12548_v57  ;;  %v8436_v57 = vpack.c.bf16 %v8432_v49, %v8431_v41 }
0x1348   : > { %8513 = vrot.lane.b32.xlu0 %v15847_v30, %s17153_s1  ;;  %7001 = vrot.lane.b32.xlu1 %v6984_v23, %s17147_s19  ;;  %v12552_v23 = vld [vmem:[%s17073_s5 + $0x40] sm:$0xff]  }
0x1349   : > { %12032 = vmatprep.subr.bf16.mxu1 %v12549_v51  ;;  %12219 = vmatpush3.bf16.msra.mxu0 %v12553_v28 }
0x134b   : > { %12033 = vmatpush3.bf16.msra.mxu1 %v12551_v5 }
0x134c   : > { %8525 = vrot.lane.b32.xlu1 %v15852_v11, %s17147_s19  ;;  %12034 = vmatprep.subr.bf16.mxu1 %v12552_v23 }
0x134f   : > { %12035 = vmatpush3.bf16.msra.mxu1 %v12554_v52 }
0x1350   : > { %8537 = vrot.lane.b32.xlu1 %v15857_v18, %s17154_s17 }
0x13aa   : > { %v8358_v61 = vpop.permute.xlu0 %8357 }
0x13ab   : > { %8375 = vst.msk [vmem:[#allocation2 + $0xc1] sm:$0xff] %vm7696_vm12, %v8358_v61 }
0x13ae   : > { %v6403_v63 = vpop.permute.xlu0 %6402  ;;  %v8360_v46 = vpop.permute.xlu1 %8359 }
0x13af   : > { %6424 = vst.msk [vmem:[#allocation2 + $0xf1] sm:$0xff] %vm5219_vm15, %v6403_v63  ;;  %v12555_v63 = vld [vmem:[%s17073_s5 + $0x98] sm:$0xff]  }
0x13b0   : > { %8376 = vst.msk [vmem:[#allocation2 + $0xc9] sm:$0xff] %vm7696_vm12, %v8360_v46  ;;  %12220 = vmatprep.subr.bf16.mxu0 %v12555_v63 }
0x13b1   : > { %12221 = vmatpush3.bf16.msra.mxu0 %v12555_v63 }
0x13b2   : > { %v6407_v14 = vpop.permute.xlu0 %6406  ;;  %v6405_v19 = vpop.permute.xlu1 %6404 }
0x13b3   : > { %6426 = vst.msk [vmem:[#allocation2 + $0x109] sm:$0xff] %vm5219_vm15, %v6407_v14  ;;  %6425 = vst.msk [vmem:[#allocation2 + $0xf9] sm:$0xff] %vm5219_vm15, %v6405_v19  ;;  %v12556_v14 = vld [vmem:[%s17073_s5 + $0x90] sm:$0xff]   ;;  %v8389_v19 = vld [vmem:[#allocation2 + $0xc1] sm:$0xff] }
0x13b4   : > { %12222 = vmatprep.subr.bf16.mxu0 %v12556_v14 }
0x13b5   : > { %12223 = vmatpush3.bf16.msra.mxu0 %v12556_v14 }
0x13b6   : > { %v7000_v54 = vpop.permute.xlu0 %6999  ;;  %v6409_v15 = vpop.permute.xlu1 %6408  ;;  %v8449_v25 = vld [vmem:[#allocation2 + $0xf0] sm:$0xff] }
0x13b7   : > { %7023 = vst.msk [vmem:[#allocation2 + $0x139] sm:$0xff] %vm5219_vm15, %v7000_v54  ;;  %6427 = vst.msk [vmem:[#allocation2 + $0x111] sm:$0xff] %vm5219_vm15, %v6409_v15  ;;  %v8427_v38 = vld [vmem:[#allocation2 + $0xf1] sm:$0xff]  ;;  %v8390_v46 = vld [vmem:[#allocation2 + $0xc9] sm:$0xff] }
0x13b8   : > { %v8397_v37 = vpack.c.bf16 %v8390_v46, %v8389_v19  ;;  %v8454_v54 = vld [vmem:[#allocation2 + $0x128] sm:$0xff] }
0x13b9   : > { %v8401_v15 = vld [vmem:[#allocation2 + $0xc2] sm:$0xff]  ;;  %v8402_v53 = vld [vmem:[#allocation2 + $0xca] sm:$0xff] }
0x13ba   : > { %v7002_v3 = vpop.permute.xlu1 %7001  ;;  %v8450_v60 = vld [vmem:[#allocation2 + $0xf8] sm:$0xff]  ;;  %v8429_v61 = vld [vmem:[#allocation2 + $0x109] sm:$0xff] }
0x13bb   : > { %7024 = vst.msk [vmem:[#allocation2 + $0x141] sm:$0xff] %vm5219_vm15, %v7002_v3  ;;  %v15989_v32 = vpack.c.bf16 %v8450_v60, %v8449_v25  ;;  %v8428_v27 = vld [vmem:[#allocation2 + $0xf9] sm:$0xff]  ;;  %v12557_v3 = vld [vmem:[%s17073_s5 + $0x88] sm:$0xff]   ;;  %v8459_v25 = vpack.c.bf16 %v8454_v54, %v8453_v16  ;;  %v8409_v60 = vpack.c.bf16 %v8402_v53, %v8401_v15 }
0x13bc   : > { %v16006_v48 = vpack.c.bf16 %v8428_v27, %v8427_v38  ;;  %v8439_v22 = vld [vmem:[#allocation2 + $0xf2] sm:$0xff]  ;;  %v8440_v59 = vld [vmem:[#allocation2 + $0xfa] sm:$0xff]  ;;  %12224 = vmatprep.subr.bf16.mxu0 %v12557_v3  ;;  %v8443_v38 = vld [vmem:[#allocation2 + $0x122] sm:$0xff] }
0x13bd   : > { %8549 = vrot.lane.b32.xlu1 %v15989_v32, %s17143_s16  ;;  %8515 = vrot.lane.b32.xlu0 %v15989_v32, %s17153_s1  ;;  %v8446_v21 = vpack.c.bf16 %v8440_v59, %v8439_v22  ;;  %v12558_v27 = vld [vmem:[%s17073_s5 + $0x80] sm:$0xff]   ;;  %v8448_v51 = vpack.c.bf16 %v8444_v34, %v8443_v38  ;;  %v8378_v16 = vld [vmem:[#allocation2 + $0xc8] sm:$0xff] }
0x13be   : > { %v8452_v44 = vld [vmem:[#allocation2 + $0x110] sm:$0xff]  ;;  %12225 = vmatpush3.bf16.msra.mxu0 %v12557_v3  ;;  %v8455_v59 = vld [vmem:[#allocation2 + $0x138] sm:$0xff]  ;;  %v8526_v52 = vpop.permute.xlu1 %8525 }
0x13bf   : > { %v8430_v13 = vld [vmem:[#allocation2 + $0x111] sm:$0xff]  ;;  %12226 = vmatprep.subr.bf16.mxu0 %v12558_v27 }
0x13c0   : > { %v8441_v9 = vld [vmem:[#allocation2 + $0x10a] sm:$0xff]  ;;  %v8442_v17 = vld [vmem:[#allocation2 + $0x112] sm:$0xff] }
0x13c1   : > { %8527 = vrot.lane.b32.xlu1 %v16006_v48, %s17147_s19  ;;  %8491 = vrot.lane.b32.xlu0 %v15852_v11, %s17155_s29  ;;  %v8451_v11 = vld [vmem:[#allocation2 + $0x108] sm:$0xff]  ;;  %v8447_v42 = vpack.c.bf16 %v8442_v17, %v8441_v9 }
0x13c2   : > { %v16033_v4 = vpack.c.bf16 %v8452_v44, %v8451_v11  ;;  %12227 = vmatpush3.bf16.msra.mxu0 %v12558_v27  ;;  %v8456_v22 = vld [vmem:[#allocation2 + $0x140] sm:$0xff]  ;;  %v8514_v11 = vpop.permute.xlu0 %8513 }
0x13c3   : > { %v16067_v58 = vpack.c.bf16 %v8456_v22, %v8455_v59  ;;  %v8468_v5 = vld [vmem:[#allocation2 + $0x141] sm:$0xff] }
0x13c4   : > { %v8479_v23 = vld [vmem:[#allocation2 + $0x13a] sm:$0xff]  ;;  %v8480_v28 = vld [vmem:[#allocation2 + $0x142] sm:$0xff] }
0x13c5   : > { %8539 = vrot.lane.b32.xlu1 %v8446_v21, %s17154_s17  ;;  %8503 = vrot.lane.b32.xlu0 %v15857_v18, %s17146_s14  ;;  %v8435_v18 = vpack.c.bf16 %v8430_v13, %v8429_v61  ;;  %v8538_v13 = vpop.permute.xlu1 %8537  ;;  %v8614_v61 = vsel %vm780_vm3, %v8514_v11, %v8526_v52 }
0x13c6   : > { %v8622_v63 = vsel %vm17219_vm11, %v8614_v61, %v8538_v13  ;;  %vm17224_vm11 = vmmov %vm17221_vm8 }
0x13c9   : > { %8551 = vrot.lane.b32.xlu1 %v16033_v4, %s17143_s16  ;;  %8517 = vrot.lane.b32.xlu0 %v16033_v4, %s17153_s1 }
0x13cd   : > { %8529 = vrot.lane.b32.xlu1 %v8435_v18, %s17147_s19  ;;  %8493 = vrot.lane.b32.xlu0 %v16006_v48, %s17155_s29 }
0x13d1   : > { %8541 = vrot.lane.b32.xlu1 %v8447_v42, %s17154_s17  ;;  %8489 = vrot.lane.b32.xlu0 %v8397_v37, %s17155_s29 }
0x13d5   : > { %8553 = vrot.lane.b32.xlu1 %v8459_v25, %s17143_s16  ;;  %8501 = vrot.lane.b32.xlu0 %v8409_v60, %s17146_s14  ;;  %v8377_v60 = vld [vmem:[#allocation2 + $0xc0] sm:$0xff] }
0x13d6   : > { %v8385_v27 = vpack.c.bf16 %v8378_v16, %v8377_v60 }
0x13d9   : > { %8519 = vrot.lane.b32.xlu1 %v8459_v25, %s17153_s1  ;;  %8505 = vrot.lane.b32.xlu0 %v8446_v21, %s17146_s14 }
0x13dd   : > { %8563 = vrot.lane.b32.xlu1 %v8435_v18, %s17152_s20  ;;  %8561 = vrot.lane.b32.xlu0 %v16006_v48, %s17152_s20  ;;  %v8467_v48 = vld [vmem:[#allocation2 + $0x139] sm:$0xff] }
0x13de   : > { %v16072_v44 = vpack.c.bf16 %v8468_v5, %v8467_v48 }
0x13e1   : > { %8531 = vrot.lane.b32.xlu0 %v8436_v57, %s17147_s19  ;;  %8495 = vrot.lane.b32.xlu1 %v8435_v18, %s17155_s29 }
0x13e5   : > { %8573 = vrot.lane.b32.xlu0 %v8446_v21, %s17145_s26  ;;  %8575 = vrot.lane.b32.xlu1 %v8447_v42, %s17145_s26  ;;  %v16077_v21 = vpack.c.bf16 %v8480_v28, %v8479_v23 }
0x13e9   : > { %8543 = vrot.lane.b32.xlu0 %v8448_v51, %s17154_s17  ;;  %8555 = vrot.lane.b32.xlu1 %v16067_v58, %s17143_s16 }
0x13ed   : > { %8507 = vrot.lane.b32.xlu0 %v8447_v42, %s17146_s14  ;;  %8567 = vrot.lane.b32.xlu1 %v16072_v44, %s17152_s20 }
0x13f1   : > { %8565 = vrot.lane.b32.xlu0 %v8436_v57, %s17152_s20  ;;  %8579 = vrot.lane.b32.xlu1 %v16077_v21, %s17145_s26 }
0x13f5   : > { %8577 = vrot.lane.b32.xlu0 %v8448_v51, %s17145_s26 }
0x142f   : > { %v8516_v18 = vpop.permute.xlu0 %8515  ;;  %v8550_v46 = vpop.permute.xlu1 %8549 }
0x1430   : > { %v8630_v9 = vsel %vm824_vm7, %v8622_v63, %v8550_v46 }
0x1431   : > { %8887 = vmatprep.mubr.bf16.mxu1 %v8630_v9 }
0x1433   : > { %v8492_v17 = vpop.permute.xlu0 %8491  ;;  %v8528_v14 = vpop.permute.xlu1 %8527 }
0x1434   : > { %v8616_v38 = vsel %vm780_vm3, %v8516_v18, %v8528_v14  ;;  %v8586_v23 = vsel %vm2758_vm14, %v15847_v30, %v8492_v17 }
0x1437   : > { %v8504_v19 = vpop.permute.xlu0 %8503  ;;  %v8540_v42 = vpop.permute.xlu1 %8539 }
0x1438   : > { %v8624_v22 = vsel %vm17221_vm8, %v8616_v38, %v8540_v42  ;;  %v8596_v28 = vsel %vm17223_vm10, %v8586_v23, %v8504_v19  ;;  %vm17226_vm8 = vmmov %vm17223_vm10 }
0x143b   : > { %v8518_v37 = vpop.permute.xlu0 %8517  ;;  %v8552_v54 = vpop.permute.xlu1 %8551 }
0x143c   : > { %v8633_v51 = vsel %vm824_vm7, %v8624_v22, %v8552_v54 }
0x143f   : > { %v8494_v15 = vpop.permute.xlu0 %8493  ;;  %v8530_v53 = vpop.permute.xlu1 %8529 }
0x1440   : > { %v8618_v61 = vsel %vm780_vm3, %v8518_v37, %v8530_v53  ;;  %v8589_v16 = vsel %vm2758_vm14, %v15989_v32, %v8494_v15 }
0x1443   : > { %v8490_v3 = vpop.permute.xlu0 %8489  ;;  %v8542_v25 = vpop.permute.xlu1 %8541 }
0x1444   : > { %v8583_v49 = vsel %vm2758_vm14, %v8385_v27, %v8490_v3  ;;  %v8626_v63 = vsel %vm17224_vm11, %v8618_v61, %v8542_v25  ;;  %v11646_v61 = vld [vmem:[%s17078_s10] ss:$0 sm:$0xff] }
0x1447   : > { %v8502_v41 = vpop.permute.xlu0 %8501  ;;  %v8554_v57 = vpop.permute.xlu1 %8553 }
0x1448   : > { %v8594_v34 = vsel %vm17220_vm1, %v8583_v49, %v8502_v41  ;;  %vm17225_vm1 = vmmov %vm17222_vm9 }
0x1449   : > { %v8602_v59 = vsel %vm17222_vm9, %v8594_v34, %v8514_v11  ;;  %v8605_v9 = vsel %vm17225_vm1, %v8596_v28, %v8516_v18  ;;  %v8636_v11 = vsel %vm824_vm7, %v8626_v63, %v8554_v57  ;;  %vm17227_vm9 = vcmask 195584   ;;  %vm17229_vm11 = vmmov %vm17225_vm1 }
0x144a   : > { %8888 = vmatmul.mubr.bf16.vlgmr.msra.gmra.mxu1 %v8602_v59  ;;  %vm17228_vm10 = vmmov %vm17227_vm9  ;;  %vm17230_vm1 = vcmask 588800  }
0x144b   : > { %v8506_v5 = vpop.permute.xlu0 %8505  ;;  %8895 = vmatprep.mubr.bf16.mxu1 %v8633_v51  ;;  %v8520_v48 = vpop.permute.xlu1 %8519 }
0x144c   : > { %v8598_v30 = vsel %vm17226_vm8, %v8589_v16, %v8506_v5 }
0x144d   : > { %v8608_v60 = vsel %vm17229_vm11, %v8598_v30, %v8518_v37 }
0x144f   : > { %v8562_v52 = vpop.permute.xlu0 %8561  ;;  %v8564_v13 = vpop.permute.xlu1 %8563 }
0x1450   : > { %v8642_v17 = vsel %vm17227_vm9, %v8550_v46, %v8562_v52  ;;  %v8644_v19 = vsel %vm17228_vm10, %v8552_v54, %v8564_v13  ;;  %vm17231_vm9 = vmmov %vm17229_vm11 }
0x1451   : > { %vm17232_vm11 = vmmov %vm17228_vm10 }
0x1452   : > { %8896 = vmatmul.mubr.bf16.gmra.mxu1 %v8605_v9 }
0x1453   : > { %v8532_v14 = vpop.permute.xlu0 %8531  ;;  %8903 = vmatprep.mubr.bf16.mxu1 %v8636_v11  ;;  %v8496_v42 = vpop.permute.xlu1 %8495 }
0x1454   : > { %v8620_v32 = vsel %vm780_vm3, %v8520_v48, %v8532_v14  ;;  %v8592_v49 = vsel %vm2758_vm14, %v16033_v4, %v8496_v42  ;;  %v16122_v4 = vpop.f32.mrf.mxu1 }
0x1457   : > { %v8574_v53 = vpop.permute.xlu0 %8573  ;;  %v8576_v3 = vpop.permute.xlu1 %8575 }
0x1458   : > { %v8650_v25 = vsel %vm797_vm4, %v8642_v17, %v8574_v53  ;;  %v8652_v18 = vsel %vm797_vm4, %v8644_v19, %v8576_v3 }
0x1459   : > { %12228 = vmatprep.mubr.msk.bf16.mxu0 %vm7498_vm5, %v8650_v25 }
0x145a   : > { %8904 = vmatmul.mubr.bf16.gmra.mxu1 %v8608_v60  ;;  %12229 = vmatmul.mubr.msk.bf16.vlgmr.msra.gmra.mxu0 %vm7498_vm5, %v8652_v18 }
0x145b   : > { %v8544_v15 = vpop.permute.xlu0 %8543  ;;  %v8556_v27 = vpop.permute.xlu1 %8555 }
0x145c   : > { %v8628_v46 = vsel %vm17230_vm1, %v8620_v32, %v8544_v15 }
0x145d   : > { %v8639_v54 = vsel %vm824_vm7, %v8628_v46, %v8556_v27 }
0x145e   : > { %8911 = vmatprep.mubr.bf16.mxu1 %v8639_v54 }
0x145f   : > { %v8508_v41 = vpop.permute.xlu0 %8507  ;;  %v8568_v34 = vpop.permute.xlu1 %8567 }
0x1460   : > { %v8600_v38 = vsel %vm17226_vm8, %v8592_v49, %v8508_v41  ;;  %v8648_v23 = vsel %vm17232_vm11, %v8556_v27, %v8568_v34 }
0x1461   : > { %v8611_v37 = vsel %vm17231_vm9, %v8600_v38, %v8520_v48 }
0x1462   : > { %8912 = vmatmul.mubr.bf16.gmra.mxu1 %v8611_v37 }
0x1463   : > { %v8566_v22 = vpop.permute.xlu0 %8565  ;;  %v8580_v59 = vpop.permute.xlu1 %8579 }
0x1464   : > { %v8646_v51 = vsel %vm17228_vm10, %v8554_v57, %v8566_v22  ;;  %v8656_v52 = vsel %vm797_vm4, %v8648_v23, %v8580_v59 }
0x1467   : > { %v8578_v5 = vpop.permute.xlu0 %8577 }
0x1468   : > { %v8654_v28 = vsel %vm797_vm4, %v8646_v51, %v8578_v5 }
0x1469   : > { %12232 = vmatprep.mubr.msk.bf16.mxu0 %vm7498_vm5, %v8654_v28 }
0x146a   : > { %12233 = vmatmul.mubr.msk.bf16.gmra.mxu0 %vm7498_vm5, %v8656_v52 }
0x150a   : > { %v12036_v13 = vpop.f32.mrf.mxu1 }
0x150c   : > { %v12037_v48 = vpop.f32.mrf.mxu1 }
0x150d   : > { %v12038_v57 = vadd.f32 %v12037_v48, %v12036_v13 }
0x150e   : > { %v12039_v63 = vpop.f32.mrf.mxu1 }
0x150f   : > { %v8890_v9 = vadd.f32 %v12038_v57, %v11646_v61 }
0x1510   : > { %v12040_v11 = vpop.f32.mrf.mxu1 }
0x1511   : > { %v12041_v14 = vadd.f32 %v12040_v11, %v12039_v63  ;;  %v6945_v11 = vadd.f32 %v15635_v36, %v15661_v50 }
0x1512   : > { %v12042_v42 = vpop.f32.mrf.mxu1 }
0x1513   : > { %v8893_v16 = vadd.f32 %v12041_v14, %v11646_v61  ;;  %vm6969_vm8 = vcmp.ge.f32.partialorder %v6945_v11, 0.0 }
0x1514   : > { %v12043_v30 = vpop.f32.mrf.mxu1 }
0x1515   : > { %v12044_v17 = vadd.f32 %v12043_v30, %v12042_v42 }
0x1516   : > { %v12045_v19 = vpop.f32.mrf.mxu1 }
0x1517   : > { %v8898_v53 = vadd.f32 %v12044_v17, %v11646_v61 }
0x1518   : > { %v12046_v3 = vpop.f32.mrf.mxu1 }
0x1519   : > { %v12047_v25 = vadd.f32 %v12046_v3, %v12045_v19 }
0x151a   : > { %v12048_v18 = vpop.f32.mrf.mxu1  ;;  %v12230_v60 = vpop.f32.mrf.mxu0 }
0x151b   : > { %v16127_v32 = vadd.f32 %v12230_v60, %v8898_v53  ;;  %v8901_v15 = vadd.f32 %v12047_v25, %v11646_v61  ;;  %v6948_v53 = vadd.f32 %v15639_v39, %v15664_v55  ;;  %v6977_v25 = vmul.f32 0.2, %v6945_v11 }
0x151c   : > { %v12049_v27 = vpop.f32.mrf.mxu1  ;;  %v8954_v46 = vpop.f32.mrf.mxu0  ;;  %v6961_v39 = vadd.f32 %v15643_v47, %v15675_v43 }
0x151d   : > { %v12050_v54 = vadd.f32 %v12049_v27, %v12048_v18  ;;  %v16129_v49 = vadd.f32 %v8954_v46, %v8890_v9  ;;  %v6953_v18 = vadd.f32 %v15645_v35, %v15667_v26  ;;  %v6985_v50 = vsel %vm6969_vm8, %v6945_v11, %v6977_v25  ;;  %v12569_v11 = vld [vmem:[%s17073_s5 + $0x88] sm:$0xff]  }
0x151e   : > { %v12051_v41 = vpop.f32.mrf.mxu1  ;;  %v12231_v38 = vpop.f32.mrf.mxu0  ;;  %vm6970_vm10 = vcmp.ge.f32.partialorder %v6948_v53, 0.0  ;;  %v6978_v27 = vmul.f32 0.2, %v6948_v53  ;;  %v6964_v26 = vadd.f32 %v15647_v45, %v15684_v10  ;;  %vm6973_vm8 = vcmp.ge.f32.partialorder %v6961_v39, 0.0  ;;  %v12559_v45 = vld [vmem:[%s17073_s5 + $0xb0] ss:$0 sps:$4 sm:$0xff]  }
0x151f   : > { %v16131_v34 = vadd.f32 %v12231_v38, %v8901_v15  ;;  %v8906_v37 = vadd.f32 %v12050_v54, %v11646_v61  ;;  %v6979_v46 = vmul.f32 0.2, %v6953_v18  ;;  %vm6971_vm11 = vcmp.ge.f32.partialorder %v6953_v18, 0.0  ;;  %v12560_v10 = vld [vmem:[%s17073_s5 + $0xa8] sm:$0xff]   ;;  %12261 = vmatprep.subr.msk.bf16.mxu0 %vm2899_vm13, %v12559_v45 }
0x1520   : > { %v12052_v22 = vpop.f32.mrf.mxu1  ;;  %v8957_v59 = vpop.f32.mrf.mxu0  ;;  %v6986_v35 = vsel %vm6970_vm10, %v6948_v53, %v6978_v27  ;;  %v6981_v38 = vmul.f32 0.2, %v6961_v39  ;;  %v12573_v53 = vld [vmem:[%s17073_s5 + $0x20] sm:$0xff]   ;;  %vm8314_vm10 = vcmp.ge.f32.partialorder %v15915_v8, 0.0 }
0x1521   : > { %v12053_v51 = vadd.f32 %v12052_v22, %v12051_v41  ;;  %v16133_v5 = vadd.f32 %v8957_v59, %v8893_v16  ;;  %v6987_v54 = vsel %vm6971_vm11, %v6953_v18, %v6979_v46  ;;  %v9525_v22 = vsel %vm2899_vm13, %v12559_v45, 0  ;;  %v12565_v59 = vld [vmem:[%s17073_s5 + $0x70] sm:$0xff]  }
0x1522   : > { %v12054_v23 = vpop.f32.mrf.mxu1  ;;  %12237 = vmatpush3.bf16.msra.mxu0 %v9525_v22  ;;  %v12576_v46 = vld [vmem:[%s17073_s5 + $0x50] sm:$0xff]   ;;  %vm7643_vm11 = vcmp.ge.f32.partialorder %v15692_v24, 0.0 }
0x1523   : > { %v16135_v28 = vadd.f32 %v12053_v51, %v11646_v61  ;;  %12238 = vmatprep.subr.bf16.mxu0 %v12560_v10  ;;  %v12561_v51 = vld [vmem:[%s17073_s5 + $0xa0] sm:$0xff]  }
0x1524   : > { %v12055_v52 = vpop.f32.mrf.mxu1 }
0x1525   : > { %v12056_v13 = vadd.f32 %v12055_v52, %v12054_v23  ;;  %v12567_v23 = vld [vmem:[%s17073_s5 + $0x30] sm:$0xff]   ;;  %v12563_v52 = vld [vmem:[%s17073_s5 + $0x98] sm:$0xff]  }
0x1526   : > { %v12057_v48 = vpop.f32.mrf.mxu1  ;;  %12239 = vmatpush3.bf16.msra.mxu0 %v12560_v10 }
0x1527   : > { %v8914_v9 = vadd.f32 %v12056_v13, %v11646_v61  ;;  %12240 = vmatprep.subr.bf16.mxu0 %v12561_v51  ;;  %v12566_v13 = vld [vmem:[%s17073_s5 + $0x90] sm:$0xff]  }
0x1528   : > { %v12058_v57 = vpop.f32.mrf.mxu1 }
0x1529   : > { %v12059_v63 = vadd.f32 %v12058_v57, %v12057_v48 }
0x152a   : > { %v12234_v14 = vpop.f32.mrf.mxu0  ;;  %12241 = vmatpush3.bf16.msra.mxu0 %v12561_v51  ;;  %v12580_v51 = vld [vmem:[%s17073_s5 + $0x40] sm:$0xff]  }
0x152b   : > { %v8979_v42 = vadd.f32 %v12234_v14, %v8914_v9  ;;  %v8917_v16 = vadd.f32 %v12059_v63, %v11646_v61  ;;  %v6956_v61 = vadd.f32 %v15649_v31, %v15672_v56  ;;  %v6989_v31 = vsel %vm6973_vm8, %v6961_v39, %v6981_v38  ;;  %12242 = vmatprep.subr.bf16.mxu0 %v12563_v52  ;;  %v12568_v9 = vld [vmem:[%s17073_s5 + $0x68] sm:$0xff]   ;;  %v12577_v38 = vld [vmem:[%s17073_s5 + $0x10] sm:$0xff]  }
0x152c   : > { %v8970_v30 = vpop.f32.mrf.mxu0  ;;  %v6982_v56 = vmul.f32 0.2, %v6964_v26  ;;  %v12570_v14 = vld [vmem:[%s17073_s5 + $0x28] sm:$0xff]   ;;  %vm7642_vm8 = vcmp.ge.f32.partialorder %v15686_v6, 0.0 }
0x152d   : > { %vm8991_vm1 = vcmp.ge.f32.partialorder %v8979_v42, 0.0  ;;  %v8999_v17 = vmul.f32 0.2, %v8979_v42  ;;  %v16139_v19 = vadd.f32 %v8970_v30, %v8906_v37  ;;  %v6980_v41 = vmul.f32 0.2, %v6956_v61  ;;  %v12562_v37 = vld [vmem:[%s17073_s5 + $0x78] sm:$0xff]  }
0x152e   : > { %v12235_v3 = vpop.f32.mrf.mxu0  ;;  %12071 = vmatprep.subr.bf16.mxu1 %v12562_v37  ;;  %12243 = vmatpush3.bf16.msra.mxu0 %v12563_v52  ;;  %v12578_v37 = vld [vmem:[%s17073_s5 + $0x48] sm:$0xff]  }
0x152f   : > { %v8982_v60 = vadd.f32 %v12235_v3, %v8917_v16  ;;  %v9007_v15 = vsel %vm8991_vm1, %v8979_v42, %v8999_v17  ;;  %vm6972_vm1 = vcmp.ge.f32.partialorder %v6956_v61, 0.0  ;;  %12244 = vmatprep.subr.bf16.mxu0 %v12566_v13  ;;  %v12571_v17 = vld [vmem:[%s17073_s5 + $0x60] sm:$0xff]  }
0x1530   : > { %9029 = vrot.lane.b32.xlu0 %v9007_v15, %s17155_s29  ;;  %v6988_v47 = vsel %vm6972_vm1, %v6956_v61, %v6980_v41  ;;  %v12572_v16 = vld [vmem:[%s17073_s5 + $0x80] sm:$0xff]   ;;  %vm8313_vm1 = vcmp.ge.f32.partialorder %v15907_v2, 0.0 }
0x1531   : > { %vm8992_vm9 = vcmp.ge.f32.partialorder %v8982_v60, 0.0  ;;  %v9000_v36 = vmul.f32 0.2, %v8982_v60 }
0x1532   : > { %12245 = vmatpush3.bf16.msra.mxu0 %v12566_v13 }
0x1533   : > { %v9008_v55 = vsel %vm8992_vm9, %v8982_v60, %v9000_v36  ;;  %vm6974_vm9 = vcmp.ge.f32.partialorder %v6964_v26, 0.0  ;;  %12246 = vmatprep.subr.bf16.mxu0 %v12569_v11  ;;  %v12574_v60 = vld [vmem:[%s17073_s5 + $0x58] sm:$0xff]  }
0x1534   : > { %9031 = vrot.lane.b32.xlu1 %v9008_v55, %s17155_s29  ;;  %7003 = vrot.lane.b32.xlu0 %v6985_v50, %s17147_s19  ;;  %v6990_v43 = vsel %vm6974_vm9, %v6964_v26, %v6982_v56  ;;  %v12575_v55 = vld [vmem:[%s17073_s5 + $0x18] sm:$0xff]   ;;  %vm7641_vm9 = vcmp.ge.f32.partialorder %v15699_v62, 0.0 }
0x1536   : > { %12247 = vmatpush3.bf16.msra.mxu0 %v12569_v11 }
0x1537   : > { %12248 = vmatprep.subr.bf16.mxu0 %v12572_v16 }
0x1538   : > { %7005 = vrot.lane.b32.xlu1 %v6986_v35, %s17147_s19  ;;  %7007 = vrot.lane.b32.xlu0 %v6987_v54, %s17147_s19 }
0x153a   : > { %12249 = vmatpush3.bf16.msra.mxu0 %v12572_v16 }
0x153c   : > { %7009 = vrot.lane.b32.xlu1 %v6988_v47, %s17147_s19  ;;  %7011 = vrot.lane.b32.xlu0 %v6989_v31, %s17147_s19 }
0x1540   : > { %7013 = vrot.lane.b32.xlu1 %v6990_v43, %s17147_s19  ;;  %9185 = vrot.lane.b32.xlu0 %v16067_v58, %s17153_s1  ;;  %v12564_v58 = vld [vmem:[%s17073_s5 + $0x38] sm:$0xff]  }
0x1541   : > { %12072 = vmatpush3.bf16.msra.mxu1 %v12564_v58  ;;  %v12579_v58 = vld [vmem:[%s17073_s5 + $0x8] sm:$0xff]  }
0x1542   : > { %12073 = vmatprep.subr.bf16.mxu1 %v12565_v59 }
0x1544   : > { %9197 = vrot.lane.b32.xlu1 %v16072_v44, %s17147_s19 }
0x1545   : > { %12074 = vmatpush3.bf16.msra.mxu1 %v12567_v23  ;;  %v12581_v23 = vld [vmem:[%s17073_s5] sm:$0xff]  }
0x1546   : > { %12075 = vmatprep.subr.bf16.mxu1 %v12568_v9 }
0x1548   : > { %9209 = vrot.lane.b32.xlu1 %v16077_v21, %s17154_s17 }
0x1549   : > { %12076 = vmatpush3.bf16.msra.mxu1 %v12570_v14 }
0x154a   : > { %12077 = vmatprep.subr.bf16.mxu1 %v12571_v17 }
0x154d   : > { %12078 = vmatpush3.bf16.msra.mxu1 %v12573_v53  ;;  %v9127_v53 = vld [vmem:[#allocation2 + $0x198] sm:$0xff] }
0x154e   : > { %12079 = vmatprep.subr.bf16.mxu1 %v12574_v60  ;;  %v9139_v60 = vld [vmem:[#allocation2 + $0x199] sm:$0xff] }
0x1551   : > { %12080 = vmatpush3.bf16.msra.mxu1 %v12575_v55  ;;  %v9152_v55 = vld [vmem:[#allocation2 + $0x1a2] sm:$0xff] }
0x1552   : > { %12081 = vmatprep.subr.bf16.mxu1 %v12576_v46 }
0x1555   : > { %12082 = vmatpush3.bf16.msra.mxu1 %v12577_v38  ;;  %v8321_v38 = vmul.f32 0.2, %v15907_v2 }
0x1556   : > { %12083 = vmatprep.subr.bf16.mxu1 %v12578_v37 }
0x1559   : > { %12084 = vmatpush3.bf16.msra.mxu1 %v12579_v58 }
0x155a   : > { %12085 = vmatprep.subr.bf16.mxu1 %v12580_v51 }
0x155d   : > { %12086 = vmatpush3.bf16.msra.mxu1 %v12581_v23  ;;  %v8993_v23 = vmul.f32 0.2, %v16129_v49 }
0x15a2   : > { %v9030_v48 = vpop.permute.xlu0 %9029 }
0x15a3   : > { %9047 = vst.msk [vmem:[#allocation2 + $0x121] sm:$0xff] %vm7696_vm12, %v9030_v48 }
0x15a6   : > { %v9032_v57 = vpop.permute.xlu1 %9031  ;;  %v7004_v63 = vpop.permute.xlu0 %7003 }
0x15a7   : > { %9048 = vst.msk [vmem:[#allocation2 + $0x129] sm:$0xff] %vm7696_vm12, %v9032_v57 }
0x15a8   : > { %7025 = vst.msk [vmem:[#allocation2 + $0x151] sm:$0xff] %vm5219_vm15, %v7004_v63 }
0x15aa   : > { %v7006_v42 = vpop.permute.xlu1 %7005  ;;  %v7008_v30 = vpop.permute.xlu0 %7007  ;;  %v9061_v13 = vld [vmem:[#allocation2 + $0x121] sm:$0xff] }
0x15ab   : > { %7026 = vst.msk [vmem:[#allocation2 + $0x159] sm:$0xff] %vm5219_vm15, %v7006_v42  ;;  %7027 = vst.msk [vmem:[#allocation2 + $0x169] sm:$0xff] %vm5219_vm15, %v7008_v30 }
0x15ae   : > { %v7010_v3 = vpop.permute.xlu1 %7009  ;;  %v7012_v25 = vpop.permute.xlu0 %7011  ;;  %v9062_v52 = vld [vmem:[#allocation2 + $0x129] sm:$0xff] }
0x15af   : > { %7028 = vst.msk [vmem:[#allocation2 + $0x171] sm:$0xff] %vm5219_vm15, %v7010_v3  ;;  %7029 = vst.msk [vmem:[#allocation2 + $0x181] sm:$0xff] %vm5219_vm15, %v7012_v25  ;;  %v9133_v18 = vld [vmem:[#allocation2 + $0x151] sm:$0xff]  ;;  %v9069_v48 = vpack.c.bf16 %v9062_v52, %v9061_v13  ;;  %v9073_v57 = vld [vmem:[#allocation2 + $0x122] sm:$0xff] }
0x15b0   : > { %v9121_v50 = vld [vmem:[#allocation2 + $0x150] sm:$0xff]  ;;  %v9128_v3 = vld [vmem:[#allocation2 + $0x1a0] sm:$0xff] }
0x15b1   : > { %v9074_v63 = vld [vmem:[#allocation2 + $0x12a] sm:$0xff] }
0x15b2   : > { %v7014_v15 = vpop.permute.xlu1 %7013  ;;  %v9134_v36 = vld [vmem:[#allocation2 + $0x159] sm:$0xff]  ;;  %v9135_v35 = vld [vmem:[#allocation2 + $0x169] sm:$0xff]  ;;  %v9081_v9 = vpack.c.bf16 %v9074_v63, %v9073_v57 }
0x15b3   : > { %v9122_v27 = vld [vmem:[#allocation2 + $0x158] sm:$0xff]  ;;  %7030 = vst.msk [vmem:[#allocation2 + $0x189] sm:$0xff] %vm5219_vm15, %v7014_v15  ;;  %v9141_v61 = vpack.c.bf16 %v9134_v36, %v9133_v18  ;;  %v9123_v26 = vld [vmem:[#allocation2 + $0x168] sm:$0xff]  ;;  %v9132_v18 = vpack.c.bf16 %v9128_v3, %v9127_v53  ;;  %vm7644_vm15 = vcmp.ge.f32.partialorder %v15707_v0, 0.0 }
0x15b4   : > { %v16223_v39 = vpack.c.bf16 %v9122_v27, %v9121_v50  ;;  %v9145_v56 = vld [vmem:[#allocation2 + $0x152] sm:$0xff]  ;;  %v9146_v43 = vld [vmem:[#allocation2 + $0x15a] sm:$0xff] }
0x15b5   : > { %9233 = vrot.lane.b32.xlu0 %v9141_v61, %s17152_s20  ;;  %v9153_v59 = vpack.c.bf16 %v9146_v43, %v9145_v56  ;;  %v9140_v15 = vld [vmem:[#allocation2 + $0x1a1] sm:$0xff]  ;;  %v12591_v50 = vld [vmem:[%s17078_s10] ss:$0 sm:$0xff] }
0x15b6   : > { %9221 = vrot.lane.b32.xlu1 %v16223_v39, %s17143_s16  ;;  %v9136_v54 = vld [vmem:[#allocation2 + $0x171] sm:$0xff]  ;;  %v9103_v30 = vld [vmem:[#allocation2 + $0x181] sm:$0xff]  ;;  %v9144_v36 = vpack.c.bf16 %v9140_v15, %v9139_v60  ;;  %v7564_v27 = vadd.f32 %v12591_v50, %v15669_v20  ;;  %v8237_v43 = vadd.f32 %v12591_v50, %v15913_v29  ;;  %v7648_v29 = vmul.f32 0.2, %v15689_v12 }
0x15b7   : > { %v9124_v41 = vld [vmem:[#allocation2 + $0x170] sm:$0xff]  ;;  %v9142_v47 = vpack.c.bf16 %v9136_v54, %v9135_v35  ;;  %v7652_v54 = vmul.f32 0.2, %v15707_v0 }
0x15b8   : > { %v16237_v31 = vpack.c.bf16 %v9124_v41, %v9123_v26  ;;  %v9147_v45 = vld [vmem:[#allocation2 + $0x16a] sm:$0xff]  ;;  %v9148_v10 = vld [vmem:[#allocation2 + $0x172] sm:$0xff]  ;;  %v7629_v46 = vadd.f32 %v15901_v1, %v7564_v27  ;;  %v8322_v41 = vmul.f32 0.2, %v15915_v8  ;;  %v7651_v1 = vmul.f32 0.2, %v15692_v24 }
0x15b9   : > { %9235 = vrot.lane.b32.xlu0 %v9142_v47, %s17152_s20  ;;  %v9154_v22 = vpack.c.bf16 %v9148_v10, %v9147_v45  ;;  %v7660_v56 = vsel %vm7644_vm15, %v15707_v0, %v7652_v54  ;;  %v7650_v45 = vmul.f32 0.2, %v15686_v6  ;;  %v7649_v10 = vmul.f32 0.2, %v15699_v62 }
0x15ba   : > { %9223 = vrot.lane.b32.xlu1 %v16237_v31, %s17143_s16  ;;  %v9126_v11 = vld [vmem:[#allocation2 + $0x188] sm:$0xff]  ;;  %v7653_v26 = vmul.f32 0.2, %v7629_v46  ;;  %vm7645_vm13 = vcmp.ge.f32.partialorder %v7629_v46, 0.0  ;;  %v8302_v37 = vadd.f32 %v16122_v4, %v8237_v43  ;;  %v8329_v0 = vsel %vm8313_vm1, %v15907_v2, %v8321_v38 }
0x15bb   : > { %v9104_v42 = vld [vmem:[#allocation2 + $0x189] sm:$0xff]  ;;  %v8994_v2 = vmul.f32 0.2, %v16133_v5  ;;  %vm8316_vm1 = vcmp.ge.f32.partialorder %v15910_v33, 0.0 }
0x15bc   : > { %v9115_v17 = vld [vmem:[#allocation2 + $0x182] sm:$0xff]  ;;  %v9116_v16 = vld [vmem:[#allocation2 + $0x18a] sm:$0xff]  ;;  %v7661_v20 = vsel %vm7645_vm13, %v7629_v46, %v7653_v26  ;;  %v8326_v58 = vmul.f32 0.2, %v8302_v37  ;;  %vm7640_vm13 = vcmp.ge.f32.partialorder %v15689_v12, 0.0  ;;  %vm8318_vm15 = vcmp.ge.f32.partialorder %v8302_v37, 0.0 }
0x15bd   : > { %9247 = vrot.lane.b32.xlu0 %v9154_v22, %s17145_s26  ;;  %v9120_v25 = vpack.c.bf16 %v9116_v16, %v9115_v17  ;;  %v7656_v51 = vsel %vm7640_vm13, %v15689_v12, %v7648_v29  ;;  %v8323_v12 = vmul.f32 0.2, %v15904_v40 }
0x15be   : > { %9245 = vrot.lane.b32.xlu1 %v9153_v59, %s17145_s26  ;;  %v8334_v4 = vsel %vm8318_vm15, %v8302_v37, %v8326_v58  ;;  %vm8989_vm15 = vcmp.ge.f32.partialorder %v16139_v19, 0.0 }
0x15c1   : > { %9199 = vrot.lane.b32.xlu0 %v9141_v61, %s17147_s19 }
0x15c2   : > { %9187 = vrot.lane.b32.xlu1 %v16223_v39, %s17153_s1 }
0x15c5   : > { %9211 = vrot.lane.b32.xlu0 %v9153_v59, %s17154_s17 }
0x15c6   : > { %9163 = vrot.lane.b32.xlu1 %v16072_v44, %s17155_s29  ;;  %v9125_v44 = vld [vmem:[#allocation2 + $0x180] sm:$0xff] }
0x15c7   : > { %v9131_v14 = vpack.c.bf16 %v9126_v11, %v9125_v44  ;;  %v9770_v11 = vld [vmem:[#allocation2 + $0x68] sm:$0xff] }
0x15c9   : > { %9161 = vrot.lane.b32.xlu0 %v9069_v48, %s17155_s29 }
0x15ca   : > { %9175 = vrot.lane.b32.xlu1 %v16077_v21, %s17146_s14  ;;  %v9108_v21 = vpack.c.bf16 %v9104_v42, %v9103_v30  ;;  %v9186_v42 = vpop.permute.xlu0 %9185 }
0x15cd   : > { %9173 = vrot.lane.b32.xlu0 %v9081_v9, %s17146_s14 }
0x15ce   : > { %9201 = vrot.lane.b32.xlu1 %v9142_v47, %s17147_s19 }
0x15d1   : > { %9189 = vrot.lane.b32.xlu0 %v16237_v31, %s17153_s1 }
0x15d2   : > { %9213 = vrot.lane.b32.xlu1 %v9154_v22, %s17154_s17 }
0x15d5   : > { %9165 = vrot.lane.b32.xlu0 %v9141_v61, %s17155_s29  ;;  %v9151_v61 = vld [vmem:[#allocation2 + $0x19a] sm:$0xff] }
0x15d6   : > { %9225 = vrot.lane.b32.xlu1 %v9131_v14, %s17143_s16  ;;  %v9156_v35 = vpack.c.bf16 %v9152_v55, %v9151_v61 }
0x15d9   : > { %9177 = vrot.lane.b32.xlu0 %v9153_v59, %s17146_s14  ;;  %v7658_v59 = vsel %vm7642_vm8, %v15686_v6, %v7650_v45  ;;  %v8324_v6 = vmul.f32 0.2, %v15910_v33  ;;  %vm8985_vm8 = vcmp.ge.f32.partialorder %v16129_v49, 0.0  ;;  %v9052_v45 = vld [vmem:[#allocation2 + $0x140] sm:$0xff] }
0x15da   : > { %9203 = vrot.lane.b32.xlu1 %v9108_v21, %s17147_s19  ;;  %v9001_v9 = vsel %vm8985_vm8, %v16129_v49, %v8993_v23 }
0x15db   : > { %v8332_v63 = vsel %vm8316_vm1, %v15910_v33, %v8324_v6  ;;  %v9769_v33 = vld [vmem:[#allocation2 + $0x60] sm:$0xff] }
0x15dc   : > { %v16344_v49 = vpack.c.bf16 %v9770_v11, %v9769_v33 }
0x15dd   : > { %9191 = vrot.lane.b32.xlu0 %v9131_v14, %s17153_s1  ;;  %v9198_v14 = vpop.permute.xlu1 %9197 }
0x15de   : > { %9215 = vrot.lane.b32.xlu1 %v9120_v25, %s17154_s17  ;;  %v9286_v30 = vsel %vm780_vm3, %v9186_v42, %v9198_v14  ;;  %s17264_s17 = sld [smem:[#allocation24_spill]] }
0x15e1   : > { %9167 = vrot.lane.b32.xlu0 %v9142_v47, %s17155_s29  ;;  %v8330_v47 = vsel %vm8314_vm10, %v15915_v8, %v8322_v41  ;;  %v7659_v8 = vsel %vm7643_vm11, %v15692_v24, %v7651_v1  ;;  %v8325_v24 = vmul.f32 0.2, %v15921_v7  ;;  %vm8317_vm10 = vcmp.ge.f32.partialorder %v15921_v7, 0.0  ;;  %v9049_v41 = vld [vmem:[#allocation2 + $0x120] sm:$0xff] }
0x15e2   : > { %9227 = vrot.lane.b32.xlu1 %v9132_v18, %s17143_s16  ;;  %vm8986_vm11 = vcmp.ge.f32.partialorder %v16133_v5, 0.0 }
0x15e3   : > { %v9002_v13 = vsel %vm8986_vm11, %v16133_v5, %v8994_v2  ;;  %v8333_v48 = vsel %vm8317_vm10, %v15921_v7, %v8325_v24  ;;  %v8997_v7 = vmul.f32 0.2, %v16139_v19  ;;  %vm17233_vm10 = vcmask 588800  }
0x15e4   : > { %vm17234_vm11 = vcmask 195584   ;;  %vm17236_vm8 = vmmov %vm17233_vm10  ;;  %s17020_s13 = scalar_lea.hbm %s17264_s17, %s11733_s3 }
0x15e5   : > { %9179 = vrot.lane.b32.xlu0 %v9154_v22, %s17146_s14  ;;  %v7657_v22 = vsel %vm7641_vm9, %v15699_v62, %v7649_v10  ;;  %v8973_v62 = vpop.f32.mrf.mxu0  ;;  %vm8315_vm9 = vcmp.ge.f32.partialorder %v15904_v40, 0.0  ;;  %v9005_v44 = vsel %vm8989_vm15, %v16139_v19, %v8997_v7  ;;  %vm17235_vm1 = vmmov %vm17234_vm11 }
0x15e6   : > { %9239 = vrot.lane.b32.xlu1 %v9144_v36, %s17152_s20  ;;  %v8974_v52 = vadd.f32 %v8973_v62, %v16135_v28  ;;  %v8331_v28 = vsel %vm8315_vm9, %v15904_v40, %v8323_v12  ;;  %v9210_v40 = vpop.permute.xlu1 %9209  ;;  %vm17237_vm9 = vcmask 654336  }
0x15e7   : > { %vm17239_vm15 = vmmov %vm17237_vm9 }
0x15e8   : > { %v8998_v57 = vmul.f32 0.2, %v8974_v52  ;;  %vm8990_vm13 = vcmp.ge.f32.partialorder %v8974_v52, 0.0 }
0x15e9   : > { %9237 = vrot.lane.b32.xlu0 %v9108_v21, %s17152_s20  ;;  %v9294_v21 = vsel %vm17233_vm10, %v9286_v30, %v9210_v40 }
0x15ea   : > { %9251 = vrot.lane.b32.xlu1 %v9156_v35, %s17145_s26  ;;  %v9006_v5 = vsel %vm8990_vm13, %v8974_v52, %v8998_v57  ;;  %v9050_v35 = vld [vmem:[#allocation2 + $0x128] sm:$0xff]  ;;  %vm17238_vm13 = vcmask 982016  }
0x15eb   : > { %vm17240_vm10 = vmmov %vm17238_vm13 }
0x15ed   : > { %9249 = vrot.lane.b32.xlu0 %v9120_v25, %s17145_s26 }
0x15ee   : > { %7682 = vrot.lane.b32.xlu1 %v7661_v20, %s17155_s29  ;;  %v16359_v20 = vpack.c.bf16 %v9050_v35, %v9049_v41  ;;  %v9782_v41 = vld [vmem:[#allocation2 + $0x69] sm:$0xff] }
0x15f1   : > { %7680 = vrot.lane.b32.xlu0 %v7660_v56, %s17155_s29 }
0x15f2   : > { %8347 = vrot.lane.b32.xlu1 %v8330_v47, %s17155_s29 }
0x15f5   : > { %8345 = vrot.lane.b32.xlu0 %v8329_v0, %s17155_s29 }
0x15f6   : > { %7678 = vrot.lane.b32.xlu1 %v7659_v8, %s17155_s29  ;;  %v9051_v8 = vld [vmem:[#allocation2 + $0x138] sm:$0xff] }
0x15f7   : > { %v9058_v29 = vpack.c.bf16 %v9052_v45, %v9051_v8 }
0x15f9   : > { %7676 = vrot.lane.b32.xlu0 %v7658_v59, %s17155_s29 }
0x15fa   : > { %7674 = vrot.lane.b32.xlu1 %v7657_v22, %s17155_s29 }
0x15fd   : > { %7672 = vrot.lane.b32.xlu0 %v7656_v51, %s17155_s29 }
0x15fe   : > { %8355 = vrot.lane.b32.xlu1 %v8334_v4, %s17155_s29 }
0x1601   : > { %8353 = vrot.lane.b32.xlu0 %v8333_v48, %s17155_s29 }
0x1602   : > { %9019 = vrot.lane.b32.xlu1 %v9002_v13, %s17155_s29 }
0x1605   : > { %9017 = vrot.lane.b32.xlu0 %v9001_v9, %s17155_s29 }
0x1606   : > { %8351 = vrot.lane.b32.xlu1 %v8332_v63, %s17155_s29 }
0x1609   : > { %8349 = vrot.lane.b32.xlu0 %v8331_v28, %s17155_s29 }
0x160a   : > { %9027 = vrot.lane.b32.xlu1 %v9006_v5, %s17155_s29 }
0x160d   : > { %9025 = vrot.lane.b32.xlu0 %v9005_v44, %s17155_s29 }
0x160e   : > { %9869 = vrot.lane.b32.xlu1 %v16344_v49, %s17148_s0 }
0x1627   : > { %v9234_v16 = vpop.permute.xlu0 %9233 }
0x1628   : > { %v9222_v17 = vpop.permute.xlu1 %9221 }
0x1629   : > { %v9302_v53 = vsel %vm824_vm7, %v9294_v21, %v9222_v17  ;;  %v9314_v19 = vsel %vm17234_vm11, %v9222_v17, %v9234_v16  ;;  %vm17241_vm11 = vmmov %vm17236_vm8 }
0x162a   : > { %9559 = vmatprep.mubr.bf16.mxu1 %v9302_v53 }
0x162b   : > { %v9236_v25 = vpop.permute.xlu0 %9235 }
0x162c   : > { %v9224_v3 = vpop.permute.xlu1 %9223 }
0x162d   : > { %v9316_v18 = vsel %vm17235_vm1, %v9224_v3, %v9236_v25  ;;  %vm17242_vm1 = vmmov %vm17237_vm9 }
0x162f   : > { %v9248_v15 = vpop.permute.xlu0 %9247 }
0x1630   : > { %v9246_v60 = vpop.permute.xlu1 %9245  ;;  %v9324_v50 = vsel %vm797_vm4, %v9316_v18, %v9248_v15 }
0x1631   : > { %v9322_v36 = vsel %vm797_vm4, %v9314_v19, %v9246_v60 }
0x1632   : > { %12250 = vmatprep.mubr.msk.bf16.mxu0 %vm7498_vm5, %v9322_v36 }
0x1633   : > { %12251 = vmatmul.mubr.msk.bf16.vlgmr.msra.gmra.mxu0 %vm7498_vm5, %v9324_v50  ;;  %v9200_v61 = vpop.permute.xlu0 %9199 }
0x1634   : > { %v9188_v27 = vpop.permute.xlu1 %9187 }
0x1635   : > { %v9288_v1 = vsel %vm780_vm3, %v9188_v27, %v9200_v61 }
0x1637   : > { %v9212_v46 = vpop.permute.xlu0 %9211 }
0x1638   : > { %v9164_v55 = vpop.permute.xlu1 %9163  ;;  %v9296_v38 = vsel %vm17236_vm8, %v9288_v1, %v9212_v46  ;;  %vm17243_vm8 = vmmov %vm17240_vm10 }
0x1639   : > { %v9305_v0 = vsel %vm824_vm7, %v9296_v38, %v9224_v3  ;;  %v9258_v59 = vsel %vm2758_vm14, %v9058_v29, %v9164_v55 }
0x163b   : > { %v9162_v54 = vpop.permute.xlu0 %9161 }
0x163c   : > { %v9176_v26 = vpop.permute.xlu1 %9175  ;;  %v9255_v47 = vsel %vm2758_vm14, %v16359_v20, %v9162_v54  ;;  %v8995_v54 = vmul.f32 0.2, %v16127_v32 }
0x163d   : > { %v9268_v24 = vsel %vm17239_vm15, %v9258_v59, %v9176_v26  ;;  %vm17246_vm15 = vmmov %vm17243_vm8 }
0x163e   : > { %v9277_v62 = vsel %vm17240_vm10, %v9268_v24, %v9188_v27  ;;  %vm17247_vm10 = vcmask 195584  }
0x163f   : > { %v9174_v43 = vpop.permute.xlu0 %9173 }
0x1640   : > { %v9202_v56 = vpop.permute.xlu1 %9201  ;;  %v9266_v10 = vsel %vm17237_vm9, %v9255_v47, %v9174_v43  ;;  %vm17244_vm9 = vmmov %vm17241_vm11  ;;  %v9781_v47 = vld [vmem:[#allocation2 + $0x61] sm:$0xff] }
0x1641   : > { %v9274_v37 = vsel %vm17238_vm13, %v9266_v10, %v9186_v42  ;;  %vm17245_vm13 = vmmov %vm17242_vm1  ;;  %v16410_v45 = vpack.c.bf16 %v9782_v41, %v9781_v47 }
0x1642   : > { %9560 = vmatmul.mubr.bf16.vlgmr.msra.gmra.mxu1 %v9274_v37  ;;  %v9793_v37 = vld [vmem:[#allocation2 + $0x62] sm:$0xff] }
0x1643   : > { %9567 = vmatprep.mubr.bf16.mxu1 %v9305_v0  ;;  %v9190_v22 = vpop.permute.xlu0 %9189  ;;  %v9794_v0 = vld [vmem:[#allocation2 + $0x6a] sm:$0xff] }
0x1644   : > { %v9214_v58 = vpop.permute.xlu1 %9213  ;;  %v9290_v2 = vsel %vm780_vm3, %v9190_v22, %v9202_v56  ;;  %v16422_v24 = vpack.c.bf16 %v9794_v0, %v9793_v37  ;;  %v10179_v37 = vld [vmem:[#allocation2 + $0xc1] sm:$0xff] }
0x1645   : > { %v9298_v6 = vsel %vm17241_vm11, %v9290_v2, %v9214_v58  ;;  %vm17248_vm11 = vmmov %vm17247_vm10  ;;  %v8996_v2 = vmul.f32 0.2, %v16131_v34 }
0x1647   : > { %v9166_v51 = vpop.permute.xlu0 %9165 }
0x1648   : > { %v9226_v4 = vpop.permute.xlu1 %9225  ;;  %v9261_v48 = vsel %vm2758_vm14, %v16223_v39, %v9166_v51 }
0x1649   : > { %v9308_v23 = vsel %vm824_vm7, %v9298_v6, %v9226_v4 }
0x164a   : > { %9568 = vmatmul.mubr.bf16.gmra.mxu1 %v9277_v62 }
0x164b   : > { %9575 = vmatprep.mubr.bf16.mxu1 %v9308_v23  ;;  %v9178_v13 = vpop.permute.xlu0 %9177 }
0x164c   : > { %v9204_v52 = vpop.permute.xlu1 %9203  ;;  %v9270_v12 = vsel %vm17242_vm1, %v9261_v48, %v9178_v13 }
0x164d   : > { %v9280_v7 = vsel %vm17243_vm8, %v9270_v12, %v9190_v22  ;;  %vm17249_vm8 = vmmov %vm17242_vm1 }
0x164f   : > { %v9192_v63 = vpop.permute.xlu0 %9191 }
0x1650   : > { %v9216_v57 = vpop.permute.xlu1 %9215  ;;  %v9292_v9 = vsel %vm780_vm3, %v9192_v63, %v9204_v52 }
0x1651   : > { %v9300_v11 = vsel %vm17244_vm9, %v9292_v9, %v9216_v57 }
0x1652   : > { %9576 = vmatmul.mubr.bf16.gmra.mxu1 %v9280_v7 }
0x1653   : > { %v9168_v28 = vpop.permute.xlu0 %9167 }
0x1654   : > { %v9228_v5 = vpop.permute.xlu1 %9227  ;;  %v9264_v44 = vsel %vm2758_vm14, %v16237_v31, %v9168_v28  ;;  %vm8987_vm14 = vcmp.ge.f32.partialorder %v16127_v32, 0.0 }
0x1655   : > { %v9311_v33 = vsel %vm824_vm7, %v9300_v11, %v9228_v5  ;;  %v9003_v8 = vsel %vm8987_vm14, %v16127_v32, %v8995_v54  ;;  %v16488_v54 = vld [vmem:[%s17074_s6 + $0x4] ss:$16 sps:$4 sm:$0xff]  }
0x1656   : > { %9583 = vmatprep.mubr.bf16.mxu1 %v9311_v33 }
0x1657   : > { %v9180_v14 = vpop.permute.xlu0 %9179 }
0x1658   : > { %v9240_v39 = vpop.permute.xlu1 %9239  ;;  %v9272_v42 = vsel %vm17245_vm13, %v9264_v44, %v9180_v14  ;;  %vm17250_vm13 = vmmov %vm17242_vm1 }
0x1659   : > { %v9283_v40 = vsel %vm17246_vm15, %v9272_v42, %v9192_v63  ;;  %v9320_v3 = vsel %vm17248_vm11, %v9228_v5, %v9240_v39 }
0x165a   : > { %9584 = vmatmul.mubr.bf16.gmra.mxu1 %v9283_v40 }
0x165b   : > { %v9238_v21 = vpop.permute.xlu0 %9237 }
0x165c   : > { %v9252_v30 = vpop.permute.xlu1 %9251  ;;  %v9318_v17 = vsel %vm17247_vm10, %v9226_v4, %v9238_v21  ;;  %vm17251_vm10 = vmmov %vm17242_vm1 }
0x165d   : > { %v9328_v31 = vsel %vm797_vm4, %v9320_v3, %v9252_v30  ;;  %v9752_v3 = vld [vmem:[#allocation2 + $0xa] sm:$0xff] }
0x165f   : > { %v9250_v16 = vpop.permute.xlu0 %9249 }
0x1660   : > { %v7683_v53 = vpop.permute.xlu1 %7682  ;;  %v9326_v25 = vsel %vm797_vm4, %v9318_v17, %v9250_v16 }
0x1661   : > { %7702 = vst.msk [vmem:[#allocation2 + $0x51] sm:$0xff] %vm7696_vm12, %v7683_v53  ;;  %12254 = vmatprep.mubr.msk.bf16.mxu0 %vm7498_vm5, %v9326_v25  ;;  %v9751_v53 = vld [vmem:[#allocation2 + $0x2] sm:$0xff] }
0x1662   : > { %12255 = vmatmul.mubr.msk.bf16.gmra.mxu0 %vm7498_vm5, %v9328_v31  ;;  %vm8988_vm5 = vcmp.ge.f32.partialorder %v16131_v34, 0.0  ;;  %v9759_v25 = vpack.c.bf16 %v9752_v3, %v9751_v53 }
0x1663   : > { %v7681_v18 = vpop.permute.xlu0 %7680  ;;  %v9004_v52 = vsel %vm8988_vm5, %v16131_v34, %v8996_v2  ;;  %10067 = vmatprep.mubr.bf16.mxu0 %v16488_v54 }
0x1664   : > { %v8348_v19 = vpop.permute.xlu1 %8347  ;;  %7701 = vst.msk [vmem:[#allocation2 + $0x49] sm:$0xff] %vm7696_vm12, %v7681_v18  ;;  %v9740_v18 = vld [vmem:[#allocation2 + $0x9] sm:$0xff] }
0x1665   : > { %8370 = vst.msk [vmem:[#allocation2 + $0x81] sm:$0xff] %vm7696_vm12, %v8348_v19  ;;  %v9739_v19 = vld [vmem:[#allocation2 + $0x1] sm:$0xff] }
0x1667   : > { %v8346_v15 = vpop.permute.xlu0 %8345 }
0x1668   : > { %v7679_v60 = vpop.permute.xlu1 %7678  ;;  %8369 = vst.msk [vmem:[#allocation2 + $0x79] sm:$0xff] %vm7696_vm12, %v8346_v15  ;;  %v9758_v36 = vld [vmem:[#allocation2 + $0x52] sm:$0xff]  ;;  %v9747_v15 = vpack.c.bf16 %v9740_v18, %v9739_v19 }
0x1669   : > { %7700 = vst.msk [vmem:[#allocation2 + $0x39] sm:$0xff] %vm7696_vm12, %v7679_v60  ;;  %v9746_v46 = vld [vmem:[#allocation2 + $0x51] sm:$0xff] }
0x166b   : > { %v7677_v27 = vpop.permute.xlu0 %7676  ;;  %v9757_v61 = vld [vmem:[#allocation2 + $0x4a] sm:$0xff] }
0x166c   : > { %v7675_v50 = vpop.permute.xlu1 %7674  ;;  %v9745_v55 = vld [vmem:[#allocation2 + $0x49] sm:$0xff]  ;;  %7699 = vst.msk [vmem:[#allocation2 + $0x31] sm:$0xff] %vm7696_vm12, %v7677_v27  ;;  %v16398_v35 = vpack.c.bf16 %v9758_v36, %v9757_v61  ;;  %v9818_v57 = vld [vmem:[#allocation2 + $0x81] sm:$0xff] }
0x166d   : > { %7698 = vst.msk [vmem:[#allocation2 + $0x21] sm:$0xff] %vm7696_vm12, %v7675_v50  ;;  %v16400_v26 = vpack.c.bf16 %v9746_v46, %v9745_v55  ;;  %v9830_v43 = vld [vmem:[#allocation2 + $0x82] sm:$0xff]  ;;  %v9768_v7 = vld [vmem:[#allocation2 + $0x50] sm:$0xff] }
0x166e   : > { %9857 = vrot.lane.b32.xlu0 %v16398_v35, %s17149_s23  ;;  %v9767_v9 = vld [vmem:[#allocation2 + $0x48] sm:$0xff]  ;;  %v10167_v50 = vld [vmem:[#allocation2 + $0xc0] sm:$0xff] }
0x166f   : > { %9845 = vrot.lane.b32.xlu1 %v16400_v26, %s17144_s30  ;;  %v7673_v38 = vpop.permute.xlu0 %7672  ;;  %v9829_v56 = vld [vmem:[#allocation2 + $0x7a] sm:$0xff]  ;;  %v16449_v5 = vpack.c.bf16 %v9768_v7, %v9767_v9  ;;  %v10168_v36 = vld [vmem:[#allocation2 + $0xc8] sm:$0xff] }
0x1670   : > { %v8356_v1 = vpop.permute.xlu1 %8355  ;;  %7697 = vst.msk [vmem:[#allocation2 + $0x19] sm:$0xff] %vm7696_vm12, %v7673_v38  ;;  %v16412_v10 = vpack.c.bf16 %v9830_v43, %v9829_v56  ;;  %v9805_v29 = vld [vmem:[#allocation2 + $0x78] sm:$0xff]  ;;  %v9806_v58 = vld [vmem:[#allocation2 + $0x80] sm:$0xff]  ;;  %v10172_v27 = vpack.c.bf16 %v10168_v36, %v10167_v50  ;;  %v10180_v38 = vld [vmem:[#allocation2 + $0xc9] sm:$0xff] }
0x1671   : > { %8374 = vst.msk [vmem:[#allocation2 + $0xb1] sm:$0xff] %vm7696_vm12, %v8356_v1  ;;  %v16424_v32 = vpack.c.bf16 %v9806_v58, %v9805_v29  ;;  %v9756_v6 = vld [vmem:[#allocation2 + $0x3a] sm:$0xff]  ;;  %v10191_v29 = vld [vmem:[#allocation2 + $0xc2] sm:$0xff]  ;;  %v10192_v58 = vld [vmem:[#allocation2 + $0xca] sm:$0xff] }
0x1672   : > { %9881 = vrot.lane.b32.xlu0 %v16410_v45, %s17145_s26  ;;  %11706 = vmatprep.subr.msk.bf16.mxu1 %vm453_vm0, %v16412_v10  ;;  %v9817_v13 = vld [vmem:[#allocation2 + $0x79] sm:$0xff]  ;;  %v16511_v2 = vpack.c.bf16 %v10192_v58, %v10191_v29 }
0x1673   : > { %9021 = vrot.lane.b32.xlu1 %v9003_v8, %s17155_s29  ;;  %v8354_v59 = vpop.permute.xlu0 %8353  ;;  %v9755_v4 = vld [vmem:[#allocation2 + $0x32] sm:$0xff]  ;;  %v16442_v63 = vpack.c.bf16 %v9818_v57, %v9817_v13  ;;  %v16499_v43 = vld [vmem:[%s17074_s6 + $0xc] ss:$16 sps:$4 sm:$0xff]   ;;  %v16501_v8 = vpack.c.bf16 %v10180_v38, %v10179_v37 }
0x1674   : > { %v9020_v22 = vpop.permute.xlu1 %9019  ;;  %8373 = vst.msk [vmem:[#allocation2 + $0xa9] sm:$0xff] %vm7696_vm12, %v8354_v59  ;;  %v16434_v23 = vpack.c.bf16 %v9756_v6, %v9755_v4  ;;  %v9743_v28 = vld [vmem:[#allocation2 + $0x31] sm:$0xff]  ;;  %v9744_v11 = vld [vmem:[#allocation2 + $0x39] sm:$0xff]  ;;  %v9754_v30 = vld [vmem:[#allocation2 + $0x22] sm:$0xff]  ;;  %11710 = vmatprep.mubr.msk.bf16.mxu1 %vm453_vm0, %v16499_v43 }
0x1675   : > { %9042 = vst.msk [vmem:[#allocation2 + $0xe1] sm:$0xff] %vm7696_vm12, %v9020_v22  ;;  %v9749_v33 = vpack.c.bf16 %v9744_v11, %v9743_v28  ;;  %v9765_v44 = vld [vmem:[#allocation2 + $0x30] sm:$0xff]  ;;  %v9766_v39 = vld [vmem:[#allocation2 + $0x38] sm:$0xff]  ;;  %v9742_v21 = vld [vmem:[#allocation2 + $0x21] sm:$0xff] }
0x1676   : > { %9893 = vrot.lane.b32.xlu0 %v16422_v24, %s17143_s16  ;;  %v16458_v14 = vpack.c.bf16 %v9766_v39, %v9765_v44 }
0x1677   : > { %9905 = vrot.lane.b32.xlu1 %v16424_v32, %s17147_s19  ;;  %v9018_v62 = vpop.permute.xlu0 %9017  ;;  %v9753_v42 = vld [vmem:[#allocation2 + $0x1a] sm:$0xff] }
0x1678   : > { %v8352_v51 = vpop.permute.xlu1 %8351  ;;  %9041 = vst.msk [vmem:[#allocation2 + $0xd9] sm:$0xff] %vm7696_vm12, %v9018_v62  ;;  %v9741_v40 = vld [vmem:[#allocation2 + $0x19] sm:$0xff]  ;;  %v9760_v17 = vpack.c.bf16 %v9754_v30, %v9753_v42 }
0x1679   : > { %8372 = vst.msk [vmem:[#allocation2 + $0x99] sm:$0xff] %vm7696_vm12, %v8352_v51  ;;  %v9748_v16 = vpack.c.bf16 %v9742_v21, %v9741_v40  ;;  %v9764_v31 = vld [vmem:[#allocation2 + $0x20] sm:$0xff]  ;;  %v10156_v46 = vld [vmem:[#allocation2 + $0xb2] sm:$0xff] }
0x167a   : > { %9023 = vrot.lane.b32.xlu0 %v9004_v52, %s17155_s29 }
0x167b   : > { %9855 = vrot.lane.b32.xlu1 %v16434_v23, %s17149_s23  ;;  %v8350_v12 = vpop.permute.xlu0 %8349  ;;  %v10155_v61 = vld [vmem:[#allocation2 + $0xaa] sm:$0xff] }
0x167c   : > { %v9028_v48 = vpop.permute.xlu1 %9027  ;;  %8371 = vst.msk [vmem:[#allocation2 + $0x91] sm:$0xff] %vm7696_vm12, %v8350_v12  ;;  %v10143_v55 = vld [vmem:[#allocation2 + $0xa9] sm:$0xff]  ;;  %v16490_v41 = vpack.c.bf16 %v10156_v46, %v10155_v61  ;;  %v10216_v62 = vld [vmem:[#allocation2 + $0xe1] sm:$0xff] }
0x167d   : > { %9046 = vst.msk [vmem:[#allocation2 + $0x111] sm:$0xff] %vm7696_vm12, %v9028_v48  ;;  %v10165_v52 = vld [vmem:[#allocation2 + $0xa8] sm:$0xff]  ;;  %v10166_v13 = vld [vmem:[#allocation2 + $0xb0] sm:$0xff] }
0x167e   : > { %9917 = vrot.lane.b32.xlu0 %v16442_v63, %s17146_s14  ;;  %v16524_v48 = vpack.c.bf16 %v10166_v13, %v10165_v52 }
0x167f   : > { %9879 = vrot.lane.b32.xlu1 %v16400_v26, %s17145_s26  ;;  %v9026_v34 = vpop.permute.xlu0 %9025  ;;  %v10203_v47 = vld [vmem:[#allocation2 + $0xd8] sm:$0xff]  ;;  %v10204_v56 = vld [vmem:[#allocation2 + $0xe0] sm:$0xff] }
0x1680   : > { %9045 = vst.msk [vmem:[#allocation2 + $0x109] sm:$0xff] %vm7696_vm12, %v9026_v34  ;;  %v16503_v0 = vpack.c.bf16 %v10204_v56, %v10203_v47  ;;  %v10154_v59 = vld [vmem:[#allocation2 + $0x9a] sm:$0xff]  ;;  %v9870_v11 = vpop.permute.xlu1 %9869 }
0x1681   : > { %v10215_v51 = vld [vmem:[#allocation2 + $0xd9] sm:$0xff] }
0x1682   : > { %9867 = vrot.lane.b32.xlu0 %v16449_v5, %s17148_s0  ;;  %v16519_v6 = vpack.c.bf16 %v10216_v62, %v10215_v51  ;;  %v10142_v57 = vld [vmem:[#allocation2 + $0x99] sm:$0xff] }
0x1683   : > { %9891 = vrot.lane.b32.xlu1 %v16398_v35, %s17143_s16  ;;  %v10153_v22 = vld [vmem:[#allocation2 + $0x92] sm:$0xff] }
0x1684   : > { %v16513_v4 = vpack.c.bf16 %v10154_v59, %v10153_v22  ;;  %v10141_v12 = vld [vmem:[#allocation2 + $0x91] sm:$0xff] }
0x1685   : > { %v16530_v9 = vpack.c.bf16 %v10142_v57, %v10141_v12  ;;  %v10163_v7 = vld [vmem:[#allocation2 + $0x90] sm:$0xff]  ;;  %v10164_v34 = vld [vmem:[#allocation2 + $0x98] sm:$0xff] }
0x1686   : > { %9843 = vrot.lane.b32.xlu0 %v9749_v33, %s17144_s30  ;;  %v16536_v28 = vpack.c.bf16 %v10164_v34, %v10163_v7 }
0x1687   : > { %9915 = vrot.lane.b32.xlu1 %v16410_v45, %s17146_s14 }
0x168a   : > { %9903 = vrot.lane.b32.xlu0 %v16344_v49, %s17147_s19  ;;  %v9763_v49 = vld [vmem:[#allocation2 + $0x18] sm:$0xff] }
0x168b   : > { %9865 = vrot.lane.b32.xlu1 %v16458_v14, %s17148_s0  ;;  %v16475_v60 = vpack.c.bf16 %v9764_v31, %v9763_v49 }
0x168e   : > { %9853 = vrot.lane.b32.xlu0 %v9760_v17, %s17149_s23 }
0x168f   : > { %9841 = vrot.lane.b32.xlu1 %v9748_v16, %s17144_s30 }
0x1692   : > { %9877 = vrot.lane.b32.xlu0 %v9749_v33, %s17145_s26 }
0x1693   : > { %9901 = vrot.lane.b32.xlu1 %v16449_v5, %s17147_s19 }
0x1696   : > { %9889 = vrot.lane.b32.xlu0 %v16434_v23, %s17143_s16 }
0x1697   : > { %9851 = vrot.lane.b32.xlu1 %v9759_v25, %s17149_s23 }
0x169a   : > { %9913 = vrot.lane.b32.xlu0 %v16400_v26, %s17146_s14  ;;  %v10144_v26 = vld [vmem:[#allocation2 + $0xb1] sm:$0xff] }
0x169b   : > { %9875 = vrot.lane.b32.xlu1 %v9748_v16, %s17145_s26  ;;  %v10148_v1 = vpack.c.bf16 %v10144_v26, %v10143_v55 }
0x169e   : > { %9863 = vrot.lane.b32.xlu0 %v16475_v60, %s17148_s0 }
0x169f   : > { %9887 = vrot.lane.b32.xlu1 %v9760_v17, %s17143_s16 }
0x16a2   : > { %9839 = vrot.lane.b32.xlu0 %v9747_v15, %s17144_s30 }
0x16a3   : > { %9911 = vrot.lane.b32.xlu1 %v9749_v33, %s17146_s14 }
0x16a6   : > { %9899 = vrot.lane.b32.xlu0 %v16458_v14, %s17147_s19 }
0x16a7   : > { %10267 = vrot.lane.b32.xlu1 %v10172_v27, %s17148_s0 }
0x16aa   : > { %10255 = vrot.lane.b32.xlu0 %v16490_v41, %s17149_s23 }
0x16ab   : > { %10243 = vrot.lane.b32.xlu1 %v10148_v1, %s17144_s30 }
0x16ae   : > { %10279 = vrot.lane.b32.xlu0 %v16501_v8, %s17145_s26 }
0x16af   : > { %10303 = vrot.lane.b32.xlu1 %v16503_v0, %s17147_s19 }
0x16b2   : > { %10291 = vrot.lane.b32.xlu0 %v16511_v2, %s17143_s16 }
0x16b3   : > { %10253 = vrot.lane.b32.xlu1 %v16513_v4, %s17149_s23 }
0x16b6   : > { %10315 = vrot.lane.b32.xlu0 %v16519_v6, %s17146_s14 }
0x16b7   : > { %10277 = vrot.lane.b32.xlu1 %v10148_v1, %s17145_s26 }
0x16ba   : > { %10265 = vrot.lane.b32.xlu0 %v16524_v48, %s17148_s0 }
0x16bb   : > { %10289 = vrot.lane.b32.xlu1 %v16490_v41, %s17143_s16 }
0x16be   : > { %10241 = vrot.lane.b32.xlu0 %v16530_v9, %s17144_s30 }
0x16bf   : > { %10313 = vrot.lane.b32.xlu1 %v16501_v8, %s17146_s14 }
0x16c2   : > { %10301 = vrot.lane.b32.xlu0 %v10172_v27, %s17147_s19 }
0x16c3   : > { %10263 = vrot.lane.b32.xlu1 %v16536_v28, %s17148_s0 }
0x16c6   : > { %10251 = vrot.lane.b32.xlu0 %v16412_v10, %s17149_s23 }
0x16c7   : > { %10239 = vrot.lane.b32.xlu1 %v16442_v63, %s17144_s30 }
0x16ca   : > { %10275 = vrot.lane.b32.xlu0 %v16530_v9, %s17145_s26 }
0x16cb   : > { %10299 = vrot.lane.b32.xlu1 %v16524_v48, %s17147_s19 }
0x16ce   : > { %10287 = vrot.lane.b32.xlu0 %v16513_v4, %s17143_s16 }
0x16cf   : > { %10249 = vrot.lane.b32.xlu1 %v16422_v24, %s17149_s23 }
0x16d2   : > { %10311 = vrot.lane.b32.xlu0 %v10148_v1, %s17146_s14 }
0x16d3   : > { %10273 = vrot.lane.b32.xlu1 %v16442_v63, %s17145_s26 }
0x16d6   : > { %10261 = vrot.lane.b32.xlu0 %v16424_v32, %s17148_s0 }
0x16d7   : > { %10285 = vrot.lane.b32.xlu1 %v16412_v10, %s17143_s16 }
0x16da   : > { %10237 = vrot.lane.b32.xlu0 %v16410_v45, %s17144_s30 }
0x16de   : > { %10297 = vrot.lane.b32.xlu0 %v16536_v28, %s17147_s19 }
0x16e0   : > { %v9858_v44 = vpop.permute.xlu0 %9857 }
0x16e1   : > { %v9846_v33 = vpop.permute.xlu1 %9845  ;;  %v9950_v10 = vsel %vm542_vm2, %v9858_v44, %v9870_v11 }
0x16e2   : > { %v9930_v63 = vsel %vm453_vm0, %v16449_v5, %v9846_v33 }
0x16e3   : > { %v9941_v17 = vsel %vm815_vm6, %v9930_v63, %v9858_v44 }
0x16e4   : > { %v9882_v42 = vpop.permute.xlu0 %9881 }
0x16e5   : > { %v9022_v39 = vpop.permute.xlu1 %9021  ;;  %v9958_v40 = vsel %vm797_vm4, %v9950_v10, %v9882_v42 }
0x16e6   : > { %9043 = vst.msk [vmem:[#allocation2 + $0xf1] sm:$0xff] %vm7696_vm12, %v9022_v39 }
0x16e8   : > { %v9894_v21 = vpop.permute.xlu0 %9893 }
0x16e9   : > { %v9906_v30 = vpop.permute.xlu1 %9905  ;;  %v9969_v45 = vsel %vm824_vm7, %v9958_v40, %v9894_v21 }
0x16ea   : > { %10043 = vmatprep.subr.bf16.mxu0 %v9969_v45  ;;  %v9978_v3 = vsel %vm780_vm3, %v9894_v21, %v9906_v30 }
0x16eb   : > { %10044 = vmatpush1.bf16.xpose.msra.mxu0 %v9941_v17 }
0x16ec   : > { %v9024_v53 = vpop.permute.xlu0 %9023 }
0x16ed   : > { %v9856_v16 = vpop.permute.xlu1 %9855  ;;  %9044 = vst.msk [vmem:[#allocation2 + $0xf9] sm:$0xff] %vm7696_vm12, %v9024_v53 }
0x16f0   : > { %v9918_v5 = vpop.permute.xlu0 %9917 }
0x16f1   : > { %v9880_v25 = vpop.permute.xlu1 %9879  ;;  %v9989_v49 = vsel %vm17242_vm1, %v9978_v3, %v9918_v5  ;;  %v10538_v3 = vld [vmem:[#allocation2 + $0x10a] sm:$0xff] }
0x16f2   : > { %10085 = vmatpush1.bf16.xpose.msra.mxu1 %v9989_v49 }
0x16f3   : > { %11707 = vmatprep.subr.msk.bf16.mxu1 %vm453_vm0, %v16422_v24  ;;  %v16583_v1 = vpop.f32.mrf.mxu0 }
0x16f4   : > { %v9868_v19 = vpop.permute.xlu0 %9867 }
0x16f5   : > { %v9892_v31 = vpop.permute.xlu1 %9891  ;;  %v9948_v18 = vsel %vm542_vm2, %v9856_v16, %v9868_v19  ;;  %v9626_v29 = vpop.f32.mrf.mxu0  ;;  %v9727_v19 = vld [vmem:[#allocation2] sm:$0xff] }
0x16f6   : > { %v9956_v15 = vsel %vm797_vm4, %v9948_v18, %v9880_v25  ;;  %v9728_v18 = vld [vmem:[#allocation2 + $0x8] sm:$0xff] }
0x16f7   : > { %v9966_v50 = vsel %vm824_vm7, %v9956_v15, %v9892_v31  ;;  %v16593_v52 = vpop.f32.mrf.mxu0 }
0x16f8   : > { %10045 = vmatprep.subr.bf16.mxu0 %v9966_v50  ;;  %v9844_v27 = vpop.permute.xlu0 %9843 }
0x16f9   : > { %v9916_v36 = vpop.permute.xlu1 %9915  ;;  %v9927_v61 = vsel %vm453_vm0, %v16458_v14, %v9844_v27  ;;  %v16591_v14 = vld [vmem:[%s17078_s10] ss:$0 sm:$0xff]  ;;  %v9629_v63 = vpop.f32.mrf.mxu0 }
0x16fa   : > { %v9938_v55 = vsel %vm815_vm6, %v9927_v61, %v9856_v16 }
0x16fb   : > { %10046 = vmatpush1.bf16.xpose.msra.mxu0 %v9938_v55 }
0x16fc   : > { %v9904_v26 = vpop.permute.xlu0 %9903 }
0x16fd   : > { %v9866_v46 = vpop.permute.xlu1 %9865  ;;  %v9976_v24 = vsel %vm780_vm3, %v9892_v31, %v9904_v26  ;;  %v10539_v31 = vld [vmem:[#allocation2 + $0x112] sm:$0xff] }
0x16fe   : > { %v9986_v38 = vsel %vm17249_vm8, %v9976_v24, %v9916_v36  ;;  %v16608_v50 = vpack.c.bf16 %v10539_v31, %v10538_v3  ;;  %v10536_v31 = vld [vmem:[#allocation2 + $0xf2] sm:$0xff] }
0x16ff   : > { %10087 = vmatpush1.bf16.xpose.msra.mxu1 %v9986_v38  ;;  %v9735_v38 = vpack.c.bf16 %v9728_v18, %v9727_v19  ;;  %v10537_v19 = vld [vmem:[#allocation2 + $0xfa] sm:$0xff] }
0x1700   : > { %11708 = vmatprep.subr.msk.bf16.mxu1 %vm453_vm0, %v16398_v35  ;;  %v9854_v56 = vpop.permute.xlu0 %9853 }
0x1701   : > { %v9842_v47 = vpop.permute.xlu1 %9841  ;;  %v9946_v12 = vsel %vm542_vm2, %v9854_v56, %v9866_v46  ;;  %v10563_v46 = vld [vmem:[#allocation2 + $0x129] sm:$0xff] }
0x1702   : > { %v12087_v37 = vpop.f32.mrf.mxu1  ;;  %v9924_v35 = vsel %vm453_vm0, %v16475_v60, %v9842_v47 }
0x1703   : > { %v9935_v40 = vsel %vm815_vm6, %v9924_v35, %v9854_v56 }
0x1704   : > { %v12088_v58 = vpop.f32.mrf.mxu1  ;;  %v9878_v51 = vpop.permute.xlu0 %9877 }
0x1705   : > { %v9902_v22 = vpop.permute.xlu1 %9901  ;;  %v12089_v59 = vadd.f32 %v12088_v58, %v12087_v37  ;;  %v9954_v11 = vsel %vm797_vm4, %v9946_v12, %v9878_v51 }
0x1706   : > { %v12090_v62 = vpop.f32.mrf.mxu1 }
0x1707   : > { %v9562_v13 = vadd.f32 %v12089_v59, %v16591_v14 }
0x1708   : > { %v12091_v57 = vpop.f32.mrf.mxu1  ;;  %v9890_v44 = vpop.permute.xlu0 %9889 }
0x1709   : > { %v9852_v7 = vpop.permute.xlu1 %9851  ;;  %v9627_v34 = vadd.f32 %v9626_v29, %v9562_v13  ;;  %v12092_v33 = vadd.f32 %v12091_v57, %v12090_v62  ;;  %v9963_v42 = vsel %vm824_vm7, %v9954_v11, %v9890_v44  ;;  %v9974_v17 = vsel %vm780_vm3, %v9890_v44, %v9902_v22  ;;  %v10574_v62 = vld [vmem:[#allocation2 + $0x122] sm:$0xff]  ;;  %v10575_v13 = vld [vmem:[#allocation2 + $0x12a] sm:$0xff]  ;;  %v10227_v44 = vld [vmem:[#allocation2 + $0xda] sm:$0xff] }
0x170a   : > { %v12093_v39 = vpop.f32.mrf.mxu1  ;;  %10047 = vmatprep.subr.bf16.mxu0 %v9963_v42 }
0x170b   : > { %v9565_v10 = vadd.f32 %v12092_v33, %v16591_v14  ;;  %vm9657_vm9 = vcmp.ge.f32.partialorder %v9627_v34, 0.0  ;;  %v9665_v60 = vmul.f32 0.2, %v9627_v34  ;;  %10048 = vmatpush1.bf16.xpose.msra.mxu0 %v9935_v40  ;;  %v16625_v33 = vpack.c.bf16 %v10575_v13, %v10574_v62  ;;  %v10549_v40 = vld [vmem:[#allocation2 + $0x110] sm:$0xff] }
0x170c   : > { %v12094_v30 = vpop.f32.mrf.mxu1  ;;  %v9914_v16 = vpop.permute.xlu0 %9913 }
0x170d   : > { %v9876_v21 = vpop.permute.xlu1 %9875  ;;  %v9630_v45 = vadd.f32 %v9629_v63, %v9565_v10  ;;  %v9673_v53 = vsel %vm9657_vm9, %v9627_v34, %v9665_v60  ;;  %v9983_v25 = vsel %vm17250_vm13, %v9974_v17, %v9914_v16  ;;  %v12095_v22 = vadd.f32 %v12094_v30, %v12093_v39  ;;  %v10548_v10 = vld [vmem:[#allocation2 + $0x108] sm:$0xff]  ;;  %v10527_v17 = vld [vmem:[#allocation2 + $0x111] sm:$0xff] }
0x170e   : > { %v12096_v5 = vpop.f32.mrf.mxu1  ;;  %9689 = vrot.lane.b32.xlu0 %v9673_v53, %s17155_s29  ;;  %10089 = vmatpush1.bf16.xpose.msra.mxu1 %v9983_v25  ;;  %v10526_v60 = vld [vmem:[#allocation2 + $0x109] sm:$0xff]  ;;  %v16642_v3 = vpack.c.bf16 %v10549_v40, %v10548_v10 }
0x170f   : > { %vm9658_vm15 = vcmp.ge.f32.partialorder %v9630_v45, 0.0  ;;  %v9666_v49 = vmul.f32 0.2, %v9630_v45  ;;  %11709 = vmatprep.subr.msk.bf16.mxu1 %vm453_vm0, %v16434_v23  ;;  %v10562_v23 = vld [vmem:[#allocation2 + $0x121] sm:$0xff]  ;;  %v9570_v39 = vadd.f32 %v12095_v22, %v16591_v14 }
0x1710   : > { %v12097_v15 = vpop.f32.mrf.mxu1  ;;  %v9864_v61 = vpop.permute.xlu0 %9863  ;;  %v16616_v58 = vpack.c.bf16 %v10563_v46, %v10562_v23 }
0x1711   : > { %v9888_v36 = vpop.permute.xlu1 %9887  ;;  %v12098_v27 = vadd.f32 %v12097_v15, %v12096_v5  ;;  %v9674_v55 = vsel %vm9658_vm15, %v9630_v45, %v9666_v49  ;;  %v9944_v26 = vsel %vm542_vm2, %v9852_v7, %v9864_v61  ;;  %v9635_v25 = vadd.f32 %v16583_v1, %v9570_v39  ;;  %v16657_v1 = vld [vmem:[%s17074_s6 + $0x8] ss:$16 sps:$4 sm:$0xff]   ;;  %vm17252_vm15 = vmmov %vm17249_vm8 }
0x1712   : > { %v12099_v24 = vpop.f32.mrf.mxu1  ;;  %9691 = vrot.lane.b32.xlu1 %v9674_v55, %s17155_s29  ;;  %10638 = vrot.lane.b32.xlu0 %v16608_v50, %s17149_s23  ;;  %v9952_v47 = vsel %vm797_vm4, %v9944_v26, %v9876_v21  ;;  %v16659_v55 = vpack.c.bf16 %v10537_v19, %v10536_v31  ;;  %v10525_v31 = vld [vmem:[#allocation2 + $0xf9] sm:$0xff] }
0x1713   : > { %v9960_v29 = vsel %vm824_vm7, %v9952_v47, %v9888_v36  ;;  %v9573_v59 = vadd.f32 %v12098_v27, %v16591_v14  ;;  %vm9659_vm14 = vcmp.ge.f32.partialorder %v9635_v25, 0.0 }
0x1714   : > { %v12100_v56 = vpop.f32.mrf.mxu1  ;;  %10049 = vmatprep.subr.bf16.mxu0 %v9960_v29  ;;  %v9840_v51 = vpop.permute.xlu0 %9839 }
0x1715   : > { %v9912_v37 = vpop.permute.xlu1 %9911  ;;  %v9921_v35 = vsel %vm453_vm0, %v9735_v38, %v9840_v51  ;;  %v9638_v42 = vadd.f32 %v16593_v52, %v9573_v59  ;;  %v16640_v52 = vld [vmem:[%s17074_s6] ss:$16 sps:$4 sm:$0xff]   ;;  %v9667_v38 = vmul.f32 0.2, %v9635_v25 }
0x1716   : > { %v12102_v12 = vpop.f32.mrf.mxu1  ;;  %10309 = vrot.lane.b32.xlu1 %v16530_v9, %s17146_s14  ;;  %10662 = vrot.lane.b32.xlu0 %v16616_v58, %s17145_s26  ;;  %v9932_v57 = vsel %vm815_vm6, %v9921_v35, %v9852_v7  ;;  %v10228_v7 = vld [vmem:[#allocation2 + $0xe2] sm:$0xff] }
0x1717   : > { %10050 = vmatpush1.bf16.xpose.msra.mxu0 %v9932_v57  ;;  %v16635_v45 = vpack.c.bf16 %v10228_v7, %v10227_v44  ;;  %v9668_v49 = vmul.f32 0.2, %v9638_v42  ;;  %vm9660_vm11 = vcmp.ge.f32.partialorder %v9638_v42, 0.0  ;;  %v9675_v57 = vsel %vm9659_vm14, %v9635_v25, %v9667_v38  ;;  %v10585_v38 = vld [vmem:[#allocation2 + $0x128] sm:$0xff]  ;;  %vm17256_vm14 = vmmov %vm17249_vm8 }
0x1718   : > { %v12103_v34 = vpop.f32.mrf.mxu1  ;;  %v9900_v63 = vpop.permute.xlu0 %9899 }
0x1719   : > { %v10268_v11 = vpop.permute.xlu1 %10267  ;;  %v9972_v9 = vsel %vm780_vm3, %v9888_v36, %v9900_v63  ;;  %v12101_v36 = vadd.f32 %v12100_v56, %v12099_v24  ;;  %v9676_v26 = vsel %vm9660_vm11, %v9638_v42, %v9668_v49  ;;  %v12104_v47 = vadd.f32 %v12103_v34, %v12102_v12  ;;  %vm17254_vm11 = vmmov %vm17249_vm8 }
0x171a   : > { %v12105_v30 = vpop.f32.mrf.mxu1  ;;  %10650 = vrot.lane.b32.xlu1 %v16359_v20, %s17148_s0  ;;  %10674 = vrot.lane.b32.xlu0 %v16625_v33, %s17143_s16  ;;  %v9980_v21 = vsel %vm17251_vm10, %v9972_v9, %v9912_v37  ;;  %v16644_v20 = vpack.c.bf16 %v10527_v17, %v10526_v60  ;;  %vm17253_vm10 = vmmov %vm17249_vm8 }
0x171b   : > { %10091 = vmatpush1.bf16.xpose.msra.mxu1 %v9980_v21  ;;  %v9578_v37 = vadd.f32 %v12101_v36, %v16591_v14 }
0x171c   : > { %v12106_v16 = vpop.f32.mrf.mxu1  ;;  %11711 = vmatprep.subr.msk.bf16.mxu1 %vm453_vm0, %v16635_v45  ;;  %v10256_v5 = vpop.permute.xlu0 %10255 }
0x171d   : > { %v10244_v53 = vpop.permute.xlu1 %10243  ;;  %v12107_v18 = vadd.f32 %v12106_v16, %v12105_v30  ;;  %v10348_v22 = vsel %vm542_vm2, %v10256_v5, %v10268_v11 }
0x171e   : > { %v12108_v15 = vpop.f32.mrf.mxu1  ;;  %10648 = vrot.lane.b32.xlu0 %v16642_v3, %s17148_s0  ;;  %10626 = vrot.lane.b32.xlu1 %v16644_v20, %s17144_s30  ;;  %v10328_v29 = vsel %vm453_vm0, %v16524_v48, %v10244_v53  ;;  %v9581_v48 = vadd.f32 %v12104_v47, %v16591_v14 }
0x171f   : > { %10068 = vmatmul.mubr.bf16.vlgmr.msra.gmra.mxu0 %v16640_v52  ;;  %v9586_v23 = vadd.f32 %v12107_v18, %v16591_v14  ;;  %v10339_v42 = vsel %vm815_vm6, %v10328_v29, %v10256_v5 }
0x1720   : > { %v12109_v27 = vpop.f32.mrf.mxu1  ;;  %10433 = vmatprep.mubr.bf16.mxu0 %v16488_v54  ;;  %v10280_v46 = vpop.permute.xlu0 %10279 }
0x1721   : > { %v10304_v61 = vpop.permute.xlu1 %10303  ;;  %v12110_v56 = vadd.f32 %v12109_v27, %v12108_v15  ;;  %v10356_v13 = vsel %vm797_vm4, %v10348_v22, %v10280_v46  ;;  %v10524_v15 = vld [vmem:[#allocation2 + $0xf1] sm:$0xff] }
0x1722   : > { %v12256_v24 = vpop.f32.mrf.mxu0  ;;  %9695 = vrot.lane.b32.xlu0 %v9676_v26, %s17155_s29  ;;  %10636 = vrot.lane.b32.xlu1 %v16659_v55, %s17149_s23 }
0x1723   : > { %10109 = vmatmul.mubr.bf16.vlgmr.msra.gmra.mxu1 %v16657_v1  ;;  %v9651_v59 = vadd.f32 %v12256_v24, %v9586_v23  ;;  %v9589_v39 = vadd.f32 %v12110_v56, %v16591_v14  ;;  %v10584_v24 = vld [vmem:[#allocation2 + $0x120] sm:$0xff] }
0x1724   : > { %v9642_v51 = vpop.f32.mrf.mxu0  ;;  %11715 = vmatprep.mubr.msk.bf16.mxu1 %vm453_vm0, %v16499_v43  ;;  %v10292_v12 = vpop.permute.xlu0 %10291 }
0x1725   : > { %v10254_v62 = vpop.permute.xlu1 %10253  ;;  %v9643_v35 = vadd.f32 %v9642_v51, %v9578_v37  ;;  %v10367_v44 = vsel %vm824_vm7, %v10356_v13, %v10292_v12  ;;  %v9671_v63 = vmul.f32 0.2, %v9651_v59  ;;  %v10376_v60 = vsel %vm780_vm3, %v10292_v12, %v10304_v61  ;;  %v10546_v12 = vld [vmem:[#allocation2 + $0xf0] sm:$0xff] }
0x1726   : > { %v12257_v34 = vpop.f32.mrf.mxu0  ;;  %9693 = vrot.lane.b32.xlu1 %v9675_v57, %s17155_s29  ;;  %10409 = vmatprep.subr.bf16.mxu0 %v10367_v44  ;;  %vm9663_vm1 = vcmp.ge.f32.partialorder %v9651_v59, 0.0  ;;  %v16689_v61 = vpack.c.bf16 %v10525_v31, %v10524_v15  ;;  %v16697_v37 = vpack.c.bf16 %v10585_v38, %v10584_v24 }
0x1727   : > { %vm9661_vm5 = vcmp.ge.f32.partialorder %v9643_v35, 0.0  ;;  %v9669_v11 = vmul.f32 0.2, %v9643_v35  ;;  %10410 = vmatpush1.bf16.xpose.msra.mxu0 %v10339_v42  ;;  %v9654_v9 = vadd.f32 %v12257_v34, %v9589_v39  ;;  %v9679_v5 = vsel %vm9663_vm1, %v9651_v59, %v9671_v63 }
0x1728   : > { %v9645_v10 = vpop.f32.mrf.mxu0  ;;  %v10316_v7 = vpop.permute.xlu0 %10315 }
0x1729   : > { %v10278_v40 = vpop.permute.xlu1 %10277  ;;  %v9646_v30 = vadd.f32 %v9645_v10, %v9581_v48  ;;  %v9677_v21 = vsel %vm9661_vm5, %v9643_v35, %v9669_v11  ;;  %v10387_v17 = vsel %vm17249_vm8, %v10376_v60, %v10316_v7  ;;  %v9672_v53 = vmul.f32 0.2, %v9654_v9  ;;  %v10547_v35 = vld [vmem:[#allocation2 + $0xf8] sm:$0xff]  ;;  %vm17257_vm5 = vmmov %vm17249_vm8 }
0x172a   : > { %9697 = vrot.lane.b32.xlu0 %v9677_v21, %s17155_s29  ;;  %10451 = vmatpush1.bf16.xpose.msra.mxu1 %v10387_v17  ;;  %vm9664_vm13 = vcmp.ge.f32.partialorder %v9654_v9, 0.0  ;;  %v16718_v44 = vpack.c.bf16 %v10547_v35, %v10546_v12  ;;  %v10125_v17 = vld [vmem:[#allocation2 + $0x60] sm:$0xff]  ;;  %v10952_v35 = vld [vmem:[#allocation2 + $0x198] sm:$0xff]  ;;  %vm17258_vm1 = vmmov %vm17257_vm5 }
0x172b   : > { %vm9662_vm9 = vcmp.ge.f32.partialorder %v9646_v30, 0.0  ;;  %v9670_v14 = vmul.f32 0.2, %v9646_v30  ;;  %11712 = vmatprep.subr.msk.bf16.mxu1 %vm453_vm0, %v16511_v2  ;;  %v9680_v26 = vsel %vm9664_vm13, %v9654_v9, %v9672_v53  ;;  %v10126_v9 = vld [vmem:[#allocation2 + $0x68] sm:$0xff]  ;;  %v10953_v12 = vld [vmem:[#allocation2 + $0x1a0] sm:$0xff]  ;;  %vm17261_vm13 = vmmov %vm17258_vm1 }
0x172c   : > { %v10266_v25 = vpop.permute.xlu0 %10265 }
0x172d   : > { %v10290_v16 = vpop.permute.xlu1 %10289  ;;  %v9678_v49 = vsel %vm9662_vm9, %v9646_v30, %v9670_v14  ;;  %v10346_v19 = vsel %vm542_vm2, %v10254_v62, %v10266_v25  ;;  %v10133_v14 = vpack.c.bf16 %v10126_v9, %v10125_v17  ;;  %vm17260_vm9 = vmmov %vm17258_vm1 }
0x172e   : > { %9701 = vrot.lane.b32.xlu0 %v9679_v5, %s17155_s29  ;;  %9699 = vrot.lane.b32.xlu1 %v9678_v49, %s17155_s29  ;;  %v10354_v18 = vsel %vm797_vm4, %v10346_v19, %v10278_v40  ;;  %v10964_v19 = vld [vmem:[#allocation2 + $0x199] sm:$0xff] }
0x172f   : > { %v10364_v27 = vsel %vm824_vm7, %v10354_v18, %v10290_v16  ;;  %v10965_v18 = vld [vmem:[#allocation2 + $0x1a1] sm:$0xff] }
0x1730   : > { %10411 = vmatprep.subr.bf16.mxu0 %v10364_v27  ;;  %v10242_v46 = vpop.permute.xlu0 %10241 }
0x1731   : > { %v10314_v36 = vpop.permute.xlu1 %10313  ;;  %v10325_v47 = vsel %vm453_vm0, %v16536_v28, %v10242_v46 }
0x1732   : > { %9703 = vrot.lane.b32.xlu1 %v9680_v26, %s17155_s29  ;;  %10624 = vrot.lane.b32.xlu0 %v16689_v61, %s17144_s30  ;;  %v10336_v23 = vsel %vm815_vm6, %v10325_v47, %v10254_v62 }
0x1733   : > { %10412 = vmatpush1.bf16.xpose.msra.mxu0 %v10336_v23 }
0x1734   : > { %v10302_v29 = vpop.permute.xlu0 %10301 }
0x1735   : > { %v10264_v56 = vpop.permute.xlu1 %10263  ;;  %v10374_v22 = vsel %vm780_vm3, %v10290_v16, %v10302_v29 }
0x1736   : > { %10660 = vrot.lane.b32.xlu1 %v16644_v20, %s17145_s26  ;;  %10684 = vrot.lane.b32.xlu0 %v16697_v37, %s17147_s19  ;;  %v10384_v28 = vsel %vm17252_vm15, %v10374_v22, %v10314_v36 }
0x1737   : > { %10453 = vmatpush1.bf16.xpose.msra.mxu1 %v10384_v28 }
0x1738   : > { %11713 = vmatprep.subr.msk.bf16.mxu1 %vm453_vm0, %v16490_v41  ;;  %v10252_v51 = vpop.permute.xlu0 %10251 }
0x1739   : > { %v10240_v59 = vpop.permute.xlu1 %10239  ;;  %v10344_v57 = vsel %vm542_vm2, %v10252_v51, %v10264_v56 }
0x173a   : > { %10672 = vrot.lane.b32.xlu1 %v16608_v50, %s17143_s16  ;;  %10634 = vrot.lane.b32.xlu0 %v16635_v45, %s17149_s23  ;;  %v10322_v41 = vsel %vm453_vm0, %v16424_v32, %v10240_v59  ;;  %v10969_v59 = vpack.c.bf16 %v10965_v18, %v10964_v19 }
0x173b   : > { %v10333_v42 = vsel %vm815_vm6, %v10322_v41, %v10252_v51 }
0x173c   : > { %v10276_v13 = vpop.permute.xlu0 %10275 }
0x173d   : > { %v10300_v62 = vpop.permute.xlu1 %10299  ;;  %v10352_v48 = vsel %vm797_vm4, %v10344_v57, %v10276_v13 }
0x173e   : > { %10696 = vrot.lane.b32.xlu1 %v16616_v58, %s17146_s14  ;;  %10658 = vrot.lane.b32.xlu0 %v16689_v61, %s17145_s26 }
0x1740   : > { %v10288_v11 = vpop.permute.xlu0 %10287 }
0x1741   : > { %v10250_v34 = vpop.permute.xlu1 %10249  ;;  %v10361_v39 = vsel %vm824_vm7, %v10352_v48, %v10288_v11  ;;  %v10372_v32 = vsel %vm780_vm3, %v10288_v11, %v10300_v62  ;;  %v10957_v48 = vpack.c.bf16 %v10953_v12, %v10952_v35 }
0x1742   : > { %10646 = vrot.lane.b32.xlu1 %v16718_v44, %s17148_s0  ;;  %10670 = vrot.lane.b32.xlu0 %v16659_v55, %s17143_s16 }
0x1743   : > { %10413 = vmatprep.subr.bf16.mxu0 %v10361_v39 }
0x1744   : > { %10414 = vmatpush1.bf16.xpose.msra.mxu0 %v10333_v42  ;;  %v10312_v10 = vpop.permute.xlu0 %10311 }
0x1745   : > { %v10274_v63 = vpop.permute.xlu1 %10273  ;;  %v10381_v40 = vsel %vm17253_vm10, %v10372_v32, %v10312_v10 }
0x1746   : > { %10622 = vrot.lane.b32.xlu1 %v16519_v6, %s17144_s30  ;;  %10694 = vrot.lane.b32.xlu0 %v16644_v20, %s17146_s14 }
0x1747   : > { %10455 = vmatpush1.bf16.xpose.msra.mxu1 %v10381_v40 }
0x1748   : > { %11714 = vmatprep.subr.msk.bf16.mxu1 %vm453_vm0, %v16513_v4  ;;  %v10262_v60 = vpop.permute.xlu0 %10261 }
0x1749   : > { %v10342_v30 = vsel %vm542_vm2, %v10250_v34, %v10262_v60  ;;  %v10286_v7 = vpop.permute.xlu1 %10285 }
0x174a   : > { %10682 = vrot.lane.b32.xlu1 %v16642_v3, %s17147_s19  ;;  %10644 = vrot.lane.b32.xlu0 %v16503_v0, %s17148_s0  ;;  %v10350_v21 = vsel %vm797_vm4, %v10342_v30, %v10274_v63 }
0x174b   : > { %v10358_v20 = vsel %vm824_vm7, %v10350_v21, %v10286_v7 }
0x174c   : > { %10415 = vmatprep.subr.bf16.mxu0 %v10358_v20  ;;  %v10238_v16 = vpop.permute.xlu0 %10237 }
0x174d   : > { %v10319_v4 = vsel %vm453_vm0, %v10133_v14, %v10238_v16 }
0x174e   : > { %10632 = vrot.lane.b32.xlu1 %v16511_v2, %s17149_s23  ;;  %10620 = vrot.lane.b32.xlu0 %v16501_v8, %s17144_s30  ;;  %v10330_v53 = vsel %vm815_vm6, %v10319_v4, %v10250_v34 }
0x174f   : > { %10416 = vmatpush1.bf16.xpose.msra.mxu0 %v10330_v53 }
0x1750   : > { %v10298_v0 = vpop.permute.xlu0 %10297 }
0x1752   : > { %10656 = vrot.lane.b32.xlu1 %v16519_v6, %s17145_s26  ;;  %10680 = vrot.lane.b32.xlu0 %v16718_v44, %s17147_s19  ;;  %v10370_v6 = vsel %vm780_vm3, %v10286_v7, %v10298_v0 }
0x1756   : > { %10668 = vrot.lane.b32.xlu1 %v16635_v45, %s17143_s16  ;;  %10434 = vmatmul.mubr.bf16.vlgmr.msra.gmra.mxu0 %v16640_v52 }
0x1757   : > { %10816 = vmatprep.mubr.bf16.mxu0 %v16488_v54 }
0x1780   : > { %v9690_v2 = vpop.permute.xlu0 %9689 }
0x1781   : > { %9713 = vst.msk [vmem:[#allocation2 + $0x139] sm:$0xff] %vm7696_vm12, %v9690_v2 }
0x1784   : > { %v9692_v8 = vpop.permute.xlu1 %9691  ;;  %v10639_v25 = vpop.permute.xlu0 %10638 }
0x1785   : > { %9714 = vst.msk [vmem:[#allocation2 + $0x141] sm:$0xff] %vm7696_vm12, %v9692_v8 }
0x1788   : > { %v10310_v5 = vpop.permute.xlu1 %10309  ;;  %v10663_v49 = vpop.permute.xlu0 %10662  ;;  %v10598_v45 = vld [vmem:[#allocation2 + $0x139] sm:$0xff] }
0x1789   : > { %v10378_v31 = vsel %vm17254_vm11, %v10370_v6, %v10310_v5  ;;  %v10586_v24 = vld [vmem:[#allocation2 + $0x138] sm:$0xff] }
0x178a   : > { %10457 = vmatpush1.bf16.xpose.msra.mxu1 %v10378_v31 }
0x178c   : > { %v10651_v15 = vpop.permute.xlu1 %10650  ;;  %v16760_v36 = vpop.permute.xlu0 %10674  ;;  %v10610_v27 = vld [vmem:[#allocation2 + $0x13a] sm:$0xff]  ;;  %v10611_v46 = vld [vmem:[#allocation2 + $0x142] sm:$0xff] }
0x178d   : > { %v10599_v26 = vld [vmem:[#allocation2 + $0x141] sm:$0xff]  ;;  %v10731_v38 = vsel %vm542_vm2, %v10639_v25, %v10651_v15  ;;  %v16763_v47 = vpack.c.bf16 %v10611_v46, %v10610_v27 }
0x178e   : > { %v16765_v23 = vpack.c.bf16 %v10599_v26, %v10598_v45  ;;  %v10587_v56 = vld [vmem:[#allocation2 + $0x140] sm:$0xff]  ;;  %v10739_v22 = vsel %vm797_vm4, %v10731_v38, %v10663_v49 }
0x178f   : > { %v16767_v29 = vpack.c.bf16 %v10587_v56, %v10586_v24  ;;  %11716 = vmatprep.subr.msk.bf16.mxu1 %vm453_vm0, %v16763_v47  ;;  %v10750_v28 = vsel %vm824_vm7, %v10739_v22, %v16760_v36 }
0x1790   : > { %10698 = vrot.lane.b32.xlu0 %v16765_v23, %s17146_s14  ;;  %v10627_v51 = vpop.permute.xlu1 %10626  ;;  %10792 = vmatprep.subr.bf16.mxu0 %v10750_v28  ;;  %v10649_v62 = vpop.permute.xlu0 %10648 }
0x1791   : > { %10686 = vrot.lane.b32.xlu1 %v16767_v29, %s17147_s19  ;;  %v10711_v13 = vsel %vm453_vm0, %v16642_v3, %v10627_v51  ;;  %10475 = vmatmul.mubr.bf16.vlgmr.msra.gmra.mxu1 %v16657_v1  ;;  %v10510_v51 = vld [vmem:[#allocation2 + $0xd8] sm:$0xff] }
0x1792   : > { %v10722_v41 = vsel %vm815_vm6, %v10711_v13, %v10639_v25  ;;  %11720 = vmatprep.mubr.msk.bf16.mxu1 %vm453_vm0, %v16499_v43 }
0x1793   : > { %10793 = vmatpush1.bf16.xpose.msra.mxu0 %v10722_v41 }
0x1794   : > { %11064 = vrot.lane.b32.xlu0 %v10969_v59, %s17146_s14  ;;  %v10637_v57 = vpop.permute.xlu1 %10636  ;;  %v9696_v34 = vpop.permute.xlu0 %9695 }
0x1795   : > { %10692 = vrot.lane.b32.xlu1 %v16689_v61, %s17146_s14  ;;  %9716 = vst.msk [vmem:[#allocation2 + $0x159] sm:$0xff] %vm7696_vm12, %v9696_v34  ;;  %v10729_v0 = vsel %vm542_vm2, %v10637_v57, %v10649_v62  ;;  %v10511_v62 = vld [vmem:[#allocation2 + $0xe0] sm:$0xff] }
0x1798   : > { %11000 = vrot.lane.b32.xlu0 %v16763_v47, %s17149_s23  ;;  %v9694_v3 = vpop.permute.xlu1 %9693 }
0x1799   : > { %11052 = vrot.lane.b32.xlu1 %v10957_v48, %s17147_s19  ;;  %9715 = vst.msk [vmem:[#allocation2 + $0x151] sm:$0xff] %vm7696_vm12, %v9694_v3  ;;  %v10517_v48 = vpack.c.bf16 %v10511_v62, %v10510_v51 }
0x179c   : > { %v9698_v43 = vpop.permute.xlu0 %9697  ;;  %v10903_v11 = vld [vmem:[#allocation2 + $0x15a] sm:$0xff] }
0x179d   : > { %9717 = vst.msk [vmem:[#allocation2 + $0x169] sm:$0xff] %vm7696_vm12, %v9698_v43  ;;  %v10891_v63 = vld [vmem:[#allocation2 + $0x159] sm:$0xff] }
0x17a0   : > { %v9700_v39 = vpop.permute.xlu1 %9699  ;;  %v9702_v42 = vpop.permute.xlu0 %9701  ;;  %v10902_v61 = vld [vmem:[#allocation2 + $0x152] sm:$0xff] }
0x17a1   : > { %v10890_v32 = vld [vmem:[#allocation2 + $0x151] sm:$0xff]  ;;  %9718 = vst.msk [vmem:[#allocation2 + $0x171] sm:$0xff] %vm7696_vm12, %v9700_v39  ;;  %9719 = vst.msk [vmem:[#allocation2 + $0x181] sm:$0xff] %vm7696_vm12, %v9702_v42  ;;  %v16795_v10 = vpack.c.bf16 %v10903_v11, %v10902_v61 }
0x17a2   : > { %v16797_v40 = vpack.c.bf16 %v10891_v63, %v10890_v32  ;;  %v10913_v34 = vld [vmem:[#allocation2 + $0x158] sm:$0xff] }
0x17a3   : > { %11002 = vrot.lane.b32.xlu1 %v16795_v10, %s17149_s23 }
0x17a4   : > { %10990 = vrot.lane.b32.xlu0 %v16797_v40, %s17144_s30  ;;  %v9704_v60 = vpop.permute.xlu1 %9703  ;;  %v10625_v9 = vpop.permute.xlu0 %10624  ;;  %v10892_v30 = vld [vmem:[#allocation2 + $0x169] sm:$0xff] }
0x17a5   : > { %9720 = vst.msk [vmem:[#allocation2 + $0x189] sm:$0xff] %vm7696_vm12, %v9704_v60  ;;  %v10708_v2 = vsel %vm453_vm0, %v16718_v44, %v10625_v9  ;;  %v10914_v5 = vld [vmem:[#allocation2 + $0x168] sm:$0xff]  ;;  %vm17255_vm12 = vmmov %vm17249_vm8 }
0x17a6   : > { %v10719_v44 = vsel %vm815_vm6, %v10708_v2, %v10637_v57  ;;  %v10912_v57 = vld [vmem:[#allocation2 + $0x150] sm:$0xff]  ;;  %vm17259_vm8 = vmmov %vm17258_vm1 }
0x17a7   : > { %v16840_v42 = vpack.c.bf16 %v10913_v34, %v10912_v57 }
0x17a8   : > { %v10661_v7 = vpop.permute.xlu1 %10660  ;;  %v10685_v21 = vpop.permute.xlu0 %10684  ;;  %v10904_v17 = vld [vmem:[#allocation2 + $0x16a] sm:$0xff]  ;;  %v10905_v20 = vld [vmem:[#allocation2 + $0x172] sm:$0xff]  ;;  %v10928_v27 = vld [vmem:[#allocation2 + $0x181] sm:$0xff] }
0x17a9   : > { %v10893_v14 = vld [vmem:[#allocation2 + $0x171] sm:$0xff]  ;;  %v16804_v16 = vpack.c.bf16 %v10905_v20, %v10904_v17  ;;  %v10737_v8 = vsel %vm797_vm4, %v10729_v0, %v10661_v7  ;;  %v10916_v59 = vld [vmem:[#allocation2 + $0x180] sm:$0xff]  ;;  %v10509_v7 = vld [vmem:[#allocation2 + $0xc8] sm:$0xff] }
0x17aa   : > { %v16806_v4 = vpack.c.bf16 %v10893_v14, %v10892_v30  ;;  %v10915_v53 = vld [vmem:[#allocation2 + $0x170] sm:$0xff]  ;;  %v10508_v17 = vld [vmem:[#allocation2 + $0xc0] sm:$0xff] }
0x17ab   : > { %11004 = vrot.lane.b32.xlu0 %v16804_v16, %s17149_s23  ;;  %v16818_v45 = vpack.c.bf16 %v10915_v53, %v10914_v5  ;;  %v10516_v14 = vpack.c.bf16 %v10509_v7, %v10508_v17  ;;  %v16897_v5 = vld [vmem:[%s12873_s28 + $0x18] sm:$0xff] }
0x17ac   : > { %10992 = vrot.lane.b32.xlu1 %v16806_v4, %s17144_s30  ;;  %v10673_v25 = vpop.permute.xlu1 %10672  ;;  %v10635_v6 = vpop.permute.xlu0 %10634  ;;  %v10929_v19 = vld [vmem:[#allocation2 + $0x189] sm:$0xff] }
0x17ad   : > { %v10757_v49 = vsel %vm780_vm3, %v10673_v25, %v10685_v21  ;;  %v10747_v31 = vsel %vm824_vm7, %v10737_v8, %v10673_v25  ;;  %v10933_v26 = vpack.c.bf16 %v10929_v19, %v10928_v27  ;;  %v10940_v38 = vld [vmem:[#allocation2 + $0x182] sm:$0xff]  ;;  %v10941_v24 = vld [vmem:[#allocation2 + $0x18a] sm:$0xff] }
0x17ae   : > { %10794 = vmatprep.subr.bf16.mxu0 %v10747_v31  ;;  %v10917_v56 = vld [vmem:[#allocation2 + $0x188] sm:$0xff]  ;;  %v16832_v35 = vpack.c.bf16 %v10941_v24, %v10940_v38 }
0x17af   : > { %11014 = vrot.lane.b32.xlu0 %v16818_v45, %s17148_s0  ;;  %10795 = vmatpush1.bf16.xpose.msra.mxu0 %v10719_v44  ;;  %v10921_v12 = vpack.c.bf16 %v10917_v56, %v10916_v59 }
0x17b0   : > { %11026 = vrot.lane.b32.xlu1 %v16806_v4, %s17145_s26  ;;  %v10697_v18 = vpop.permute.xlu1 %10696  ;;  %v10659_v15 = vpop.permute.xlu0 %10658 }
0x17b1   : > { %v16826_v46 = vsel %vm17255_vm12, %v10757_v49, %v10697_v18 }
0x17b3   : > { %11028 = vrot.lane.b32.xlu0 %v10933_v26, %s17145_s26 }
0x17b4   : > { %11038 = vrot.lane.b32.xlu1 %v16804_v16, %s17143_s16  ;;  %v10647_v22 = vpop.permute.xlu1 %10646  ;;  %v10671_v28 = vpop.permute.xlu0 %10670 }
0x17b5   : > { %v10727_v13 = vsel %vm542_vm2, %v10635_v6, %v10647_v22 }
0x17b6   : > { %v10735_v41 = vsel %vm797_vm4, %v10727_v13, %v10659_v15  ;;  %v10977_v13 = vld [vmem:[#allocation2 + $0x1a2] sm:$0xff] }
0x17b7   : > { %11040 = vrot.lane.b32.xlu0 %v16832_v35, %s17143_s16  ;;  %v10744_v3 = vsel %vm824_vm7, %v10735_v41, %v10671_v28 }
0x17b8   : > { %11016 = vrot.lane.b32.xlu1 %v10921_v12, %s17148_s0  ;;  %v10623_v43 = vpop.permute.xlu1 %10622  ;;  %10796 = vmatprep.subr.bf16.mxu0 %v10744_v3  ;;  %v10695_v39 = vpop.permute.xlu0 %10694 }
0x17b9   : > { %v10705_v11 = vsel %vm453_vm0, %v10517_v48, %v10623_v43 }
0x17ba   : > { %v10716_v61 = vsel %vm815_vm6, %v10705_v11, %v10635_v6  ;;  %v9725_v6 = vld [vmem:[%s17079_s11] sm:$0xff] }
0x17bb   : > { %11024 = vrot.lane.b32.xlu0 %v16797_v40, %s17145_s26  ;;  %10797 = vmatpush1.bf16.xpose.msra.mxu0 %v10716_v61 }
0x17bc   : > { %11012 = vrot.lane.b32.xlu1 %v16840_v42, %s17148_s0  ;;  %v10683_v32 = vpop.permute.xlu1 %10682  ;;  %v10645_v9 = vpop.permute.xlu0 %10644 }
0x17bd   : > { %v10755_v63 = vsel %vm780_vm3, %v10671_v28, %v10683_v32 }
0x17be   : > { %v16849_v60 = vsel %vm17256_vm14, %v10755_v63, %v10695_v39  ;;  %v12592_v63 = vld [vmem:[%s17074_s6 + $0xc] ss:$16 sps:$4 sm:$0xff]  }
0x17bf   : > { %11036 = vrot.lane.b32.xlu0 %v16795_v10, %s17143_s16 }
0x17c0   : > { %10988 = vrot.lane.b32.xlu1 %v16765_v23, %s17144_s30  ;;  %v10633_v30 = vpop.permute.xlu1 %10632  ;;  %v10621_v20 = vpop.permute.xlu0 %10620 }
0x17c1   : > { %v10725_v53 = vsel %vm542_vm2, %v10633_v30, %v10645_v9  ;;  %v10702_v0 = vsel %vm453_vm0, %v10516_v14, %v10621_v20 }
0x17c3   : > { %11050 = vrot.lane.b32.xlu0 %v10921_v12, %s17147_s19 }
0x17c4   : > { %11048 = vrot.lane.b32.xlu1 %v16818_v45, %s17147_s19  ;;  %v10657_v21 = vpop.permute.xlu1 %10656 }
0x17c5   : > { %v10733_v2 = vsel %vm797_vm4, %v10725_v53, %v10657_v21 }
0x17c7   : > { %11060 = vrot.lane.b32.xlu0 %v16806_v4, %s17146_s14  ;;  %v10713_v4 = vsel %vm815_vm6, %v10702_v0, %v10633_v30 }
0x17c8   : > { %11062 = vrot.lane.b32.xlu1 %v10933_v26, %s17146_s14  ;;  %v10669_v8 = vpop.permute.xlu1 %10668  ;;  %v10681_v26 = vpop.permute.xlu0 %10680 }
0x17c9   : > { %v10741_v25 = vsel %vm824_vm7, %v10733_v2, %v10669_v8  ;;  %v10753_v34 = vsel %vm780_vm3, %v10669_v8, %v10681_v26 }
0x17ca   : > { %10798 = vmatprep.subr.bf16.mxu0 %v10741_v25 }
0x17cb   : > { %11010 = vrot.lane.b32.xlu0 %v16767_v29, %s17148_s0  ;;  %10799 = vmatpush1.bf16.xpose.msra.mxu0 %v10713_v4 }
0x17cc   : > { %10998 = vrot.lane.b32.xlu1 %v16625_v33, %s17149_s23 }
0x17cf   : > { %10986 = vrot.lane.b32.xlu0 %v16616_v58, %s17144_s30  ;;  %v9726_v58 = vld [vmem:[%s17079_s11 + $0x8] sm:$0xff] }
0x17d0   : > { %11022 = vrot.lane.b32.xlu1 %v16765_v23, %s17145_s26  ;;  %v16889_v23 = vld [vmem:[%s12873_s28 + $0x10] sm:$0xff] }
0x17d2   : > { %10817 = vmatmul.mubr.bf16.vlgmr.msra.gmra.mxu0 %v16640_v52 }
0x17d3   : > { %11046 = vrot.lane.b32.xlu0 %v16840_v42, %s17147_s19  ;;  %11182 = vmatprep.mubr.bf16.mxu0 %v16488_v54 }
0x17d4   : > { %11034 = vrot.lane.b32.xlu1 %v16763_v47, %s17143_s16  ;;  %v16894_v47 = vld [vmem:[%s12873_s28] sm:$0xff] }
0x17d7   : > { %9993 = vperm.xlu0 %12324, %v9725_v6  }
0x17d8   : > { %11058 = vrot.lane.b32.xlu1 %v16797_v40, %s17146_s14  ;;  %v16906_v40 = vld [vmem:[%s12873_s28 + $0x8] sm:$0xff]  ;;  %s17263_s14 = sshll.u32 %s12867_s21, 5 }
0x17d9   : > { %s16992_s19 = scalar_lea.vmem [#allocation6], %s17263_s14 }
0x17da   : > { %s11270_s8 = sshll.u32 %s16992_s19, 4  ;;  %s17022_s8 = int_to_ptr.vmem [resolvable:$true] %s11270_s8 }
0x17db   : > { %10491 = vrot.lane.b32.xlu0 %v16889_v23, %s17145_s26  ;;  %p12628_p7 = scmp.lt.s32.totalorder %s17022_s8, %s12626_s22 }
0x17dc   : > { %9998 = vperm.xlu1 %12325, %v9726_v58  }
0x17df   : > { %11240 = vrot.lane.b32.xlu0 %v16897_v5, %s17145_s26  ;;  %v16903_v54 = vpop.f32.mrf.mxu0 }
0x17e0   : > { %10489 = vrot.lane.b32.xlu1 %v16894_v47, %s17145_s26 }
0x17e1   : > { %v10071_v49 = vpop.f32.mrf.mxu0 }
0x17e3   : > { %v16910_v31 = vpop.f32.mrf.mxu1  ;;  %v16912_v19 = vpop.f32.mrf.mxu0 }
0x17e4   : > { %11238 = vrot.lane.b32.xlu1 %v16906_v40, %s17145_s26 }
0x17e5   : > { %v10112_v44 = vpop.f32.mrf.mxu1  ;;  %v10074_v18 = vpop.f32.mrf.mxu0 }
0x17e7   : > { %v16914_v15 = vpop.f32.mrf.mxu1 }
0x17e9   : > { %v10115_v27 = vpop.f32.mrf.mxu1 }
0x1802   : > { %v10699_v38 = vpop.permute.xlu0 %10698 }
0x1803   : > { %v10687_v24 = vpop.permute.xlu1 %10686 }
0x1804   : > { %v10759_v56 = vsel %vm780_vm3, %v16760_v36, %v10687_v24  ;;  %v10976_v36 = vld [vmem:[#allocation2 + $0x19a] sm:$0xff] }
0x1805   : > { %v10770_v22 = vsel %vm17257_vm5, %v10759_v56, %v10699_v38  ;;  %v10981_v57 = vpack.c.bf16 %v10977_v13, %v10976_v36 }
0x1806   : > { %10834 = vmatpush1.bf16.xpose.msra.mxu1 %v10770_v22  ;;  %v11065_v59 = vpop.permute.xlu0 %11064 }
0x1807   : > { %11717 = vmatprep.subr.msk.bf16.mxu1 %vm453_vm0, %v16625_v33  ;;  %v10693_v28 = vpop.permute.xlu1 %10692 }
0x1808   : > { %v10761_v48 = vsel %vm17258_vm1, %v10753_v34, %v10693_v28 }
0x180a   : > { %v16924_v62 = vpop.permute.xlu0 %11000 }
0x180b   : > { %v11053_v51 = vpop.permute.xlu1 %11052 }
0x180e   : > { %10836 = vmatpush1.bf16.xpose.msra.mxu1 %v16826_v46 }
0x180f   : > { %11718 = vmatprep.subr.msk.bf16.mxu1 %vm453_vm0, %v16608_v50 }
0x1815   : > { %v11003_v33 = vpop.permute.xlu1 %11002 }
0x1816   : > { %10838 = vmatpush1.bf16.xpose.msra.mxu1 %v16849_v60  ;;  %v16929_v12 = vpop.f32.mrf.mxu0  ;;  %v10991_v41 = vpop.permute.xlu0 %10990 }
0x1817   : > { %11719 = vmatprep.subr.msk.bf16.mxu1 %vm453_vm0, %v16659_v55  ;;  %v11074_v58 = vsel %vm453_vm0, %v16840_v42, %v10991_v41 }
0x1818   : > { %v10437_v46 = vpop.f32.mrf.mxu0 }
0x181a   : > { %v16932_v50 = vpop.f32.mrf.mxu0 }
0x181c   : > { %v10440_v55 = vpop.f32.mrf.mxu0 }
0x181d   : > { %v11005_v43 = vpop.permute.xlu0 %11004 }
0x181e   : > { %10840 = vmatpush1.bf16.xpose.msra.mxu1 %v10761_v48  ;;  %v10993_v3 = vpop.permute.xlu1 %10992 }
0x181f   : > { %11721 = vmatprep.subr.msk.bf16.mxu1 %vm453_vm0, %v10981_v57  ;;  %v11077_v30 = vsel %vm453_vm0, %v16818_v45, %v10993_v3 }
0x1820   : > { %v11088_v0 = vsel %vm815_vm6, %v11077_v30, %v11005_v43 }
0x1821   : > { %v11015_v39 = vpop.permute.xlu0 %11014 }
0x1822   : > { %v11027_v11 = vpop.permute.xlu1 %11026  ;;  %v11095_v7 = vsel %vm542_vm2, %v11003_v33, %v11015_v39 }
0x1823   : > { %v11103_v8 = vsel %vm797_vm4, %v11095_v7, %v11027_v11 }
0x1825   : > { %10858 = vmatmul.mubr.bf16.vlgmr.msra.gmra.mxu1 %v16657_v1  ;;  %v11029_v32 = vpop.permute.xlu0 %11028 }
0x1826   : > { %v11039_v61 = vpop.permute.xlu1 %11038  ;;  %11725 = vmatprep.mubr.msk.bf16.mxu1 %vm453_vm0, %v12592_v63 }
0x1827   : > { %v11113_v25 = vsel %vm824_vm7, %v11103_v8, %v11039_v61 }
0x1829   : > { %v11041_v9 = vpop.permute.xlu0 %11040 }
0x182a   : > { %v11017_v60 = vpop.permute.xlu1 %11016  ;;  %v11125_v17 = vsel %vm780_vm3, %v11041_v9, %v11053_v51 }
0x182b   : > { %v11097_v21 = vsel %vm542_vm2, %v11005_v43, %v11017_v60  ;;  %v11136_v20 = vsel %vm17259_vm8, %v11125_v17, %v11065_v59 }
0x182c   : > { %v11105_v14 = vsel %vm797_vm4, %v11097_v21, %v11029_v32  ;;  %11200 = vmatpush1.bf16.xpose.msra.mxu1 %v11136_v20 }
0x182d   : > { %v11116_v53 = vsel %vm824_vm7, %v11105_v14, %v11041_v9  ;;  %11722 = vmatprep.subr.msk.bf16.mxu1 %vm453_vm0, %v16832_v35  ;;  %v11025_v45 = vpop.permute.xlu0 %11024  ;;  %v11085_v35 = vsel %vm815_vm6, %v11074_v58, %v11003_v33 }
0x182e   : > { %v11013_v2 = vpop.permute.xlu1 %11012  ;;  %11158 = vmatprep.subr.bf16.mxu0 %v11116_v53 }
0x182f   : > { %11159 = vmatpush1.bf16.xpose.msra.mxu0 %v11088_v0  ;;  %v11093_v49 = vsel %vm542_vm2, %v16924_v62, %v11013_v2 }
0x1830   : > { %11160 = vmatprep.subr.bf16.mxu0 %v11113_v25  ;;  %v11101_v44 = vsel %vm797_vm4, %v11093_v49, %v11025_v45 }
0x1831   : > { %v11037_v6 = vpop.permute.xlu0 %11036 }
0x1832   : > { %v10989_v4 = vpop.permute.xlu1 %10988  ;;  %v11110_v26 = vsel %vm824_vm7, %v11101_v44, %v11037_v6 }
0x1833   : > { %v11071_v42 = vsel %vm453_vm0, %v16767_v29, %v10989_v4 }
0x1834   : > { %v11082_v51 = vsel %vm815_vm6, %v11071_v42, %v16924_v62 }
0x1835   : > { %v11051_v27 = vpop.permute.xlu0 %11050 }
0x1836   : > { %v11049_v18 = vpop.permute.xlu1 %11048  ;;  %v11123_v38 = vsel %vm780_vm3, %v11039_v61, %v11051_v27 }
0x1837   : > { %11161 = vmatpush1.bf16.xpose.msra.mxu0 %v11085_v35  ;;  %v11121_v36 = vsel %vm780_vm3, %v11037_v6, %v11049_v18 }
0x1838   : > { %11162 = vmatprep.subr.bf16.mxu0 %v11110_v26 }
0x1839   : > { %v11061_v56 = vpop.permute.xlu0 %11060 }
0x183a   : > { %v11063_v24 = vpop.permute.xlu1 %11062  ;;  %v11130_v41 = vsel %vm17261_vm13, %v11121_v36, %v11061_v56 }
0x183b   : > { %v11133_v22 = vsel %vm17260_vm9, %v11123_v38, %v11063_v24 }
0x183c   : > { %11202 = vmatpush1.bf16.xpose.msra.mxu1 %v11133_v22 }
0x183d   : > { %11723 = vmatprep.subr.msk.bf16.mxu1 %vm453_vm0, %v16804_v16  ;;  %v11011_v59 = vpop.permute.xlu0 %11010 }
0x183e   : > { %v10999_v28 = vpop.permute.xlu1 %10998 }
0x183f   : > { %11163 = vmatpush1.bf16.xpose.msra.mxu0 %v11082_v51  ;;  %v11091_v29 = vsel %vm542_vm2, %v10999_v28, %v11011_v59  ;;  %vm17262_vm2 = vmmov %vm17258_vm1 }
0x1841   : > { %v10987_v33 = vpop.permute.xlu0 %10986 }
0x1842   : > { %v11023_v13 = vpop.permute.xlu1 %11022  ;;  %v11068_v46 = vsel %vm453_vm0, %v16697_v37, %v10987_v33 }
0x1843   : > { %v11099_v16 = vsel %vm797_vm4, %v11091_v29, %v11023_v13  ;;  %v11079_v48 = vsel %vm815_vm6, %v11068_v46, %v10999_v28 }
0x1844   : > { %11204 = vmatpush1.bf16.xpose.msra.mxu1 %v11130_v41 }
0x1845   : > { %11724 = vmatprep.subr.msk.bf16.mxu1 %vm453_vm0, %v16795_v10  ;;  %v11047_v62 = vpop.permute.xlu0 %11046  ;;  %vm10505_vm0 = vcmask 1048064  }
0x1846   : > { %v11035_v57 = vpop.permute.xlu1 %11034 }
0x1847   : > { %v11107_v34 = vsel %vm824_vm7, %v11099_v16, %v11035_v57  ;;  %v11119_v3 = vsel %vm780_vm3, %v11035_v57, %v11047_v62 }
0x1848   : > { %11164 = vmatprep.subr.bf16.mxu0 %v11107_v34 }
0x1849   : > { %11165 = vmatpush1.bf16.xpose.msra.mxu0 %v11079_v48 }
0x184a   : > { %v11059_v43 = vpop.permute.xlu1 %11058 }
0x184b   : > { %v11127_v55 = vsel %vm17262_vm2, %v11119_v3, %v11059_v43 }
0x184c   : > { %11206 = vmatpush1.bf16.xpose.msra.mxu1 %v11127_v55 }
0x1850   : > { %11183 = vmatmul.mubr.bf16.vlgmr.msra.gmra.mxu0 %v16640_v52 }
0x1851   : > { %v10476_v37 = vpop.f32.mrf.mxu1 }
0x1852   : > { %v9994_v10 = vpop.permute.xlu0 %9993 }
0x1853   : > { %11224 = vmatmul.mubr.bf16.vlgmr.msra.gmra.mxu1 %v16657_v1  ;;  %v10070_v11 = vadd.f32 %v16903_v54, %v9994_v10  ;;  %v10436_v39 = vadd.f32 %v16929_v12, %v9994_v10  ;;  %v10478_v61 = vpop.f32.mrf.mxu1 }
0x1855   : > { %v10111_v32 = vadd.f32 %v16910_v31, %v10070_v11  ;;  %v10477_v63 = vadd.f32 %v10476_v37, %v10436_v39  ;;  %v10479_v60 = vpop.f32.mrf.mxu1 }
0x1856   : > { %v10492_v14 = vpop.permute.xlu0 %10491 }
0x1857   : > { %v9999_v9 = vpop.permute.xlu1 %9998  ;;  %v10119_v7 = vmul.f32 0.2, %v10111_v32  ;;  %v10485_v21 = vmul.f32 0.2, %v10477_v63  ;;  %v10481_v17 = vpop.f32.mrf.mxu1 }
0x1858   : > { %v10073_v30 = vadd.f32 %v16912_v19, %v9999_v9  ;;  %v10439_v52 = vadd.f32 %v16932_v50, %v9999_v9 }
0x1859   : > { %v10121_v54 = vadd.f32 %v16894_v47, %v10119_v7 }
0x185a   : > { %v10114_v1 = vadd.f32 %v16914_v15, %v10073_v30  ;;  %v10480_v20 = vadd.f32 %v10479_v60, %v10439_v52  ;;  %v11241_v25 = vpop.permute.xlu0 %11240 }
0x185b   : > { %v10490_v12 = vpop.permute.xlu1 %10489  ;;  %10123 = vst.msk [vmem:[%s16992_s19] sm:$0xff] %vm797_vm4, %v10121_v54 }
0x185c   : > { %v10120_v53 = vmul.f32 0.2, %v10114_v1  ;;  %v10486_v31 = vmul.f32 0.2, %v10480_v20  ;;  %v10495_v0 = vadd.f32 %v10490_v12, %v10485_v21 }
0x185e   : > { %v10122_v19 = vadd.f32 %v16889_v23, %v10120_v53  ;;  %v10496_v15 = vadd.f32 %v10492_v14, %v10486_v31  ;;  %10499 = vrot.lane.b32.xlu1 %v10495_v0, %s17145_s26 }
0x185f   : > { %v11239_v8 = vpop.permute.xlu1 %11238 }
0x1860   : > { %10501 = vrot.lane.b32.xlu0 %v10496_v15, %s17145_s26  ;;  %10124 = vst.msk [vmem:[%s16992_s19 + $0x10] sm:$0xff] %vm797_vm4, %v10122_v19 }
0x1892   : > { %v10818_v47 = vpop.f32.mrf.mxu0 }
0x1893   : > { %v10819_v6 = vadd.f32 %v10818_v47, %v9994_v10 }
0x1894   : > { %v10820_v50 = vpop.f32.mrf.mxu0 }
0x1896   : > { %v10821_v2 = vpop.f32.mrf.mxu0 }
0x1897   : > { %v10822_v44 = vadd.f32 %v10821_v2, %v9999_v9 }
0x1898   : > { %v10823_v45 = vpop.f32.mrf.mxu0 }
0x18d0   : > { %v10500_v4 = vpop.permute.xlu1 %10499 }
0x18d1   : > { %10506 = vst.msk [vmem:[%s16992_s19] sm:$0xff] %vm10505_vm0, %v10500_v4 }
0x18d2   : > { %v10502_v23 = vpop.permute.xlu0 %10501 }
0x18d3   : > { %10507 = vst.msk [vmem:[%s16992_s19 + $0x10] sm:$0xff] %vm10505_vm0, %v10502_v23 }
0x18e5   : > { %v10859_v58 = vpop.f32.mrf.mxu1 }
0x18e6   : > { %v10860_v49 = vadd.f32 %v10859_v58, %v10819_v6 }
0x18e7   : > { %v10861_v18 = vpop.f32.mrf.mxu1 }
0x18e8   : > { %v10868_v27 = vmul.f32 0.2, %v10860_v49 }
0x18e9   : > { %v10862_v35 = vpop.f32.mrf.mxu1 }
0x18ea   : > { %v10870_v26 = vadd.f32 %v16906_v40, %v10868_v27  ;;  %v10863_v38 = vadd.f32 %v10862_v35, %v10822_v44 }
0x18eb   : > { %v10864_v24 = vpop.f32.mrf.mxu1 }
0x18ec   : > { %10872 = vst.msk [vmem:[%s16992_s19 + $0x8] sm:$0xff] %vm797_vm4, %v10870_v26  ;;  %v10869_v56 = vmul.f32 0.2, %v10863_v38 }
0x18ee   : > { %v10871_v42 = vadd.f32 %v16897_v5, %v10869_v56 }
0x18f0   : > { %10873 = vst.msk [vmem:[%s16992_s19 + $0x18] sm:$0xff] %vm797_vm4, %v10871_v42 }
0x1910   : > { %v11184_v22 = vpop.f32.mrf.mxu0 }
0x1911   : > { %v11185_v28 = vadd.f32 %v11184_v22, %v9994_v10 }
0x1912   : > { %v11186_v59 = vpop.f32.mrf.mxu0 }
0x1913   : > { %v11225_v51 = vpop.f32.mrf.mxu1 }
0x1914   : > { %v11226_v36 = vadd.f32 %v11225_v51, %v11185_v28  ;;  %v11187_v13 = vpop.f32.mrf.mxu0 }
0x1915   : > { %v11188_v33 = vadd.f32 %v11187_v13, %v9999_v9  ;;  %v11227_v40 = vpop.f32.mrf.mxu1 }
0x1916   : > { %v11234_v41 = vmul.f32 0.2, %v11226_v36  ;;  %v11189_v29 = vpop.f32.mrf.mxu0 }
0x1917   : > { %v11228_v46 = vpop.f32.mrf.mxu1 }
0x1918   : > { %v11244_v16 = vadd.f32 %v11239_v8, %v11234_v41  ;;  %v11229_v5 = vadd.f32 %v11228_v46, %v11188_v33 }
0x1919   : > { %v11230_v57 = vpop.f32.mrf.mxu1 }
0x191a   : > { %v11235_v62 = vmul.f32 0.2, %v11229_v5  ;;  %11248 = vrot.lane.b32.xlu1 %v11244_v16, %s17145_s26 }
0x191c   : > { %v11245_v34 = vadd.f32 %v11241_v25, %v11235_v62 }
0x191e   : > { %11250 = vrot.lane.b32.xlu0 %v11245_v34, %s17145_s26  ;;  %s12621_s26 = scalar_lea.vmem %s17022_s8, 512 }
0x191f   : > { %p12622_p12 = scmp.ne.s32.totalorder %s17022_s8, %s12621_s26  ;;  %p12629_p8 = scmp.lt.s32.totalorder %s12627_s24, %s12621_s26 }
0x1921   : > { %p12623_p4 = pnand %p12622_p12, %p17265_p13  ;;  %p12630_p10 = por %p12629_p8, %p12628_p7 }
0x1923   : > { %p12624_p5 = pneg %p12623_p4 }
0x1925   : > { %p12631_p0 = pnand %p12630_p10, %p12624_p5 }
0x198c   : > { %v11249_v48 = vpop.permute.xlu1 %11248 }
0x198d   : > { %11254 = vst.msk [vmem:[%s16992_s19 + $0x8] sm:$0xff] %vm10505_vm0, %v11249_v48 }
0x1990   : > { %v11251_v3 = vpop.permute.xlu0 %11250 }
0x1991   : > { %11255 = vst.msk [vmem:[%s16992_s19 + $0x18] sm:$0xff] %vm10505_vm0, %v11251_v3 }
0x1992   : > { %12634 = shalt.err (!%p12631_p0)
}
0x1993   : > { %s12635_s7 = scalar_lea.hbm %s17020_s13, 512  ;;  %s12639_s23 = scalar_lea.hbm %s17264_s17, 1024 }
0x1994   : > { %p12636_p2 = scmp.ne.s32.totalorder %s17020_s13, %s12635_s7  ;;  %p12640_p3 = scmp.lt.s32.totalorder %s17020_s13, %s17264_s17 }
0x1995   : > { %p12641_p6 = scmp.lt.s32.totalorder %s12639_s23, %s12635_s7 }
0x1996   : > { %p12637_p9 = pnand %p12636_p2, %p17265_p13 }
0x1997   : > { %p12642_p11 = por %p12641_p6, %p12640_p3 }
0x1998   : > { %p12638_p1 = pneg %p12637_p9 }
0x199a   : > { %p12643_p12 = pnand %p12642_p11, %p12638_p1 }
0x199c   : > { %12646 = shalt.err (!%p12643_p12)
}
0x199d   : > { %s12704_s18 = smov 256  }
0x199e   : > { %12264 = dma.vmem_to_hbm [thread:$0]  (%p17265_p13), %s17022_s8, 512, %s17020_s13, %s11257_s27, %s12704_s18, %s12704_s18, %s17148_s0  }
0x199f PF: > { %s17266_s28 = sld [smem:[#allocation9_spill]] }
0x19a0   : > { %s17267_s16 = sld [smem:[#allocation15_spill]] }
0x19a1   : > { %s17268_s14 = sld [smem:[#allocation12_spill]] }
0x19a5   : > { %s11285_s19 = sand.u32 1, %s17266_s28  }
0x19a6   : > { %p17269_p4 = scmp.ne.s32.totalorder %s17267_s16, 0  ;;  %s11286_s3 = scalar_lea.sflag [#allocation5], %s11285_s19 }
0x19a7   : > { %p17270_p5 = scmp.ge.s32.totalorder %s17268_s14, 2 }
0x19a9   : > { %p12271_p7 = pnand %p17270_p5, %p17269_p4 }
0x19ab   : > { %p12272_p8 = pneg %p12271_p7 }
0x19ad   : > { %12668 = dma.done.wait (%p12272_p8), %s11286_s3, 512  }
0x19ae   : > { %12670 = vsyncadd (%p12272_p8), %s11286_s3, 4294966784  ;;  %s17271_s24 = sld [smem:[#allocation13_spill]] }
0x19af   : > { %s17272_s21 = sld [smem:[#allocation10_spill]] }
0x19b0   : > { %s17273_s22 = sld [smem:[#allocation11_spill]] }
0x19b1   : > { %s17274_s23 = sld [smem:[#allocation14_spill]] }
0x19b4   : > { %p25_p10 = scmp.ge.s32.totalorder %s17271_s24, 4  }
0x19b6   :  { %27 = sbr.rel (!%p25_p10) target bundleno = 13 (0xd), region = 127 }
0x19bb   :  { %11291 = vsyncpa [#allocation4], 1 }
0x19bc   :  { %11293 = vsyncpa [#allocation4 + $0x1], 1 }
0x19bd   :  { %11294 = vsyncpa [#allocation5], 1 }
0x19be   :  { %11296 = vsyncpa [#allocation5 + $0x1], 1 }

</bundles_post_ra>
